<compile_context>
chip_gen: v7x
topology: tpu7x:2x2x1
jax: 0.10.0
libtpu: 0.0.40
codegen_flags: <defaults>
</compile_context>

<pallas_src>
import functools

import jax
import jax.numpy as jnp
import numpy as np
from jax.experimental import pallas as pl
from jax.experimental.pallas import tpu as pltpu

NGF = 64
NUM_CHANNELS = 3
NUM_Z = 100
BN_EPS = 1e-5


# ----------------------------------------------------------------------------
# Pallas kernel: per-(phase, column-tile) matmul with fused epilogue
# ----------------------------------------------------------------------------
def _mm_kernel(a_ref, b_ref, y_ref, *stats_refs, activation, with_stats):
    y = jnp.dot(a_ref[0], b_ref[0], preferred_element_type=jnp.float32)
    if activation == "tanh":
        y_ref[0] = jnp.tanh(y)
    else:
        y_ref[0] = y
    if with_stats:
        s_ref, ss_ref = stats_refs
        s_ref[0] = jnp.sum(y, axis=0, keepdims=True)          # column sums
        ss_ref[0] = jnp.sum(y * y, axis=0, keepdims=True)      # column sum-sq


def phase_matmul(a, b, *, activation="none", with_stats=False, col_tiles=1):
    """y[p] = act(a[p] @ b[p]), p = phase.

    a: (P, M, K) bf16, b: (P, K, C) bf16.  Each grid step holds the full
    (M, K) x (K, tn) problem in VMEM (no K-split, no accumulator), grid is
    (P, col_tiles) and fully "parallel".  If with_stats, also emits per-phase
    (1, C) column sums and sums-of-squares of the f32 pre-activation so the
    BatchNorm statistics pass is fused into the matmul.
    """
    P, M, K = a.shape
    Pb, Kb, C = b.shape
    assert (P, K) == (Pb, Kb), (a.shape, b.shape)
    assert M % 8 == 0 and K % 128 == 0, (M, K)
    assert C % (128 * col_tiles) == 0, (C, col_tiles)
    tn = C // col_tiles

    in_specs = [
        pl.BlockSpec((1, M, K), lambda p, j: (p, 0, 0)),
        pl.BlockSpec((1, K, tn), lambda p, j: (p, 0, j)),
    ]
    y_shape = jax.ShapeDtypeStruct((P, M, C), jnp.float32)
    y_spec = pl.BlockSpec((1, M, tn), lambda p, j: (p, 0, j))
    if with_stats:
        stat_shape = jax.ShapeDtypeStruct((P, 1, C), jnp.float32)
        stat_spec = pl.BlockSpec((1, 1, tn), lambda p, j: (p, 0, j))
        out_shape = (y_shape, stat_shape, stat_shape)
        out_specs = (y_spec, stat_spec, stat_spec)
    else:
        out_shape = y_shape
        out_specs = y_spec

    kernel = functools.partial(_mm_kernel, activation=activation,
                               with_stats=with_stats)
    return pl.pallas_call(
        kernel,
        out_shape=out_shape,
        grid_spec=pltpu.PrefetchScalarGridSpec(
            num_scalar_prefetch=0,
            grid=(P, col_tiles),
            in_specs=in_specs,
            out_specs=out_specs,
        ),
        compiler_params=pltpu.CompilerParams(
            dimension_semantics=("parallel", "parallel")),
    )(a, b)


# ----------------------------------------------------------------------------
# XLA glue: BN finalize, normalize+gather (fused by XLA), pixel shuffle
# ----------------------------------------------------------------------------
def bn_scale_shift(s, ss, m_total, gamma, beta, n_channels, eps=BN_EPS):
    """s/ss: per-phase column sums / sums-of-squares with channel fastest."""
    sums = s.reshape(-1, n_channels).sum(axis=0)
    sumsq = ss.reshape(-1, n_channels).sum(axis=0)
    mean = sums / m_total
    # One-pass (biased) variance in f32; clamp guards tiny negative values.
    # TODO(synk): switch to a two-pass variance if activation magnitudes grow.
    var = jnp.maximum(sumsq / m_total - mean * mean, 0.0)
    scale = gamma.reshape(-1) * jax.lax.rsqrt(var + eps)
    shift = beta.reshape(-1) - mean * scale
    return scale.reshape(1, 1, 1, -1), shift.reshape(1, 1, 1, -1)


def normalize_relu(h, scale, shift):
    """BN-apply + ReLU; XLA fuses this into the following im2col gather."""
    return jnp.maximum(h * scale + shift, 0.0)


def upconv_A(hn, dtype=jnp.bfloat16):
    """Sub-pixel im2col for ConvTranspose2d(k=4, s=2, p=1).

    hn: (N, H, W, Ci) normalized activation (NHWC, f32).
    Returns (4, N*H*W, 4*Ci) in `dtype`; phase p = py*2+px fills output
    pixels (2j+py, 2i+px).
    """
    N, H, W, Ci = hn.shape
    a_list = []
    for py in (0, 1):
        for px in (0, 1):
            hp = jnp.pad(hn, ((0, 0), (1 - py, py), (1 - px, px), (0, 0)))
            taps = [hp[:, dy:dy + H, dx:dx + W, :]
                    for dy in (0, 1) for dx in (0, 1)]
            ap = jnp.stack(taps, axis=3)             # (N, H, W, 4, Ci)
            a_list.append(ap.reshape(N * H * W, 4 * Ci))
    return jnp.stack(a_list).astype(dtype)


def pack_B(w, cop, dtype=jnp.bfloat16):
    """w: (Ci, Co, 4, 4) ConvTranspose2d weight -> (4, 4*Ci, cop) tap-major
    per-phase weight; output channels zero-padded to `cop` (lane-dense)."""
    Ci, Co, Kh, Kw = w.shape
    assert (Kh, Kw) == (4, 4), w.shape
    b_list = []
    for py in (0, 1):
        for px in (0, 1):
            taps = [w[:, :, 3 - py - 2 * dy, 3 - px - 2 * dx]
                    for dy in (0, 1) for dx in (0, 1)]
            b_list.append(jnp.stack(taps, axis=0).reshape(4 * Ci, Co))
    b = jnp.stack(b_list)
    if cop > Co:
        b = jnp.pad(b, ((0, 0), (0, 0), (0, cop - Co)))
    return b.astype(dtype)


def pixel_shuffle(y, N, H, W, C):
    """y: (4, N*H*W, C), phase-major (py*2+px) -> (N, 2H, 2W, C) NHWC."""
    y = y.reshape(2, 2, N, H, W, C)                  # (py, px, n, j, i, c)
    y = y.transpose(2, 3, 0, 4, 1, 5)                # (n, j, py, i, px, c)
    return y.reshape(N, 2 * H, 2 * W, C)


# ----------------------------------------------------------------------------
# Generator forward (matches the nn.Sequential of the PyTorch module)
# ----------------------------------------------------------------------------
def generator_forward(x, params):
    N = x.shape[0]

    # ---- layer 1: ConvTranspose2d(nz, 8*ngf, 4, 1, 0) on a 1x1 input is a
    # plain matmul.  Rows padded to 16 (bf16 sublane packing), K padded to
    # 128; output columns ordered (kh, kw, co) so the 4x4 reshape is free.
    w1 = params["w1"]
    nz, c1 = w1.shape[0], w1.shape[1]
    mp = max(16, -(-N // 16) * 16)
    z = jnp.zeros((1, mp, 128), jnp.float32).at[0, :N, :nz].set(
        x.reshape(N, nz)).astype(jnp.bfloat16)
    b1 = jnp.zeros((1, 128, 16 * c1), jnp.float32).at[0, :nz, :].set(
        w1.transpose(0, 2, 3, 1).reshape(nz, 16 * c1)).astype(jnp.bfloat16)
    y1, s1, ss1 = phase_matmul(z, b1, with_stats=True, col_tiles=2)
    sc, sh = bn_scale_shift(s1, ss1, N * 16, params["g1"], params["b1"], c1)
    h = y1[0, :N].reshape(N, 4, 4, c1)               # raw pre-BN, NHWC

    # ---- layers 2-5: ConvTranspose2d(4, 2, 1) [+ BatchNorm2d + ReLU | Tanh]
    layers = (("w2", "g2", "b2", False), ("w3", "g3", "b3", False),
              ("w4", "g4", "b4", False), ("w5", None, None, True))
    for wn, gn, bnn, is_last in layers:
        w = params[wn]
        co = w.shape[1]
        cop = max(co, 128)                           # lane-dense output cols
        H, W = h.shape[1], h.shape[2]

        hn = normalize_relu(h, sc, sh)               # prev layer's BN + ReLU
        A = upconv_A(hn)                             # (4, N*H*W, 4*Ci) bf16
        B = pack_B(w, cop)                           # (4, 4*Ci, cop)   bf16

        if is_last:
            y = phase_matmul(A, B, activation="tanh")
            out = pixel_shuffle(y[..., :co], N, H, W, co)   # (N, 64, 64, 3)
            return out.transpose(0, 3, 1, 2)                 # NCHW boundary

        y, s, ss = phase_matmul(A, B, with_stats=True)
        sc, sh = bn_scale_shift(s[..., :co], ss[..., :co], 4 * N * H * W,
                                params[gn], params[bnn], co)
        h = pixel_shuffle(y, N, H, W, cop)[..., :co]

    raise AssertionError("unreachable")


# ----------------------------------------------------------------------------
# Pure-JAX reference (same math, XLA ops) for verification
# ----------------------------------------------------------------------------
def generator_reference(x, params):
    def convt(h, w, stride, padding):
        wc = jnp.flip(w, (2, 3)).transpose(1, 0, 2, 3)   # (Co, Ci, K, K)
        pad = w.shape[2] - 1 - padding
        return jax.lax.conv_general_dilated(
            h, wc, window_strides=(1, 1),
            padding=[(pad, pad), (pad, pad)],
            lhs_dilation=(stride, stride),
            dimension_numbers=("NCHW", "OIHW", "NCHW"))

    def bnr(h, gamma, beta):
        mean = h.mean(axis=(0, 2, 3), keepdims=True)
        var = ((h - mean) ** 2).mean(axis=(0, 2, 3), keepdims=True)
        g = gamma.reshape(1, -1, 1, 1)
        b = beta.reshape(1, -1, 1, 1)
        return jnp.maximum((h - mean) * jax.lax.rsqrt(var + BN_EPS) * g + b,
                           0.0)

    h = bnr(convt(x, params["w1"], 1, 0), params["g1"], params["b1"])
    h = bnr(convt(h, params["w2"], 2, 1), params["g2"], params["b2"])
    h = bnr(convt(h, params["w3"], 2, 1), params["g3"], params["b3"])
    h = bnr(convt(h, params["w4"], 2, 1), params["g4"], params["b4"])
    return jnp.tanh(convt(h, params["w5"], 2, 1))


# ----------------------------------------------------------------------------
def init_params(key):
    ks = jax.random.split(key, 16)
    w = lambda k, s: (0.05 * jax.random.normal(k, s)).astype(jnp.float32)
    g = lambda k, c: (1.0 + 0.1 * jax.random.normal(k, (1, c))).astype(jnp.float32)
    b = lambda k, c: (0.1 * jax.random.normal(k, (1, c))).astype(jnp.float32)
    return {
        "w1": w(ks[0], (NUM_Z, NGF * 8, 4, 4)),
        "w2": w(ks[1], (NGF * 8, NGF * 4, 4, 4)),
        "w3": w(ks[2], (NGF * 4, NGF * 2, 4, 4)),
        "w4": w(ks[3], (NGF * 2, NGF, 4, 4)),
        "w5": w(ks[4], (NGF, NUM_CHANNELS, 4, 4)),
        "g1": g(ks[5], NGF * 8), "b1": b(ks[6], NGF * 8),
        "g2": g(ks[7], NGF * 4), "b2": b(ks[8], NGF * 4),
        "g3": g(ks[9], NGF * 2), "b3": b(ks[10], NGF * 2),
        "g4": g(ks[11], NGF), "b4": b(ks[12], NGF),
    }


if __name__ == "__main__":
    key = jax.random.PRNGKey(0)
    k_param, k_x = jax.random.split(key)
    params = init_params(k_param)
    x = jax.random.normal(k_x, (2, NUM_Z, 1, 1), dtype=jnp.float32)  # latent z

    fwd = jax.jit(generator_forward)
    out = jax.block_until_ready(fwd(x, params))
    assert out.shape == (2, NUM_CHANNELS, 64, 64), out.shape

    ref = jax.block_until_ready(jax.jit(generator_reference)(x, params))
    # bf16 MXU operands vs f32 reference -> looser tolerance than pure f32.
    np.testing.assert_allclose(np.asarray(out), np.asarray(ref),
                               atol=6e-2, rtol=6e-2)
    print("KERNEL_OK")
</pallas_src>

<mosaic_0001>
module attributes {stable_mosaic.version = 11 : i64} {
  func.func @_mm_kernel(%arg0: i32, %arg1: i32, %arg2: memref<1x16x128xbf16, #tpu.memory_space<vmem>>, %arg3: memref<1x128x4096xbf16, #tpu.memory_space<vmem>>, %arg4: memref<1x16x4096xf32, #tpu.memory_space<vmem>>, %arg5: memref<1x1x4096xf32, #tpu.memory_space<vmem>>, %arg6: memref<1x1x4096xf32, #tpu.memory_space<vmem>>) attributes {dimension_semantics = [#tpu.dimension_semantics<parallel>, #tpu.dimension_semantics<parallel>], iteration_bounds = array<i64: 1, 2>, scalar_prefetch = 0 : i64, scratch_operands = 0 : i64, tpu.core_type = #tpu.core_type<tc>, window_params = [{transform_indices = @transform_0, window_bounds = array<i64: 1, 16, 128>}, {transform_indices = @transform_1, window_bounds = array<i64: 1, 128, 4096>}, {transform_indices = @transform_2, window_bounds = array<i64: 1, 16, 4096>}, {transform_indices = @transform_3, window_bounds = array<i64: 1, 1, 4096>}, {transform_indices = @transform_4, window_bounds = array<i64: 1, 1, 4096>}]} {
    %c0 = arith.constant 0 : index
    %c0_0 = arith.constant 0 : index
    %c0_1 = arith.constant 0 : index
    %0 = vector.load %arg2[%c0, %c0_0, %c0_1] : memref<1x16x128xbf16, #tpu.memory_space<vmem>>, vector<1x16x128xbf16>
    %1 = vector.shape_cast %0 : vector<1x16x128xbf16> to vector<16x128xbf16>
    %c0_2 = arith.constant 0 : index
    %c0_3 = arith.constant 0 : index
    %c0_4 = arith.constant 0 : index
    %2 = vector.load %arg3[%c0_2, %c0_3, %c0_4] : memref<1x128x4096xbf16, #tpu.memory_space<vmem>>, vector<1x128x4096xbf16>
    %3 = vector.shape_cast %2 : vector<1x128x4096xbf16> to vector<128x4096xbf16>
    %cst = arith.constant dense<0.000000e+00> : vector<16x4096xf32>
    %4 = tpu.matmul %1, %3, %cst {dimension_numbers = #tpu.dot_dimension_numbers<[1], [0], [0], [1], [0, 0, 1, 1], [], []>} : vector<16x128xbf16>, vector<128x4096xbf16>, vector<16x4096xf32> -> vector<16x4096xf32>
    %c0_5 = arith.constant 0 : index
    %c0_6 = arith.constant 0 : index
    %c0_7 = arith.constant 0 : index
    %5 = vector.load %arg4[%c0_5, %c0_6, %c0_7] : memref<1x16x4096xf32, #tpu.memory_space<vmem>>, vector<1x16x4096xf32>
    %6 = vector.shape_cast %5 : vector<1x16x4096xf32> to vector<16x4096xf32>
    %7 = vector.shape_cast %4 : vector<16x4096xf32> to vector<1x16x4096xf32>
    tpu.vector_store %arg4[%c0_5, %c0_6, %c0_7], %7 {strides = array<i32>} : memref<1x16x4096xf32, #tpu.memory_space<vmem>>, vector<1x16x4096xf32>,
    %cst_8 = arith.constant dense<0.000000e+00> : vector<4096xf32>
    %8 = vector.multi_reduction <add>, %4, %cst_8 [0] : vector<16x4096xf32> to vector<4096xf32>
    %9 = vector.shape_cast %8 : vector<4096xf32> to vector<1x4096xf32>
    %c0_9 = arith.constant 0 : index
    %c0_10 = arith.constant 0 : index
    %c0_11 = arith.constant 0 : index
    %10 = vector.load %arg5[%c0_9, %c0_10, %c0_11] : memref<1x1x4096xf32, #tpu.memory_space<vmem>>, vector<1x1x4096xf32>
    %11 = vector.shape_cast %10 : vector<1x1x4096xf32> to vector<1x4096xf32>
    %12 = vector.shape_cast %9 : vector<1x4096xf32> to vector<1x1x4096xf32>
    tpu.vector_store %arg5[%c0_9, %c0_10, %c0_11], %12 {strides = array<i32>} : memref<1x1x4096xf32, #tpu.memory_space<vmem>>, vector<1x1x4096xf32>,
    %13 = arith.mulf %4, %4 : vector<16x4096xf32>
    %cst_12 = arith.constant dense<0.000000e+00> : vector<4096xf32>
    %14 = vector.multi_reduction <add>, %13, %cst_12 [0] : vector<16x4096xf32> to vector<4096xf32>
    %15 = vector.shape_cast %14 : vector<4096xf32> to vector<1x4096xf32>
    %c0_13 = arith.constant 0 : index
    %c0_14 = arith.constant 0 : index
    %c0_15 = arith.constant 0 : index
    %16 = vector.load %arg6[%c0_13, %c0_14, %c0_15] : memref<1x1x4096xf32, #tpu.memory_space<vmem>>, vector<1x1x4096xf32>
    %17 = vector.shape_cast %16 : vector<1x1x4096xf32> to vector<1x4096xf32>
    %18 = vector.shape_cast %15 : vector<1x4096xf32> to vector<1x1x4096xf32>
    tpu.vector_store %arg6[%c0_13, %c0_14, %c0_15], %18 {strides = array<i32>} : memref<1x1x4096xf32, #tpu.memory_space<vmem>>, vector<1x1x4096xf32>,
    return
  }
  func.func @transform_0(%arg0: i32, %arg1: i32) -> (i32, i32, i32) {
    %c0_i32 = arith.constant 0 : i32
    %c0_i32_0 = arith.constant 0 : i32
    %c0_i32_1 = arith.constant 0 : i32
    return %arg0, %c0_i32, %c0_i32_0 : i32, i32, i32
  }
  func.func @transform_1(%arg0: i32, %arg1: i32) -> (i32, i32, i32) {
    %c0_i32 = arith.constant 0 : i32
    %c0_i32_0 = arith.constant 0 : i32
    return %arg0, %c0_i32, %arg1 : i32, i32, i32
  }
  func.func @transform_2(%arg0: i32, %arg1: i32) -> (i32, i32, i32) {
    %c0_i32 = arith.constant 0 : i32
    %c0_i32_0 = arith.constant 0 : i32
    return %arg0, %c0_i32, %arg1 : i32, i32, i32
  }
  func.func @transform_3(%arg0: i32, %arg1: i32) -> (i32, i32, i32) {
    %c0_i32 = arith.constant 0 : i32
    %c0_i32_0 = arith.constant 0 : i32
    return %arg0, %c0_i32, %arg1 : i32, i32, i32
  }
  func.func @transform_4(%arg0: i32, %arg1: i32) -> (i32, i32, i32) {
    %c0_i32 = arith.constant 0 : i32
    %c0_i32_0 = arith.constant 0 : i32
    return %arg0, %c0_i32, %arg1 : i32, i32, i32
  }
}

module attributes {stable_mosaic.version = 11 : i64} {
  func.func @_mm_kernel(%arg0: i32, %arg1: i32, %arg2: memref<1x32x2048xbf16, #tpu.memory_space<vmem>>, %arg3: memref<1x2048x256xbf16, #tpu.memory_space<vmem>>, %arg4: memref<1x32x256xf32, #tpu.memory_space<vmem>>, %arg5: memref<1x1x256xf32, #tpu.memory_space<vmem>>, %arg6: memref<1x1x256xf32, #tpu.memory_space<vmem>>) attributes {dimension_semantics = [#tpu.dimension_semantics<parallel>, #tpu.dimension_semantics<parallel>], iteration_bounds = array<i64: 4, 1>, scalar_prefetch = 0 : i64, scratch_operands = 0 : i64, tpu.core_type = #tpu.core_type<tc>, window_params = [{transform_indices = @transform_0, window_bounds = array<i64: 1, 32, 2048>}, {transform_indices = @transform_1, window_bounds = array<i64: 1, 2048, 256>}, {transform_indices = @transform_2, window_bounds = array<i64: 1, 32, 256>}, {transform_indices = @transform_3, window_bounds = array<i64: 1, 1, 256>}, {transform_indices = @transform_4, window_bounds = array<i64: 1, 1, 256>}]} {
    %c0 = arith.constant 0 : index
    %c0_0 = arith.constant 0 : index
    %c0_1 = arith.constant 0 : index
    %0 = vector.load %arg2[%c0, %c0_0, %c0_1] : memref<1x32x2048xbf16, #tpu.memory_space<vmem>>, vector<1x32x2048xbf16>
    %1 = vector.shape_cast %0 : vector<1x32x2048xbf16> to vector<32x2048xbf16>
    %c0_2 = arith.constant 0 : index
    %c0_3 = arith.constant 0 : index
    %c0_4 = arith.constant 0 : index
    %2 = vector.load %arg3[%c0_2, %c0_3, %c0_4] : memref<1x2048x256xbf16, #tpu.memory_space<vmem>>, vector<1x2048x256xbf16>
    %3 = vector.shape_cast %2 : vector<1x2048x256xbf16> to vector<2048x256xbf16>
    %cst = arith.constant dense<0.000000e+00> : vector<32x256xf32>
    %4 = tpu.matmul %1, %3, %cst {dimension_numbers = #tpu.dot_dimension_numbers<[1], [0], [0], [1], [0, 0, 1, 1], [], []>} : vector<32x2048xbf16>, vector<2048x256xbf16>, vector<32x256xf32> -> vector<32x256xf32>
    %c0_5 = arith.constant 0 : index
    %c0_6 = arith.constant 0 : index
    %c0_7 = arith.constant 0 : index
    %5 = vector.load %arg4[%c0_5, %c0_6, %c0_7] : memref<1x32x256xf32, #tpu.memory_space<vmem>>, vector<1x32x256xf32>
    %6 = vector.shape_cast %5 : vector<1x32x256xf32> to vector<32x256xf32>
    %7 = vector.shape_cast %4 : vector<32x256xf32> to vector<1x32x256xf32>
    tpu.vector_store %arg4[%c0_5, %c0_6, %c0_7], %7 {strides = array<i32>} : memref<1x32x256xf32, #tpu.memory_space<vmem>>, vector<1x32x256xf32>,
    %cst_8 = arith.constant dense<0.000000e+00> : vector<256xf32>
    %8 = vector.multi_reduction <add>, %4, %cst_8 [0] : vector<32x256xf32> to vector<256xf32>
    %9 = vector.shape_cast %8 : vector<256xf32> to vector<1x256xf32>
    %c0_9 = arith.constant 0 : index
    %c0_10 = arith.constant 0 : index
    %c0_11 = arith.constant 0 : index
    %10 = vector.load %arg5[%c0_9, %c0_10, %c0_11] : memref<1x1x256xf32, #tpu.memory_space<vmem>>, vector<1x1x256xf32>
    %11 = vector.shape_cast %10 : vector<1x1x256xf32> to vector<1x256xf32>
    %12 = vector.shape_cast %9 : vector<1x256xf32> to vector<1x1x256xf32>
    tpu.vector_store %arg5[%c0_9, %c0_10, %c0_11], %12 {strides = array<i32>} : memref<1x1x256xf32, #tpu.memory_space<vmem>>, vector<1x1x256xf32>,
    %13 = arith.mulf %4, %4 : vector<32x256xf32>
    %cst_12 = arith.constant dense<0.000000e+00> : vector<256xf32>
    %14 = vector.multi_reduction <add>, %13, %cst_12 [0] : vector<32x256xf32> to vector<256xf32>
    %15 = vector.shape_cast %14 : vector<256xf32> to vector<1x256xf32>
    %c0_13 = arith.constant 0 : index
    %c0_14 = arith.constant 0 : index
    %c0_15 = arith.constant 0 : index
    %16 = vector.load %arg6[%c0_13, %c0_14, %c0_15] : memref<1x1x256xf32, #tpu.memory_space<vmem>>, vector<1x1x256xf32>
    %17 = vector.shape_cast %16 : vector<1x1x256xf32> to vector<1x256xf32>
    %18 = vector.shape_cast %15 : vector<1x256xf32> to vector<1x1x256xf32>
    tpu.vector_store %arg6[%c0_13, %c0_14, %c0_15], %18 {strides = array<i32>} : memref<1x1x256xf32, #tpu.memory_space<vmem>>, vector<1x1x256xf32>,
    return
  }
  func.func @transform_0(%arg0: i32, %arg1: i32) -> (i32, i32, i32) {
    %c0_i32 = arith.constant 0 : i32
    %c0_i32_0 = arith.constant 0 : i32
    %c0_i32_1 = arith.constant 0 : i32
    return %arg0, %c0_i32, %c0_i32_0 : i32, i32, i32
  }
  func.func @transform_1(%arg0: i32, %arg1: i32) -> (i32, i32, i32) {
    %c0_i32 = arith.constant 0 : i32
    %c0_i32_0 = arith.constant 0 : i32
    return %arg0, %c0_i32, %arg1 : i32, i32, i32
  }
  func.func @transform_2(%arg0: i32, %arg1: i32) -> (i32, i32, i32) {
    %c0_i32 = arith.constant 0 : i32
    %c0_i32_0 = arith.constant 0 : i32
    return %arg0, %c0_i32, %arg1 : i32, i32, i32
  }
  func.func @transform_3(%arg0: i32, %arg1: i32) -> (i32, i32, i32) {
    %c0_i32 = arith.constant 0 : i32
    %c0_i32_0 = arith.constant 0 : i32
    return %arg0, %c0_i32, %arg1 : i32, i32, i32
  }
  func.func @transform_4(%arg0: i32, %arg1: i32) -> (i32, i32, i32) {
    %c0_i32 = arith.constant 0 : i32
    %c0_i32_0 = arith.constant 0 : i32
    return %arg0, %c0_i32, %arg1 : i32, i32, i32
  }
}

module attributes {stable_mosaic.version = 11 : i64} {
  func.func @_mm_kernel(%arg0: i32, %arg1: i32, %arg2: memref<1x128x1024xbf16, #tpu.memory_space<vmem>>, %arg3: memref<1x1024x128xbf16, #tpu.memory_space<vmem>>, %arg4: memref<1x128x128xf32, #tpu.memory_space<vmem>>, %arg5: memref<1x1x128xf32, #tpu.memory_space<vmem>>, %arg6: memref<1x1x128xf32, #tpu.memory_space<vmem>>) attributes {dimension_semantics = [#tpu.dimension_semantics<parallel>, #tpu.dimension_semantics<parallel>], iteration_bounds = array<i64: 4, 1>, scalar_prefetch = 0 : i64, scratch_operands = 0 : i64, tpu.core_type = #tpu.core_type<tc>, window_params = [{transform_indices = @transform_0, window_bounds = array<i64: 1, 128, 1024>}, {transform_indices = @transform_1, window_bounds = array<i64: 1, 1024, 128>}, {transform_indices = @transform_2, window_bounds = array<i64: 1, 128, 128>}, {transform_indices = @transform_3, window_bounds = array<i64: 1, 1, 128>}, {transform_indices = @transform_4, window_bounds = array<i64: 1, 1, 128>}]} {
    %c0 = arith.constant 0 : index
    %c0_0 = arith.constant 0 : index
    %c0_1 = arith.constant 0 : index
    %0 = vector.load %arg2[%c0, %c0_0, %c0_1] : memref<1x128x1024xbf16, #tpu.memory_space<vmem>>, vector<1x128x1024xbf16>
    %1 = vector.shape_cast %0 : vector<1x128x1024xbf16> to vector<128x1024xbf16>
    %c0_2 = arith.constant 0 : index
    %c0_3 = arith.constant 0 : index
    %c0_4 = arith.constant 0 : index
    %2 = vector.load %arg3[%c0_2, %c0_3, %c0_4] : memref<1x1024x128xbf16, #tpu.memory_space<vmem>>, vector<1x1024x128xbf16>
    %3 = vector.shape_cast %2 : vector<1x1024x128xbf16> to vector<1024x128xbf16>
    %cst = arith.constant dense<0.000000e+00> : vector<128x128xf32>
    %4 = tpu.matmul %1, %3, %cst {dimension_numbers = #tpu.dot_dimension_numbers<[1], [0], [0], [1], [0, 0, 1, 1], [], []>} : vector<128x1024xbf16>, vector<1024x128xbf16>, vector<128x128xf32> -> vector<128x128xf32>
    %c0_5 = arith.constant 0 : index
    %c0_6 = arith.constant 0 : index
    %c0_7 = arith.constant 0 : index
    %5 = vector.load %arg4[%c0_5, %c0_6, %c0_7] : memref<1x128x128xf32, #tpu.memory_space<vmem>>, vector<1x128x128xf32>
    %6 = vector.shape_cast %5 : vector<1x128x128xf32> to vector<128x128xf32>
    %7 = vector.shape_cast %4 : vector<128x128xf32> to vector<1x128x128xf32>
    tpu.vector_store %arg4[%c0_5, %c0_6, %c0_7], %7 {strides = array<i32>} : memref<1x128x128xf32, #tpu.memory_space<vmem>>, vector<1x128x128xf32>,
    %cst_8 = arith.constant dense<0.000000e+00> : vector<128xf32>
    %8 = vector.multi_reduction <add>, %4, %cst_8 [0] : vector<128x128xf32> to vector<128xf32>
    %9 = vector.shape_cast %8 : vector<128xf32> to vector<1x128xf32>
    %c0_9 = arith.constant 0 : index
    %c0_10 = arith.constant 0 : index
    %c0_11 = arith.constant 0 : index
    %10 = vector.load %arg5[%c0_9, %c0_10, %c0_11] : memref<1x1x128xf32, #tpu.memory_space<vmem>>, vector<1x1x128xf32>
    %11 = vector.shape_cast %10 : vector<1x1x128xf32> to vector<1x128xf32>
    %12 = vector.shape_cast %9 : vector<1x128xf32> to vector<1x1x128xf32>
    tpu.vector_store %arg5[%c0_9, %c0_10, %c0_11], %12 {strides = array<i32>} : memref<1x1x128xf32, #tpu.memory_space<vmem>>, vector<1x1x128xf32>,
    %13 = arith.mulf %4, %4 : vector<128x128xf32>
    %cst_12 = arith.constant dense<0.000000e+00> : vector<128xf32>
    %14 = vector.multi_reduction <add>, %13, %cst_12 [0] : vector<128x128xf32> to vector<128xf32>
    %15 = vector.shape_cast %14 : vector<128xf32> to vector<1x128xf32>
    %c0_13 = arith.constant 0 : index
    %c0_14 = arith.constant 0 : index
    %c0_15 = arith.constant 0 : index
    %16 = vector.load %arg6[%c0_13, %c0_14, %c0_15] : memref<1x1x128xf32, #tpu.memory_space<vmem>>, vector<1x1x128xf32>
    %17 = vector.shape_cast %16 : vector<1x1x128xf32> to vector<1x128xf32>
    %18 = vector.shape_cast %15 : vector<1x128xf32> to vector<1x1x128xf32>
    tpu.vector_store %arg6[%c0_13, %c0_14, %c0_15], %18 {strides = array<i32>} : memref<1x1x128xf32, #tpu.memory_space<vmem>>, vector<1x1x128xf32>,
    return
  }
  func.func @transform_0(%arg0: i32, %arg1: i32) -> (i32, i32, i32) {
    %c0_i32 = arith.constant 0 : i32
    %c0_i32_0 = arith.constant 0 : i32
    %c0_i32_1 = arith.constant 0 : i32
    return %arg0, %c0_i32, %c0_i32_0 : i32, i32, i32
  }
  func.func @transform_1(%arg0: i32, %arg1: i32) -> (i32, i32, i32) {
    %c0_i32 = arith.constant 0 : i32
    %c0_i32_0 = arith.constant 0 : i32
    return %arg0, %c0_i32, %arg1 : i32, i32, i32
  }
  func.func @transform_2(%arg0: i32, %arg1: i32) -> (i32, i32, i32) {
    %c0_i32 = arith.constant 0 : i32
    %c0_i32_0 = arith.constant 0 : i32
    return %arg0, %c0_i32, %arg1 : i32, i32, i32
  }
  func.func @transform_3(%arg0: i32, %arg1: i32) -> (i32, i32, i32) {
    %c0_i32 = arith.constant 0 : i32
    %c0_i32_0 = arith.constant 0 : i32
    return %arg0, %c0_i32, %arg1 : i32, i32, i32
  }
  func.func @transform_4(%arg0: i32, %arg1: i32) -> (i32, i32, i32) {
    %c0_i32 = arith.constant 0 : i32
    %c0_i32_0 = arith.constant 0 : i32
    return %arg0, %c0_i32, %arg1 : i32, i32, i32
  }
}

module attributes {stable_mosaic.version = 11 : i64} {
  func.func @_mm_kernel(%arg0: i32, %arg1: i32, %arg2: memref<1x512x512xbf16, #tpu.memory_space<vmem>>, %arg3: memref<1x512x128xbf16, #tpu.memory_space<vmem>>, %arg4: memref<1x512x128xf32, #tpu.memory_space<vmem>>, %arg5: memref<1x1x128xf32, #tpu.memory_space<vmem>>, %arg6: memref<1x1x128xf32, #tpu.memory_space<vmem>>) attributes {dimension_semantics = [#tpu.dimension_semantics<parallel>, #tpu.dimension_semantics<parallel>], iteration_bounds = array<i64: 4, 1>, scalar_prefetch = 0 : i64, scratch_operands = 0 : i64, tpu.core_type = #tpu.core_type<tc>, window_params = [{transform_indices = @transform_0, window_bounds = array<i64: 1, 512, 512>}, {transform_indices = @transform_1, window_bounds = array<i64: 1, 512, 128>}, {transform_indices = @transform_2, window_bounds = array<i64: 1, 512, 128>}, {transform_indices = @transform_3, window_bounds = array<i64: 1, 1, 128>}, {transform_indices = @transform_4, window_bounds = array<i64: 1, 1, 128>}]} {
    %c0 = arith.constant 0 : index
    %c0_0 = arith.constant 0 : index
    %c0_1 = arith.constant 0 : index
    %0 = vector.load %arg2[%c0, %c0_0, %c0_1] : memref<1x512x512xbf16, #tpu.memory_space<vmem>>, vector<1x512x512xbf16>
    %1 = vector.shape_cast %0 : vector<1x512x512xbf16> to vector<512x512xbf16>
    %c0_2 = arith.constant 0 : index
    %c0_3 = arith.constant 0 : index
    %c0_4 = arith.constant 0 : index
    %2 = vector.load %arg3[%c0_2, %c0_3, %c0_4] : memref<1x512x128xbf16, #tpu.memory_space<vmem>>, vector<1x512x128xbf16>
    %3 = vector.shape_cast %2 : vector<1x512x128xbf16> to vector<512x128xbf16>
    %cst = arith.constant dense<0.000000e+00> : vector<512x128xf32>
    %4 = tpu.matmul %1, %3, %cst {dimension_numbers = #tpu.dot_dimension_numbers<[1], [0], [0], [1], [0, 0, 1, 1], [], []>} : vector<512x512xbf16>, vector<512x128xbf16>, vector<512x128xf32> -> vector<512x128xf32>
    %c0_5 = arith.constant 0 : index
    %c0_6 = arith.constant 0 : index
    %c0_7 = arith.constant 0 : index
    %5 = vector.load %arg4[%c0_5, %c0_6, %c0_7] : memref<1x512x128xf32, #tpu.memory_space<vmem>>, vector<1x512x128xf32>
    %6 = vector.shape_cast %5 : vector<1x512x128xf32> to vector<512x128xf32>
    %7 = vector.shape_cast %4 : vector<512x128xf32> to vector<1x512x128xf32>
    tpu.vector_store %arg4[%c0_5, %c0_6, %c0_7], %7 {strides = array<i32>} : memref<1x512x128xf32, #tpu.memory_space<vmem>>, vector<1x512x128xf32>,
    %cst_8 = arith.constant dense<0.000000e+00> : vector<128xf32>
    %8 = vector.multi_reduction <add>, %4, %cst_8 [0] : vector<512x128xf32> to vector<128xf32>
    %9 = vector.shape_cast %8 : vector<128xf32> to vector<1x128xf32>
    %c0_9 = arith.constant 0 : index
    %c0_10 = arith.constant 0 : index
    %c0_11 = arith.constant 0 : index
    %10 = vector.load %arg5[%c0_9, %c0_10, %c0_11] : memref<1x1x128xf32, #tpu.memory_space<vmem>>, vector<1x1x128xf32>
    %11 = vector.shape_cast %10 : vector<1x1x128xf32> to vector<1x128xf32>
    %12 = vector.shape_cast %9 : vector<1x128xf32> to vector<1x1x128xf32>
    tpu.vector_store %arg5[%c0_9, %c0_10, %c0_11], %12 {strides = array<i32>} : memref<1x1x128xf32, #tpu.memory_space<vmem>>, vector<1x1x128xf32>,
    %13 = arith.mulf %4, %4 : vector<512x128xf32>
    %cst_12 = arith.constant dense<0.000000e+00> : vector<128xf32>
    %14 = vector.multi_reduction <add>, %13, %cst_12 [0] : vector<512x128xf32> to vector<128xf32>
    %15 = vector.shape_cast %14 : vector<128xf32> to vector<1x128xf32>
    %c0_13 = arith.constant 0 : index
    %c0_14 = arith.constant 0 : index
    %c0_15 = arith.constant 0 : index
    %16 = vector.load %arg6[%c0_13, %c0_14, %c0_15] : memref<1x1x128xf32, #tpu.memory_space<vmem>>, vector<1x1x128xf32>
    %17 = vector.shape_cast %16 : vector<1x1x128xf32> to vector<1x128xf32>
    %18 = vector.shape_cast %15 : vector<1x128xf32> to vector<1x1x128xf32>
    tpu.vector_store %arg6[%c0_13, %c0_14, %c0_15], %18 {strides = array<i32>} : memref<1x1x128xf32, #tpu.memory_space<vmem>>, vector<1x1x128xf32>,
    return
  }
  func.func @transform_0(%arg0: i32, %arg1: i32) -> (i32, i32, i32) {
    %c0_i32 = arith.constant 0 : i32
    %c0_i32_0 = arith.constant 0 : i32
    %c0_i32_1 = arith.constant 0 : i32
    return %arg0, %c0_i32, %c0_i32_0 : i32, i32, i32
  }
  func.func @transform_1(%arg0: i32, %arg1: i32) -> (i32, i32, i32) {
    %c0_i32 = arith.constant 0 : i32
    %c0_i32_0 = arith.constant 0 : i32
    return %arg0, %c0_i32, %arg1 : i32, i32, i32
  }
  func.func @transform_2(%arg0: i32, %arg1: i32) -> (i32, i32, i32) {
    %c0_i32 = arith.constant 0 : i32
    %c0_i32_0 = arith.constant 0 : i32
    return %arg0, %c0_i32, %arg1 : i32, i32, i32
  }
  func.func @transform_3(%arg0: i32, %arg1: i32) -> (i32, i32, i32) {
    %c0_i32 = arith.constant 0 : i32
    %c0_i32_0 = arith.constant 0 : i32
    return %arg0, %c0_i32, %arg1 : i32, i32, i32
  }
  func.func @transform_4(%arg0: i32, %arg1: i32) -> (i32, i32, i32) {
    %c0_i32 = arith.constant 0 : i32
    %c0_i32_0 = arith.constant 0 : i32
    return %arg0, %c0_i32, %arg1 : i32, i32, i32
  }
}

module attributes {stable_mosaic.version = 11 : i64} {
  func.func @_mm_kernel(%arg0: i32, %arg1: i32, %arg2: memref<1x2048x256xbf16, #tpu.memory_space<vmem>>, %arg3: memref<1x256x128xbf16, #tpu.memory_space<vmem>>, %arg4: memref<1x2048x128xf32, #tpu.memory_space<vmem>>) attributes {dimension_semantics = [#tpu.dimension_semantics<parallel>, #tpu.dimension_semantics<parallel>], iteration_bounds = array<i64: 4, 1>, scalar_prefetch = 0 : i64, scratch_operands = 0 : i64, tpu.core_type = #tpu.core_type<tc>, window_params = [{transform_indices = @transform_0, window_bounds = array<i64: 1, 2048, 256>}, {transform_indices = @transform_1, window_bounds = array<i64: 1, 256, 128>}, {transform_indices = @transform_2, window_bounds = array<i64: 1, 2048, 128>}]} {
    %c0 = arith.constant 0 : index
    %c0_0 = arith.constant 0 : index
    %c0_1 = arith.constant 0 : index
    %0 = vector.load %arg2[%c0, %c0_0, %c0_1] : memref<1x2048x256xbf16, #tpu.memory_space<vmem>>, vector<1x2048x256xbf16>
    %1 = vector.shape_cast %0 : vector<1x2048x256xbf16> to vector<2048x256xbf16>
    %c0_2 = arith.constant 0 : index
    %c0_3 = arith.constant 0 : index
    %c0_4 = arith.constant 0 : index
    %2 = vector.load %arg3[%c0_2, %c0_3, %c0_4] : memref<1x256x128xbf16, #tpu.memory_space<vmem>>, vector<1x256x128xbf16>
    %3 = vector.shape_cast %2 : vector<1x256x128xbf16> to vector<256x128xbf16>
    %cst = arith.constant dense<0.000000e+00> : vector<2048x128xf32>
    %4 = tpu.matmul %1, %3, %cst {dimension_numbers = #tpu.dot_dimension_numbers<[1], [0], [0], [1], [0, 0, 1, 1], [], []>} : vector<2048x256xbf16>, vector<256x128xbf16>, vector<2048x128xf32> -> vector<2048x128xf32>
    %5 = math.tanh %4 : vector<2048x128xf32>
    %c0_5 = arith.constant 0 : index
    %c0_6 = arith.constant 0 : index
    %c0_7 = arith.constant 0 : index
    %6 = vector.load %arg4[%c0_5, %c0_6, %c0_7] : memref<1x2048x128xf32, #tpu.memory_space<vmem>>, vector<1x2048x128xf32>
    %7 = vector.shape_cast %6 : vector<1x2048x128xf32> to vector<2048x128xf32>
    %8 = vector.shape_cast %5 : vector<2048x128xf32> to vector<1x2048x128xf32>
    tpu.vector_store %arg4[%c0_5, %c0_6, %c0_7], %8 {strides = array<i32>} : memref<1x2048x128xf32, #tpu.memory_space<vmem>>, vector<1x2048x128xf32>,
    return
  }
  func.func @transform_0(%arg0: i32, %arg1: i32) -> (i32, i32, i32) {
    %c0_i32 = arith.constant 0 : i32
    %c0_i32_0 = arith.constant 0 : i32
    %c0_i32_1 = arith.constant 0 : i32
    return %arg0, %c0_i32, %c0_i32_0 : i32, i32, i32
  }
  func.func @transform_1(%arg0: i32, %arg1: i32) -> (i32, i32, i32) {
    %c0_i32 = arith.constant 0 : i32
    %c0_i32_0 = arith.constant 0 : i32
    return %arg0, %c0_i32, %arg1 : i32, i32, i32
  }
  func.func @transform_2(%arg0: i32, %arg1: i32) -> (i32, i32, i32) {
    %c0_i32 = arith.constant 0 : i32
    %c0_i32_0 = arith.constant 0 : i32
    return %arg0, %c0_i32, %arg1 : i32, i32, i32
  }
}

</mosaic_0001>

<bundles_post_ra>
// kernel: squeeze.65
= control target key start
LH: loop header
LB: loop body
LE: loop exit
PB: predicated region body
PF: predicated region fallthrough
CT: control target
= control target key end

     0   :  { %s1377_s0 = inlined_call_operand.vmem [shape: f32[1,2,8192], index: 0, kind: input, shape index: {}]   ;;  %s1378_s1 = inlined_call_operand.vmem [shape: f32[2,4,4,512], index: 1, kind: output, shape index: {}]  }
   0x1   :  { %v985_v0 = vld [vmem:[%s1377_s0 + $0x7e] sm:$0x3]  ;;  %v986_v1 = vld [vmem:[%s1377_s0 + $0x7c] sm:$0x3]  ;;  %v987_v2 = vld [vmem:[%s1377_s0 + $0x7a] sm:$0x3] }
   0x2   :  { %8 = vst [vmem:[#allocation1 + $0x1f8] sm:$0x3] %v985_v0  ;;  %13 = vst [vmem:[#allocation1 + $0x1f0] sm:$0x3] %v986_v1  ;;  %v988_v3 = vld [vmem:[%s1377_s0 + $0x78] sm:$0x3] }
   0x3   :  { %18 = vst [vmem:[#allocation1 + $0x1e8] sm:$0x3] %v987_v2  ;;  %v989_v4 = vld [vmem:[%s1377_s0 + $0x76] sm:$0x3]  ;;  %v990_v5 = vld [vmem:[%s1377_s0 + $0x74] sm:$0x3] }
   0x4   :  { %23 = vst [vmem:[#allocation1 + $0x1e0] sm:$0x3] %v988_v3  ;;  %28 = vst [vmem:[#allocation1 + $0x1d8] sm:$0x3] %v989_v4  ;;  %v991_v6 = vld [vmem:[%s1377_s0 + $0x72] sm:$0x3] }
   0x5   :  { %33 = vst [vmem:[#allocation1 + $0x1d0] sm:$0x3] %v990_v5  ;;  %v992_v7 = vld [vmem:[%s1377_s0 + $0x70] sm:$0x3]  ;;  %v993_v8 = vld [vmem:[%s1377_s0 + $0x6e] sm:$0x3] }
   0x6   :  { %38 = vst [vmem:[#allocation1 + $0x1c8] sm:$0x3] %v991_v6  ;;  %43 = vst [vmem:[#allocation1 + $0x1c0] sm:$0x3] %v992_v7  ;;  %v994_v9 = vld [vmem:[%s1377_s0 + $0x6c] sm:$0x3] }
   0x7   :  { %48 = vst [vmem:[#allocation1 + $0x1b8] sm:$0x3] %v993_v8  ;;  %v995_v10 = vld [vmem:[%s1377_s0 + $0x6a] sm:$0x3]  ;;  %v996_v11 = vld [vmem:[%s1377_s0 + $0x68] sm:$0x3] }
   0x8   :  { %53 = vst [vmem:[#allocation1 + $0x1b0] sm:$0x3] %v994_v9  ;;  %58 = vst [vmem:[#allocation1 + $0x1a8] sm:$0x3] %v995_v10  ;;  %v997_v12 = vld [vmem:[%s1377_s0 + $0x66] sm:$0x3] }
   0x9   :  { %63 = vst [vmem:[#allocation1 + $0x1a0] sm:$0x3] %v996_v11  ;;  %v998_v13 = vld [vmem:[%s1377_s0 + $0x64] sm:$0x3]  ;;  %v999_v14 = vld [vmem:[%s1377_s0 + $0x62] sm:$0x3] }
   0xa   :  { %68 = vst [vmem:[#allocation1 + $0x198] sm:$0x3] %v997_v12  ;;  %73 = vst [vmem:[#allocation1 + $0x190] sm:$0x3] %v998_v13  ;;  %v1000_v15 = vld [vmem:[%s1377_s0 + $0x60] sm:$0x3] }
   0xb   :  { %78 = vst [vmem:[#allocation1 + $0x188] sm:$0x3] %v999_v14  ;;  %v1001_v16 = vld [vmem:[%s1377_s0 + $0x5e] sm:$0x3]  ;;  %v1002_v17 = vld [vmem:[%s1377_s0 + $0x5c] sm:$0x3] }
   0xc   :  { %83 = vst [vmem:[#allocation1 + $0x180] sm:$0x3] %v1000_v15  ;;  %88 = vst [vmem:[#allocation1 + $0x178] sm:$0x3] %v1001_v16  ;;  %v1003_v18 = vld [vmem:[%s1377_s0 + $0x5a] sm:$0x3] }
   0xd   :  { %93 = vst [vmem:[#allocation1 + $0x170] sm:$0x3] %v1002_v17  ;;  %v1004_v19 = vld [vmem:[%s1377_s0 + $0x58] sm:$0x3]  ;;  %v1005_v20 = vld [vmem:[%s1377_s0 + $0x56] sm:$0x3] }
   0xe   :  { %98 = vst [vmem:[#allocation1 + $0x168] sm:$0x3] %v1003_v18  ;;  %103 = vst [vmem:[#allocation1 + $0x160] sm:$0x3] %v1004_v19  ;;  %v1006_v21 = vld [vmem:[%s1377_s0 + $0x54] sm:$0x3] }
   0xf   :  { %108 = vst [vmem:[#allocation1 + $0x158] sm:$0x3] %v1005_v20  ;;  %v1007_v22 = vld [vmem:[%s1377_s0 + $0x52] sm:$0x3]  ;;  %v1008_v23 = vld [vmem:[%s1377_s0 + $0x50] sm:$0x3] }
  0x10   :  { %113 = vst [vmem:[#allocation1 + $0x150] sm:$0x3] %v1006_v21  ;;  %118 = vst [vmem:[#allocation1 + $0x148] sm:$0x3] %v1007_v22  ;;  %v1009_v24 = vld [vmem:[%s1377_s0 + $0x4e] sm:$0x3] }
  0x11   :  { %123 = vst [vmem:[#allocation1 + $0x140] sm:$0x3] %v1008_v23  ;;  %v1010_v25 = vld [vmem:[%s1377_s0 + $0x4c] sm:$0x3]  ;;  %v1011_v26 = vld [vmem:[%s1377_s0 + $0x4a] sm:$0x3] }
  0x12   :  { %128 = vst [vmem:[#allocation1 + $0x138] sm:$0x3] %v1009_v24  ;;  %133 = vst [vmem:[#allocation1 + $0x130] sm:$0x3] %v1010_v25  ;;  %v1012_v27 = vld [vmem:[%s1377_s0 + $0x48] sm:$0x3] }
  0x13   :  { %138 = vst [vmem:[#allocation1 + $0x128] sm:$0x3] %v1011_v26  ;;  %v1013_v28 = vld [vmem:[%s1377_s0 + $0x46] sm:$0x3]  ;;  %v1014_v29 = vld [vmem:[%s1377_s0 + $0x44] sm:$0x3] }
  0x14   :  { %143 = vst [vmem:[#allocation1 + $0x120] sm:$0x3] %v1012_v27  ;;  %148 = vst [vmem:[#allocation1 + $0x118] sm:$0x3] %v1013_v28  ;;  %v1015_v30 = vld [vmem:[%s1377_s0 + $0x42] sm:$0x3] }
  0x15   :  { %153 = vst [vmem:[#allocation1 + $0x110] sm:$0x3] %v1014_v29  ;;  %v1016_v31 = vld [vmem:[%s1377_s0 + $0x40] sm:$0x3]  ;;  %v1017_v32 = vld [vmem:[%s1377_s0 + $0x3e] sm:$0x3] }
  0x16   :  { %158 = vst [vmem:[#allocation1 + $0x108] sm:$0x3] %v1015_v30  ;;  %163 = vst [vmem:[#allocation1 + $0x100] sm:$0x3] %v1016_v31  ;;  %v1018_v33 = vld [vmem:[%s1377_s0 + $0x3c] sm:$0x3] }
  0x17   :  { %168 = vst [vmem:[#allocation1 + $0xf8] sm:$0x3] %v1017_v32  ;;  %v1019_v34 = vld [vmem:[%s1377_s0 + $0x3a] sm:$0x3]  ;;  %v1020_v35 = vld [vmem:[%s1377_s0 + $0x38] sm:$0x3] }
  0x18   :  { %173 = vst [vmem:[#allocation1 + $0xf0] sm:$0x3] %v1018_v33  ;;  %178 = vst [vmem:[#allocation1 + $0xe8] sm:$0x3] %v1019_v34  ;;  %v1021_v36 = vld [vmem:[%s1377_s0 + $0x36] sm:$0x3] }
  0x19   :  { %183 = vst [vmem:[#allocation1 + $0xe0] sm:$0x3] %v1020_v35  ;;  %v1022_v37 = vld [vmem:[%s1377_s0 + $0x34] sm:$0x3]  ;;  %v1023_v38 = vld [vmem:[%s1377_s0 + $0x32] sm:$0x3] }
  0x1a   :  { %188 = vst [vmem:[#allocation1 + $0xd8] sm:$0x3] %v1021_v36  ;;  %193 = vst [vmem:[#allocation1 + $0xd0] sm:$0x3] %v1022_v37  ;;  %v1024_v39 = vld [vmem:[%s1377_s0 + $0x30] sm:$0x3] }
  0x1b   :  { %198 = vst [vmem:[#allocation1 + $0xc8] sm:$0x3] %v1023_v38  ;;  %v1025_v40 = vld [vmem:[%s1377_s0 + $0x2e] sm:$0x3]  ;;  %v1026_v41 = vld [vmem:[%s1377_s0 + $0x2c] sm:$0x3] }
  0x1c   :  { %203 = vst [vmem:[#allocation1 + $0xc0] sm:$0x3] %v1024_v39  ;;  %208 = vst [vmem:[#allocation1 + $0xb8] sm:$0x3] %v1025_v40  ;;  %v1027_v42 = vld [vmem:[%s1377_s0 + $0x2a] sm:$0x3] }
  0x1d   :  { %213 = vst [vmem:[#allocation1 + $0xb0] sm:$0x3] %v1026_v41  ;;  %v1028_v43 = vld [vmem:[%s1377_s0 + $0x28] sm:$0x3]  ;;  %v1029_v44 = vld [vmem:[%s1377_s0 + $0x26] sm:$0x3] }
  0x1e   :  { %218 = vst [vmem:[#allocation1 + $0xa8] sm:$0x3] %v1027_v42  ;;  %223 = vst [vmem:[#allocation1 + $0xa0] sm:$0x3] %v1028_v43  ;;  %v1030_v45 = vld [vmem:[%s1377_s0 + $0x24] sm:$0x3] }
  0x1f   :  { %228 = vst [vmem:[#allocation1 + $0x98] sm:$0x3] %v1029_v44  ;;  %v1031_v46 = vld [vmem:[%s1377_s0 + $0x22] sm:$0x3]  ;;  %v1032_v47 = vld [vmem:[%s1377_s0 + $0x20] sm:$0x3] }
  0x20   :  { %233 = vst [vmem:[#allocation1 + $0x90] sm:$0x3] %v1030_v45  ;;  %238 = vst [vmem:[#allocation1 + $0x88] sm:$0x3] %v1031_v46  ;;  %v1033_v48 = vld [vmem:[%s1377_s0 + $0x1e] sm:$0x3] }
  0x21   :  { %243 = vst [vmem:[#allocation1 + $0x80] sm:$0x3] %v1032_v47  ;;  %v1034_v49 = vld [vmem:[%s1377_s0 + $0x1c] sm:$0x3]  ;;  %v1035_v50 = vld [vmem:[%s1377_s0 + $0x1a] sm:$0x3] }
  0x22   :  { %248 = vst [vmem:[#allocation1 + $0x78] sm:$0x3] %v1033_v48  ;;  %253 = vst [vmem:[#allocation1 + $0x70] sm:$0x3] %v1034_v49  ;;  %v1036_v51 = vld [vmem:[%s1377_s0 + $0x18] sm:$0x3] }
  0x23   :  { %258 = vst [vmem:[#allocation1 + $0x68] sm:$0x3] %v1035_v50  ;;  %v1037_v52 = vld [vmem:[%s1377_s0 + $0x16] sm:$0x3]  ;;  %v1038_v53 = vld [vmem:[%s1377_s0 + $0x14] sm:$0x3] }
  0x24   :  { %263 = vst [vmem:[#allocation1 + $0x60] sm:$0x3] %v1036_v51  ;;  %268 = vst [vmem:[#allocation1 + $0x58] sm:$0x3] %v1037_v52  ;;  %v1039_v54 = vld [vmem:[%s1377_s0 + $0x12] sm:$0x3] }
  0x25   :  { %273 = vst [vmem:[#allocation1 + $0x50] sm:$0x3] %v1038_v53  ;;  %v1040_v55 = vld [vmem:[%s1377_s0 + $0x10] sm:$0x3]  ;;  %v1041_v56 = vld [vmem:[%s1377_s0 + $0xe] sm:$0x3] }
  0x26   :  { %278 = vst [vmem:[#allocation1 + $0x48] sm:$0x3] %v1039_v54  ;;  %283 = vst [vmem:[#allocation1 + $0x40] sm:$0x3] %v1040_v55  ;;  %v1042_v57 = vld [vmem:[%s1377_s0 + $0xc] sm:$0x3] }
  0x27   :  { %288 = vst [vmem:[#allocation1 + $0x38] sm:$0x3] %v1041_v56  ;;  %v1043_v58 = vld [vmem:[%s1377_s0 + $0xa] sm:$0x3]  ;;  %v1044_v59 = vld [vmem:[%s1377_s0 + $0x8] sm:$0x3] }
  0x28   :  { %293 = vst [vmem:[#allocation1 + $0x30] sm:$0x3] %v1042_v57  ;;  %298 = vst [vmem:[#allocation1 + $0x28] sm:$0x3] %v1043_v58  ;;  %v1045_v60 = vld [vmem:[%s1377_s0 + $0x6] sm:$0x3] }
  0x29   :  { %303 = vst [vmem:[#allocation1 + $0x20] sm:$0x3] %v1044_v59  ;;  %v1046_v61 = vld [vmem:[%s1377_s0 + $0x4] sm:$0x3]  ;;  %v1047_v62 = vld [vmem:[%s1377_s0 + $0x2] sm:$0x3] }
  0x2a   :  { %308 = vst [vmem:[#allocation1 + $0x18] sm:$0x3] %v1045_v60  ;;  %313 = vst [vmem:[#allocation1 + $0x10] sm:$0x3] %v1046_v61  ;;  %v318_v63 = vld [vmem:[%s1377_s0] sm:$0x3] }
  0x2b   :  { %317 = vst [vmem:[#allocation1 + $0x8] sm:$0x3] %v1047_v62  ;;  %v451_v0 = vld [vmem:[#allocation1 + $0xb0] sm:$0x3]   ;;  %v457_v1 = vld [vmem:[#allocation1 + $0xb8] sm:$0x3]  }
  0x2c   :  { %319 = vst [vmem:[#allocation1] sm:$0x3] %v318_v63  ;;  %v433_v2 = vld [vmem:[#allocation1 + $0x98] sm:$0x3]   ;;  %v439_v3 = vld [vmem:[#allocation1 + $0xa0] sm:$0x3]  }
  0x2d   :  { %v445_v4 = vld [vmem:[#allocation1 + $0xa8] sm:$0x3]   ;;  %453 = vst [vmem:[#allocation0 + $0x31] sm:$0x1] %v451_v0   ;;  %455 = vst [vmem:[#allocation0 + $0xb0] sm:$0x2] %v451_v0  }
  0x2e   :  { %459 = vst [vmem:[#allocation0 + $0x39] sm:$0x1] %v457_v1   ;;  %461 = vst [vmem:[#allocation0 + $0xb8] sm:$0x2] %v457_v1   ;;  %v415_v5 = vld [vmem:[#allocation1 + $0x80] sm:$0x3]  }
  0x2f   :  { %v421_v6 = vld [vmem:[#allocation1 + $0x88] sm:$0x3]   ;;  %v427_v7 = vld [vmem:[#allocation1 + $0x90] sm:$0x3]   ;;  %435 = vst [vmem:[#allocation0 + $0x38] sm:$0x1] %v433_v2  }
  0x30   :  { %437 = vst [vmem:[#allocation0 + $0xb7] sm:$0x2] %v433_v2   ;;  %441 = vst [vmem:[#allocation0 + $0x21] sm:$0x1] %v439_v3   ;;  %v397_v8 = vld [vmem:[#allocation1 + $0x68] sm:$0x3]  }
  0x31   :  { %443 = vst [vmem:[#allocation0 + $0xa0] sm:$0x2] %v439_v3   ;;  %447 = vst [vmem:[#allocation0 + $0x29] sm:$0x1] %v445_v4   ;;  %v403_v9 = vld [vmem:[#allocation1 + $0x70] sm:$0x3]  }
  0x32   :  { %449 = vst [vmem:[#allocation0 + $0xa8] sm:$0x2] %v445_v4   ;;  %v409_v10 = vld [vmem:[#allocation1 + $0x78] sm:$0x3]   ;;  %417 = vst [vmem:[#allocation0 + $0x20] sm:$0x1] %v415_v5  }
  0x33   :  { %419 = vst [vmem:[#allocation0 + $0x9f] sm:$0x2] %v415_v5   ;;  %423 = vst [vmem:[#allocation0 + $0x28] sm:$0x1] %v421_v6   ;;  %v379_v11 = vld [vmem:[#allocation1 + $0x50] sm:$0x3]  }
  0x34   :  { %425 = vst [vmem:[#allocation0 + $0xa7] sm:$0x2] %v421_v6   ;;  %429 = vst [vmem:[#allocation0 + $0x30] sm:$0x1] %v427_v7   ;;  %v385_v12 = vld [vmem:[#allocation1 + $0x58] sm:$0x3]  }
  0x35   :  { %431 = vst [vmem:[#allocation0 + $0xaf] sm:$0x2] %v427_v7   ;;  %v391_v13 = vld [vmem:[#allocation1 + $0x60] sm:$0x3]   ;;  %399 = vst [vmem:[#allocation0 + $0xb] sm:$0x1] %v397_v8  }
  0x36   :  { %401 = vst [vmem:[#allocation0 + $0x8a] sm:$0x2] %v397_v8   ;;  %405 = vst [vmem:[#allocation0 + $0x13] sm:$0x1] %v403_v9   ;;  %v361_v14 = vld [vmem:[#allocation1 + $0x38] sm:$0x3]  }
  0x37   :  { %407 = vst [vmem:[#allocation0 + $0x92] sm:$0x2] %v403_v9   ;;  %411 = vst [vmem:[#allocation0 + $0x1b] sm:$0x1] %v409_v10   ;;  %v367_v15 = vld [vmem:[#allocation1 + $0x40] sm:$0x3]  }
  0x38   :  { %413 = vst [vmem:[#allocation0 + $0x9a] sm:$0x2] %v409_v10   ;;  %v373_v16 = vld [vmem:[#allocation1 + $0x48] sm:$0x3]   ;;  %381 = vst [vmem:[#allocation0 + $0x12] sm:$0x1] %v379_v11  }
  0x39   :  { %383 = vst [vmem:[#allocation0 + $0x91] sm:$0x2] %v379_v11   ;;  %387 = vst [vmem:[#allocation0 + $0x1a] sm:$0x1] %v385_v12   ;;  %v343_v17 = vld [vmem:[#allocation1 + $0x20] sm:$0x3]  }
  0x3a   :  { %389 = vst [vmem:[#allocation0 + $0x99] sm:$0x2] %v385_v12   ;;  %393 = vst [vmem:[#allocation0 + $0x3] sm:$0x1] %v391_v13   ;;  %v349_v18 = vld [vmem:[#allocation1 + $0x28] sm:$0x3]  }
  0x3b   :  { %395 = vst [vmem:[#allocation0 + $0x82] sm:$0x2] %v391_v13   ;;  %v355_v19 = vld [vmem:[#allocation1 + $0x30] sm:$0x3]   ;;  %363 = vst [vmem:[#allocation0 + $0x19] sm:$0x1] %v361_v14  }
  0x3c   :  { %365 = vst [vmem:[#allocation0 + $0x98] sm:$0x2] %v361_v14   ;;  %369 = vst [vmem:[#allocation0 + $0x2] sm:$0x1] %v367_v15   ;;  %v325_v20 = vld [vmem:[#allocation1 + $0x8] sm:$0x3]  }
  0x3d   :  { %371 = vst [vmem:[#allocation0 + $0x81] sm:$0x2] %v367_v15   ;;  %375 = vst [vmem:[#allocation0 + $0xa] sm:$0x1] %v373_v16   ;;  %v331_v21 = vld [vmem:[#allocation1 + $0x10] sm:$0x3]  }
  0x3e   :  { %377 = vst [vmem:[#allocation0 + $0x89] sm:$0x2] %v373_v16   ;;  %v337_v22 = vld [vmem:[#allocation1 + $0x18] sm:$0x3]   ;;  %345 = vst [vmem:[#allocation0 + $0x1] sm:$0x1] %v343_v17  }
  0x3f   :  { %347 = vst [vmem:[#allocation0 + $0x80] sm:$0x2] %v343_v17   ;;  %351 = vst [vmem:[#allocation0 + $0x9] sm:$0x1] %v349_v18   ;;  %v320_v23 = vld [vmem:[#allocation1] sm:$0x3]  }
  0x40   :  { %353 = vst [vmem:[#allocation0 + $0x88] sm:$0x2] %v349_v18   ;;  %357 = vst [vmem:[#allocation0 + $0x11] sm:$0x1] %v355_v19   ;;  %v463_v24 = vld [vmem:[#allocation1 + $0xc0] sm:$0x3]  }
  0x41   :  { %359 = vst [vmem:[#allocation0 + $0x90] sm:$0x2] %v355_v19   ;;  %327 = vst [vmem:[#allocation0 + $0x8] sm:$0x1] %v325_v20   ;;  %v469_v25 = vld [vmem:[#allocation1 + $0xc8] sm:$0x3]  }
  0x42   :  { %329 = vst [vmem:[#allocation0 + $0x87] sm:$0x2] %v325_v20   ;;  %333 = vst [vmem:[#allocation0 + $0x10] sm:$0x1] %v331_v21   ;;  %v475_v26 = vld [vmem:[#allocation1 + $0xd0] sm:$0x3]  }
  0x43   :  { %335 = vst [vmem:[#allocation0 + $0x8f] sm:$0x2] %v331_v21   ;;  %339 = vst [vmem:[#allocation0 + $0x18] sm:$0x1] %v337_v22   ;;  %v481_v27 = vld [vmem:[#allocation1 + $0xd8] sm:$0x3]  }
  0x44   :  { %341 = vst [vmem:[#allocation0 + $0x97] sm:$0x2] %v337_v22   ;;  %321 = vst [vmem:[#allocation0] sm:$0x1] %v320_v23   ;;  %v487_v28 = vld [vmem:[#allocation1 + $0xe0] sm:$0x3]  }
  0x45   :  { %323 = vst [vmem:[#allocation0 + $0x7f] sm:$0x2] %v320_v23   ;;  %465 = vst [vmem:[#allocation0 + $0x22] sm:$0x1] %v463_v24   ;;  %v493_v29 = vld [vmem:[#allocation1 + $0xe8] sm:$0x3]  }
  0x46   :  { %467 = vst [vmem:[#allocation0 + $0xa1] sm:$0x2] %v463_v24   ;;  %471 = vst [vmem:[#allocation0 + $0x2a] sm:$0x1] %v469_v25   ;;  %v499_v30 = vld [vmem:[#allocation1 + $0xf0] sm:$0x3]  }
  0x47   :  { %473 = vst [vmem:[#allocation0 + $0xa9] sm:$0x2] %v469_v25   ;;  %477 = vst [vmem:[#allocation0 + $0x32] sm:$0x1] %v475_v26   ;;  %v505_v31 = vld [vmem:[#allocation1 + $0xf8] sm:$0x3]  }
  0x48   :  { %479 = vst [vmem:[#allocation0 + $0xb1] sm:$0x2] %v475_v26   ;;  %483 = vst [vmem:[#allocation0 + $0x3a] sm:$0x1] %v481_v27   ;;  %v511_v32 = vld [vmem:[#allocation1 + $0x100] sm:$0x3]  }
  0x49   :  { %485 = vst [vmem:[#allocation0 + $0xb9] sm:$0x2] %v481_v27   ;;  %489 = vst [vmem:[#allocation0 + $0x23] sm:$0x1] %v487_v28   ;;  %v517_v33 = vld [vmem:[#allocation1 + $0x108] sm:$0x3]  }
  0x4a   :  { %491 = vst [vmem:[#allocation0 + $0xa2] sm:$0x2] %v487_v28   ;;  %495 = vst [vmem:[#allocation0 + $0x2b] sm:$0x1] %v493_v29   ;;  %v523_v34 = vld [vmem:[#allocation1 + $0x110] sm:$0x3]  }
  0x4b   :  { %497 = vst [vmem:[#allocation0 + $0xaa] sm:$0x2] %v493_v29   ;;  %501 = vst [vmem:[#allocation0 + $0x33] sm:$0x1] %v499_v30   ;;  %v529_v35 = vld [vmem:[#allocation1 + $0x118] sm:$0x3]  }
  0x4c   :  { %503 = vst [vmem:[#allocation0 + $0xb2] sm:$0x2] %v499_v30   ;;  %507 = vst [vmem:[#allocation0 + $0x3b] sm:$0x1] %v505_v31   ;;  %v535_v36 = vld [vmem:[#allocation1 + $0x120] sm:$0x3]  }
  0x4d   :  { %509 = vst [vmem:[#allocation0 + $0xba] sm:$0x2] %v505_v31   ;;  %513 = vst [vmem:[#allocation0 + $0x40] sm:$0x1] %v511_v32   ;;  %v541_v37 = vld [vmem:[#allocation1 + $0x128] sm:$0x3]  }
  0x4e   :  { %515 = vst [vmem:[#allocation0 + $0xbf] sm:$0x2] %v511_v32   ;;  %519 = vst [vmem:[#allocation0 + $0x48] sm:$0x1] %v517_v33   ;;  %v547_v38 = vld [vmem:[#allocation1 + $0x130] sm:$0x3]  }
  0x4f   :  { %521 = vst [vmem:[#allocation0 + $0xc7] sm:$0x2] %v517_v33   ;;  %525 = vst [vmem:[#allocation0 + $0x50] sm:$0x1] %v523_v34   ;;  %v553_v39 = vld [vmem:[#allocation1 + $0x138] sm:$0x3]  }
  0x50   :  { %527 = vst [vmem:[#allocation0 + $0xcf] sm:$0x2] %v523_v34   ;;  %531 = vst [vmem:[#allocation0 + $0x58] sm:$0x1] %v529_v35   ;;  %v559_v40 = vld [vmem:[#allocation1 + $0x140] sm:$0x3]  }
  0x51   :  { %533 = vst [vmem:[#allocation0 + $0xd7] sm:$0x2] %v529_v35   ;;  %537 = vst [vmem:[#allocation0 + $0x41] sm:$0x1] %v535_v36   ;;  %v565_v41 = vld [vmem:[#allocation1 + $0x148] sm:$0x3]  }
  0x52   :  { %539 = vst [vmem:[#allocation0 + $0xc0] sm:$0x2] %v535_v36   ;;  %543 = vst [vmem:[#allocation0 + $0x49] sm:$0x1] %v541_v37   ;;  %v571_v42 = vld [vmem:[#allocation1 + $0x150] sm:$0x3]  }
  0x53   :  { %545 = vst [vmem:[#allocation0 + $0xc8] sm:$0x2] %v541_v37   ;;  %549 = vst [vmem:[#allocation0 + $0x51] sm:$0x1] %v547_v38   ;;  %v577_v43 = vld [vmem:[#allocation1 + $0x158] sm:$0x3]  }
  0x54   :  { %551 = vst [vmem:[#allocation0 + $0xd0] sm:$0x2] %v547_v38   ;;  %555 = vst [vmem:[#allocation0 + $0x59] sm:$0x1] %v553_v39   ;;  %v583_v44 = vld [vmem:[#allocation1 + $0x160] sm:$0x3]  }
  0x55   :  { %557 = vst [vmem:[#allocation0 + $0xd8] sm:$0x2] %v553_v39   ;;  %561 = vst [vmem:[#allocation0 + $0x42] sm:$0x1] %v559_v40   ;;  %v589_v45 = vld [vmem:[#allocation1 + $0x168] sm:$0x3]  }
  0x56   :  { %563 = vst [vmem:[#allocation0 + $0xc1] sm:$0x2] %v559_v40   ;;  %567 = vst [vmem:[#allocation0 + $0x4a] sm:$0x1] %v565_v41   ;;  %v595_v46 = vld [vmem:[#allocation1 + $0x170] sm:$0x3]  }
  0x57   :  { %569 = vst [vmem:[#allocation0 + $0xc9] sm:$0x2] %v565_v41   ;;  %573 = vst [vmem:[#allocation0 + $0x52] sm:$0x1] %v571_v42   ;;  %v601_v47 = vld [vmem:[#allocation1 + $0x178] sm:$0x3]  }
  0x58   :  { %575 = vst [vmem:[#allocation0 + $0xd1] sm:$0x2] %v571_v42   ;;  %579 = vst [vmem:[#allocation0 + $0x5a] sm:$0x1] %v577_v43   ;;  %v607_v48 = vld [vmem:[#allocation1 + $0x180] sm:$0x3]  }
  0x59   :  { %581 = vst [vmem:[#allocation0 + $0xd9] sm:$0x2] %v577_v43   ;;  %585 = vst [vmem:[#allocation0 + $0x43] sm:$0x1] %v583_v44   ;;  %v613_v49 = vld [vmem:[#allocation1 + $0x188] sm:$0x3]  }
  0x5a   :  { %587 = vst [vmem:[#allocation0 + $0xc2] sm:$0x2] %v583_v44   ;;  %591 = vst [vmem:[#allocation0 + $0x4b] sm:$0x1] %v589_v45   ;;  %v619_v50 = vld [vmem:[#allocation1 + $0x190] sm:$0x3]  }
  0x5b   :  { %593 = vst [vmem:[#allocation0 + $0xca] sm:$0x2] %v589_v45   ;;  %597 = vst [vmem:[#allocation0 + $0x53] sm:$0x1] %v595_v46   ;;  %v625_v51 = vld [vmem:[#allocation1 + $0x198] sm:$0x3]  }
  0x5c   :  { %599 = vst [vmem:[#allocation0 + $0xd2] sm:$0x2] %v595_v46   ;;  %603 = vst [vmem:[#allocation0 + $0x5b] sm:$0x1] %v601_v47   ;;  %v631_v52 = vld [vmem:[#allocation1 + $0x1a0] sm:$0x3]  }
  0x5d   :  { %605 = vst [vmem:[#allocation0 + $0xda] sm:$0x2] %v601_v47   ;;  %609 = vst [vmem:[#allocation0 + $0x60] sm:$0x1] %v607_v48   ;;  %v637_v53 = vld [vmem:[#allocation1 + $0x1a8] sm:$0x3]  }
  0x5e   :  { %611 = vst [vmem:[#allocation0 + $0xdf] sm:$0x2] %v607_v48   ;;  %615 = vst [vmem:[#allocation0 + $0x68] sm:$0x1] %v613_v49   ;;  %v643_v54 = vld [vmem:[#allocation1 + $0x1b0] sm:$0x3]  }
  0x5f   :  { %617 = vst [vmem:[#allocation0 + $0xe7] sm:$0x2] %v613_v49   ;;  %621 = vst [vmem:[#allocation0 + $0x70] sm:$0x1] %v619_v50   ;;  %v649_v55 = vld [vmem:[#allocation1 + $0x1b8] sm:$0x3]  }
  0x60   :  { %623 = vst [vmem:[#allocation0 + $0xef] sm:$0x2] %v619_v50   ;;  %627 = vst [vmem:[#allocation0 + $0x78] sm:$0x1] %v625_v51   ;;  %v655_v56 = vld [vmem:[#allocation1 + $0x1c0] sm:$0x3]  }
  0x61   :  { %629 = vst [vmem:[#allocation0 + $0xf7] sm:$0x2] %v625_v51   ;;  %633 = vst [vmem:[#allocation0 + $0x61] sm:$0x1] %v631_v52   ;;  %v661_v57 = vld [vmem:[#allocation1 + $0x1c8] sm:$0x3]  }
  0x62   :  { %635 = vst [vmem:[#allocation0 + $0xe0] sm:$0x2] %v631_v52   ;;  %639 = vst [vmem:[#allocation0 + $0x69] sm:$0x1] %v637_v53   ;;  %v667_v58 = vld [vmem:[#allocation1 + $0x1d0] sm:$0x3]  }
  0x63   :  { %641 = vst [vmem:[#allocation0 + $0xe8] sm:$0x2] %v637_v53   ;;  %645 = vst [vmem:[#allocation0 + $0x71] sm:$0x1] %v643_v54   ;;  %v673_v59 = vld [vmem:[#allocation1 + $0x1d8] sm:$0x3]  }
  0x64   :  { %647 = vst [vmem:[#allocation0 + $0xf0] sm:$0x2] %v643_v54   ;;  %651 = vst [vmem:[#allocation0 + $0x79] sm:$0x1] %v649_v55   ;;  %v679_v60 = vld [vmem:[#allocation1 + $0x1e0] sm:$0x3]  }
  0x65   :  { %653 = vst [vmem:[#allocation0 + $0xf8] sm:$0x2] %v649_v55   ;;  %657 = vst [vmem:[#allocation0 + $0x62] sm:$0x1] %v655_v56   ;;  %v685_v61 = vld [vmem:[#allocation1 + $0x1e8] sm:$0x3]  }
  0x66   :  { %659 = vst [vmem:[#allocation0 + $0xe1] sm:$0x2] %v655_v56   ;;  %663 = vst [vmem:[#allocation0 + $0x6a] sm:$0x1] %v661_v57   ;;  %v691_v62 = vld [vmem:[#allocation1 + $0x1f0] sm:$0x3]  }
  0x67   :  { %665 = vst [vmem:[#allocation0 + $0xe9] sm:$0x2] %v661_v57   ;;  %669 = vst [vmem:[#allocation0 + $0x72] sm:$0x1] %v667_v58   ;;  %v697_v63 = vld [vmem:[#allocation1 + $0x1f8] sm:$0x3]  }
  0x68   :  { %671 = vst [vmem:[#allocation0 + $0xf1] sm:$0x2] %v667_v58   ;;  %675 = vst [vmem:[#allocation0 + $0x7a] sm:$0x1] %v673_v59   ;;  %v705_v0 = vld [vmem:[#allocation0] sm:$0xf] }
  0x69   :  { %677 = vst [vmem:[#allocation0 + $0xf9] sm:$0x2] %v673_v59   ;;  %681 = vst [vmem:[#allocation0 + $0x63] sm:$0x1] %v679_v60   ;;  %v709_v1 = vld [vmem:[#allocation0 + $0x8] sm:$0xf] }
  0x6a   :  { %683 = vst [vmem:[#allocation0 + $0xe2] sm:$0x2] %v679_v60   ;;  %687 = vst [vmem:[#allocation0 + $0x6b] sm:$0x1] %v685_v61   ;;  %v714_v2 = vld [vmem:[#allocation0 + $0x10] sm:$0xf] }
  0x6b   :  { %689 = vst [vmem:[#allocation0 + $0xea] sm:$0x2] %v685_v61   ;;  %693 = vst [vmem:[#allocation0 + $0x73] sm:$0x1] %v691_v62   ;;  %v720_v3 = vld [vmem:[#allocation0 + $0x18] sm:$0xf] }
  0x6c   :  { %695 = vst [vmem:[#allocation0 + $0xf2] sm:$0x2] %v691_v62   ;;  %699 = vst [vmem:[#allocation0 + $0x7b] sm:$0x1] %v697_v63   ;;  %v726_v4 = vld [vmem:[#allocation0 + $0x20] sm:$0xf] }
  0x6d   :  { %701 = vst [vmem:[#allocation0 + $0xfa] sm:$0x2] %v697_v63   ;;  %707 = vst [vmem:[%s1378_s1] sm:$0xf] %v705_v0  ;;  %v732_v5 = vld [vmem:[#allocation0 + $0x28] sm:$0xf] }
  0x6e   :  { %1048 = vst [vmem:[%s1378_s1 + $0x4] sm:$0xf] %v709_v1  ;;  %1049 = vst [vmem:[%s1378_s1 + $0x8] sm:$0xf] %v714_v2  ;;  %v738_v6 = vld [vmem:[#allocation0 + $0x30] sm:$0xf] }
  0x6f   :  { %1050 = vst [vmem:[%s1378_s1 + $0xc] sm:$0xf] %v720_v3  ;;  %1051 = vst [vmem:[%s1378_s1 + $0x10] sm:$0xf] %v726_v4  ;;  %v744_v7 = vld [vmem:[#allocation0 + $0x38] sm:$0xf] }
  0x70   :  { %1052 = vst [vmem:[%s1378_s1 + $0x14] sm:$0xf] %v732_v5  ;;  %1053 = vst [vmem:[%s1378_s1 + $0x18] sm:$0xf] %v738_v6  ;;  %v750_v8 = vld [vmem:[#allocation0 + $0x40] sm:$0xf] }
  0x71   :  { %v756_v9 = vld [vmem:[#allocation0 + $0x48] sm:$0xf]  ;;  %1054 = vst [vmem:[%s1378_s1 + $0x1c] sm:$0xf] %v744_v7  ;;  %1055 = vst [vmem:[%s1378_s1 + $0x20] sm:$0xf] %v750_v8 }
  0x72   :  { %1056 = vst [vmem:[%s1378_s1 + $0x24] sm:$0xf] %v756_v9  ;;  %v762_v10 = vld [vmem:[#allocation0 + $0x50] sm:$0xf]  ;;  %v768_v11 = vld [vmem:[#allocation0 + $0x58] sm:$0xf] }
  0x73   :  { %v798_v12 = vld [vmem:[#allocation0 + $0x80] sm:$0xf]  ;;  %1057 = vst [vmem:[%s1378_s1 + $0x28] sm:$0xf] %v762_v10  ;;  %1058 = vst [vmem:[%s1378_s1 + $0x2c] sm:$0xf] %v768_v11 }
  0x74   :  { %1063 = vst [vmem:[%s1378_s1 + $0x40] sm:$0xf] %v798_v12  ;;  %v804_v13 = vld [vmem:[#allocation0 + $0x88] sm:$0xf]  ;;  %v810_v14 = vld [vmem:[#allocation0 + $0x90] sm:$0xf] }
  0x75   :  { %v816_v15 = vld [vmem:[#allocation0 + $0x98] sm:$0xf]  ;;  %1064 = vst [vmem:[%s1378_s1 + $0x44] sm:$0xf] %v804_v13  ;;  %1065 = vst [vmem:[%s1378_s1 + $0x48] sm:$0xf] %v810_v14 }
  0x76   :  { %1066 = vst [vmem:[%s1378_s1 + $0x4c] sm:$0xf] %v816_v15  ;;  %v822_v16 = vld [vmem:[#allocation0 + $0xa0] sm:$0xf]  ;;  %v828_v17 = vld [vmem:[#allocation0 + $0xa8] sm:$0xf] }
  0x77   :  { %v834_v18 = vld [vmem:[#allocation0 + $0xb0] sm:$0xf]  ;;  %v774_v19 = vld [vmem:[#allocation0 + $0x60] sm:$0xf]  ;;  %v780_v20 = vld [vmem:[#allocation0 + $0x68] sm:$0xf] }
  0x78   :  { %1067 = vst [vmem:[%s1378_s1 + $0x50] sm:$0xf] %v822_v16  ;;  %1068 = vst [vmem:[%s1378_s1 + $0x54] sm:$0xf] %v828_v17  ;;  %v840_v21 = vld [vmem:[#allocation0 + $0xb8] sm:$0xf] }
  0x79   :  { %1069 = vst [vmem:[%s1378_s1 + $0x58] sm:$0xf] %v834_v18  ;;  %1059 = vst [vmem:[%s1378_s1 + $0x30] sm:$0xf] %v774_v19  ;;  %v786_v22 = vld [vmem:[#allocation0 + $0x70] sm:$0xf] }
  0x7a   :  { %1060 = vst [vmem:[%s1378_s1 + $0x34] sm:$0xf] %v780_v20  ;;  %v792_v23 = vld [vmem:[#allocation0 + $0x78] sm:$0xf]  ;;  %1070 = vst [vmem:[%s1378_s1 + $0x5c] sm:$0xf] %v840_v21 }
  0x7b   :  { %v846_v24 = vld [vmem:[#allocation0 + $0xc0] sm:$0xf]  ;;  %1061 = vst [vmem:[%s1378_s1 + $0x38] sm:$0xf] %v786_v22  ;;  %1062 = vst [vmem:[%s1378_s1 + $0x3c] sm:$0xf] %v792_v23 }
  0x7c   :  { %1071 = vst [vmem:[%s1378_s1 + $0x60] sm:$0xf] %v846_v24  ;;  %v852_v25 = vld [vmem:[#allocation0 + $0xc8] sm:$0xf]  ;;  %v858_v26 = vld [vmem:[#allocation0 + $0xd0] sm:$0xf] }
  0x7d   :  { %v864_v27 = vld [vmem:[#allocation0 + $0xd8] sm:$0xf]  ;;  %1072 = vst [vmem:[%s1378_s1 + $0x64] sm:$0xf] %v852_v25  ;;  %1073 = vst [vmem:[%s1378_s1 + $0x68] sm:$0xf] %v858_v26 }
  0x7e   :  { %1074 = vst [vmem:[%s1378_s1 + $0x6c] sm:$0xf] %v864_v27  ;;  %v870_v28 = vld [vmem:[#allocation0 + $0xe0] sm:$0xf]  ;;  %v876_v29 = vld [vmem:[#allocation0 + $0xe8] sm:$0xf] }
  0x7f   :  { %v882_v30 = vld [vmem:[#allocation0 + $0xf0] sm:$0xf]  ;;  %1075 = vst [vmem:[%s1378_s1 + $0x70] sm:$0xf] %v870_v28  ;;  %1076 = vst [vmem:[%s1378_s1 + $0x74] sm:$0xf] %v876_v29 }
  0x80   :  { %1077 = vst [vmem:[%s1378_s1 + $0x78] sm:$0xf] %v882_v30  ;;  %v888_v31 = vld [vmem:[#allocation0 + $0xf8] sm:$0xf] }
  0x81   :  { %1078 = vst [vmem:[%s1378_s1 + $0x7c] sm:$0xf] %v888_v31 }

// kernel: generator_forward.5
= control target key start
LH: loop header
LB: loop body
LE: loop exit
PB: predicated region body
PF: predicated region fallthrough
CT: control target
= control target key end

     0   :  { %s4803_s15 = smov 0   ;;  %s4805_s16 = smov 0   ;;  %s6064_s0 = inlined_call_operand.vmem [shape: bf16[1,16,128], index: 0, kind: input, shape index: {}]   ;;  %s6065_s1 = inlined_call_operand.vmem [shape: bf16[1,128,8192], index: 1, kind: input, shape index: {}]   ;;  %s6066_s2 = inlined_call_operand.vmem [shape: f32[1,16,8192], index: 2, kind: output, shape index: {0}]   ;;  %s6067_s3 = inlined_call_operand.vmem [shape: f32[1,1,8192], index: 3, kind: output, shape index: {1}]   ;;  %s6068_s4 = inlined_call_operand.vmem [shape: f32[1,1,8192], index: 4, kind: output, shape index: {2}]  }
   0x1   :  { %s4807_s17 = smov 0   ;;  %s4809_s18 = smov 0  }
   0x2   :  { %s4811_s19 = smov 0  }
   0x3 LB: > { %s24_s20 = sadd.s32 1, %s4770_s18  ;;  %s4415_s21 = sadd.s32 4294967295, %s4774_s19   ;;  %s4774_s19 = sphi %s4811_s19, %s15_s19   ;;  %s4770_s18 = sphi %s4809_s18, %s6073_s18   ;;  %s4766_s17 = sphi %s4807_s17, %s6072_s17   ;;  %s4762_s16 = sphi %s4805_s16, %s6071_s16   ;;  %s4758_s15 = sphi %s4803_s15, %s6070_s15  }
   0x4   : > { %p25_p0 = scmp.ge.s32.totalorder %s24_s20, 2  ;;  %p69_p1 = scmp.ne.s32.totalorder %s4762_s16, %s4758_s15 }
   0x5   : > { %p70_p2 = scmp.eq.s32.totalorder %s4774_s19, 0  ;;  %p101_p4 = scmp.eq.s32.totalorder %s4415_s21, 1 }
   0x6   : > { %s6075_s20 = smov (%p25_p0, %s24_s20), 0  ;;  %s62_s23 = sadd.s32 1, %s4762_s16 }
   0x7   : > { %p71_p3 = por %p70_p2, %p69_p1  ;;  %s58_s22 = ssub.s32 %s4770_s18, %s6075_s20 }
   0x8   : > { %p60_p5 = scmp.eq.s32.totalorder %s58_s22, 0  ;;  %p4838_p6 = por %p101_p4, %p69_p1 }
   0x9   : > { %p4419_p7 = scmp.ge.s32.totalorder %s4774_s19, 2 }
   0xa   : > { %s4843_s25 = scalar_select %p60_p5, %s4762_s16, %s62_s23  }
   0xb   : > { %187 = sbr.rel (%p4419_p7) target bundleno = 150 (0x96), region = 20 }
  0x12   : > { %190 = sbr.rel (!%p71_p3) target bundleno = 150 (0x96), region = 24  ;;  %s192_s26 = sand.u32 (%p71_p3), 1, %s4762_s16  }
  0x13   : > { %s4690_s27 = sshll.u32 (%p71_p3), %s4770_s18, 7  ;;  %s4420_s28 = sshll.u32 (%p71_p3), %s192_s26, 11 }
  0x14   : > { %s4851_s5 = scalar_lea.vmem (%p71_p3), %s6065_s1, %s4690_s27  ;;  %s4856_s6 = scalar_lea.vmem (%p71_p3), [#allocation2], %s4420_s28 }
  0x15   : > { %v212_v0 = vld [vmem:[%s4851_s5] sm:$0xff] (%p71_p3)  ;;  %v214_v1 = vld [vmem:[%s4851_s5 + $0x8] sm:$0xff] (%p71_p3)  ;;  %v216_v2 = vld [vmem:[%s4851_s5 + $0x10] sm:$0xff] (%p71_p3) }
  0x16   : > { %213 = vst [vmem:[%s4856_s6] sm:$0xff] (%p71_p3), %v212_v0  ;;  %215 = vst [vmem:[%s4856_s6 + $0x8] sm:$0xff] (%p71_p3), %v214_v1  ;;  %v218_v3 = vld [vmem:[%s4851_s5 + $0x18] sm:$0xff] (%p71_p3)  ;;  %v220_v4 = vld [vmem:[%s4851_s5 + $0x20] sm:$0xff] (%p71_p3) }
  0x17   : > { %217 = vst [vmem:[%s4856_s6 + $0x10] sm:$0xff] (%p71_p3), %v216_v2  ;;  %v222_v5 = vld [vmem:[%s4851_s5 + $0x28] sm:$0xff] (%p71_p3)  ;;  %219 = vst [vmem:[%s4856_s6 + $0x18] sm:$0xff] (%p71_p3), %v218_v3  ;;  %v224_v6 = vld [vmem:[%s4851_s5 + $0x30] sm:$0xff] (%p71_p3) }
  0x18   : > { %221 = vst [vmem:[%s4856_s6 + $0x20] sm:$0xff] (%p71_p3), %v220_v4  ;;  %223 = vst [vmem:[%s4856_s6 + $0x28] sm:$0xff] (%p71_p3), %v222_v5  ;;  %v226_v7 = vld [vmem:[%s4851_s5 + $0x38] sm:$0xff] (%p71_p3)  ;;  %v228_v8 = vld [vmem:[%s4851_s5 + $0x40] sm:$0xff] (%p71_p3) }
  0x19   : > { %225 = vst [vmem:[%s4856_s6 + $0x30] sm:$0xff] %v224_v6  ;;  %227 = vst [vmem:[%s4856_s6 + $0x38] sm:$0xff] %v226_v7  ;;  %v230_v9 = vld [vmem:[%s4851_s5 + $0x48] sm:$0xff]  ;;  %v232_v10 = vld [vmem:[%s4851_s5 + $0x50] sm:$0xff] }
  0x1a   : > { %229 = vst [vmem:[%s4856_s6 + $0x40] sm:$0xff] %v228_v8  ;;  %v234_v11 = vld [vmem:[%s4851_s5 + $0x58] sm:$0xff]  ;;  %231 = vst [vmem:[%s4856_s6 + $0x48] sm:$0xff] %v230_v9  ;;  %v236_v12 = vld [vmem:[%s4851_s5 + $0x60] sm:$0xff] }
  0x1b   : > { %233 = vst [vmem:[%s4856_s6 + $0x50] sm:$0xff] %v232_v10  ;;  %235 = vst [vmem:[%s4856_s6 + $0x58] sm:$0xff] %v234_v11  ;;  %v238_v13 = vld [vmem:[%s4851_s5 + $0x68] sm:$0xff]  ;;  %v240_v14 = vld [vmem:[%s4851_s5 + $0x70] sm:$0xff] }
  0x1c   : > { %237 = vst [vmem:[%s4856_s6 + $0x60] sm:$0xff] %v236_v12  ;;  %239 = vst [vmem:[%s4856_s6 + $0x68] sm:$0xff] %v238_v13  ;;  %v242_v15 = vld [vmem:[%s4851_s5 + $0x78] sm:$0xff]  ;;  %v244_v16 = vld [vmem:[%s4851_s5 + $0x100] sm:$0xff] }
  0x1d   : > { %241 = vst [vmem:[%s4856_s6 + $0x70] sm:$0xff] %v240_v14  ;;  %v246_v17 = vld [vmem:[%s4851_s5 + $0x108] sm:$0xff]  ;;  %243 = vst [vmem:[%s4856_s6 + $0x78] sm:$0xff] %v242_v15  ;;  %v248_v18 = vld [vmem:[%s4851_s5 + $0x110] sm:$0xff] }
  0x1e   : > { %245 = vst [vmem:[%s4856_s6 + $0x80] sm:$0xff] %v244_v16  ;;  %247 = vst [vmem:[%s4856_s6 + $0x88] sm:$0xff] %v246_v17  ;;  %v250_v19 = vld [vmem:[%s4851_s5 + $0x118] sm:$0xff]  ;;  %v252_v20 = vld [vmem:[%s4851_s5 + $0x120] sm:$0xff] }
  0x1f   : > { %249 = vst [vmem:[%s4856_s6 + $0x90] sm:$0xff] %v248_v18  ;;  %251 = vst [vmem:[%s4856_s6 + $0x98] sm:$0xff] %v250_v19  ;;  %v254_v21 = vld [vmem:[%s4851_s5 + $0x128] sm:$0xff]  ;;  %v256_v22 = vld [vmem:[%s4851_s5 + $0x130] sm:$0xff] }
  0x20   : > { %253 = vst [vmem:[%s4856_s6 + $0xa0] sm:$0xff] %v252_v20  ;;  %v258_v23 = vld [vmem:[%s4851_s5 + $0x138] sm:$0xff]  ;;  %255 = vst [vmem:[%s4856_s6 + $0xa8] sm:$0xff] %v254_v21  ;;  %v260_v24 = vld [vmem:[%s4851_s5 + $0x140] sm:$0xff] }
  0x21   : > { %257 = vst [vmem:[%s4856_s6 + $0xb0] sm:$0xff] %v256_v22  ;;  %259 = vst [vmem:[%s4856_s6 + $0xb8] sm:$0xff] %v258_v23  ;;  %v262_v25 = vld [vmem:[%s4851_s5 + $0x148] sm:$0xff]  ;;  %v264_v26 = vld [vmem:[%s4851_s5 + $0x150] sm:$0xff] }
  0x22   : > { %261 = vst [vmem:[%s4856_s6 + $0xc0] sm:$0xff] %v260_v24  ;;  %263 = vst [vmem:[%s4856_s6 + $0xc8] sm:$0xff] %v262_v25  ;;  %v266_v27 = vld [vmem:[%s4851_s5 + $0x158] sm:$0xff]  ;;  %v268_v28 = vld [vmem:[%s4851_s5 + $0x160] sm:$0xff] }
  0x23   : > { %265 = vst [vmem:[%s4856_s6 + $0xd0] sm:$0xff] %v264_v26  ;;  %v270_v29 = vld [vmem:[%s4851_s5 + $0x168] sm:$0xff]  ;;  %267 = vst [vmem:[%s4856_s6 + $0xd8] sm:$0xff] %v266_v27  ;;  %v272_v30 = vld [vmem:[%s4851_s5 + $0x170] sm:$0xff] }
  0x24   : > { %269 = vst [vmem:[%s4856_s6 + $0xe0] sm:$0xff] %v268_v28  ;;  %271 = vst [vmem:[%s4856_s6 + $0xe8] sm:$0xff] %v270_v29  ;;  %v274_v31 = vld [vmem:[%s4851_s5 + $0x178] sm:$0xff]  ;;  %v276_v32 = vld [vmem:[%s4851_s5 + $0x200] sm:$0xff] }
  0x25   : > { %273 = vst [vmem:[%s4856_s6 + $0xf0] sm:$0xff] %v272_v30  ;;  %275 = vst [vmem:[%s4856_s6 + $0xf8] sm:$0xff] %v274_v31  ;;  %v278_v33 = vld [vmem:[%s4851_s5 + $0x208] sm:$0xff]  ;;  %v280_v34 = vld [vmem:[%s4851_s5 + $0x210] sm:$0xff] }
  0x26   : > { %277 = vst [vmem:[%s4856_s6 + $0x100] sm:$0xff] %v276_v32  ;;  %v282_v35 = vld [vmem:[%s4851_s5 + $0x218] sm:$0xff]  ;;  %279 = vst [vmem:[%s4856_s6 + $0x108] sm:$0xff] %v278_v33  ;;  %v284_v36 = vld [vmem:[%s4851_s5 + $0x220] sm:$0xff] }
  0x27   : > { %281 = vst [vmem:[%s4856_s6 + $0x110] sm:$0xff] %v280_v34  ;;  %283 = vst [vmem:[%s4856_s6 + $0x118] sm:$0xff] %v282_v35  ;;  %v286_v37 = vld [vmem:[%s4851_s5 + $0x228] sm:$0xff]  ;;  %v288_v38 = vld [vmem:[%s4851_s5 + $0x230] sm:$0xff] }
  0x28   : > { %285 = vst [vmem:[%s4856_s6 + $0x120] sm:$0xff] %v284_v36  ;;  %287 = vst [vmem:[%s4856_s6 + $0x128] sm:$0xff] %v286_v37  ;;  %v290_v39 = vld [vmem:[%s4851_s5 + $0x238] sm:$0xff]  ;;  %v292_v40 = vld [vmem:[%s4851_s5 + $0x240] sm:$0xff] }
  0x29   : > { %289 = vst [vmem:[%s4856_s6 + $0x130] sm:$0xff] %v288_v38  ;;  %v294_v41 = vld [vmem:[%s4851_s5 + $0x248] sm:$0xff]  ;;  %291 = vst [vmem:[%s4856_s6 + $0x138] sm:$0xff] %v290_v39  ;;  %v296_v42 = vld [vmem:[%s4851_s5 + $0x250] sm:$0xff] }
  0x2a   : > { %293 = vst [vmem:[%s4856_s6 + $0x140] sm:$0xff] %v292_v40  ;;  %295 = vst [vmem:[%s4856_s6 + $0x148] sm:$0xff] %v294_v41  ;;  %v298_v43 = vld [vmem:[%s4851_s5 + $0x258] sm:$0xff]  ;;  %v300_v44 = vld [vmem:[%s4851_s5 + $0x260] sm:$0xff] }
  0x2b   : > { %297 = vst [vmem:[%s4856_s6 + $0x150] sm:$0xff] %v296_v42  ;;  %299 = vst [vmem:[%s4856_s6 + $0x158] sm:$0xff] %v298_v43  ;;  %v302_v45 = vld [vmem:[%s4851_s5 + $0x268] sm:$0xff]  ;;  %v304_v46 = vld [vmem:[%s4851_s5 + $0x270] sm:$0xff] }
  0x2c   : > { %301 = vst [vmem:[%s4856_s6 + $0x160] sm:$0xff] %v300_v44  ;;  %v306_v47 = vld [vmem:[%s4851_s5 + $0x278] sm:$0xff]  ;;  %303 = vst [vmem:[%s4856_s6 + $0x168] sm:$0xff] %v302_v45  ;;  %v308_v48 = vld [vmem:[%s4851_s5 + $0x300] sm:$0xff] }
  0x2d   : > { %305 = vst [vmem:[%s4856_s6 + $0x170] sm:$0xff] %v304_v46  ;;  %307 = vst [vmem:[%s4856_s6 + $0x178] sm:$0xff] %v306_v47  ;;  %v310_v49 = vld [vmem:[%s4851_s5 + $0x308] sm:$0xff]  ;;  %v312_v50 = vld [vmem:[%s4851_s5 + $0x310] sm:$0xff] }
  0x2e   : > { %309 = vst [vmem:[%s4856_s6 + $0x180] sm:$0xff] %v308_v48  ;;  %311 = vst [vmem:[%s4856_s6 + $0x188] sm:$0xff] %v310_v49  ;;  %v314_v51 = vld [vmem:[%s4851_s5 + $0x318] sm:$0xff]  ;;  %v316_v52 = vld [vmem:[%s4851_s5 + $0x320] sm:$0xff] }
  0x2f   : > { %313 = vst [vmem:[%s4856_s6 + $0x190] sm:$0xff] %v312_v50  ;;  %v318_v53 = vld [vmem:[%s4851_s5 + $0x328] sm:$0xff]  ;;  %315 = vst [vmem:[%s4856_s6 + $0x198] sm:$0xff] %v314_v51  ;;  %v320_v54 = vld [vmem:[%s4851_s5 + $0x330] sm:$0xff] }
  0x30   : > { %317 = vst [vmem:[%s4856_s6 + $0x1a0] sm:$0xff] %v316_v52  ;;  %319 = vst [vmem:[%s4856_s6 + $0x1a8] sm:$0xff] %v318_v53  ;;  %v322_v55 = vld [vmem:[%s4851_s5 + $0x338] sm:$0xff]  ;;  %v324_v56 = vld [vmem:[%s4851_s5 + $0x340] sm:$0xff] }
  0x31   : > { %321 = vst [vmem:[%s4856_s6 + $0x1b0] sm:$0xff] %v320_v54  ;;  %323 = vst [vmem:[%s4856_s6 + $0x1b8] sm:$0xff] %v322_v55  ;;  %v326_v57 = vld [vmem:[%s4851_s5 + $0x348] sm:$0xff]  ;;  %v328_v58 = vld [vmem:[%s4851_s5 + $0x350] sm:$0xff] }
  0x32   : > { %325 = vst [vmem:[%s4856_s6 + $0x1c0] sm:$0xff] %v324_v56  ;;  %v330_v59 = vld [vmem:[%s4851_s5 + $0x358] sm:$0xff]  ;;  %327 = vst [vmem:[%s4856_s6 + $0x1c8] sm:$0xff] %v326_v57  ;;  %v332_v60 = vld [vmem:[%s4851_s5 + $0x360] sm:$0xff] }
  0x33   : > { %329 = vst [vmem:[%s4856_s6 + $0x1d0] sm:$0xff] %v328_v58  ;;  %331 = vst [vmem:[%s4856_s6 + $0x1d8] sm:$0xff] %v330_v59  ;;  %v334_v61 = vld [vmem:[%s4851_s5 + $0x368] sm:$0xff]  ;;  %v336_v62 = vld [vmem:[%s4851_s5 + $0x370] sm:$0xff] }
  0x34   : > { %333 = vst [vmem:[%s4856_s6 + $0x1e0] sm:$0xff] %v332_v60  ;;  %335 = vst [vmem:[%s4856_s6 + $0x1e8] sm:$0xff] %v334_v61  ;;  %v338_v63 = vld [vmem:[%s4851_s5 + $0x378] sm:$0xff]  ;;  %v340_v0 = vld [vmem:[%s4851_s5 + $0x400] sm:$0xff] }
  0x35   : > { %337 = vst [vmem:[%s4856_s6 + $0x1f0] sm:$0xff] %v336_v62  ;;  %v342_v1 = vld [vmem:[%s4851_s5 + $0x408] sm:$0xff]  ;;  %339 = vst [vmem:[%s4856_s6 + $0x1f8] sm:$0xff] %v338_v63  ;;  %v344_v2 = vld [vmem:[%s4851_s5 + $0x410] sm:$0xff] }
  0x36   : > { %341 = vst [vmem:[%s4856_s6 + $0x200] sm:$0xff] %v340_v0  ;;  %343 = vst [vmem:[%s4856_s6 + $0x208] sm:$0xff] %v342_v1  ;;  %v346_v3 = vld [vmem:[%s4851_s5 + $0x418] sm:$0xff]  ;;  %v348_v4 = vld [vmem:[%s4851_s5 + $0x420] sm:$0xff] }
  0x37   : > { %345 = vst [vmem:[%s4856_s6 + $0x210] sm:$0xff] %v344_v2  ;;  %347 = vst [vmem:[%s4856_s6 + $0x218] sm:$0xff] %v346_v3  ;;  %v350_v5 = vld [vmem:[%s4851_s5 + $0x428] sm:$0xff]  ;;  %v352_v6 = vld [vmem:[%s4851_s5 + $0x430] sm:$0xff] }
  0x38   : > { %349 = vst [vmem:[%s4856_s6 + $0x220] sm:$0xff] %v348_v4  ;;  %v354_v7 = vld [vmem:[%s4851_s5 + $0x438] sm:$0xff]  ;;  %351 = vst [vmem:[%s4856_s6 + $0x228] sm:$0xff] %v350_v5  ;;  %v356_v8 = vld [vmem:[%s4851_s5 + $0x440] sm:$0xff] }
  0x39   : > { %353 = vst [vmem:[%s4856_s6 + $0x230] sm:$0xff] %v352_v6  ;;  %355 = vst [vmem:[%s4856_s6 + $0x238] sm:$0xff] %v354_v7  ;;  %v358_v9 = vld [vmem:[%s4851_s5 + $0x448] sm:$0xff]  ;;  %v360_v10 = vld [vmem:[%s4851_s5 + $0x450] sm:$0xff] }
  0x3a   : > { %357 = vst [vmem:[%s4856_s6 + $0x240] sm:$0xff] %v356_v8  ;;  %359 = vst [vmem:[%s4856_s6 + $0x248] sm:$0xff] %v358_v9  ;;  %v362_v11 = vld [vmem:[%s4851_s5 + $0x458] sm:$0xff]  ;;  %v364_v12 = vld [vmem:[%s4851_s5 + $0x460] sm:$0xff] }
  0x3b   : > { %361 = vst [vmem:[%s4856_s6 + $0x250] sm:$0xff] %v360_v10  ;;  %v366_v13 = vld [vmem:[%s4851_s5 + $0x468] sm:$0xff]  ;;  %363 = vst [vmem:[%s4856_s6 + $0x258] sm:$0xff] %v362_v11  ;;  %v368_v14 = vld [vmem:[%s4851_s5 + $0x470] sm:$0xff] }
  0x3c   : > { %365 = vst [vmem:[%s4856_s6 + $0x260] sm:$0xff] %v364_v12  ;;  %367 = vst [vmem:[%s4856_s6 + $0x268] sm:$0xff] %v366_v13  ;;  %v370_v15 = vld [vmem:[%s4851_s5 + $0x478] sm:$0xff]  ;;  %v372_v16 = vld [vmem:[%s4851_s5 + $0x500] sm:$0xff] }
  0x3d   : > { %369 = vst [vmem:[%s4856_s6 + $0x270] sm:$0xff] %v368_v14  ;;  %371 = vst [vmem:[%s4856_s6 + $0x278] sm:$0xff] %v370_v15  ;;  %v374_v17 = vld [vmem:[%s4851_s5 + $0x508] sm:$0xff]  ;;  %v376_v18 = vld [vmem:[%s4851_s5 + $0x510] sm:$0xff] }
  0x3e   : > { %373 = vst [vmem:[%s4856_s6 + $0x280] sm:$0xff] %v372_v16  ;;  %v378_v19 = vld [vmem:[%s4851_s5 + $0x518] sm:$0xff]  ;;  %375 = vst [vmem:[%s4856_s6 + $0x288] sm:$0xff] %v374_v17  ;;  %v380_v20 = vld [vmem:[%s4851_s5 + $0x520] sm:$0xff] }
  0x3f   : > { %377 = vst [vmem:[%s4856_s6 + $0x290] sm:$0xff] %v376_v18  ;;  %379 = vst [vmem:[%s4856_s6 + $0x298] sm:$0xff] %v378_v19  ;;  %v382_v21 = vld [vmem:[%s4851_s5 + $0x528] sm:$0xff]  ;;  %v384_v22 = vld [vmem:[%s4851_s5 + $0x530] sm:$0xff] }
  0x40   : > { %381 = vst [vmem:[%s4856_s6 + $0x2a0] sm:$0xff] %v380_v20  ;;  %383 = vst [vmem:[%s4856_s6 + $0x2a8] sm:$0xff] %v382_v21  ;;  %v386_v23 = vld [vmem:[%s4851_s5 + $0x538] sm:$0xff]  ;;  %v388_v24 = vld [vmem:[%s4851_s5 + $0x540] sm:$0xff] }
  0x41   : > { %385 = vst [vmem:[%s4856_s6 + $0x2b0] sm:$0xff] %v384_v22  ;;  %v390_v25 = vld [vmem:[%s4851_s5 + $0x548] sm:$0xff]  ;;  %387 = vst [vmem:[%s4856_s6 + $0x2b8] sm:$0xff] %v386_v23  ;;  %v392_v26 = vld [vmem:[%s4851_s5 + $0x550] sm:$0xff] }
  0x42   : > { %389 = vst [vmem:[%s4856_s6 + $0x2c0] sm:$0xff] %v388_v24  ;;  %391 = vst [vmem:[%s4856_s6 + $0x2c8] sm:$0xff] %v390_v25  ;;  %v394_v27 = vld [vmem:[%s4851_s5 + $0x558] sm:$0xff]  ;;  %v396_v28 = vld [vmem:[%s4851_s5 + $0x560] sm:$0xff] }
  0x43   : > { %393 = vst [vmem:[%s4856_s6 + $0x2d0] sm:$0xff] %v392_v26  ;;  %395 = vst [vmem:[%s4856_s6 + $0x2d8] sm:$0xff] %v394_v27  ;;  %v398_v29 = vld [vmem:[%s4851_s5 + $0x568] sm:$0xff]  ;;  %v400_v30 = vld [vmem:[%s4851_s5 + $0x570] sm:$0xff] }
  0x44   : > { %397 = vst [vmem:[%s4856_s6 + $0x2e0] sm:$0xff] %v396_v28  ;;  %v402_v31 = vld [vmem:[%s4851_s5 + $0x578] sm:$0xff]  ;;  %399 = vst [vmem:[%s4856_s6 + $0x2e8] sm:$0xff] %v398_v29  ;;  %v404_v32 = vld [vmem:[%s4851_s5 + $0x600] sm:$0xff] }
  0x45   : > { %401 = vst [vmem:[%s4856_s6 + $0x2f0] sm:$0xff] %v400_v30  ;;  %403 = vst [vmem:[%s4856_s6 + $0x2f8] sm:$0xff] %v402_v31  ;;  %v406_v33 = vld [vmem:[%s4851_s5 + $0x608] sm:$0xff]  ;;  %v408_v34 = vld [vmem:[%s4851_s5 + $0x610] sm:$0xff] }
  0x46   : > { %405 = vst [vmem:[%s4856_s6 + $0x300] sm:$0xff] %v404_v32  ;;  %407 = vst [vmem:[%s4856_s6 + $0x308] sm:$0xff] %v406_v33  ;;  %v410_v35 = vld [vmem:[%s4851_s5 + $0x618] sm:$0xff]  ;;  %v412_v36 = vld [vmem:[%s4851_s5 + $0x620] sm:$0xff] }
  0x47   : > { %409 = vst [vmem:[%s4856_s6 + $0x310] sm:$0xff] %v408_v34  ;;  %v414_v37 = vld [vmem:[%s4851_s5 + $0x628] sm:$0xff]  ;;  %411 = vst [vmem:[%s4856_s6 + $0x318] sm:$0xff] %v410_v35  ;;  %v416_v38 = vld [vmem:[%s4851_s5 + $0x630] sm:$0xff] }
  0x48   : > { %413 = vst [vmem:[%s4856_s6 + $0x320] sm:$0xff] %v412_v36  ;;  %415 = vst [vmem:[%s4856_s6 + $0x328] sm:$0xff] %v414_v37  ;;  %v418_v39 = vld [vmem:[%s4851_s5 + $0x638] sm:$0xff]  ;;  %v420_v40 = vld [vmem:[%s4851_s5 + $0x640] sm:$0xff] }
  0x49   : > { %417 = vst [vmem:[%s4856_s6 + $0x330] sm:$0xff] %v416_v38  ;;  %419 = vst [vmem:[%s4856_s6 + $0x338] sm:$0xff] %v418_v39  ;;  %v422_v41 = vld [vmem:[%s4851_s5 + $0x648] sm:$0xff]  ;;  %v424_v42 = vld [vmem:[%s4851_s5 + $0x650] sm:$0xff] }
  0x4a   : > { %421 = vst [vmem:[%s4856_s6 + $0x340] sm:$0xff] %v420_v40  ;;  %v426_v43 = vld [vmem:[%s4851_s5 + $0x658] sm:$0xff]  ;;  %423 = vst [vmem:[%s4856_s6 + $0x348] sm:$0xff] %v422_v41  ;;  %v428_v44 = vld [vmem:[%s4851_s5 + $0x660] sm:$0xff] }
  0x4b   : > { %425 = vst [vmem:[%s4856_s6 + $0x350] sm:$0xff] %v424_v42  ;;  %427 = vst [vmem:[%s4856_s6 + $0x358] sm:$0xff] %v426_v43  ;;  %v430_v45 = vld [vmem:[%s4851_s5 + $0x668] sm:$0xff]  ;;  %v432_v46 = vld [vmem:[%s4851_s5 + $0x670] sm:$0xff] }
  0x4c   : > { %429 = vst [vmem:[%s4856_s6 + $0x360] sm:$0xff] %v428_v44  ;;  %431 = vst [vmem:[%s4856_s6 + $0x368] sm:$0xff] %v430_v45  ;;  %v434_v47 = vld [vmem:[%s4851_s5 + $0x678] sm:$0xff]  ;;  %v436_v48 = vld [vmem:[%s4851_s5 + $0x700] sm:$0xff] }
  0x4d   : > { %433 = vst [vmem:[%s4856_s6 + $0x370] sm:$0xff] %v432_v46  ;;  %v438_v49 = vld [vmem:[%s4851_s5 + $0x708] sm:$0xff]  ;;  %435 = vst [vmem:[%s4856_s6 + $0x378] sm:$0xff] %v434_v47  ;;  %v440_v50 = vld [vmem:[%s4851_s5 + $0x710] sm:$0xff] }
  0x4e   : > { %437 = vst [vmem:[%s4856_s6 + $0x380] sm:$0xff] %v436_v48  ;;  %439 = vst [vmem:[%s4856_s6 + $0x388] sm:$0xff] %v438_v49  ;;  %v442_v51 = vld [vmem:[%s4851_s5 + $0x718] sm:$0xff]  ;;  %v444_v52 = vld [vmem:[%s4851_s5 + $0x720] sm:$0xff] }
  0x4f   : > { %441 = vst [vmem:[%s4856_s6 + $0x390] sm:$0xff] %v440_v50  ;;  %443 = vst [vmem:[%s4856_s6 + $0x398] sm:$0xff] %v442_v51  ;;  %v446_v53 = vld [vmem:[%s4851_s5 + $0x728] sm:$0xff]  ;;  %v448_v54 = vld [vmem:[%s4851_s5 + $0x730] sm:$0xff] }
  0x50   : > { %445 = vst [vmem:[%s4856_s6 + $0x3a0] sm:$0xff] %v444_v52  ;;  %v450_v55 = vld [vmem:[%s4851_s5 + $0x738] sm:$0xff]  ;;  %447 = vst [vmem:[%s4856_s6 + $0x3a8] sm:$0xff] %v446_v53  ;;  %v452_v56 = vld [vmem:[%s4851_s5 + $0x740] sm:$0xff] }
  0x51   : > { %449 = vst [vmem:[%s4856_s6 + $0x3b0] sm:$0xff] %v448_v54  ;;  %451 = vst [vmem:[%s4856_s6 + $0x3b8] sm:$0xff] %v450_v55  ;;  %v454_v57 = vld [vmem:[%s4851_s5 + $0x748] sm:$0xff]  ;;  %v456_v58 = vld [vmem:[%s4851_s5 + $0x750] sm:$0xff] }
  0x52   : > { %453 = vst [vmem:[%s4856_s6 + $0x3c0] sm:$0xff] %v452_v56  ;;  %455 = vst [vmem:[%s4856_s6 + $0x3c8] sm:$0xff] %v454_v57  ;;  %v458_v59 = vld [vmem:[%s4851_s5 + $0x758] sm:$0xff]  ;;  %v460_v60 = vld [vmem:[%s4851_s5 + $0x760] sm:$0xff] }
  0x53   : > { %457 = vst [vmem:[%s4856_s6 + $0x3d0] sm:$0xff] %v456_v58  ;;  %v462_v61 = vld [vmem:[%s4851_s5 + $0x768] sm:$0xff]  ;;  %459 = vst [vmem:[%s4856_s6 + $0x3d8] sm:$0xff] %v458_v59  ;;  %v464_v62 = vld [vmem:[%s4851_s5 + $0x770] sm:$0xff] }
  0x54   : > { %461 = vst [vmem:[%s4856_s6 + $0x3e0] sm:$0xff] %v460_v60  ;;  %463 = vst [vmem:[%s4856_s6 + $0x3e8] sm:$0xff] %v462_v61  ;;  %v466_v63 = vld [vmem:[%s4851_s5 + $0x778] sm:$0xff]  ;;  %v468_v0 = vld [vmem:[%s4851_s5 + $0x800] sm:$0xff] }
  0x55   : > { %465 = vst [vmem:[%s4856_s6 + $0x3f0] sm:$0xff] %v464_v62  ;;  %467 = vst [vmem:[%s4856_s6 + $0x3f8] sm:$0xff] %v466_v63  ;;  %v470_v1 = vld [vmem:[%s4851_s5 + $0x808] sm:$0xff]  ;;  %v472_v2 = vld [vmem:[%s4851_s5 + $0x810] sm:$0xff] }
  0x56   : > { %469 = vst [vmem:[%s4856_s6 + $0x400] sm:$0xff] %v468_v0  ;;  %v474_v3 = vld [vmem:[%s4851_s5 + $0x818] sm:$0xff]  ;;  %471 = vst [vmem:[%s4856_s6 + $0x408] sm:$0xff] %v470_v1  ;;  %v476_v4 = vld [vmem:[%s4851_s5 + $0x820] sm:$0xff] }
  0x57   : > { %473 = vst [vmem:[%s4856_s6 + $0x410] sm:$0xff] %v472_v2  ;;  %475 = vst [vmem:[%s4856_s6 + $0x418] sm:$0xff] %v474_v3  ;;  %v478_v5 = vld [vmem:[%s4851_s5 + $0x828] sm:$0xff]  ;;  %v480_v6 = vld [vmem:[%s4851_s5 + $0x830] sm:$0xff] }
  0x58   : > { %477 = vst [vmem:[%s4856_s6 + $0x420] sm:$0xff] %v476_v4  ;;  %479 = vst [vmem:[%s4856_s6 + $0x428] sm:$0xff] %v478_v5  ;;  %v482_v7 = vld [vmem:[%s4851_s5 + $0x838] sm:$0xff]  ;;  %v484_v8 = vld [vmem:[%s4851_s5 + $0x840] sm:$0xff] }
  0x59   : > { %481 = vst [vmem:[%s4856_s6 + $0x430] sm:$0xff] %v480_v6  ;;  %v486_v9 = vld [vmem:[%s4851_s5 + $0x848] sm:$0xff]  ;;  %483 = vst [vmem:[%s4856_s6 + $0x438] sm:$0xff] %v482_v7  ;;  %v488_v10 = vld [vmem:[%s4851_s5 + $0x850] sm:$0xff] }
  0x5a   : > { %485 = vst [vmem:[%s4856_s6 + $0x440] sm:$0xff] %v484_v8  ;;  %487 = vst [vmem:[%s4856_s6 + $0x448] sm:$0xff] %v486_v9  ;;  %v490_v11 = vld [vmem:[%s4851_s5 + $0x858] sm:$0xff]  ;;  %v492_v12 = vld [vmem:[%s4851_s5 + $0x860] sm:$0xff] }
  0x5b   : > { %489 = vst [vmem:[%s4856_s6 + $0x450] sm:$0xff] %v488_v10  ;;  %491 = vst [vmem:[%s4856_s6 + $0x458] sm:$0xff] %v490_v11  ;;  %v494_v13 = vld [vmem:[%s4851_s5 + $0x868] sm:$0xff]  ;;  %v496_v14 = vld [vmem:[%s4851_s5 + $0x870] sm:$0xff] }
  0x5c   : > { %493 = vst [vmem:[%s4856_s6 + $0x460] sm:$0xff] %v492_v12  ;;  %v498_v15 = vld [vmem:[%s4851_s5 + $0x878] sm:$0xff]  ;;  %495 = vst [vmem:[%s4856_s6 + $0x468] sm:$0xff] %v494_v13  ;;  %v500_v16 = vld [vmem:[%s4851_s5 + $0x900] sm:$0xff] }
  0x5d   : > { %497 = vst [vmem:[%s4856_s6 + $0x470] sm:$0xff] %v496_v14  ;;  %499 = vst [vmem:[%s4856_s6 + $0x478] sm:$0xff] %v498_v15  ;;  %v502_v17 = vld [vmem:[%s4851_s5 + $0x908] sm:$0xff]  ;;  %v504_v18 = vld [vmem:[%s4851_s5 + $0x910] sm:$0xff] }
  0x5e   : > { %501 = vst [vmem:[%s4856_s6 + $0x480] sm:$0xff] %v500_v16  ;;  %503 = vst [vmem:[%s4856_s6 + $0x488] sm:$0xff] %v502_v17  ;;  %v506_v19 = vld [vmem:[%s4851_s5 + $0x918] sm:$0xff]  ;;  %v508_v20 = vld [vmem:[%s4851_s5 + $0x920] sm:$0xff] }
  0x5f   : > { %505 = vst [vmem:[%s4856_s6 + $0x490] sm:$0xff] %v504_v18  ;;  %v510_v21 = vld [vmem:[%s4851_s5 + $0x928] sm:$0xff]  ;;  %507 = vst [vmem:[%s4856_s6 + $0x498] sm:$0xff] %v506_v19  ;;  %v512_v22 = vld [vmem:[%s4851_s5 + $0x930] sm:$0xff] }
  0x60   : > { %509 = vst [vmem:[%s4856_s6 + $0x4a0] sm:$0xff] %v508_v20  ;;  %511 = vst [vmem:[%s4856_s6 + $0x4a8] sm:$0xff] %v510_v21  ;;  %v514_v23 = vld [vmem:[%s4851_s5 + $0x938] sm:$0xff]  ;;  %v516_v24 = vld [vmem:[%s4851_s5 + $0x940] sm:$0xff] }
  0x61   : > { %513 = vst [vmem:[%s4856_s6 + $0x4b0] sm:$0xff] %v512_v22  ;;  %515 = vst [vmem:[%s4856_s6 + $0x4b8] sm:$0xff] %v514_v23  ;;  %v518_v25 = vld [vmem:[%s4851_s5 + $0x948] sm:$0xff]  ;;  %v520_v26 = vld [vmem:[%s4851_s5 + $0x950] sm:$0xff] }
  0x62   : > { %517 = vst [vmem:[%s4856_s6 + $0x4c0] sm:$0xff] %v516_v24  ;;  %v522_v27 = vld [vmem:[%s4851_s5 + $0x958] sm:$0xff]  ;;  %519 = vst [vmem:[%s4856_s6 + $0x4c8] sm:$0xff] %v518_v25  ;;  %v524_v28 = vld [vmem:[%s4851_s5 + $0x960] sm:$0xff] }
  0x63   : > { %521 = vst [vmem:[%s4856_s6 + $0x4d0] sm:$0xff] %v520_v26  ;;  %523 = vst [vmem:[%s4856_s6 + $0x4d8] sm:$0xff] %v522_v27  ;;  %v526_v29 = vld [vmem:[%s4851_s5 + $0x968] sm:$0xff]  ;;  %v528_v30 = vld [vmem:[%s4851_s5 + $0x970] sm:$0xff] }
  0x64   : > { %525 = vst [vmem:[%s4856_s6 + $0x4e0] sm:$0xff] %v524_v28  ;;  %527 = vst [vmem:[%s4856_s6 + $0x4e8] sm:$0xff] %v526_v29  ;;  %v530_v31 = vld [vmem:[%s4851_s5 + $0x978] sm:$0xff]  ;;  %v532_v32 = vld [vmem:[%s4851_s5 + $0xa00] sm:$0xff] }
  0x65   : > { %529 = vst [vmem:[%s4856_s6 + $0x4f0] sm:$0xff] %v528_v30  ;;  %v534_v33 = vld [vmem:[%s4851_s5 + $0xa08] sm:$0xff]  ;;  %531 = vst [vmem:[%s4856_s6 + $0x4f8] sm:$0xff] %v530_v31  ;;  %v536_v34 = vld [vmem:[%s4851_s5 + $0xa10] sm:$0xff] }
  0x66   : > { %533 = vst [vmem:[%s4856_s6 + $0x500] sm:$0xff] %v532_v32  ;;  %535 = vst [vmem:[%s4856_s6 + $0x508] sm:$0xff] %v534_v33  ;;  %v538_v35 = vld [vmem:[%s4851_s5 + $0xa18] sm:$0xff]  ;;  %v540_v36 = vld [vmem:[%s4851_s5 + $0xa20] sm:$0xff] }
  0x67   : > { %537 = vst [vmem:[%s4856_s6 + $0x510] sm:$0xff] %v536_v34  ;;  %539 = vst [vmem:[%s4856_s6 + $0x518] sm:$0xff] %v538_v35  ;;  %v542_v37 = vld [vmem:[%s4851_s5 + $0xa28] sm:$0xff]  ;;  %v544_v38 = vld [vmem:[%s4851_s5 + $0xa30] sm:$0xff] }
  0x68   : > { %541 = vst [vmem:[%s4856_s6 + $0x520] sm:$0xff] %v540_v36  ;;  %v546_v39 = vld [vmem:[%s4851_s5 + $0xa38] sm:$0xff]  ;;  %543 = vst [vmem:[%s4856_s6 + $0x528] sm:$0xff] %v542_v37  ;;  %v548_v40 = vld [vmem:[%s4851_s5 + $0xa40] sm:$0xff] }
  0x69   : > { %545 = vst [vmem:[%s4856_s6 + $0x530] sm:$0xff] %v544_v38  ;;  %547 = vst [vmem:[%s4856_s6 + $0x538] sm:$0xff] %v546_v39  ;;  %v550_v41 = vld [vmem:[%s4851_s5 + $0xa48] sm:$0xff]  ;;  %v552_v42 = vld [vmem:[%s4851_s5 + $0xa50] sm:$0xff] }
  0x6a   : > { %549 = vst [vmem:[%s4856_s6 + $0x540] sm:$0xff] %v548_v40  ;;  %551 = vst [vmem:[%s4856_s6 + $0x548] sm:$0xff] %v550_v41  ;;  %v554_v43 = vld [vmem:[%s4851_s5 + $0xa58] sm:$0xff]  ;;  %v556_v44 = vld [vmem:[%s4851_s5 + $0xa60] sm:$0xff] }
  0x6b   : > { %553 = vst [vmem:[%s4856_s6 + $0x550] sm:$0xff] %v552_v42  ;;  %v558_v45 = vld [vmem:[%s4851_s5 + $0xa68] sm:$0xff]  ;;  %555 = vst [vmem:[%s4856_s6 + $0x558] sm:$0xff] %v554_v43  ;;  %v560_v46 = vld [vmem:[%s4851_s5 + $0xa70] sm:$0xff] }
  0x6c   : > { %557 = vst [vmem:[%s4856_s6 + $0x560] sm:$0xff] %v556_v44  ;;  %559 = vst [vmem:[%s4856_s6 + $0x568] sm:$0xff] %v558_v45  ;;  %v562_v47 = vld [vmem:[%s4851_s5 + $0xa78] sm:$0xff]  ;;  %v564_v48 = vld [vmem:[%s4851_s5 + $0xb00] sm:$0xff] }
  0x6d   : > { %561 = vst [vmem:[%s4856_s6 + $0x570] sm:$0xff] %v560_v46  ;;  %563 = vst [vmem:[%s4856_s6 + $0x578] sm:$0xff] %v562_v47  ;;  %v566_v49 = vld [vmem:[%s4851_s5 + $0xb08] sm:$0xff]  ;;  %v568_v50 = vld [vmem:[%s4851_s5 + $0xb10] sm:$0xff] }
  0x6e   : > { %565 = vst [vmem:[%s4856_s6 + $0x580] sm:$0xff] %v564_v48  ;;  %v570_v51 = vld [vmem:[%s4851_s5 + $0xb18] sm:$0xff]  ;;  %567 = vst [vmem:[%s4856_s6 + $0x588] sm:$0xff] %v566_v49  ;;  %v572_v52 = vld [vmem:[%s4851_s5 + $0xb20] sm:$0xff] }
  0x6f   : > { %569 = vst [vmem:[%s4856_s6 + $0x590] sm:$0xff] %v568_v50  ;;  %571 = vst [vmem:[%s4856_s6 + $0x598] sm:$0xff] %v570_v51  ;;  %v574_v53 = vld [vmem:[%s4851_s5 + $0xb28] sm:$0xff]  ;;  %v576_v54 = vld [vmem:[%s4851_s5 + $0xb30] sm:$0xff] }
  0x70   : > { %573 = vst [vmem:[%s4856_s6 + $0x5a0] sm:$0xff] %v572_v52  ;;  %575 = vst [vmem:[%s4856_s6 + $0x5a8] sm:$0xff] %v574_v53  ;;  %v578_v55 = vld [vmem:[%s4851_s5 + $0xb38] sm:$0xff]  ;;  %v580_v56 = vld [vmem:[%s4851_s5 + $0xb40] sm:$0xff] }
  0x71   : > { %577 = vst [vmem:[%s4856_s6 + $0x5b0] sm:$0xff] %v576_v54  ;;  %v582_v57 = vld [vmem:[%s4851_s5 + $0xb48] sm:$0xff]  ;;  %579 = vst [vmem:[%s4856_s6 + $0x5b8] sm:$0xff] %v578_v55  ;;  %v584_v58 = vld [vmem:[%s4851_s5 + $0xb50] sm:$0xff] }
  0x72   : > { %581 = vst [vmem:[%s4856_s6 + $0x5c0] sm:$0xff] %v580_v56  ;;  %583 = vst [vmem:[%s4856_s6 + $0x5c8] sm:$0xff] %v582_v57  ;;  %v586_v59 = vld [vmem:[%s4851_s5 + $0xb58] sm:$0xff]  ;;  %v588_v60 = vld [vmem:[%s4851_s5 + $0xb60] sm:$0xff] }
  0x73   : > { %585 = vst [vmem:[%s4856_s6 + $0x5d0] sm:$0xff] %v584_v58  ;;  %587 = vst [vmem:[%s4856_s6 + $0x5d8] sm:$0xff] %v586_v59  ;;  %v590_v61 = vld [vmem:[%s4851_s5 + $0xb68] sm:$0xff]  ;;  %v592_v62 = vld [vmem:[%s4851_s5 + $0xb70] sm:$0xff] }
  0x74   : > { %589 = vst [vmem:[%s4856_s6 + $0x5e0] sm:$0xff] %v588_v60  ;;  %v594_v63 = vld [vmem:[%s4851_s5 + $0xb78] sm:$0xff]  ;;  %591 = vst [vmem:[%s4856_s6 + $0x5e8] sm:$0xff] %v590_v61  ;;  %v596_v0 = vld [vmem:[%s4851_s5 + $0xc00] sm:$0xff] }
  0x75   : > { %593 = vst [vmem:[%s4856_s6 + $0x5f0] sm:$0xff] %v592_v62  ;;  %595 = vst [vmem:[%s4856_s6 + $0x5f8] sm:$0xff] %v594_v63  ;;  %v598_v1 = vld [vmem:[%s4851_s5 + $0xc08] sm:$0xff]  ;;  %v600_v2 = vld [vmem:[%s4851_s5 + $0xc10] sm:$0xff] }
  0x76   : > { %597 = vst [vmem:[%s4856_s6 + $0x600] sm:$0xff] %v596_v0  ;;  %599 = vst [vmem:[%s4856_s6 + $0x608] sm:$0xff] %v598_v1  ;;  %v602_v3 = vld [vmem:[%s4851_s5 + $0xc18] sm:$0xff]  ;;  %v604_v4 = vld [vmem:[%s4851_s5 + $0xc20] sm:$0xff] }
  0x77   : > { %601 = vst [vmem:[%s4856_s6 + $0x610] sm:$0xff] %v600_v2  ;;  %v606_v5 = vld [vmem:[%s4851_s5 + $0xc28] sm:$0xff]  ;;  %603 = vst [vmem:[%s4856_s6 + $0x618] sm:$0xff] %v602_v3  ;;  %v608_v6 = vld [vmem:[%s4851_s5 + $0xc30] sm:$0xff] }
  0x78   : > { %605 = vst [vmem:[%s4856_s6 + $0x620] sm:$0xff] %v604_v4  ;;  %607 = vst [vmem:[%s4856_s6 + $0x628] sm:$0xff] %v606_v5  ;;  %v610_v7 = vld [vmem:[%s4851_s5 + $0xc38] sm:$0xff]  ;;  %v612_v8 = vld [vmem:[%s4851_s5 + $0xc40] sm:$0xff] }
  0x79   : > { %609 = vst [vmem:[%s4856_s6 + $0x630] sm:$0xff] %v608_v6  ;;  %611 = vst [vmem:[%s4856_s6 + $0x638] sm:$0xff] %v610_v7  ;;  %v614_v9 = vld [vmem:[%s4851_s5 + $0xc48] sm:$0xff]  ;;  %v616_v10 = vld [vmem:[%s4851_s5 + $0xc50] sm:$0xff] }
  0x7a   : > { %613 = vst [vmem:[%s4856_s6 + $0x640] sm:$0xff] %v612_v8  ;;  %v618_v11 = vld [vmem:[%s4851_s5 + $0xc58] sm:$0xff]  ;;  %615 = vst [vmem:[%s4856_s6 + $0x648] sm:$0xff] %v614_v9  ;;  %v620_v12 = vld [vmem:[%s4851_s5 + $0xc60] sm:$0xff] }
  0x7b   : > { %617 = vst [vmem:[%s4856_s6 + $0x650] sm:$0xff] %v616_v10  ;;  %619 = vst [vmem:[%s4856_s6 + $0x658] sm:$0xff] %v618_v11  ;;  %v622_v13 = vld [vmem:[%s4851_s5 + $0xc68] sm:$0xff]  ;;  %v624_v14 = vld [vmem:[%s4851_s5 + $0xc70] sm:$0xff] }
  0x7c   : > { %621 = vst [vmem:[%s4856_s6 + $0x660] sm:$0xff] %v620_v12  ;;  %623 = vst [vmem:[%s4856_s6 + $0x668] sm:$0xff] %v622_v13  ;;  %v626_v15 = vld [vmem:[%s4851_s5 + $0xc78] sm:$0xff]  ;;  %v628_v16 = vld [vmem:[%s4851_s5 + $0xd00] sm:$0xff] }
  0x7d   : > { %625 = vst [vmem:[%s4856_s6 + $0x670] sm:$0xff] %v624_v14  ;;  %v630_v17 = vld [vmem:[%s4851_s5 + $0xd08] sm:$0xff]  ;;  %627 = vst [vmem:[%s4856_s6 + $0x678] sm:$0xff] %v626_v15  ;;  %v632_v18 = vld [vmem:[%s4851_s5 + $0xd10] sm:$0xff] }
  0x7e   : > { %629 = vst [vmem:[%s4856_s6 + $0x680] sm:$0xff] %v628_v16  ;;  %631 = vst [vmem:[%s4856_s6 + $0x688] sm:$0xff] %v630_v17  ;;  %v634_v19 = vld [vmem:[%s4851_s5 + $0xd18] sm:$0xff]  ;;  %v636_v20 = vld [vmem:[%s4851_s5 + $0xd20] sm:$0xff] }
  0x7f   : > { %633 = vst [vmem:[%s4856_s6 + $0x690] sm:$0xff] %v632_v18  ;;  %635 = vst [vmem:[%s4856_s6 + $0x698] sm:$0xff] %v634_v19  ;;  %v638_v21 = vld [vmem:[%s4851_s5 + $0xd28] sm:$0xff]  ;;  %v640_v22 = vld [vmem:[%s4851_s5 + $0xd30] sm:$0xff] }
  0x80   : > { %637 = vst [vmem:[%s4856_s6 + $0x6a0] sm:$0xff] %v636_v20  ;;  %v642_v23 = vld [vmem:[%s4851_s5 + $0xd38] sm:$0xff]  ;;  %639 = vst [vmem:[%s4856_s6 + $0x6a8] sm:$0xff] %v638_v21  ;;  %v644_v24 = vld [vmem:[%s4851_s5 + $0xd40] sm:$0xff] }
  0x81   : > { %641 = vst [vmem:[%s4856_s6 + $0x6b0] sm:$0xff] %v640_v22  ;;  %643 = vst [vmem:[%s4856_s6 + $0x6b8] sm:$0xff] %v642_v23  ;;  %v646_v25 = vld [vmem:[%s4851_s5 + $0xd48] sm:$0xff]  ;;  %v648_v26 = vld [vmem:[%s4851_s5 + $0xd50] sm:$0xff] }
  0x82   : > { %645 = vst [vmem:[%s4856_s6 + $0x6c0] sm:$0xff] %v644_v24  ;;  %647 = vst [vmem:[%s4856_s6 + $0x6c8] sm:$0xff] %v646_v25  ;;  %v650_v27 = vld [vmem:[%s4851_s5 + $0xd58] sm:$0xff]  ;;  %v652_v28 = vld [vmem:[%s4851_s5 + $0xd60] sm:$0xff] }
  0x83   : > { %649 = vst [vmem:[%s4856_s6 + $0x6d0] sm:$0xff] %v648_v26  ;;  %v654_v29 = vld [vmem:[%s4851_s5 + $0xd68] sm:$0xff]  ;;  %651 = vst [vmem:[%s4856_s6 + $0x6d8] sm:$0xff] %v650_v27  ;;  %v656_v30 = vld [vmem:[%s4851_s5 + $0xd70] sm:$0xff] }
  0x84   : > { %653 = vst [vmem:[%s4856_s6 + $0x6e0] sm:$0xff] %v652_v28  ;;  %655 = vst [vmem:[%s4856_s6 + $0x6e8] sm:$0xff] %v654_v29  ;;  %v658_v31 = vld [vmem:[%s4851_s5 + $0xd78] sm:$0xff]  ;;  %v660_v32 = vld [vmem:[%s4851_s5 + $0xe00] sm:$0xff] }
  0x85   : > { %657 = vst [vmem:[%s4856_s6 + $0x6f0] sm:$0xff] %v656_v30  ;;  %659 = vst [vmem:[%s4856_s6 + $0x6f8] sm:$0xff] %v658_v31  ;;  %v662_v33 = vld [vmem:[%s4851_s5 + $0xe08] sm:$0xff]  ;;  %v664_v34 = vld [vmem:[%s4851_s5 + $0xe10] sm:$0xff] }
  0x86   : > { %661 = vst [vmem:[%s4856_s6 + $0x700] sm:$0xff] %v660_v32  ;;  %v666_v35 = vld [vmem:[%s4851_s5 + $0xe18] sm:$0xff]  ;;  %663 = vst [vmem:[%s4856_s6 + $0x708] sm:$0xff] %v662_v33  ;;  %v668_v36 = vld [vmem:[%s4851_s5 + $0xe20] sm:$0xff] }
  0x87   : > { %665 = vst [vmem:[%s4856_s6 + $0x710] sm:$0xff] %v664_v34  ;;  %667 = vst [vmem:[%s4856_s6 + $0x718] sm:$0xff] %v666_v35  ;;  %v670_v37 = vld [vmem:[%s4851_s5 + $0xe28] sm:$0xff]  ;;  %v672_v38 = vld [vmem:[%s4851_s5 + $0xe30] sm:$0xff] }
  0x88   : > { %669 = vst [vmem:[%s4856_s6 + $0x720] sm:$0xff] %v668_v36  ;;  %671 = vst [vmem:[%s4856_s6 + $0x728] sm:$0xff] %v670_v37  ;;  %v674_v39 = vld [vmem:[%s4851_s5 + $0xe38] sm:$0xff]  ;;  %v676_v40 = vld [vmem:[%s4851_s5 + $0xe40] sm:$0xff] }
  0x89   : > { %673 = vst [vmem:[%s4856_s6 + $0x730] sm:$0xff] %v672_v38  ;;  %v678_v41 = vld [vmem:[%s4851_s5 + $0xe48] sm:$0xff]  ;;  %675 = vst [vmem:[%s4856_s6 + $0x738] sm:$0xff] %v674_v39  ;;  %v680_v42 = vld [vmem:[%s4851_s5 + $0xe50] sm:$0xff] }
  0x8a   : > { %677 = vst [vmem:[%s4856_s6 + $0x740] sm:$0xff] %v676_v40  ;;  %679 = vst [vmem:[%s4856_s6 + $0x748] sm:$0xff] %v678_v41  ;;  %v682_v43 = vld [vmem:[%s4851_s5 + $0xe58] sm:$0xff]  ;;  %v684_v44 = vld [vmem:[%s4851_s5 + $0xe60] sm:$0xff] }
  0x8b   : > { %681 = vst [vmem:[%s4856_s6 + $0x750] sm:$0xff] %v680_v42  ;;  %683 = vst [vmem:[%s4856_s6 + $0x758] sm:$0xff] %v682_v43  ;;  %v686_v45 = vld [vmem:[%s4851_s5 + $0xe68] sm:$0xff]  ;;  %v688_v46 = vld [vmem:[%s4851_s5 + $0xe70] sm:$0xff] }
  0x8c   : > { %685 = vst [vmem:[%s4856_s6 + $0x760] sm:$0xff] %v684_v44  ;;  %v690_v47 = vld [vmem:[%s4851_s5 + $0xe78] sm:$0xff]  ;;  %687 = vst [vmem:[%s4856_s6 + $0x768] sm:$0xff] %v686_v45  ;;  %v692_v48 = vld [vmem:[%s4851_s5 + $0xf00] sm:$0xff] }
  0x8d   : > { %689 = vst [vmem:[%s4856_s6 + $0x770] sm:$0xff] %v688_v46  ;;  %691 = vst [vmem:[%s4856_s6 + $0x778] sm:$0xff] %v690_v47  ;;  %v694_v49 = vld [vmem:[%s4851_s5 + $0xf08] sm:$0xff]  ;;  %v696_v50 = vld [vmem:[%s4851_s5 + $0xf10] sm:$0xff] }
  0x8e   : > { %693 = vst [vmem:[%s4856_s6 + $0x780] sm:$0xff] %v692_v48  ;;  %695 = vst [vmem:[%s4856_s6 + $0x788] sm:$0xff] %v694_v49  ;;  %v698_v51 = vld [vmem:[%s4851_s5 + $0xf18] sm:$0xff]  ;;  %v700_v52 = vld [vmem:[%s4851_s5 + $0xf20] sm:$0xff] }
  0x8f   : > { %697 = vst [vmem:[%s4856_s6 + $0x790] sm:$0xff] %v696_v50  ;;  %v702_v53 = vld [vmem:[%s4851_s5 + $0xf28] sm:$0xff]  ;;  %699 = vst [vmem:[%s4856_s6 + $0x798] sm:$0xff] %v698_v51  ;;  %v704_v54 = vld [vmem:[%s4851_s5 + $0xf30] sm:$0xff] }
  0x90   : > { %701 = vst [vmem:[%s4856_s6 + $0x7a0] sm:$0xff] %v700_v52  ;;  %703 = vst [vmem:[%s4856_s6 + $0x7a8] sm:$0xff] %v702_v53  ;;  %v706_v55 = vld [vmem:[%s4851_s5 + $0xf38] sm:$0xff]  ;;  %v708_v56 = vld [vmem:[%s4851_s5 + $0xf40] sm:$0xff] }
  0x91   : > { %705 = vst [vmem:[%s4856_s6 + $0x7b0] sm:$0xff] %v704_v54  ;;  %707 = vst [vmem:[%s4856_s6 + $0x7b8] sm:$0xff] %v706_v55  ;;  %v710_v57 = vld [vmem:[%s4851_s5 + $0xf48] sm:$0xff]  ;;  %v712_v58 = vld [vmem:[%s4851_s5 + $0xf50] sm:$0xff] }
  0x92   : > { %709 = vst [vmem:[%s4856_s6 + $0x7c0] sm:$0xff] %v708_v56  ;;  %v714_v59 = vld [vmem:[%s4851_s5 + $0xf58] sm:$0xff]  ;;  %711 = vst [vmem:[%s4856_s6 + $0x7c8] sm:$0xff] %v710_v57  ;;  %v716_v60 = vld [vmem:[%s4851_s5 + $0xf60] sm:$0xff] }
  0x93   : > { %713 = vst [vmem:[%s4856_s6 + $0x7d0] sm:$0xff] %v712_v58  ;;  %715 = vst [vmem:[%s4856_s6 + $0x7d8] sm:$0xff] %v714_v59  ;;  %v718_v61 = vld [vmem:[%s4851_s5 + $0xf68] sm:$0xff]  ;;  %v720_v62 = vld [vmem:[%s4851_s5 + $0xf70] sm:$0xff] }
  0x94   : > { %717 = vst [vmem:[%s4856_s6 + $0x7e0] sm:$0xff] %v716_v60  ;;  %719 = vst [vmem:[%s4856_s6 + $0x7e8] sm:$0xff] %v718_v61  ;;  %v722_v63 = vld [vmem:[%s4851_s5 + $0xf78] sm:$0xff] }
  0x95   : > { %721 = vst [vmem:[%s4856_s6 + $0x7f0] sm:$0xff] %v720_v62  ;;  %723 = vst [vmem:[%s4856_s6 + $0x7f8] sm:$0xff] %v722_v63 }
  0x96 PF: > { %p4423_p8 = scmp.ge.s32.totalorder %s4774_s19, 1  ;;  %p728_p9 = scmp.lt.s32.totalorder %s4774_s19, 3 }
  0x98   : > { %p729_p10 = pnand %p4423_p8, %p728_p9 }
  0x99   : > { %s735_s7 = sand.u32 (!%p729_p10), 1, %s4758_s15   ;;  %v4776_v0 = vmov (!%p729_p10), 0   ;;  %s4426_s21 = sshll.u32 (!%p729_p10), %s4766_s17, 5 }
  0x9a   : > { %732 = sbr.rel (%p729_p10) target bundleno = 670 (0x29e), region = 47  ;;  %s4424_s8 = sshll.u32 (!%p729_p10), %s735_s7, 11  ;;  %2382 = vmatprep.mubr.bf16.mxu0 (!%p729_p10), %v4776_v0  ;;  %2425 = vmatprep.mubr.bf16.mxu1 (!%p729_p10), %v4776_v0 }
  0x9b   : > { %s5374_s9 = scalar_lea.vmem (!%p729_p10), [#allocation2], %s4424_s8  ;;  %s4425_s14 = sshll.u32 (!%p729_p10), %s735_s7, 9 }
  0x9c   : > { %v808_v1 = vld [vmem:[%s5374_s9] sm:$0xff] (!%p729_p10)  ;;  %v809_v3 = vld [vmem:[%s5374_s9 + $0x8] sm:$0xff] (!%p729_p10)  ;;  %v810_v63 = vld [vmem:[%s5374_s9 + $0x10] sm:$0xff] (!%p729_p10)  ;;  %s5696_s15 = scalar_lea.vmem (!%p729_p10), [#allocation3], %s4425_s14  ;;  %p790_p11 = scmp.lt.s32.totalorder (!%p729_p10), %s4426_s21, 63 }
  0x9d   : > { %v824_v2 = vld [vmem:[%s5374_s9 + $0x80] sm:$0xff] (!%p729_p10)  ;;  %v825_v5 = vld [vmem:[%s5374_s9 + $0x88] sm:$0xff] (!%p729_p10) }
  0x9e   : > { %v4430_v4 = vcombine.high (!%p729_p10), %v808_v1, %v824_v2  ;;  %v4429_v6 = vcombine.low (!%p729_p10), %v808_v1, %v824_v2  ;;  %v840_v7 = vld [vmem:[%s5374_s9 + $0x100] sm:$0xff] (!%p729_p10)  ;;  %v4432_v9 = vcombine.high (!%p729_p10), %v809_v3, %v825_v5  ;;  %v4431_v10 = vcombine.low (!%p729_p10), %v809_v3, %v825_v5  ;;  %v841_v12 = vld [vmem:[%s5374_s9 + $0x108] sm:$0xff] (!%p729_p10)  ;;  %v826_v1 = vld [vmem:[%s5374_s9 + $0x90] sm:$0xff] (!%p729_p10) }
  0x9f   : > { %v856_v8 = vld [vmem:[%s5374_s9 + $0x180] sm:$0xff] (!%p729_p10)  ;;  %v857_v13 = vld [vmem:[%s5374_s9 + $0x188] sm:$0xff] (!%p729_p10)  ;;  %v811_v2 = vld [vmem:[%s5374_s9 + $0x18] sm:$0xff] (!%p729_p10) }
  0xa0   : > { %v4462_v11 = vcombine.high (!%p729_p10), %v840_v7, %v856_v8  ;;  %v872_v14 = vld [vmem:[%s5374_s9 + $0x200] sm:$0xff] (!%p729_p10)  ;;  %2350 = vmatprep.subr.bf16.mxu0 (!%p729_p10), %v4430_v4  ;;  %v4464_v15 = vcombine.high (!%p729_p10), %v841_v12, %v857_v13  ;;  %v873_v17 = vld [vmem:[%s5374_s9 + $0x208] sm:$0xff] (!%p729_p10)  ;;  %2393 = vmatprep.subr.bf16.mxu1 (!%p729_p10), %v4432_v9  ;;  %v4461_v19 = vcombine.low (!%p729_p10), %v840_v7, %v856_v8  ;;  %v827_v3 = vld [vmem:[%s5374_s9 + $0x98] sm:$0xff] (!%p729_p10) }
  0xa1   : > { %v888_v16 = vld [vmem:[%s5374_s9 + $0x280] sm:$0xff]  ;;  %v889_v18 = vld [vmem:[%s5374_s9 + $0x288] sm:$0xff]  ;;  %2351 = vmatpush1.bf16.msra.mxu0 %v4429_v6  ;;  %2394 = vmatpush1.bf16.msra.mxu1 %v4431_v10  ;;  %v4463_v20 = vcombine.low %v841_v12, %v857_v13  ;;  %v4434_v6 = vcombine.high %v810_v63, %v826_v1  ;;  %v4436_v7 = vcombine.high %v811_v2, %v827_v3  ;;  %v842_v8 = vld [vmem:[%s5374_s9 + $0x110] sm:$0xff]  ;;  %s6077_s21 = smov (!%p790_p11, %s4426_s21), 63  ;;  %s4691_s30 = sshll.u32 (%p4838_p6), %s4766_s17, 8 }
  0xa2   : > { %2352 = vmatprep.subr.bf16.mxu0 %v4462_v11  ;;  %v4494_v21 = vcombine.high %v872_v14, %v888_v16  ;;  %2395 = vmatprep.subr.bf16.mxu1 %v4464_v15  ;;  %v4496_v22 = vcombine.high %v873_v17, %v889_v18  ;;  %v904_v23 = vld [vmem:[%s5374_s9 + $0x300] sm:$0xff]  ;;  %v905_v25 = vld [vmem:[%s5374_s9 + $0x308] sm:$0xff]  ;;  %v4493_v27 = vcombine.low %v872_v14, %v888_v16  ;;  %v858_v9 = vld [vmem:[%s5374_s9 + $0x190] sm:$0xff]  ;;  %s5755_s26 = scalar_lea.vmem %s6067_s3, %s6077_s21  ;;  %s5765_s29 = scalar_lea.vmem %s6068_s4, %s6077_s21 }
  0xa3   : > { %v920_v24 = vld [vmem:[%s5374_s9 + $0x380] sm:$0xff]  ;;  %v921_v26 = vld [vmem:[%s5374_s9 + $0x388] sm:$0xff]  ;;  %v4495_v28 = vcombine.low %v873_v17, %v889_v18  ;;  %v843_v11 = vld [vmem:[%s5374_s9 + $0x118] sm:$0xff]  ;;  %v4433_v13 = vcombine.low %v810_v63, %v826_v1  ;;  %v4435_v14 = vcombine.low %v811_v2, %v827_v3  ;;  %v4466_v15 = vcombine.high %v842_v8, %v858_v9  ;;  %s5922_s7 = scalar_lea.vmem (%p4838_p6), %s6066_s2, %s4691_s30 }
  0xa4   : > { %v4526_v29 = vcombine.high %v904_v23, %v920_v24  ;;  %v4528_v30 = vcombine.high %v905_v25, %v921_v26  ;;  %v936_v31 = vld [vmem:[%s5374_s9 + $0x400] sm:$0xff]  ;;  %v937_v33 = vld [vmem:[%s5374_s9 + $0x408] sm:$0xff]  ;;  %v4525_v35 = vcombine.low %v904_v23, %v920_v24  ;;  %v4527_v36 = vcombine.low %v905_v25, %v921_v26  ;;  %v859_v12 = vld [vmem:[%s5374_s9 + $0x198] sm:$0xff] }
  0xa5   : > { %2353 = vmatpush1.bf16.msra.mxu0 %v4461_v19  ;;  %2396 = vmatpush1.bf16.msra.mxu1 %v4463_v20  ;;  %v952_v32 = vld [vmem:[%s5374_s9 + $0x480] sm:$0xff]  ;;  %v953_v34 = vld [vmem:[%s5374_s9 + $0x488] sm:$0xff]  ;;  %v4468_v16 = vcombine.high %v843_v11, %v859_v12  ;;  %v874_v17 = vld [vmem:[%s5374_s9 + $0x210] sm:$0xff] }
  0xa6   : > { %2354 = vmatprep.subr.bf16.mxu0 %v4494_v21  ;;  %2397 = vmatprep.subr.bf16.mxu1 %v4496_v22  ;;  %v4558_v37 = vcombine.high %v936_v31, %v952_v32  ;;  %v4560_v38 = vcombine.high %v937_v33, %v953_v34  ;;  %v968_v39 = vld [vmem:[%s5374_s9 + $0x500] sm:$0xff]  ;;  %v969_v41 = vld [vmem:[%s5374_s9 + $0x508] sm:$0xff]  ;;  %v4557_v43 = vcombine.low %v936_v31, %v952_v32  ;;  %v890_v18 = vld [vmem:[%s5374_s9 + $0x290] sm:$0xff] }
  0xa7   : > { %v984_v40 = vld [vmem:[%s5374_s9 + $0x580] sm:$0xff]  ;;  %v985_v42 = vld [vmem:[%s5374_s9 + $0x588] sm:$0xff]  ;;  %v4559_v44 = vcombine.low %v937_v33, %v953_v34  ;;  %v875_v19 = vld [vmem:[%s5374_s9 + $0x218] sm:$0xff]  ;;  %v4465_v21 = vcombine.low %v842_v8, %v858_v9  ;;  %v4467_v22 = vcombine.low %v843_v11, %v859_v12  ;;  %v4498_v23 = vcombine.high %v874_v17, %v890_v18 }
  0xa8   : > { %v4590_v45 = vcombine.high %v968_v39, %v984_v40  ;;  %v4592_v46 = vcombine.high %v969_v41, %v985_v42  ;;  %v1000_v47 = vld [vmem:[%s5374_s9 + $0x600] sm:$0xff]  ;;  %v1001_v49 = vld [vmem:[%s5374_s9 + $0x608] sm:$0xff]  ;;  %v4589_v51 = vcombine.low %v968_v39, %v984_v40  ;;  %v4591_v52 = vcombine.low %v969_v41, %v985_v42  ;;  %v891_v20 = vld [vmem:[%s5374_s9 + $0x298] sm:$0xff] }
  0xa9   : > { %2355 = vmatpush1.bf16.msra.mxu0 %v4493_v27  ;;  %2398 = vmatpush1.bf16.msra.mxu1 %v4495_v28  ;;  %v1016_v48 = vld [vmem:[%s5374_s9 + $0x680] sm:$0xff]  ;;  %v1017_v50 = vld [vmem:[%s5374_s9 + $0x688] sm:$0xff]  ;;  %v4500_v24 = vcombine.high %v875_v19, %v891_v20  ;;  %v906_v25 = vld [vmem:[%s5374_s9 + $0x310] sm:$0xff] }
  0xaa   : > { %2356 = vmatprep.subr.bf16.mxu0 %v4526_v29  ;;  %2399 = vmatprep.subr.bf16.mxu1 %v4528_v30  ;;  %v4622_v53 = vcombine.high %v1000_v47, %v1016_v48  ;;  %v4624_v54 = vcombine.high %v1001_v49, %v1017_v50  ;;  %v1032_v55 = vld [vmem:[%s5374_s9 + $0x700] sm:$0xff]  ;;  %v1033_v57 = vld [vmem:[%s5374_s9 + $0x708] sm:$0xff]  ;;  %v4621_v59 = vcombine.low %v1000_v47, %v1016_v48  ;;  %v922_v26 = vld [vmem:[%s5374_s9 + $0x390] sm:$0xff] }
  0xab   : > { %v1048_v56 = vld [vmem:[%s5374_s9 + $0x780] sm:$0xff]  ;;  %v1049_v58 = vld [vmem:[%s5374_s9 + $0x788] sm:$0xff]  ;;  %v4623_v60 = vcombine.low %v1001_v49, %v1017_v50  ;;  %v907_v27 = vld [vmem:[%s5374_s9 + $0x318] sm:$0xff]  ;;  %v4497_v29 = vcombine.low %v874_v17, %v890_v18  ;;  %v4499_v30 = vcombine.low %v875_v19, %v891_v20  ;;  %v4530_v31 = vcombine.high %v906_v25, %v922_v26 }
  0xac   : > { %v4654_v61 = vcombine.high %v1032_v55, %v1048_v56  ;;  %v4656_v62 = vcombine.high %v1033_v57, %v1049_v58  ;;  %v4653_v4 = vcombine.low %v1032_v55, %v1048_v56  ;;  %v4655_v5 = vcombine.low %v1033_v57, %v1049_v58  ;;  %v5417_v10 = vld [vmem:[%s6064_s0] sm:$0xff]   ;;  %v923_v28 = vld [vmem:[%s5374_s9 + $0x398] sm:$0xff]  ;;  %v938_v33 = vld [vmem:[%s5374_s9 + $0x410] sm:$0xff] }
  0xad   : > { %2357 = vmatpush1.bf16.msra.mxu0 %v4525_v35  ;;  %2400 = vmatpush1.bf16.msra.mxu1 %v4527_v36  ;;  %v4532_v32 = vcombine.high %v907_v27, %v923_v28  ;;  %v954_v34 = vld [vmem:[%s5374_s9 + $0x490] sm:$0xff]  ;;  %v939_v35 = vld [vmem:[%s5374_s9 + $0x418] sm:$0xff]  ;;  %v812_v2 = vld [vmem:[%s5374_s9 + $0x20] sm:$0xff] }
  0xae   : > { %2358 = vmatprep.subr.bf16.mxu0 %v4558_v37  ;;  %2401 = vmatprep.subr.bf16.mxu1 %v4560_v38  ;;  %v955_v36 = vld [vmem:[%s5374_s9 + $0x498] sm:$0xff]  ;;  %v4529_v37 = vcombine.low %v906_v25, %v922_v26  ;;  %v4531_v38 = vcombine.low %v907_v27, %v923_v28  ;;  %v4562_v39 = vcombine.high %v938_v33, %v954_v34  ;;  %v970_v41 = vld [vmem:[%s5374_s9 + $0x510] sm:$0xff]  ;;  %v828_v3 = vld [vmem:[%s5374_s9 + $0xa0] sm:$0xff] }
  0xaf   : > { %v4564_v40 = vcombine.high %v939_v35, %v955_v36  ;;  %v986_v42 = vld [vmem:[%s5374_s9 + $0x590] sm:$0xff]  ;;  %v4438_v8 = vcombine.high %v812_v2, %v828_v3  ;;  %v844_v11 = vld [vmem:[%s5374_s9 + $0x120] sm:$0xff] }
  0xb0   : > { %v4594_v47 = vcombine.high %v970_v41, %v986_v42  ;;  %v1002_v49 = vld [vmem:[%s5374_s9 + $0x610] sm:$0xff]  ;;  %v860_v12 = vld [vmem:[%s5374_s9 + $0x1a0] sm:$0xff] }
  0xb1   : > { %2359 = vmatpush1.bf16.msra.mxu0 %v4557_v43  ;;  %2402 = vmatpush1.bf16.msra.mxu1 %v4559_v44  ;;  %v971_v43 = vld [vmem:[%s5374_s9 + $0x518] sm:$0xff]  ;;  %v1018_v50 = vld [vmem:[%s5374_s9 + $0x690] sm:$0xff]  ;;  %v4470_v17 = vcombine.high %v844_v11, %v860_v12  ;;  %v876_v19 = vld [vmem:[%s5374_s9 + $0x220] sm:$0xff] }
  0xb2   : > { %2360 = vmatprep.subr.bf16.mxu0 %v4590_v45  ;;  %2403 = vmatprep.subr.bf16.mxu1 %v4592_v46  ;;  %v987_v44 = vld [vmem:[%s5374_s9 + $0x598] sm:$0xff]  ;;  %v4561_v45 = vcombine.low %v938_v33, %v954_v34  ;;  %v4563_v46 = vcombine.low %v939_v35, %v955_v36  ;;  %v4626_v55 = vcombine.high %v1002_v49, %v1018_v50  ;;  %v1034_v57 = vld [vmem:[%s5374_s9 + $0x710] sm:$0xff]  ;;  %v892_v20 = vld [vmem:[%s5374_s9 + $0x2a0] sm:$0xff] }
  0xb3   : > { %v4596_v48 = vcombine.high %v971_v43, %v987_v44  ;;  %v1050_v58 = vld [vmem:[%s5374_s9 + $0x790] sm:$0xff]  ;;  %v4502_v25 = vcombine.high %v876_v19, %v892_v20  ;;  %v908_v27 = vld [vmem:[%s5374_s9 + $0x320] sm:$0xff] }
  0xb4   : > { %v4658_v63 = vcombine.high %v1034_v57, %v1050_v58  ;;  %v924_v28 = vld [vmem:[%s5374_s9 + $0x3a0] sm:$0xff] }
  0xb5   : > { %2361 = vmatpush1.bf16.msra.mxu0 %v4589_v51  ;;  %2404 = vmatpush1.bf16.msra.mxu1 %v4591_v52  ;;  %v1003_v51 = vld [vmem:[%s5374_s9 + $0x618] sm:$0xff]  ;;  %v4534_v33 = vcombine.high %v908_v27, %v924_v28  ;;  %v940_v35 = vld [vmem:[%s5374_s9 + $0x420] sm:$0xff] }
  0xb6   : > { %2362 = vmatprep.subr.bf16.mxu0 %v4622_v53  ;;  %2405 = vmatprep.subr.bf16.mxu1 %v4624_v54  ;;  %v1019_v52 = vld [vmem:[%s5374_s9 + $0x698] sm:$0xff]  ;;  %v4593_v53 = vcombine.low %v970_v41, %v986_v42  ;;  %v4595_v54 = vcombine.low %v971_v43, %v987_v44  ;;  %v956_v36 = vld [vmem:[%s5374_s9 + $0x4a0] sm:$0xff] }
  0xb7   : > { %v4628_v56 = vcombine.high %v1003_v51, %v1019_v52  ;;  %v4566_v41 = vcombine.high %v940_v35, %v956_v36  ;;  %v972_v43 = vld [vmem:[%s5374_s9 + $0x520] sm:$0xff] }
  0xb8   : > { %v988_v44 = vld [vmem:[%s5374_s9 + $0x5a0] sm:$0xff] }
  0xb9   : > { %2363 = vmatpush1.bf16.msra.mxu0 %v4621_v59  ;;  %2406 = vmatpush1.bf16.msra.mxu1 %v4623_v60  ;;  %v1035_v59 = vld [vmem:[%s5374_s9 + $0x718] sm:$0xff] }
  0xba   : > { %2364 = vmatprep.subr.bf16.mxu0 %v4654_v61  ;;  %2407 = vmatprep.subr.bf16.mxu1 %v4656_v62  ;;  %v1051_v60 = vld [vmem:[%s5374_s9 + $0x798] sm:$0xff]  ;;  %v4625_v61 = vcombine.low %v1002_v49, %v1018_v50  ;;  %v4627_v62 = vcombine.low %v1003_v51, %v1019_v52  ;;  %v4598_v49 = vcombine.high %v972_v43, %v988_v44  ;;  %v1004_v51 = vld [vmem:[%s5374_s9 + $0x620] sm:$0xff] }
  0xbb   : > { %v4660_v1 = vcombine.high %v1035_v59, %v1051_v60  ;;  %v1020_v52 = vld [vmem:[%s5374_s9 + $0x6a0] sm:$0xff] }
  0xbd   : > { %2365 = vmatpush1.bf16.msra.mxu0 %v4653_v4  ;;  %2408 = vmatpush1.bf16.msra.mxu1 %v4655_v5  ;;  %v813_v4 = vld [vmem:[%s5374_s9 + $0x28] sm:$0xff] }
  0xbe   : > { %2436 = vmatprep.subr.bf16.mxu0 %v4434_v6  ;;  %2479 = vmatprep.subr.bf16.mxu1 %v4436_v7  ;;  %v829_v5 = vld [vmem:[%s5374_s9 + $0xa8] sm:$0xff]  ;;  %v4657_v6 = vcombine.low %v1034_v57, %v1050_v58  ;;  %v4659_v7 = vcombine.low %v1035_v59, %v1051_v60  ;;  %v4630_v57 = vcombine.high %v1004_v51, %v1020_v52  ;;  %v1036_v59 = vld [vmem:[%s5374_s9 + $0x720] sm:$0xff] }
  0xbf   : > { %v4440_v9 = vcombine.high %v813_v4, %v829_v5  ;;  %v1052_v60 = vld [vmem:[%s5374_s9 + $0x7a0] sm:$0xff] }
  0xc0   : > { %2383 = vmatmul.mubr.bf16.vlgmr.msra.gmra.mrb[0].mxu0 %v5417_v10  ;;  %2426 = vmatmul.mubr.bf16.vlgmr.msra.gmra.mrb[0].mxu1 %v5417_v10 }
  0xc1   : > { %2437 = vmatpush1.bf16.msra.mxu0 %v4433_v13  ;;  %2480 = vmatpush1.bf16.msra.mxu1 %v4435_v14  ;;  %v845_v13 = vld [vmem:[%s5374_s9 + $0x128] sm:$0xff] }
  0xc2   : > { %2438 = vmatprep.subr.bf16.mxu0 %v4466_v15  ;;  %2481 = vmatprep.subr.bf16.mxu1 %v4468_v16  ;;  %v861_v14 = vld [vmem:[%s5374_s9 + $0x1a8] sm:$0xff]  ;;  %v4437_v15 = vcombine.low %v812_v2, %v828_v3  ;;  %v4439_v16 = vcombine.low %v813_v4, %v829_v5  ;;  %v4662_v2 = vcombine.high %v1036_v59, %v1052_v60  ;;  %v814_v4 = vld [vmem:[%s5374_s9 + $0x30] sm:$0xff] }
  0xc3   : > { %2468 = vmatprep.mubr.bf16.mxu0 %v4776_v0  ;;  %2511 = vmatprep.mubr.bf16.mxu1 %v4776_v0  ;;  %v4472_v18 = vcombine.high %v845_v13, %v861_v14  ;;  %v830_v5 = vld [vmem:[%s5374_s9 + $0xb0] sm:$0xff] }
  0xc5   : > { %2439 = vmatpush1.bf16.msra.mxu0 %v4465_v21  ;;  %2482 = vmatpush1.bf16.msra.mxu1 %v4467_v22  ;;  %v877_v21 = vld [vmem:[%s5374_s9 + $0x228] sm:$0xff] }
  0xc6   : > { %2440 = vmatprep.subr.bf16.mxu0 %v4498_v23  ;;  %2483 = vmatprep.subr.bf16.mxu1 %v4500_v24  ;;  %v893_v22 = vld [vmem:[%s5374_s9 + $0x2a8] sm:$0xff]  ;;  %v4469_v23 = vcombine.low %v844_v11, %v860_v12  ;;  %v4471_v24 = vcombine.low %v845_v13, %v861_v14  ;;  %v4442_v11 = vcombine.high %v814_v4, %v830_v5  ;;  %v846_v13 = vld [vmem:[%s5374_s9 + $0x130] sm:$0xff] }
  0xc7   : > { %v4504_v26 = vcombine.high %v877_v21, %v893_v22  ;;  %v862_v14 = vld [vmem:[%s5374_s9 + $0x1b0] sm:$0xff] }
  0xc9   : > { %2441 = vmatpush1.bf16.msra.mxu0 %v4497_v29  ;;  %2484 = vmatpush1.bf16.msra.mxu1 %v4499_v30  ;;  %v909_v29 = vld [vmem:[%s5374_s9 + $0x328] sm:$0xff] }
  0xca   : > { %2442 = vmatprep.subr.bf16.mxu0 %v4530_v31  ;;  %2485 = vmatprep.subr.bf16.mxu1 %v4532_v32  ;;  %v925_v30 = vld [vmem:[%s5374_s9 + $0x3a8] sm:$0xff]  ;;  %v4501_v31 = vcombine.low %v876_v19, %v892_v20  ;;  %v4503_v32 = vcombine.low %v877_v21, %v893_v22  ;;  %v4474_v19 = vcombine.high %v846_v13, %v862_v14  ;;  %v878_v21 = vld [vmem:[%s5374_s9 + $0x230] sm:$0xff] }
  0xcb   : > { %v4536_v34 = vcombine.high %v909_v29, %v925_v30  ;;  %v894_v22 = vld [vmem:[%s5374_s9 + $0x2b0] sm:$0xff] }
  0xcd   : > { %2443 = vmatpush1.bf16.msra.mxu0 %v4529_v37  ;;  %2486 = vmatpush1.bf16.msra.mxu1 %v4531_v38  ;;  %v941_v37 = vld [vmem:[%s5374_s9 + $0x428] sm:$0xff] }
  0xce   : > { %2444 = vmatprep.subr.bf16.mxu0 %v4562_v39  ;;  %2487 = vmatprep.subr.bf16.mxu1 %v4564_v40  ;;  %v957_v38 = vld [vmem:[%s5374_s9 + $0x4a8] sm:$0xff]  ;;  %v4533_v39 = vcombine.low %v908_v27, %v924_v28  ;;  %v4535_v40 = vcombine.low %v909_v29, %v925_v30  ;;  %v4506_v27 = vcombine.high %v878_v21, %v894_v22  ;;  %v910_v29 = vld [vmem:[%s5374_s9 + $0x330] sm:$0xff] }
  0xcf   : > { %v4568_v42 = vcombine.high %v941_v37, %v957_v38  ;;  %v926_v30 = vld [vmem:[%s5374_s9 + $0x3b0] sm:$0xff] }
  0xd1   : > { %2445 = vmatpush1.bf16.msra.mxu0 %v4561_v45  ;;  %2488 = vmatpush1.bf16.msra.mxu1 %v4563_v46  ;;  %v973_v45 = vld [vmem:[%s5374_s9 + $0x528] sm:$0xff] }
  0xd2   : > { %2446 = vmatprep.subr.bf16.mxu0 %v4594_v47  ;;  %2489 = vmatprep.subr.bf16.mxu1 %v4596_v48  ;;  %v989_v46 = vld [vmem:[%s5374_s9 + $0x5a8] sm:$0xff]  ;;  %v4565_v47 = vcombine.low %v940_v35, %v956_v36  ;;  %v4567_v48 = vcombine.low %v941_v37, %v957_v38  ;;  %v4538_v35 = vcombine.high %v910_v29, %v926_v30  ;;  %v942_v37 = vld [vmem:[%s5374_s9 + $0x430] sm:$0xff] }
  0xd3   : > { %v4600_v50 = vcombine.high %v973_v45, %v989_v46  ;;  %v958_v38 = vld [vmem:[%s5374_s9 + $0x4b0] sm:$0xff] }
  0xd5   : > { %2447 = vmatpush1.bf16.msra.mxu0 %v4593_v53  ;;  %2490 = vmatpush1.bf16.msra.mxu1 %v4595_v54  ;;  %v1005_v53 = vld [vmem:[%s5374_s9 + $0x628] sm:$0xff] }
  0xd6   : > { %2448 = vmatprep.subr.bf16.mxu0 %v4626_v55  ;;  %2491 = vmatprep.subr.bf16.mxu1 %v4628_v56  ;;  %v1021_v54 = vld [vmem:[%s5374_s9 + $0x6a8] sm:$0xff]  ;;  %v4597_v55 = vcombine.low %v972_v43, %v988_v44  ;;  %v4599_v56 = vcombine.low %v973_v45, %v989_v46  ;;  %v4570_v43 = vcombine.high %v942_v37, %v958_v38  ;;  %v974_v45 = vld [vmem:[%s5374_s9 + $0x530] sm:$0xff] }
  0xd7   : > { %v4632_v58 = vcombine.high %v1005_v53, %v1021_v54  ;;  %v990_v46 = vld [vmem:[%s5374_s9 + $0x5b0] sm:$0xff] }
  0xd9   : > { %2449 = vmatpush1.bf16.msra.mxu0 %v4625_v61  ;;  %2492 = vmatpush1.bf16.msra.mxu1 %v4627_v62  ;;  %v1037_v61 = vld [vmem:[%s5374_s9 + $0x728] sm:$0xff] }
  0xda   : > { %2450 = vmatprep.subr.bf16.mxu0 %v4658_v63  ;;  %2493 = vmatprep.subr.bf16.mxu1 %v4660_v1  ;;  %v1053_v62 = vld [vmem:[%s5374_s9 + $0x7a8] sm:$0xff]  ;;  %v4629_v63 = vcombine.low %v1004_v51, %v1020_v52  ;;  %v4631_v1 = vcombine.low %v1005_v53, %v1021_v54  ;;  %v4602_v51 = vcombine.high %v974_v45, %v990_v46  ;;  %v1006_v53 = vld [vmem:[%s5374_s9 + $0x630] sm:$0xff] }
  0xdb   : > { %v4664_v3 = vcombine.high %v1037_v61, %v1053_v62  ;;  %v1022_v54 = vld [vmem:[%s5374_s9 + $0x6b0] sm:$0xff] }
  0xdd   : > { %2451 = vmatpush1.bf16.msra.mxu0 %v4657_v6  ;;  %2494 = vmatpush1.bf16.msra.mxu1 %v4659_v7  ;;  %v815_v6 = vld [vmem:[%s5374_s9 + $0x38] sm:$0xff] }
  0xde   : > { %2522 = vmatprep.subr.bf16.mxu0 %v4438_v8  ;;  %2565 = vmatprep.subr.bf16.mxu1 %v4440_v9  ;;  %v831_v7 = vld [vmem:[%s5374_s9 + $0xb8] sm:$0xff]  ;;  %v4661_v8 = vcombine.low %v1036_v59, %v1052_v60  ;;  %v4663_v9 = vcombine.low %v1037_v61, %v1053_v62  ;;  %v4634_v59 = vcombine.high %v1006_v53, %v1022_v54  ;;  %v1038_v61 = vld [vmem:[%s5374_s9 + $0x730] sm:$0xff] }
  0xdf   : > { %v4444_v12 = vcombine.high %v815_v6, %v831_v7  ;;  %v1054_v62 = vld [vmem:[%s5374_s9 + $0x7b0] sm:$0xff] }
  0xe0   : > { %2469 = vmatmul.mubr.bf16.vlgmr.msra.gmra.mrb[4].mxu0 %v5417_v10  ;;  %2512 = vmatmul.mubr.bf16.vlgmr.msra.gmra.mrb[4].mxu1 %v5417_v10 }
  0xe1   : > { %2523 = vmatpush1.bf16.msra.mxu0 %v4437_v15  ;;  %2566 = vmatpush1.bf16.msra.mxu1 %v4439_v16  ;;  %v847_v15 = vld [vmem:[%s5374_s9 + $0x138] sm:$0xff] }
  0xe2   : > { %2524 = vmatprep.subr.bf16.mxu0 %v4470_v17  ;;  %2567 = vmatprep.subr.bf16.mxu1 %v4472_v18  ;;  %v863_v16 = vld [vmem:[%s5374_s9 + $0x1b8] sm:$0xff]  ;;  %v4441_v17 = vcombine.low %v814_v4, %v830_v5  ;;  %v4443_v18 = vcombine.low %v815_v6, %v831_v7  ;;  %v4666_v4 = vcombine.high %v1038_v61, %v1054_v62  ;;  %v816_v6 = vld [vmem:[%s5374_s9 + $0x40] sm:$0xff] }
  0xe3   : > { %2554 = vmatprep.mubr.bf16.mxu0 %v4776_v0  ;;  %2597 = vmatprep.mubr.bf16.mxu1 %v4776_v0  ;;  %v4476_v20 = vcombine.high %v847_v15, %v863_v16  ;;  %v832_v7 = vld [vmem:[%s5374_s9 + $0xc0] sm:$0xff] }
  0xe5   : > { %2525 = vmatpush1.bf16.msra.mxu0 %v4469_v23  ;;  %2568 = vmatpush1.bf16.msra.mxu1 %v4471_v24  ;;  %v879_v23 = vld [vmem:[%s5374_s9 + $0x238] sm:$0xff] }
  0xe6   : > { %2526 = vmatprep.subr.bf16.mxu0 %v4502_v25  ;;  %2569 = vmatprep.subr.bf16.mxu1 %v4504_v26  ;;  %v895_v24 = vld [vmem:[%s5374_s9 + $0x2b8] sm:$0xff]  ;;  %v4473_v25 = vcombine.low %v846_v13, %v862_v14  ;;  %v4475_v26 = vcombine.low %v847_v15, %v863_v16  ;;  %v4446_v13 = vcombine.high %v816_v6, %v832_v7  ;;  %v848_v15 = vld [vmem:[%s5374_s9 + $0x140] sm:$0xff] }
  0xe7   : > { %v4508_v28 = vcombine.high %v879_v23, %v895_v24  ;;  %v864_v16 = vld [vmem:[%s5374_s9 + $0x1c0] sm:$0xff] }
  0xe9   : > { %2527 = vmatpush1.bf16.msra.mxu0 %v4501_v31  ;;  %2570 = vmatpush1.bf16.msra.mxu1 %v4503_v32  ;;  %v911_v31 = vld [vmem:[%s5374_s9 + $0x338] sm:$0xff] }
  0xea   : > { %2528 = vmatprep.subr.bf16.mxu0 %v4534_v33  ;;  %2571 = vmatprep.subr.bf16.mxu1 %v4536_v34  ;;  %v927_v32 = vld [vmem:[%s5374_s9 + $0x3b8] sm:$0xff]  ;;  %v4505_v33 = vcombine.low %v878_v21, %v894_v22  ;;  %v4507_v34 = vcombine.low %v879_v23, %v895_v24  ;;  %v4478_v21 = vcombine.high %v848_v15, %v864_v16  ;;  %v880_v23 = vld [vmem:[%s5374_s9 + $0x240] sm:$0xff] }
  0xeb   : > { %v4540_v36 = vcombine.high %v911_v31, %v927_v32  ;;  %v896_v24 = vld [vmem:[%s5374_s9 + $0x2c0] sm:$0xff] }
  0xed   : > { %2529 = vmatpush1.bf16.msra.mxu0 %v4533_v39  ;;  %2572 = vmatpush1.bf16.msra.mxu1 %v4535_v40  ;;  %v943_v39 = vld [vmem:[%s5374_s9 + $0x438] sm:$0xff] }
  0xee   : > { %2530 = vmatprep.subr.bf16.mxu0 %v4566_v41  ;;  %2573 = vmatprep.subr.bf16.mxu1 %v4568_v42  ;;  %v959_v40 = vld [vmem:[%s5374_s9 + $0x4b8] sm:$0xff]  ;;  %v4537_v41 = vcombine.low %v910_v29, %v926_v30  ;;  %v4539_v42 = vcombine.low %v911_v31, %v927_v32  ;;  %v4510_v29 = vcombine.high %v880_v23, %v896_v24  ;;  %v912_v31 = vld [vmem:[%s5374_s9 + $0x340] sm:$0xff] }
  0xef   : > { %v4572_v44 = vcombine.high %v943_v39, %v959_v40  ;;  %v928_v32 = vld [vmem:[%s5374_s9 + $0x3c0] sm:$0xff] }
  0xf1   : > { %2531 = vmatpush1.bf16.msra.mxu0 %v4565_v47  ;;  %2574 = vmatpush1.bf16.msra.mxu1 %v4567_v48  ;;  %v975_v47 = vld [vmem:[%s5374_s9 + $0x538] sm:$0xff] }
  0xf2   : > { %2532 = vmatprep.subr.bf16.mxu0 %v4598_v49  ;;  %2575 = vmatprep.subr.bf16.mxu1 %v4600_v50  ;;  %v991_v48 = vld [vmem:[%s5374_s9 + $0x5b8] sm:$0xff]  ;;  %v4569_v49 = vcombine.low %v942_v37, %v958_v38  ;;  %v4571_v50 = vcombine.low %v943_v39, %v959_v40  ;;  %v4542_v37 = vcombine.high %v912_v31, %v928_v32  ;;  %v944_v39 = vld [vmem:[%s5374_s9 + $0x440] sm:$0xff] }
  0xf3   : > { %v4604_v52 = vcombine.high %v975_v47, %v991_v48  ;;  %v960_v40 = vld [vmem:[%s5374_s9 + $0x4c0] sm:$0xff] }
  0xf5   : > { %2533 = vmatpush1.bf16.msra.mxu0 %v4597_v55  ;;  %2576 = vmatpush1.bf16.msra.mxu1 %v4599_v56  ;;  %v1007_v55 = vld [vmem:[%s5374_s9 + $0x638] sm:$0xff] }
  0xf6   : > { %2534 = vmatprep.subr.bf16.mxu0 %v4630_v57  ;;  %2577 = vmatprep.subr.bf16.mxu1 %v4632_v58  ;;  %v1023_v56 = vld [vmem:[%s5374_s9 + $0x6b8] sm:$0xff]  ;;  %v4601_v57 = vcombine.low %v974_v45, %v990_v46  ;;  %v4603_v58 = vcombine.low %v975_v47, %v991_v48  ;;  %v4574_v45 = vcombine.high %v944_v39, %v960_v40  ;;  %v976_v47 = vld [vmem:[%s5374_s9 + $0x540] sm:$0xff] }
  0xf7   : > { %v4636_v60 = vcombine.high %v1007_v55, %v1023_v56  ;;  %v992_v48 = vld [vmem:[%s5374_s9 + $0x5c0] sm:$0xff] }
  0xf9   : > { %2535 = vmatpush1.bf16.msra.mxu0 %v4629_v63  ;;  %2578 = vmatpush1.bf16.msra.mxu1 %v4631_v1  ;;  %v1039_v63 = vld [vmem:[%s5374_s9 + $0x738] sm:$0xff] }
  0xfa   : > { %2536 = vmatprep.subr.bf16.mxu0 %v4662_v2  ;;  %2579 = vmatprep.subr.bf16.mxu1 %v4664_v3  ;;  %v1055_v1 = vld [vmem:[%s5374_s9 + $0x7b8] sm:$0xff]  ;;  %v4633_v2 = vcombine.low %v1006_v53, %v1022_v54  ;;  %v4635_v3 = vcombine.low %v1007_v55, %v1023_v56  ;;  %v4606_v53 = vcombine.high %v976_v47, %v992_v48  ;;  %v1008_v55 = vld [vmem:[%s5374_s9 + $0x640] sm:$0xff] }
  0xfb   : > { %v4668_v5 = vcombine.high %v1039_v63, %v1055_v1  ;;  %v1024_v56 = vld [vmem:[%s5374_s9 + $0x6c0] sm:$0xff] }
  0xfd   : > { %2537 = vmatpush1.bf16.msra.mxu0 %v4661_v8  ;;  %2580 = vmatpush1.bf16.msra.mxu1 %v4663_v9  ;;  %v817_v8 = vld [vmem:[%s5374_s9 + $0x48] sm:$0xff] }
  0xfe   : > { %2608 = vmatprep.subr.bf16.mxu0 %v4442_v11  ;;  %2651 = vmatprep.subr.bf16.mxu1 %v4444_v12  ;;  %v833_v9 = vld [vmem:[%s5374_s9 + $0xc8] sm:$0xff]  ;;  %v4665_v11 = vcombine.low %v1038_v61, %v1054_v62  ;;  %v4667_v12 = vcombine.low %v1039_v63, %v1055_v1  ;;  %v4638_v61 = vcombine.high %v1008_v55, %v1024_v56  ;;  %v1040_v63 = vld [vmem:[%s5374_s9 + $0x740] sm:$0xff] }
  0xff   : > { %v4448_v14 = vcombine.high %v817_v8, %v833_v9  ;;  %v1056_v1 = vld [vmem:[%s5374_s9 + $0x7c0] sm:$0xff] }
 0x100   : > { %2555 = vmatmul.mubr.bf16.vlgmr.msra.gmra.mrb[8].mxu0 %v5417_v10  ;;  %2598 = vmatmul.mubr.bf16.vlgmr.msra.gmra.mrb[8].mxu1 %v5417_v10 }
 0x101   : > { %2609 = vmatpush1.bf16.msra.mxu0 %v4441_v17  ;;  %2652 = vmatpush1.bf16.msra.mxu1 %v4443_v18  ;;  %v849_v17 = vld [vmem:[%s5374_s9 + $0x148] sm:$0xff] }
 0x102   : > { %2610 = vmatprep.subr.bf16.mxu0 %v4474_v19  ;;  %2653 = vmatprep.subr.bf16.mxu1 %v4476_v20  ;;  %v865_v18 = vld [vmem:[%s5374_s9 + $0x1c8] sm:$0xff]  ;;  %v4445_v19 = vcombine.low %v816_v6, %v832_v7  ;;  %v4447_v20 = vcombine.low %v817_v8, %v833_v9  ;;  %v4670_v6 = vcombine.high %v1040_v63, %v1056_v1  ;;  %v818_v8 = vld [vmem:[%s5374_s9 + $0x50] sm:$0xff] }
 0x103   : > { %2640 = vmatprep.mubr.bf16.mxu0 %v4776_v0  ;;  %2683 = vmatprep.mubr.bf16.mxu1 %v4776_v0  ;;  %v4480_v22 = vcombine.high %v849_v17, %v865_v18  ;;  %v834_v9 = vld [vmem:[%s5374_s9 + $0xd0] sm:$0xff] }
 0x105   : > { %2611 = vmatpush1.bf16.msra.mxu0 %v4473_v25  ;;  %2654 = vmatpush1.bf16.msra.mxu1 %v4475_v26  ;;  %v881_v25 = vld [vmem:[%s5374_s9 + $0x248] sm:$0xff] }
 0x106   : > { %2612 = vmatprep.subr.bf16.mxu0 %v4506_v27  ;;  %2655 = vmatprep.subr.bf16.mxu1 %v4508_v28  ;;  %v897_v26 = vld [vmem:[%s5374_s9 + $0x2c8] sm:$0xff]  ;;  %v4477_v27 = vcombine.low %v848_v15, %v864_v16  ;;  %v4479_v28 = vcombine.low %v849_v17, %v865_v18  ;;  %v4450_v15 = vcombine.high %v818_v8, %v834_v9  ;;  %v850_v17 = vld [vmem:[%s5374_s9 + $0x150] sm:$0xff] }
 0x107   : > { %v4512_v30 = vcombine.high %v881_v25, %v897_v26  ;;  %v866_v18 = vld [vmem:[%s5374_s9 + $0x1d0] sm:$0xff] }
 0x109   : > { %2613 = vmatpush1.bf16.msra.mxu0 %v4505_v33  ;;  %2656 = vmatpush1.bf16.msra.mxu1 %v4507_v34  ;;  %v913_v33 = vld [vmem:[%s5374_s9 + $0x348] sm:$0xff] }
 0x10a   : > { %2614 = vmatprep.subr.bf16.mxu0 %v4538_v35  ;;  %2657 = vmatprep.subr.bf16.mxu1 %v4540_v36  ;;  %v929_v34 = vld [vmem:[%s5374_s9 + $0x3c8] sm:$0xff]  ;;  %v4509_v35 = vcombine.low %v880_v23, %v896_v24  ;;  %v4511_v36 = vcombine.low %v881_v25, %v897_v26  ;;  %v4482_v23 = vcombine.high %v850_v17, %v866_v18  ;;  %v882_v25 = vld [vmem:[%s5374_s9 + $0x250] sm:$0xff] }
 0x10b   : > { %v4544_v38 = vcombine.high %v913_v33, %v929_v34  ;;  %v898_v26 = vld [vmem:[%s5374_s9 + $0x2d0] sm:$0xff] }
 0x10d   : > { %2615 = vmatpush1.bf16.msra.mxu0 %v4537_v41  ;;  %2658 = vmatpush1.bf16.msra.mxu1 %v4539_v42  ;;  %v945_v41 = vld [vmem:[%s5374_s9 + $0x448] sm:$0xff] }
 0x10e   : > { %2616 = vmatprep.subr.bf16.mxu0 %v4570_v43  ;;  %2659 = vmatprep.subr.bf16.mxu1 %v4572_v44  ;;  %v961_v42 = vld [vmem:[%s5374_s9 + $0x4c8] sm:$0xff]  ;;  %v4541_v43 = vcombine.low %v912_v31, %v928_v32  ;;  %v4543_v44 = vcombine.low %v913_v33, %v929_v34  ;;  %v4514_v31 = vcombine.high %v882_v25, %v898_v26  ;;  %v914_v33 = vld [vmem:[%s5374_s9 + $0x350] sm:$0xff] }
 0x10f   : > { %v4576_v46 = vcombine.high %v945_v41, %v961_v42  ;;  %v930_v34 = vld [vmem:[%s5374_s9 + $0x3d0] sm:$0xff] }
 0x111   : > { %2617 = vmatpush1.bf16.msra.mxu0 %v4569_v49  ;;  %2660 = vmatpush1.bf16.msra.mxu1 %v4571_v50  ;;  %v977_v49 = vld [vmem:[%s5374_s9 + $0x548] sm:$0xff] }
 0x112   : > { %2618 = vmatprep.subr.bf16.mxu0 %v4602_v51  ;;  %2661 = vmatprep.subr.bf16.mxu1 %v4604_v52  ;;  %v993_v50 = vld [vmem:[%s5374_s9 + $0x5c8] sm:$0xff]  ;;  %v4573_v51 = vcombine.low %v944_v39, %v960_v40  ;;  %v4575_v52 = vcombine.low %v945_v41, %v961_v42  ;;  %v946_v40 = vld [vmem:[%s5374_s9 + $0x450] sm:$0xff]  ;;  %v947_v42 = vld [vmem:[%s5374_s9 + $0x458] sm:$0xff] }
 0x113   : > { %v4608_v54 = vcombine.high %v977_v49, %v993_v50  ;;  %v962_v41 = vld [vmem:[%s5374_s9 + $0x4d0] sm:$0xff] }
 0x115   : > { %2619 = vmatpush1.bf16.msra.mxu0 %v4601_v57  ;;  %2662 = vmatpush1.bf16.msra.mxu1 %v4603_v58  ;;  %v1009_v57 = vld [vmem:[%s5374_s9 + $0x648] sm:$0xff] }
 0x116   : > { %2620 = vmatprep.subr.bf16.mxu0 %v4634_v59  ;;  %2663 = vmatprep.subr.bf16.mxu1 %v4636_v60  ;;  %v1025_v58 = vld [vmem:[%s5374_s9 + $0x6c8] sm:$0xff]  ;;  %v4605_v59 = vcombine.low %v976_v47, %v992_v48  ;;  %v4607_v60 = vcombine.low %v977_v49, %v993_v50  ;;  %v978_v48 = vld [vmem:[%s5374_s9 + $0x550] sm:$0xff]  ;;  %v979_v50 = vld [vmem:[%s5374_s9 + $0x558] sm:$0xff] }
 0x117   : > { %v4640_v62 = vcombine.high %v1009_v57, %v1025_v58  ;;  %v994_v49 = vld [vmem:[%s5374_s9 + $0x5d0] sm:$0xff] }
 0x119   : > { %2621 = vmatpush1.bf16.msra.mxu0 %v4633_v2  ;;  %2664 = vmatpush1.bf16.msra.mxu1 %v4635_v3  ;;  %v1041_v2 = vld [vmem:[%s5374_s9 + $0x748] sm:$0xff] }
 0x11a   : > { %2622 = vmatprep.subr.bf16.mxu0 %v4666_v4  ;;  %2665 = vmatprep.subr.bf16.mxu1 %v4668_v5  ;;  %v1057_v3 = vld [vmem:[%s5374_s9 + $0x7c8] sm:$0xff]  ;;  %v4637_v4 = vcombine.low %v1008_v55, %v1024_v56  ;;  %v4639_v5 = vcombine.low %v1009_v57, %v1025_v58  ;;  %v1010_v56 = vld [vmem:[%s5374_s9 + $0x650] sm:$0xff]  ;;  %v1011_v58 = vld [vmem:[%s5374_s9 + $0x658] sm:$0xff] }
 0x11b   : > { %v4672_v7 = vcombine.high %v1041_v2, %v1057_v3  ;;  %v1026_v57 = vld [vmem:[%s5374_s9 + $0x6d0] sm:$0xff] }
 0x11d   : > { %2623 = vmatpush1.bf16.msra.mxu0 %v4665_v11  ;;  %2666 = vmatpush1.bf16.msra.mxu1 %v4667_v12  ;;  %v819_v11 = vld [vmem:[%s5374_s9 + $0x58] sm:$0xff] }
 0x11e   : > { %2694 = vmatprep.subr.bf16.mxu0 %v4446_v13  ;;  %2737 = vmatprep.subr.bf16.mxu1 %v4448_v14  ;;  %v835_v12 = vld [vmem:[%s5374_s9 + $0xd8] sm:$0xff]  ;;  %v4669_v13 = vcombine.low %v1040_v63, %v1056_v1  ;;  %v4671_v14 = vcombine.low %v1041_v2, %v1057_v3  ;;  %v1042_v1 = vld [vmem:[%s5374_s9 + $0x750] sm:$0xff] }
 0x11f   : > { %v4452_v16 = vcombine.high %v819_v11, %v835_v12  ;;  %v1058_v2 = vld [vmem:[%s5374_s9 + $0x7d0] sm:$0xff]  ;;  %v1043_v3 = vld [vmem:[%s5374_s9 + $0x758] sm:$0xff] }
 0x120   : > { %2641 = vmatmul.mubr.bf16.vlgmr.msra.gmra.mrb[12].mxu0 %v5417_v10  ;;  %2684 = vmatmul.mubr.bf16.vlgmr.msra.gmra.mrb[12].mxu1 %v5417_v10 }
 0x121   : > { %2695 = vmatpush1.bf16.msra.mxu0 %v4445_v19  ;;  %2738 = vmatpush1.bf16.msra.mxu1 %v4447_v20  ;;  %v851_v19 = vld [vmem:[%s5374_s9 + $0x158] sm:$0xff] }
 0x122   : > { %2696 = vmatprep.subr.bf16.mxu0 %v4478_v21  ;;  %2739 = vmatprep.subr.bf16.mxu1 %v4480_v22  ;;  %v867_v20 = vld [vmem:[%s5374_s9 + $0x1d8] sm:$0xff]  ;;  %v4449_v21 = vcombine.low %v818_v8, %v834_v9  ;;  %v4451_v22 = vcombine.low %v819_v11, %v835_v12  ;;  %v820_v9 = vld [vmem:[%s5374_s9 + $0x60] sm:$0xff]  ;;  %v821_v12 = vld [vmem:[%s5374_s9 + $0x68] sm:$0xff] }
 0x123   : > { %2726 = vmatprep.mubr.bf16.mxu0 %v4776_v0  ;;  %2769 = vmatprep.mubr.bf16.mxu1 %v4776_v0  ;;  %v4484_v24 = vcombine.high %v851_v19, %v867_v20  ;;  %v836_v11 = vld [vmem:[%s5374_s9 + $0xe0] sm:$0xff] }
 0x125   : > { %2697 = vmatpush1.bf16.msra.mxu0 %v4477_v27  ;;  %2740 = vmatpush1.bf16.msra.mxu1 %v4479_v28  ;;  %v883_v27 = vld [vmem:[%s5374_s9 + $0x258] sm:$0xff] }
 0x126   : > { %2698 = vmatprep.subr.bf16.mxu0 %v4510_v29  ;;  %2741 = vmatprep.subr.bf16.mxu1 %v4512_v30  ;;  %v899_v28 = vld [vmem:[%s5374_s9 + $0x2d8] sm:$0xff]  ;;  %v4481_v29 = vcombine.low %v850_v17, %v866_v18  ;;  %v4483_v30 = vcombine.low %v851_v19, %v867_v20  ;;  %v852_v18 = vld [vmem:[%s5374_s9 + $0x160] sm:$0xff]  ;;  %v853_v20 = vld [vmem:[%s5374_s9 + $0x168] sm:$0xff] }
 0x127   : > { %v4516_v32 = vcombine.high %v883_v27, %v899_v28  ;;  %v868_v19 = vld [vmem:[%s5374_s9 + $0x1e0] sm:$0xff] }
 0x129   : > { %2699 = vmatpush1.bf16.msra.mxu0 %v4509_v35  ;;  %2742 = vmatpush1.bf16.msra.mxu1 %v4511_v36  ;;  %v915_v35 = vld [vmem:[%s5374_s9 + $0x358] sm:$0xff] }
 0x12a   : > { %2700 = vmatprep.subr.bf16.mxu0 %v4542_v37  ;;  %2743 = vmatprep.subr.bf16.mxu1 %v4544_v38  ;;  %v931_v36 = vld [vmem:[%s5374_s9 + $0x3d8] sm:$0xff]  ;;  %v4515_v37 = vcombine.low %v883_v27, %v899_v28  ;;  %v4546_v38 = vcombine.high %v914_v33, %v930_v34  ;;  %v900_v27 = vld [vmem:[%s5374_s9 + $0x2e0] sm:$0xff] }
 0x12b   : > { %v4548_v39 = vcombine.high %v915_v35, %v931_v36  ;;  %v5606_v28 = vld [vmem:[%s6064_s0] sm:$0xff]  }
 0x12d   : > { %2701 = vmatpush1.bf16.msra.mxu0 %v4541_v43  ;;  %2744 = vmatpush1.bf16.msra.mxu1 %v4543_v44  ;;  %v963_v43 = vld [vmem:[%s5374_s9 + $0x4d8] sm:$0xff]  ;;  %v4545_v44 = vcombine.low %v914_v33, %v930_v34 }
 0x12e   : > { %2702 = vmatprep.subr.bf16.mxu0 %v4574_v45  ;;  %2745 = vmatprep.subr.bf16.mxu1 %v4576_v46  ;;  %v4547_v45 = vcombine.low %v915_v35, %v931_v36  ;;  %v4578_v46 = vcombine.high %v946_v40, %v962_v41  ;;  %v4580_v47 = vcombine.high %v947_v42, %v963_v43  ;;  %v916_v35 = vld [vmem:[%s5374_s9 + $0x360] sm:$0xff] }
 0x12f   : > { %v932_v36 = vld [vmem:[%s5374_s9 + $0x3e0] sm:$0xff] }
 0x131   : > { %2703 = vmatpush1.bf16.msra.mxu0 %v4573_v51  ;;  %2746 = vmatpush1.bf16.msra.mxu1 %v4575_v52  ;;  %v995_v51 = vld [vmem:[%s5374_s9 + $0x5d8] sm:$0xff]  ;;  %v4577_v52 = vcombine.low %v946_v40, %v962_v41  ;;  %v4550_v40 = vcombine.high %v916_v35, %v932_v36 }
 0x132   : > { %2704 = vmatprep.subr.bf16.mxu0 %v4606_v53  ;;  %2747 = vmatprep.subr.bf16.mxu1 %v4608_v54  ;;  %v4579_v53 = vcombine.low %v947_v42, %v963_v43  ;;  %v4610_v54 = vcombine.high %v978_v48, %v994_v49  ;;  %v4612_v55 = vcombine.high %v979_v50, %v995_v51  ;;  %v948_v42 = vld [vmem:[%s5374_s9 + $0x460] sm:$0xff] }
 0x133   : > { %v964_v43 = vld [vmem:[%s5374_s9 + $0x4e0] sm:$0xff] }
 0x135   : > { %2705 = vmatpush1.bf16.msra.mxu0 %v4605_v59  ;;  %2748 = vmatpush1.bf16.msra.mxu1 %v4607_v60  ;;  %v1027_v59 = vld [vmem:[%s5374_s9 + $0x6d8] sm:$0xff]  ;;  %v4609_v60 = vcombine.low %v978_v48, %v994_v49  ;;  %v4582_v48 = vcombine.high %v948_v42, %v964_v43 }
 0x136   : > { %2706 = vmatprep.subr.bf16.mxu0 %v4638_v61  ;;  %2749 = vmatprep.subr.bf16.mxu1 %v4640_v62  ;;  %v4611_v61 = vcombine.low %v979_v50, %v995_v51  ;;  %v4642_v62 = vcombine.high %v1010_v56, %v1026_v57  ;;  %v4644_v63 = vcombine.high %v1011_v58, %v1027_v59  ;;  %v980_v50 = vld [vmem:[%s5374_s9 + $0x560] sm:$0xff] }
 0x137   : > { %v996_v51 = vld [vmem:[%s5374_s9 + $0x5e0] sm:$0xff] }
 0x139   : > { %2707 = vmatpush1.bf16.msra.mxu0 %v4637_v4  ;;  %2750 = vmatpush1.bf16.msra.mxu1 %v4639_v5  ;;  %v1059_v4 = vld [vmem:[%s5374_s9 + $0x7d8] sm:$0xff]  ;;  %v4641_v5 = vcombine.low %v1010_v56, %v1026_v57  ;;  %v4614_v56 = vcombine.high %v980_v50, %v996_v51 }
 0x13a   : > { %2708 = vmatprep.subr.bf16.mxu0 %v4670_v6  ;;  %2751 = vmatprep.subr.bf16.mxu1 %v4672_v7  ;;  %v4643_v6 = vcombine.low %v1011_v58, %v1027_v59  ;;  %v4674_v7 = vcombine.high %v1042_v1, %v1058_v2  ;;  %v4676_v8 = vcombine.high %v1043_v3, %v1059_v4  ;;  %v1012_v58 = vld [vmem:[%s5374_s9 + $0x660] sm:$0xff] }
 0x13b   : > { %v1028_v59 = vld [vmem:[%s5374_s9 + $0x6e0] sm:$0xff] }
 0x13d   : > { %2709 = vmatpush1.bf16.msra.mxu0 %v4669_v13  ;;  %2752 = vmatpush1.bf16.msra.mxu1 %v4671_v14  ;;  %v837_v13 = vld [vmem:[%s5374_s9 + $0xe8] sm:$0xff]  ;;  %v4673_v14 = vcombine.low %v1042_v1, %v1058_v2  ;;  %v4646_v1 = vcombine.high %v1012_v58, %v1028_v59 }
 0x13e   : > { %2780 = vmatprep.subr.bf16.mxu0 %v4450_v15  ;;  %2823 = vmatprep.subr.bf16.mxu1 %v4452_v16  ;;  %v4675_v15 = vcombine.low %v1043_v3, %v1059_v4  ;;  %v4454_v16 = vcombine.high %v820_v9, %v836_v11  ;;  %v4456_v17 = vcombine.high %v821_v12, %v837_v13  ;;  %v1044_v3 = vld [vmem:[%s5374_s9 + $0x760] sm:$0xff] }
 0x13f   : > { %v1060_v4 = vld [vmem:[%s5374_s9 + $0x7e0] sm:$0xff] }
 0x140   : > { %2727 = vmatmul.mubr.bf16.vlgmr.msra.gmra.mrb[16].mxu0 %v5417_v10  ;;  %2770 = vmatmul.mubr.bf16.vlgmr.msra.gmra.mrb[16].mxu1 %v5417_v10  ;;  %v4513_v10 = vcombine.low %v882_v25, %v898_v26  ;;  %v884_v26 = vld [vmem:[%s5374_s9 + $0x260] sm:$0xff] }
 0x141   : > { %2781 = vmatpush1.bf16.msra.mxu0 %v4449_v21  ;;  %2824 = vmatpush1.bf16.msra.mxu1 %v4451_v22  ;;  %v869_v21 = vld [vmem:[%s5374_s9 + $0x1e8] sm:$0xff]  ;;  %v4453_v22 = vcombine.low %v820_v9, %v836_v11  ;;  %v4518_v33 = vcombine.high %v884_v26, %v900_v27  ;;  %v4678_v9 = vcombine.high %v1044_v3, %v1060_v4 }
 0x142   : > { %2782 = vmatprep.subr.bf16.mxu0 %v4482_v23  ;;  %2825 = vmatprep.subr.bf16.mxu1 %v4484_v24  ;;  %v4455_v23 = vcombine.low %v821_v12, %v837_v13  ;;  %v4486_v24 = vcombine.high %v852_v18, %v868_v19  ;;  %v4488_v25 = vcombine.high %v853_v20, %v869_v21  ;;  %v822_v12 = vld [vmem:[%s5374_s9 + $0x70] sm:$0xff] }
 0x143   : > { %2812 = vmatprep.mubr.bf16.mxu0 %v4776_v0  ;;  %2855 = vmatprep.mubr.bf16.mxu1 %v4776_v0  ;;  %v838_v13 = vld [vmem:[%s5374_s9 + $0xf0] sm:$0xff] }
 0x145   : > { %2783 = vmatpush1.bf16.msra.mxu0 %v4481_v29  ;;  %2826 = vmatpush1.bf16.msra.mxu1 %v4483_v30  ;;  %v885_v29 = vld [vmem:[%s5374_s9 + $0x268] sm:$0xff] }
 0x146   : > { %2784 = vmatprep.subr.bf16.mxu0 %v4514_v31  ;;  %2827 = vmatprep.subr.bf16.mxu1 %v4516_v32  ;;  %v901_v30 = vld [vmem:[%s5374_s9 + $0x2e8] sm:$0xff]  ;;  %v4485_v31 = vcombine.low %v852_v18, %v868_v19  ;;  %v4487_v32 = vcombine.low %v853_v20, %v869_v21  ;;  %v4458_v18 = vcombine.high %v822_v12, %v838_v13  ;;  %v854_v20 = vld [vmem:[%s5374_s9 + $0x170] sm:$0xff] }
 0x147   : > { %v4520_v34 = vcombine.high %v885_v29, %v901_v30  ;;  %v870_v21 = vld [vmem:[%s5374_s9 + $0x1f0] sm:$0xff] }
 0x149   : > { %2785 = vmatpush1.bf16.msra.mxu0 %v4513_v10  ;;  %2828 = vmatpush1.bf16.msra.mxu1 %v4515_v37  ;;  %v917_v10 = vld [vmem:[%s5374_s9 + $0x368] sm:$0xff] }
 0x14a   : > { %2786 = vmatprep.subr.bf16.mxu0 %v4546_v38  ;;  %2829 = vmatprep.subr.bf16.mxu1 %v4548_v39  ;;  %v933_v37 = vld [vmem:[%s5374_s9 + $0x3e8] sm:$0xff]  ;;  %v4517_v38 = vcombine.low %v884_v26, %v900_v27  ;;  %v4519_v39 = vcombine.low %v885_v29, %v901_v30  ;;  %v4490_v26 = vcombine.high %v854_v20, %v870_v21  ;;  %v886_v29 = vld [vmem:[%s5374_s9 + $0x270] sm:$0xff] }
 0x14b   : > { %v4552_v41 = vcombine.high %v917_v10, %v933_v37  ;;  %v902_v30 = vld [vmem:[%s5374_s9 + $0x2f0] sm:$0xff] }
 0x14d   : > { %2787 = vmatpush1.bf16.msra.mxu0 %v4545_v44  ;;  %2830 = vmatpush1.bf16.msra.mxu1 %v4547_v45  ;;  %v949_v44 = vld [vmem:[%s5374_s9 + $0x468] sm:$0xff] }
 0x14e   : > { %2788 = vmatprep.subr.bf16.mxu0 %v4578_v46  ;;  %2831 = vmatprep.subr.bf16.mxu1 %v4580_v47  ;;  %v965_v45 = vld [vmem:[%s5374_s9 + $0x4e8] sm:$0xff]  ;;  %v4549_v46 = vcombine.low %v916_v35, %v932_v36  ;;  %v4551_v47 = vcombine.low %v917_v10, %v933_v37  ;;  %v4522_v35 = vcombine.high %v886_v29, %v902_v30  ;;  %v918_v10 = vld [vmem:[%s5374_s9 + $0x370] sm:$0xff] }
 0x14f   : > { %v4584_v49 = vcombine.high %v949_v44, %v965_v45  ;;  %v934_v37 = vld [vmem:[%s5374_s9 + $0x3f0] sm:$0xff] }
 0x151   : > { %2789 = vmatpush1.bf16.msra.mxu0 %v4577_v52  ;;  %2832 = vmatpush1.bf16.msra.mxu1 %v4579_v53  ;;  %v981_v52 = vld [vmem:[%s5374_s9 + $0x568] sm:$0xff] }
 0x152   : > { %2790 = vmatprep.subr.bf16.mxu0 %v4610_v54  ;;  %2833 = vmatprep.subr.bf16.mxu1 %v4612_v55  ;;  %v997_v53 = vld [vmem:[%s5374_s9 + $0x5e8] sm:$0xff]  ;;  %v4581_v54 = vcombine.low %v948_v42, %v964_v43  ;;  %v4583_v55 = vcombine.low %v949_v44, %v965_v45  ;;  %v4554_v42 = vcombine.high %v918_v10, %v934_v37  ;;  %v950_v44 = vld [vmem:[%s5374_s9 + $0x470] sm:$0xff] }
 0x153   : > { %v4616_v57 = vcombine.high %v981_v52, %v997_v53  ;;  %v966_v45 = vld [vmem:[%s5374_s9 + $0x4f0] sm:$0xff] }
 0x155   : > { %2791 = vmatpush1.bf16.msra.mxu0 %v4609_v60  ;;  %2834 = vmatpush1.bf16.msra.mxu1 %v4611_v61  ;;  %v1013_v60 = vld [vmem:[%s5374_s9 + $0x668] sm:$0xff] }
 0x156   : > { %2792 = vmatprep.subr.bf16.mxu0 %v4642_v62  ;;  %2835 = vmatprep.subr.bf16.mxu1 %v4644_v63  ;;  %v1029_v61 = vld [vmem:[%s5374_s9 + $0x6e8] sm:$0xff]  ;;  %v4613_v62 = vcombine.low %v980_v50, %v996_v51  ;;  %v4615_v63 = vcombine.low %v981_v52, %v997_v53  ;;  %v982_v51 = vld [vmem:[%s5374_s9 + $0x570] sm:$0xff]  ;;  %v983_v53 = vld [vmem:[%s5374_s9 + $0x578] sm:$0xff] }
 0x157   : > { %v4648_v2 = vcombine.high %v1013_v60, %v1029_v61  ;;  %v998_v52 = vld [vmem:[%s5374_s9 + $0x5f0] sm:$0xff] }
 0x159   : > { %2793 = vmatpush1.bf16.msra.mxu0 %v4641_v5  ;;  %2836 = vmatpush1.bf16.msra.mxu1 %v4643_v6  ;;  %v1045_v5 = vld [vmem:[%s5374_s9 + $0x768] sm:$0xff] }
 0x15a   : > { %2794 = vmatprep.subr.bf16.mxu0 %v4674_v7  ;;  %2837 = vmatprep.subr.bf16.mxu1 %v4676_v8  ;;  %v1061_v6 = vld [vmem:[%s5374_s9 + $0x7e8] sm:$0xff]  ;;  %v4645_v7 = vcombine.low %v1012_v58, %v1028_v59  ;;  %v4647_v8 = vcombine.low %v1013_v60, %v1029_v61  ;;  %v3365_v58 = vlaneseq  ;;  %v4618_v60 = vcombine.high %v982_v51, %v998_v52 }
 0x15b   : > { %v4680_v11 = vcombine.high %v1045_v5, %v1061_v6 }
 0x15d   : > { %2795 = vmatpush1.bf16.msra.mxu0 %v4673_v14  ;;  %2838 = vmatpush1.bf16.msra.mxu1 %v4675_v15  ;;  %v823_v14 = vld [vmem:[%s5374_s9 + $0x78] sm:$0xff] }
 0x15e   : > { %2866 = vmatprep.subr.bf16.mxu0 %v4454_v16  ;;  %2909 = vmatprep.subr.bf16.mxu1 %v4456_v17  ;;  %v839_v15 = vld [vmem:[%s5374_s9 + $0xf8] sm:$0xff]  ;;  %v4677_v16 = vcombine.low %v1044_v3, %v1060_v4  ;;  %v4679_v17 = vcombine.low %v1045_v5, %v1061_v6  ;;  %v5677_v3 = vld [vmem:[%s5374_s9 + $0x770] sm:$0xff]  ;;  %v4617_v4 = vcombine.low %v982_v51, %v998_v52  ;;  %v3366_v6 = vshrl.u32 %v3365_v58, 7 }
 0x15f   : > { %v4460_v19 = vcombine.high %v823_v14, %v839_v15 }
 0x160   : > { %2813 = vmatmul.mubr.bf16.vlgmr.msra.gmra.mrb[20].mxu0 %v5606_v28  ;;  %2856 = vmatmul.mubr.bf16.vlgmr.msra.gmra.mrb[20].mxu1 %v5606_v28 }
 0x161   : > { %2867 = vmatpush1.bf16.msra.mxu0 %v4453_v22  ;;  %2910 = vmatpush1.bf16.msra.mxu1 %v4455_v23  ;;  %v855_v22 = vld [vmem:[%s5374_s9 + $0x178] sm:$0xff] }
 0x162   : > { %2868 = vmatprep.subr.bf16.mxu0 %v4486_v24  ;;  %2911 = vmatprep.subr.bf16.mxu1 %v4488_v25  ;;  %v871_v23 = vld [vmem:[%s5374_s9 + $0x1f8] sm:$0xff]  ;;  %v4457_v24 = vcombine.low %v822_v12, %v838_v13  ;;  %v4459_v25 = vcombine.low %v823_v14, %v839_v15 }
 0x163   : > { %2898 = vmatprep.mubr.bf16.mxu0 %v4776_v0  ;;  %2941 = vmatprep.mubr.bf16.mxu1 %v4776_v0  ;;  %v4492_v27 = vcombine.high %v855_v22, %v871_v23 }
 0x165   : > { %2869 = vmatpush1.bf16.msra.mxu0 %v4485_v31  ;;  %2912 = vmatpush1.bf16.msra.mxu1 %v4487_v32  ;;  %v887_v31 = vld [vmem:[%s5374_s9 + $0x278] sm:$0xff] }
 0x166   : > { %2870 = vmatprep.subr.bf16.mxu0 %v4518_v33  ;;  %2913 = vmatprep.subr.bf16.mxu1 %v4520_v34  ;;  %v903_v32 = vld [vmem:[%s5374_s9 + $0x2f8] sm:$0xff]  ;;  %v4489_v33 = vcombine.low %v854_v20, %v870_v21  ;;  %v4491_v34 = vcombine.low %v855_v22, %v871_v23 }
 0x167   : > { %v4524_v36 = vcombine.high %v887_v31, %v903_v32 }
 0x169   : > { %2871 = vmatpush1.bf16.msra.mxu0 %v4517_v38  ;;  %2914 = vmatpush1.bf16.msra.mxu1 %v4519_v39  ;;  %v919_v38 = vld [vmem:[%s5374_s9 + $0x378] sm:$0xff] }
 0x16a   : > { %2872 = vmatprep.subr.bf16.mxu0 %v4550_v40  ;;  %2915 = vmatprep.subr.bf16.mxu1 %v4552_v41  ;;  %v935_v39 = vld [vmem:[%s5374_s9 + $0x3f8] sm:$0xff]  ;;  %v4521_v40 = vcombine.low %v886_v29, %v902_v30  ;;  %v4523_v41 = vcombine.low %v887_v31, %v903_v32 }
 0x16b   : > { %v4556_v43 = vcombine.high %v919_v38, %v935_v39 }
 0x16d   : > { %2873 = vmatpush1.bf16.msra.mxu0 %v4549_v46  ;;  %2916 = vmatpush1.bf16.msra.mxu1 %v4551_v47  ;;  %v951_v46 = vld [vmem:[%s5374_s9 + $0x478] sm:$0xff] }
 0x16e   : > { %2874 = vmatprep.subr.bf16.mxu0 %v4582_v48  ;;  %2917 = vmatprep.subr.bf16.mxu1 %v4584_v49  ;;  %v967_v47 = vld [vmem:[%s5374_s9 + $0x4f8] sm:$0xff]  ;;  %v4553_v48 = vcombine.low %v918_v10, %v934_v37  ;;  %v4586_v49 = vcombine.high %v950_v44, %v966_v45 }
 0x16f   : > { %v4588_v50 = vcombine.high %v951_v46, %v967_v47  ;;  %v4587_v59 = vcombine.low %v951_v46, %v967_v47 }
 0x171   : > { %2875 = vmatpush1.bf16.msra.mxu0 %v4581_v54  ;;  %2918 = vmatpush1.bf16.msra.mxu1 %v4583_v55  ;;  %v999_v54 = vld [vmem:[%s5374_s9 + $0x5f8] sm:$0xff]  ;;  %v4585_v55 = vcombine.low %v950_v44, %v966_v45 }
 0x172   : > { %2876 = vmatprep.subr.bf16.mxu0 %v4614_v56  ;;  %2919 = vmatprep.subr.bf16.mxu1 %v4616_v57  ;;  %v4777_v56 = vmov 1966171168   ;;  %v4620_v61 = vcombine.high %v983_v53, %v999_v54 }
 0x173   : > { %v3363_v57 = vunpack.c.l.s4 %v4777_v56 }
 0x175   : > { %2877 = vmatpush1.bf16.msra.mxu0 %v4613_v62  ;;  %2920 = vmatpush1.bf16.msra.mxu1 %v4615_v63  ;;  %v5665_v62 = vld [vmem:[%s5374_s9 + $0x670] sm:$0xff]  ;;  %v3364_v5 = vunpack.c.0.s8 %v3363_v57 }
 0x176   : > { %2878 = vmatprep.subr.bf16.mxu0 %v4646_v1  ;;  %2921 = vmatprep.subr.bf16.mxu1 %v4648_v2  ;;  %v5668_v63 = vld [vmem:[%s5374_s9 + $0x6f0] sm:$0xff]  ;;  %v5671_v1 = vld [vmem:[%s5374_s9 + $0x678] sm:$0xff] }
 0x177   : > { %v5674_v2 = vld [vmem:[%s5374_s9 + $0x6f8] sm:$0xff]  ;;  %v4650_v12 = vcombine.high %v5665_v62, %v5668_v63  ;;  %v4649_v14 = vcombine.low %v5665_v62, %v5668_v63 }
 0x178   : > { %v4651_v15 = vcombine.low %v5671_v1, %v5674_v2 }
 0x179   : > { %2879 = vmatpush1.bf16.msra.mxu0 %v4645_v7  ;;  %2922 = vmatpush1.bf16.msra.mxu1 %v4647_v8  ;;  %v5680_v7 = vld [vmem:[%s5374_s9 + $0x7f0] sm:$0xff]  ;;  %v5683_v8 = vld [vmem:[%s5374_s9 + $0x778] sm:$0xff] }
 0x17a   : > { %2880 = vmatprep.subr.bf16.mxu0 %v4678_v9  ;;  %2923 = vmatprep.subr.bf16.mxu1 %v4680_v11  ;;  %v5686_v9 = vld [vmem:[%s5374_s9 + $0x7f8] sm:$0xff]  ;;  %v4619_v11 = vcombine.low %v983_v53, %v999_v54  ;;  %v4681_v20 = vcombine.low %v5677_v3, %v5680_v7  ;;  %v4682_v21 = vcombine.high %v5677_v3, %v5680_v7 }
 0x17b   : > { %v4683_v22 = vcombine.low %v5683_v8, %v5686_v9  ;;  %v4684_v29 = vcombine.high %v5683_v8, %v5686_v9 }
 0x17d   : > { %2881 = vmatpush1.bf16.msra.mxu0 %v4677_v16  ;;  %2924 = vmatpush1.bf16.msra.mxu1 %v4679_v17  ;;  %v4652_v16 = vcombine.high %v5671_v1, %v5674_v2 }
 0x17e   : > { %2952 = vmatprep.subr.bf16.mxu0 %v4458_v18  ;;  %2995 = vmatprep.subr.bf16.mxu1 %v4460_v19 }
 0x180   : > { %2899 = vmatmul.mubr.bf16.vlgmr.msra.gmra.mrb[24].mxu0 %v5606_v28  ;;  %2942 = vmatmul.mubr.bf16.vlgmr.msra.gmra.mrb[24].mxu1 %v5606_v28 }
 0x181   : > { %2953 = vmatpush1.bf16.msra.mxu0 %v4457_v24  ;;  %2996 = vmatpush1.bf16.msra.mxu1 %v4459_v25 }
 0x182   : > { %2954 = vmatprep.subr.bf16.mxu0 %v4490_v26  ;;  %2997 = vmatprep.subr.bf16.mxu1 %v4492_v27  ;;  %v5707_v27 = vsub.s32 %v3364_v5, %v3366_v6 }
 0x183   : > { %2984 = vmatprep.mubr.bf16.mxu0 %v4776_v0  ;;  %3027 = vmatprep.mubr.bf16.mxu1 %v4776_v0  ;;  %v4555_v0 = vcombine.low %v919_v38, %v935_v39 }
 0x185   : > { %2955 = vmatpush1.bf16.msra.mxu0 %v4489_v33  ;;  %2998 = vmatpush1.bf16.msra.mxu1 %v4491_v34 }
 0x186   : > { %2956 = vmatprep.subr.bf16.mxu0 %v4522_v35  ;;  %2999 = vmatprep.subr.bf16.mxu1 %v4524_v36 }
 0x189   : > { %2957 = vmatpush1.bf16.msra.mxu0 %v4521_v40  ;;  %3000 = vmatpush1.bf16.msra.mxu1 %v4523_v41 }
 0x18a   : > { %2958 = vmatprep.subr.bf16.mxu0 %v4554_v42  ;;  %3001 = vmatprep.subr.bf16.mxu1 %v4556_v43 }
 0x18d   : > { %2959 = vmatpush1.bf16.msra.mxu0 %v4553_v48  ;;  %3002 = vmatpush1.bf16.msra.mxu1 %v4555_v0 }
 0x18e   : > { %2960 = vmatprep.subr.bf16.mxu0 %v4586_v49  ;;  %3003 = vmatprep.subr.bf16.mxu1 %v4588_v50 }
 0x191   : > { %2961 = vmatpush1.bf16.msra.mxu0 %v4585_v55  ;;  %3004 = vmatpush1.bf16.msra.mxu1 %v4587_v59 }
 0x192   : > { %2962 = vmatprep.subr.bf16.mxu0 %v4618_v60  ;;  %3005 = vmatprep.subr.bf16.mxu1 %v4620_v61 }
 0x193   : > { %v2384_v13 = vpop.f32.mrb[0].mxu0  ;;  %v2427_v18 = vpop.f32.mrb[0].mxu1 }
 0x194   : > { %3038 = vst [vmem:[%s5696_s15] sm:$0xff] %v2384_v13  ;;  %v3562_v17 = vmul.f32 %v2384_v13, %v2384_v13  ;;  %v2386_v19 = vpop.f32.mrb[1].mxu0  ;;  %3040 = vst [vmem:[%s5696_s15 + $0x10] sm:$0xff] %v2427_v18  ;;  %v3564_v23 = vmul.f32 %v2427_v18, %v2427_v18  ;;  %v2429_v25 = vpop.f32.mrb[1].mxu1 }
 0x195   : > { %3039 = vst [vmem:[%s5696_s15 + $0x8] sm:$0xff] %v2386_v19  ;;  %v3563_v24 = vmul.f32 %v2386_v19, %v2386_v19  ;;  %v2388_v26 = vpop.f32.mrb[2].mxu0  ;;  %2963 = vmatpush1.bf16.msra.mxu0 %v4617_v4  ;;  %3041 = vst [vmem:[%s5696_s15 + $0x18] sm:$0xff] %v2429_v25  ;;  %v3565_v30 = vmul.f32 %v2429_v25, %v2429_v25  ;;  %v2431_v33 = vpop.f32.mrb[2].mxu1  ;;  %3006 = vmatpush1.bf16.msra.mxu1 %v4619_v11 }
 0x196   : > { %3070 = vst [vmem:[%s5696_s15 + $0x100] sm:$0xff] %v2388_v26  ;;  %v3102_v31 = vadd.f32 %v2388_v26, %v2384_v13  ;;  %v3594_v32 = vmul.f32 %v2388_v26, %v2388_v26  ;;  %v2390_v34 = vpop.f32.mrb[3].mxu0  ;;  %2964 = vmatprep.subr.bf16.mxu0 %v4650_v12  ;;  %3072 = vst [vmem:[%s5696_s15 + $0x110] sm:$0xff] %v2431_v33  ;;  %v3116_v35 = vadd.f32 %v2431_v33, %v2427_v18  ;;  %v2433_v38 = vpop.f32.mrb[3].mxu1 }
 0x197   : > { %v3596_v36 = vmul.f32 %v2431_v33, %v2431_v33  ;;  %3071 = vst [vmem:[%s5696_s15 + $0x108] sm:$0xff] %v2390_v34  ;;  %v3109_v10 = vadd.f32 %v2390_v34, %v2386_v19  ;;  %v3595_v37 = vmul.f32 %v2390_v34, %v2390_v34  ;;  %3007 = vmatprep.subr.bf16.mxu1 %v4652_v16  ;;  %3073 = vst [vmem:[%s5696_s15 + $0x118] sm:$0xff] %v2433_v38 }
 0x198   : > { %v3103_v39 = vrot.slane %v3102_v31, 4  ;;  %v3626_v40 = vadd.f32 %v3594_v32, %v3562_v17  ;;  %v3123_v41 = vadd.f32 %v2433_v38, %v2429_v25  ;;  %v3597_v42 = vmul.f32 %v2433_v38, %v2433_v38 }
 0x199   : > { %v3117_v43 = vrot.slane %v3116_v35, 4  ;;  %v3640_v44 = vadd.f32 %v3596_v36, %v3564_v23  ;;  %v3110_v45 = vrot.slane %v3109_v10, 4  ;;  %v3633_v46 = vadd.f32 %v3595_v37, %v3563_v24  ;;  %2965 = vmatpush1.bf16.msra.mxu0 %v4649_v14  ;;  %3008 = vmatpush1.bf16.msra.mxu1 %v4651_v15 }
 0x19a   : > { %v3104_v47 = vadd.f32 %v3103_v39, %v3102_v31  ;;  %v3627_v48 = vrot.slane %v3626_v40, 4  ;;  %v3124_v0 = vrot.slane %v3123_v41, 4  ;;  %v3647_v49 = vadd.f32 %v3597_v42, %v3565_v30  ;;  %2966 = vmatprep.subr.bf16.mxu0 %v4682_v21  ;;  %3009 = vmatprep.subr.bf16.mxu1 %v4684_v29 }
 0x19b   : > { %v3118_v50 = vadd.f32 %v3117_v43, %v3116_v35  ;;  %v3641_v51 = vrot.slane %v3640_v44, 4  ;;  %v3111_v52 = vadd.f32 %v3110_v45, %v3109_v10  ;;  %v3634_v53 = vrot.slane %v3633_v46, 4 }
 0x19c   : > { %v3105_v54 = vrot.slane %v3104_v47, 2  ;;  %v3628_v55 = vadd.f32 %v3627_v48, %v3626_v40  ;;  %v3125_v56 = vadd.f32 %v3124_v0, %v3123_v41  ;;  %v3648_v57 = vrot.slane %v3647_v49, 4 }
 0x19d   : > { %v3119_v58 = vrot.slane %v3118_v50, 2  ;;  %v3642_v59 = vadd.f32 %v3641_v51, %v3640_v44  ;;  %v3112_v60 = vrot.slane %v3111_v52, 2  ;;  %v3635_v61 = vadd.f32 %v3634_v53, %v3633_v46  ;;  %2967 = vmatpush1.bf16.msra.mxu0 %v4681_v20  ;;  %3010 = vmatpush1.bf16.msra.mxu1 %v4683_v22 }
 0x19e   : > { %v3106_v62 = vadd.f32 %v3105_v54, %v3104_v47  ;;  %v3629_v63 = vrot.slane %v3628_v55, 2  ;;  %v3126_v1 = vrot.slane %v3125_v56, 2  ;;  %v3649_v2 = vadd.f32 %v3648_v57, %v3647_v49 }
 0x19f   : > { %v3120_v3 = vadd.f32 %v3119_v58, %v3118_v50  ;;  %v3643_v4 = vrot.slane %v3642_v59, 2  ;;  %v3113_v5 = vadd.f32 %v3112_v60, %v3111_v52  ;;  %v3636_v6 = vrot.slane %v3635_v61, 2 }
 0x1a0   : > { %v3107_v7 = vrot.slane %v3106_v62, 1  ;;  %v3630_v8 = vadd.f32 %v3629_v63, %v3628_v55  ;;  %v3127_v9 = vadd.f32 %v3126_v1, %v3125_v56  ;;  %v3650_v11 = vrot.slane %v3649_v2, 2  ;;  %2985 = vmatmul.mubr.bf16.vlgmr.msra.gmra.mrb[28].mxu0 %v5606_v28  ;;  %3028 = vmatmul.mubr.bf16.vlgmr.msra.gmra.mrb[28].mxu1 %v5606_v28 }
 0x1a1   : > { %v3121_v12 = vrot.slane %v3120_v3, 1  ;;  %v3644_v13 = vadd.f32 %v3643_v4, %v3642_v59  ;;  %v3114_v14 = vrot.slane %v3113_v5, 1  ;;  %v3637_v15 = vadd.f32 %v3636_v6, %v3635_v61 }
 0x1a2   : > { %v3108_v16 = vadd.f32 %v3107_v7, %v3106_v62  ;;  %v3631_v17 = vrot.slane %v3630_v8, 1  ;;  %v3128_v18 = vrot.slane %v3127_v9, 1  ;;  %v3651_v19 = vadd.f32 %v3650_v11, %v3649_v2 }
 0x1a3   : > { %v3122_v20 = vadd.f32 %v3121_v12, %v3120_v3  ;;  %v3645_v21 = vrot.slane %v3644_v13, 1  ;;  %v3115_v22 = vadd.f32 %v3114_v14, %v3113_v5  ;;  %v3638_v23 = vrot.slane %v3637_v15, 1 }
 0x1a4   : > { %v3632_v24 = vadd.f32 %v3631_v17, %v3630_v8  ;;  %v3129_v25 = vadd.f32 %v3128_v18, %v3127_v9  ;;  %v3652_v26 = vrot.slane %v3651_v19, 1 }
 0x1a5   : > { %v3646_v29 = vadd.f32 %v3645_v21, %v3644_v13  ;;  %v3358_v30 = vcombine.low %v3108_v16, %v3115_v22  ;;  %v3639_v31 = vadd.f32 %v3638_v23, %v3637_v15 }
 0x1a6   : > { %v3359_v32 = vcombine.low %v3122_v20, %v3129_v25  ;;  %v3653_v33 = vadd.f32 %v3652_v26, %v3651_v19 }
 0x1a7   : > { %v5719_v28 = vrot.slane %v3358_v30, %v5707_v27  ;;  %v3882_v34 = vcombine.low %v3632_v24, %v3639_v31 }
 0x1a8   : > { %v5722_v35 = vrot.slane %v3359_v32, %v5707_v27  ;;  %v3883_v36 = vcombine.low %v3646_v29, %v3653_v33 }
 0x1a9   : > { %v5725_v10 = vrot.slane %v3882_v34, %v5707_v27 }
 0x1aa   : > { %v3390_v37 = vcombine.low %v5719_v28, %v5722_v35  ;;  %v5730_v38 = vrot.slane %v3883_v36, %v5707_v27 }
 0x1ac   : > { %v3914_v39 = vcombine.low %v5725_v10, %v5730_v38 }
 0x1b3   : > { %v2470_v40 = vpop.f32.mrb[4].mxu0  ;;  %v2513_v42 = vpop.f32.mrb[4].mxu1 }
 0x1b4   : > { %3042 = vst [vmem:[%s5696_s15 + $0x20] sm:$0xff] %v2470_v40  ;;  %v3566_v41 = vmul.f32 %v2470_v40, %v2470_v40  ;;  %v2472_v43 = vpop.f32.mrb[5].mxu0  ;;  %3044 = vst [vmem:[%s5696_s15 + $0x30] sm:$0xff] %v2513_v42  ;;  %v3568_v44 = vmul.f32 %v2513_v42, %v2513_v42  ;;  %v2515_v45 = vpop.f32.mrb[5].mxu1 }
 0x1b5   : > { %3043 = vst [vmem:[%s5696_s15 + $0x28] sm:$0xff] %v2472_v43  ;;  %v2474_v46 = vpop.f32.mrb[6].mxu0  ;;  %v3567_v47 = vmul.f32 %v2472_v43, %v2472_v43  ;;  %3045 = vst [vmem:[%s5696_s15 + $0x38] sm:$0xff] %v2515_v45  ;;  %v3569_v48 = vmul.f32 %v2515_v45, %v2515_v45  ;;  %v2517_v50 = vpop.f32.mrb[6].mxu1 }
 0x1b6   : > { %3074 = vst [vmem:[%s5696_s15 + $0x120] sm:$0xff] %v2474_v46  ;;  %v3130_v0 = vadd.f32 %v2474_v46, %v2470_v40  ;;  %v3598_v49 = vmul.f32 %v2474_v46, %v2474_v46  ;;  %v2476_v51 = vpop.f32.mrb[7].mxu0  ;;  %3076 = vst [vmem:[%s5696_s15 + $0x130] sm:$0xff] %v2517_v50  ;;  %v3144_v52 = vadd.f32 %v2517_v50, %v2513_v42  ;;  %v2519_v56 = vpop.f32.mrb[7].mxu1 }
 0x1b7   : > { %v3600_v53 = vmul.f32 %v2517_v50, %v2517_v50  ;;  %3075 = vst [vmem:[%s5696_s15 + $0x128] sm:$0xff] %v2476_v51  ;;  %v3137_v54 = vadd.f32 %v2476_v51, %v2472_v43  ;;  %v3599_v55 = vmul.f32 %v2476_v51, %v2476_v51  ;;  %3077 = vst [vmem:[%s5696_s15 + $0x138] sm:$0xff] %v2519_v56 }
 0x1b8   : > { %v3131_v57 = vrot.slane %v3130_v0, 4  ;;  %v3654_v58 = vadd.f32 %v3598_v49, %v3566_v41  ;;  %v3151_v59 = vadd.f32 %v2519_v56, %v2515_v45  ;;  %v3601_v60 = vmul.f32 %v2519_v56, %v2519_v56 }
 0x1b9   : > { %v3145_v61 = vrot.slane %v3144_v52, 4  ;;  %v3668_v62 = vadd.f32 %v3600_v53, %v3568_v44  ;;  %v3138_v63 = vrot.slane %v3137_v54, 4  ;;  %v3661_v1 = vadd.f32 %v3599_v55, %v3567_v47 }
 0x1ba   : > { %v3132_v2 = vadd.f32 %v3131_v57, %v3130_v0  ;;  %v3655_v3 = vrot.slane %v3654_v58, 4  ;;  %v3152_v4 = vrot.slane %v3151_v59, 4  ;;  %v3675_v5 = vadd.f32 %v3601_v60, %v3569_v48 }
 0x1bb   : > { %v3146_v6 = vadd.f32 %v3145_v61, %v3144_v52  ;;  %v3669_v7 = vrot.slane %v3668_v62, 4  ;;  %v3139_v8 = vadd.f32 %v3138_v63, %v3137_v54  ;;  %v3662_v9 = vrot.slane %v3661_v1, 4 }
 0x1bc   : > { %v3133_v11 = vrot.slane %v3132_v2, 2  ;;  %v3656_v12 = vadd.f32 %v3655_v3, %v3654_v58  ;;  %v3153_v13 = vadd.f32 %v3152_v4, %v3151_v59  ;;  %v3676_v14 = vrot.slane %v3675_v5, 4 }
 0x1bd   : > { %v3147_v15 = vrot.slane %v3146_v6, 2  ;;  %v3670_v16 = vadd.f32 %v3669_v7, %v3668_v62  ;;  %v3140_v17 = vrot.slane %v3139_v8, 2  ;;  %v3663_v18 = vadd.f32 %v3662_v9, %v3661_v1 }
 0x1be   : > { %v3134_v19 = vadd.f32 %v3133_v11, %v3132_v2  ;;  %v3657_v20 = vrot.slane %v3656_v12, 2  ;;  %v3154_v21 = vrot.slane %v3153_v13, 2  ;;  %v3677_v22 = vadd.f32 %v3676_v14, %v3675_v5 }
 0x1bf   : > { %v3148_v23 = vadd.f32 %v3147_v15, %v3146_v6  ;;  %v3671_v24 = vrot.slane %v3670_v16, 2  ;;  %v3141_v25 = vadd.f32 %v3140_v17, %v3139_v8  ;;  %v3664_v26 = vrot.slane %v3663_v18, 2 }
 0x1c0   : > { %v3135_v29 = vrot.slane %v3134_v19, 1  ;;  %v3658_v30 = vadd.f32 %v3657_v20, %v3656_v12  ;;  %v3155_v31 = vadd.f32 %v3154_v21, %v3153_v13  ;;  %v3678_v32 = vrot.slane %v3677_v22, 2 }
 0x1c1   : > { %v3149_v33 = vrot.slane %v3148_v23, 1  ;;  %v3672_v34 = vadd.f32 %v3671_v24, %v3670_v16  ;;  %v3142_v36 = vrot.slane %v3141_v25, 1  ;;  %v3665_v40 = vadd.f32 %v3664_v26, %v3663_v18 }
 0x1c2   : > { %v3136_v41 = vadd.f32 %v3135_v29, %v3134_v19  ;;  %v3659_v42 = vrot.slane %v3658_v30, 1  ;;  %v3156_v43 = vrot.slane %v3155_v31, 1  ;;  %v3679_v44 = vadd.f32 %v3678_v32, %v3677_v22 }
 0x1c3   : > { %v3150_v45 = vadd.f32 %v3149_v33, %v3148_v23  ;;  %v3673_v46 = vrot.slane %v3672_v34, 1  ;;  %v3143_v47 = vadd.f32 %v3142_v36, %v3141_v25  ;;  %v3666_v48 = vrot.slane %v3665_v40, 1 }
 0x1c4   : > { %v3660_v0 = vadd.f32 %v3659_v42, %v3658_v30  ;;  %v3157_v49 = vadd.f32 %v3156_v43, %v3155_v31  ;;  %v3680_v50 = vrot.slane %v3679_v44, 1  ;;  %v3398_v63 = vrot.slane %v3390_v37, %v5707_v27 }
 0x1c5   : > { %v3674_v51 = vadd.f32 %v3673_v46, %v3672_v34  ;;  %v3360_v52 = vcombine.low %v3136_v41, %v3143_v47  ;;  %v3667_v53 = vadd.f32 %v3666_v48, %v3665_v40  ;;  %v3922_v3 = vrot.slane %v3914_v39, %v5707_v27 }
 0x1c6   : > { %v3361_v54 = vcombine.low %v3150_v45, %v3157_v49  ;;  %v3681_v55 = vadd.f32 %v3680_v50, %v3679_v44 }
 0x1c7   : > { %v3382_v56 = vrot.slane %v3360_v52, %v5707_v27  ;;  %v3884_v57 = vcombine.low %v3660_v0, %v3667_v53 }
 0x1c8   : > { %v3389_v58 = vrot.slane %v3361_v54, %v5707_v27  ;;  %v3885_v59 = vcombine.low %v3674_v51, %v3681_v55 }
 0x1c9   : > { %v3906_v60 = vrot.slane %v3884_v57, %v5707_v27 }
 0x1ca   : > { %v3391_v61 = vcombine.low %v3382_v56, %v3389_v58  ;;  %v3913_v62 = vrot.slane %v3885_v59, %v5707_v27 }
 0x1cc   : > { %v3405_v1 = vrot.slane %v3391_v61, %v5707_v27  ;;  %v3915_v2 = vcombine.low %v3906_v60, %v3913_v62 }
 0x1ce   : > { %v3406_v4 = vcombine.low %v3398_v63, %v3405_v1  ;;  %v3929_v28 = vrot.slane %v3915_v2, %v5707_v27 }
 0x1d0   : > { %3558 = vst [vmem:[%s5755_s26] sm:$0xff] %v3406_v4  ;;  %v3930_v35 = vcombine.low %v3922_v3, %v3929_v28 }
 0x1d2   : > { %4082 = vst [vmem:[%s5765_s29] sm:$0xff] %v3930_v35 }
 0x1d3   : > { %v2556_v37 = vpop.f32.mrb[8].mxu0  ;;  %v2599_v10 = vpop.f32.mrb[8].mxu1 }
 0x1d4   : > { %3046 = vst [vmem:[%s5696_s15 + $0x40] sm:$0xff] %v2556_v37  ;;  %v3570_v5 = vmul.f32 %v2556_v37, %v2556_v37  ;;  %v2558_v38 = vpop.f32.mrb[9].mxu0  ;;  %3048 = vst [vmem:[%s5696_s15 + $0x50] sm:$0xff] %v2599_v10  ;;  %v3572_v39 = vmul.f32 %v2599_v10, %v2599_v10  ;;  %v2601_v6 = vpop.f32.mrb[9].mxu1 }
 0x1d5   : > { %3047 = vst [vmem:[%s5696_s15 + $0x48] sm:$0xff] %v2558_v38  ;;  %v2560_v7 = vpop.f32.mrb[10].mxu0  ;;  %v3571_v8 = vmul.f32 %v2558_v38, %v2558_v38  ;;  %3049 = vst [vmem:[%s5696_s15 + $0x58] sm:$0xff] %v2601_v6  ;;  %v3573_v9 = vmul.f32 %v2601_v6, %v2601_v6  ;;  %v2603_v13 = vpop.f32.mrb[10].mxu1 }
 0x1d6   : > { %3078 = vst [vmem:[%s5696_s15 + $0x140] sm:$0xff] %v2560_v7  ;;  %v3158_v11 = vadd.f32 %v2560_v7, %v2556_v37  ;;  %v3602_v12 = vmul.f32 %v2560_v7, %v2560_v7  ;;  %v2562_v14 = vpop.f32.mrb[11].mxu0  ;;  %3080 = vst [vmem:[%s5696_s15 + $0x150] sm:$0xff] %v2603_v13  ;;  %v3172_v15 = vadd.f32 %v2603_v13, %v2599_v10  ;;  %v2605_v19 = vpop.f32.mrb[11].mxu1 }
 0x1d7   : > { %v3604_v16 = vmul.f32 %v2603_v13, %v2603_v13  ;;  %3079 = vst [vmem:[%s5696_s15 + $0x148] sm:$0xff] %v2562_v14  ;;  %v3165_v17 = vadd.f32 %v2562_v14, %v2558_v38  ;;  %v3603_v18 = vmul.f32 %v2562_v14, %v2562_v14  ;;  %3081 = vst [vmem:[%s5696_s15 + $0x158] sm:$0xff] %v2605_v19 }
 0x1d8   : > { %v3159_v20 = vrot.slane %v3158_v11, 4  ;;  %v3682_v21 = vadd.f32 %v3602_v12, %v3570_v5  ;;  %v3179_v22 = vadd.f32 %v2605_v19, %v2601_v6  ;;  %v3605_v23 = vmul.f32 %v2605_v19, %v2605_v19 }
 0x1d9   : > { %v3173_v24 = vrot.slane %v3172_v15, 4  ;;  %v3696_v25 = vadd.f32 %v3604_v16, %v3572_v39  ;;  %v3166_v26 = vrot.slane %v3165_v17, 4  ;;  %v3689_v29 = vadd.f32 %v3603_v18, %v3571_v8 }
 0x1da   : > { %v3160_v30 = vadd.f32 %v3159_v20, %v3158_v11  ;;  %v3683_v31 = vrot.slane %v3682_v21, 4  ;;  %v3180_v32 = vrot.slane %v3179_v22, 4  ;;  %v3703_v33 = vadd.f32 %v3605_v23, %v3573_v9 }
 0x1db   : > { %v3174_v34 = vadd.f32 %v3173_v24, %v3172_v15  ;;  %v3697_v36 = vrot.slane %v3696_v25, 4  ;;  %v3167_v40 = vadd.f32 %v3166_v26, %v3165_v17  ;;  %v3690_v41 = vrot.slane %v3689_v29, 4 }
 0x1dc   : > { %v3161_v42 = vrot.slane %v3160_v30, 2  ;;  %v3684_v43 = vadd.f32 %v3683_v31, %v3682_v21  ;;  %v3181_v44 = vadd.f32 %v3180_v32, %v3179_v22  ;;  %v3704_v45 = vrot.slane %v3703_v33, 4 }
 0x1dd   : > { %v3175_v46 = vrot.slane %v3174_v34, 2  ;;  %v3698_v47 = vadd.f32 %v3697_v36, %v3696_v25  ;;  %v3168_v48 = vrot.slane %v3167_v40, 2  ;;  %v3691_v0 = vadd.f32 %v3690_v41, %v3689_v29 }
 0x1de   : > { %v3162_v49 = vadd.f32 %v3161_v42, %v3160_v30  ;;  %v3685_v50 = vrot.slane %v3684_v43, 2  ;;  %v3182_v51 = vrot.slane %v3181_v44, 2  ;;  %v3705_v52 = vadd.f32 %v3704_v45, %v3703_v33 }
 0x1df   : > { %v3176_v53 = vadd.f32 %v3175_v46, %v3174_v34  ;;  %v3699_v54 = vrot.slane %v3698_v47, 2  ;;  %v3169_v55 = vadd.f32 %v3168_v48, %v3167_v40  ;;  %v3692_v56 = vrot.slane %v3691_v0, 2 }
 0x1e0   : > { %v3163_v57 = vrot.slane %v3162_v49, 1  ;;  %v3686_v58 = vadd.f32 %v3685_v50, %v3684_v43  ;;  %v3183_v59 = vadd.f32 %v3182_v51, %v3181_v44  ;;  %v3706_v60 = vrot.slane %v3705_v52, 2 }
 0x1e1   : > { %v3177_v61 = vrot.slane %v3176_v53, 1  ;;  %v3700_v62 = vadd.f32 %v3699_v54, %v3698_v47  ;;  %v3170_v63 = vrot.slane %v3169_v55, 1  ;;  %v3693_v1 = vadd.f32 %v3692_v56, %v3691_v0 }
 0x1e2   : > { %v3164_v2 = vadd.f32 %v3163_v57, %v3162_v49  ;;  %v3687_v3 = vrot.slane %v3686_v58, 1  ;;  %v3184_v4 = vrot.slane %v3183_v59, 1  ;;  %v3707_v28 = vadd.f32 %v3706_v60, %v3705_v52 }
 0x1e3   : > { %v3178_v35 = vadd.f32 %v3177_v61, %v3176_v53  ;;  %v3701_v37 = vrot.slane %v3700_v62, 1  ;;  %v3171_v5 = vadd.f32 %v3170_v63, %v3169_v55  ;;  %v3694_v10 = vrot.slane %v3693_v1, 1 }
 0x1e4   : > { %v3688_v38 = vadd.f32 %v3687_v3, %v3686_v58  ;;  %v3185_v39 = vadd.f32 %v3184_v4, %v3183_v59  ;;  %v3708_v6 = vrot.slane %v3707_v28, 1 }
 0x1e5   : > { %v3702_v7 = vadd.f32 %v3701_v37, %v3700_v62  ;;  %v3407_v8 = vcombine.low %v3164_v2, %v3171_v5  ;;  %v3695_v9 = vadd.f32 %v3694_v10, %v3693_v1 }
 0x1e6   : > { %v3408_v11 = vcombine.low %v3178_v35, %v3185_v39  ;;  %v3709_v12 = vadd.f32 %v3708_v6, %v3707_v28 }
 0x1e7   : > { %v5778_v13 = vrot.slane %v3407_v8, %v5707_v27  ;;  %v3931_v14 = vcombine.low %v3688_v38, %v3695_v9 }
 0x1e8   : > { %v5781_v15 = vrot.slane %v3408_v11, %v5707_v27  ;;  %v3932_v16 = vcombine.low %v3702_v7, %v3709_v12 }
 0x1e9   : > { %v5784_v17 = vrot.slane %v3931_v14, %v5707_v27 }
 0x1ea   : > { %v3439_v18 = vcombine.low %v5778_v13, %v5781_v15  ;;  %v5789_v19 = vrot.slane %v3932_v16, %v5707_v27 }
 0x1ec   : > { %v3963_v20 = vcombine.low %v5784_v17, %v5789_v19 }
 0x1f3   : > { %v2642_v21 = vpop.f32.mrb[12].mxu0  ;;  %v2685_v23 = vpop.f32.mrb[12].mxu1 }
 0x1f4   : > { %3050 = vst [vmem:[%s5696_s15 + $0x60] sm:$0xff] %v2642_v21  ;;  %v3574_v22 = vmul.f32 %v2642_v21, %v2642_v21  ;;  %v2644_v24 = vpop.f32.mrb[13].mxu0  ;;  %3052 = vst [vmem:[%s5696_s15 + $0x70] sm:$0xff] %v2685_v23  ;;  %v3576_v25 = vmul.f32 %v2685_v23, %v2685_v23  ;;  %v2687_v26 = vpop.f32.mrb[13].mxu1 }
 0x1f5   : > { %3051 = vst [vmem:[%s5696_s15 + $0x68] sm:$0xff] %v2644_v24  ;;  %v2646_v29 = vpop.f32.mrb[14].mxu0  ;;  %v3575_v30 = vmul.f32 %v2644_v24, %v2644_v24  ;;  %3053 = vst [vmem:[%s5696_s15 + $0x78] sm:$0xff] %v2687_v26  ;;  %v3577_v31 = vmul.f32 %v2687_v26, %v2687_v26  ;;  %v2689_v34 = vpop.f32.mrb[14].mxu1 }
 0x1f6   : > { %3082 = vst [vmem:[%s5696_s15 + $0x160] sm:$0xff] %v2646_v29  ;;  %v3186_v32 = vadd.f32 %v2646_v29, %v2642_v21  ;;  %v3606_v33 = vmul.f32 %v2646_v29, %v2646_v29  ;;  %v2648_v36 = vpop.f32.mrb[15].mxu0  ;;  %3084 = vst [vmem:[%s5696_s15 + $0x170] sm:$0xff] %v2689_v34  ;;  %v3200_v40 = vadd.f32 %v2689_v34, %v2685_v23  ;;  %v2691_v44 = vpop.f32.mrb[15].mxu1 }
 0x1f7   : > { %v3608_v41 = vmul.f32 %v2689_v34, %v2689_v34  ;;  %3083 = vst [vmem:[%s5696_s15 + $0x168] sm:$0xff] %v2648_v36  ;;  %v3193_v42 = vadd.f32 %v2648_v36, %v2644_v24  ;;  %v3607_v43 = vmul.f32 %v2648_v36, %v2648_v36  ;;  %3085 = vst [vmem:[%s5696_s15 + $0x178] sm:$0xff] %v2691_v44 }
 0x1f8   : > { %v3187_v45 = vrot.slane %v3186_v32, 4  ;;  %v3710_v46 = vadd.f32 %v3606_v33, %v3574_v22  ;;  %v3207_v47 = vadd.f32 %v2691_v44, %v2687_v26  ;;  %v3609_v48 = vmul.f32 %v2691_v44, %v2691_v44 }
 0x1f9   : > { %v3201_v0 = vrot.slane %v3200_v40, 4  ;;  %v3724_v49 = vadd.f32 %v3608_v41, %v3576_v25  ;;  %v3194_v50 = vrot.slane %v3193_v42, 4  ;;  %v3717_v51 = vadd.f32 %v3607_v43, %v3575_v30 }
 0x1fa   : > { %v3188_v52 = vadd.f32 %v3187_v45, %v3186_v32  ;;  %v3711_v53 = vrot.slane %v3710_v46, 4  ;;  %v3208_v54 = vrot.slane %v3207_v47, 4  ;;  %v3731_v55 = vadd.f32 %v3609_v48, %v3577_v31 }
 0x1fb   : > { %v3202_v56 = vadd.f32 %v3201_v0, %v3200_v40  ;;  %v3725_v57 = vrot.slane %v3724_v49, 4  ;;  %v3195_v58 = vadd.f32 %v3194_v50, %v3193_v42  ;;  %v3718_v59 = vrot.slane %v3717_v51, 4 }
 0x1fc   : > { %v3189_v60 = vrot.slane %v3188_v52, 2  ;;  %v3712_v61 = vadd.f32 %v3711_v53, %v3710_v46  ;;  %v3209_v62 = vadd.f32 %v3208_v54, %v3207_v47  ;;  %v3732_v63 = vrot.slane %v3731_v55, 4 }
 0x1fd   : > { %v3203_v1 = vrot.slane %v3202_v56, 2  ;;  %v3726_v2 = vadd.f32 %v3725_v57, %v3724_v49  ;;  %v3196_v3 = vrot.slane %v3195_v58, 2  ;;  %v3719_v4 = vadd.f32 %v3718_v59, %v3717_v51 }
 0x1fe   : > { %v3190_v28 = vadd.f32 %v3189_v60, %v3188_v52  ;;  %v3713_v35 = vrot.slane %v3712_v61, 2  ;;  %v3210_v37 = vrot.slane %v3209_v62, 2  ;;  %v3733_v5 = vadd.f32 %v3732_v63, %v3731_v55 }
 0x1ff   : > { %v3204_v10 = vadd.f32 %v3203_v1, %v3202_v56  ;;  %v3727_v38 = vrot.slane %v3726_v2, 2  ;;  %v3197_v39 = vadd.f32 %v3196_v3, %v3195_v58  ;;  %v3720_v6 = vrot.slane %v3719_v4, 2 }
 0x200   : > { %v3191_v7 = vrot.slane %v3190_v28, 1  ;;  %v3714_v8 = vadd.f32 %v3713_v35, %v3712_v61  ;;  %v3211_v9 = vadd.f32 %v3210_v37, %v3209_v62  ;;  %v3734_v11 = vrot.slane %v3733_v5, 2 }
 0x201   : > { %v3205_v12 = vrot.slane %v3204_v10, 1  ;;  %v3728_v14 = vadd.f32 %v3727_v38, %v3726_v2  ;;  %v3198_v16 = vrot.slane %v3197_v39, 1  ;;  %v3721_v21 = vadd.f32 %v3720_v6, %v3719_v4 }
 0x202   : > { %v3192_v22 = vadd.f32 %v3191_v7, %v3190_v28  ;;  %v3715_v23 = vrot.slane %v3714_v8, 1  ;;  %v3212_v24 = vrot.slane %v3211_v9, 1  ;;  %v3735_v25 = vadd.f32 %v3734_v11, %v3733_v5 }
 0x203   : > { %v3206_v26 = vadd.f32 %v3205_v12, %v3204_v10  ;;  %v3729_v29 = vrot.slane %v3728_v14, 1  ;;  %v3199_v30 = vadd.f32 %v3198_v16, %v3197_v39  ;;  %v3722_v31 = vrot.slane %v3721_v21, 1 }
 0x204   : > { %v3716_v32 = vadd.f32 %v3715_v23, %v3714_v8  ;;  %v3213_v33 = vadd.f32 %v3212_v24, %v3211_v9  ;;  %v3736_v34 = vrot.slane %v3735_v25, 1  ;;  %v3447_v50 = vrot.slane %v3439_v18, %v5707_v27 }
 0x205   : > { %v3730_v36 = vadd.f32 %v3729_v29, %v3728_v14  ;;  %v3409_v40 = vcombine.low %v3192_v22, %v3199_v30  ;;  %v3723_v41 = vadd.f32 %v3722_v31, %v3721_v21  ;;  %v3971_v53 = vrot.slane %v3963_v20, %v5707_v27 }
 0x206   : > { %v3410_v42 = vcombine.low %v3206_v26, %v3213_v33  ;;  %v3737_v43 = vadd.f32 %v3736_v34, %v3735_v25 }
 0x207   : > { %v3431_v44 = vrot.slane %v3409_v40, %v5707_v27  ;;  %v3933_v45 = vcombine.low %v3716_v32, %v3723_v41 }
 0x208   : > { %v3438_v46 = vrot.slane %v3410_v42, %v5707_v27  ;;  %v3934_v47 = vcombine.low %v3730_v36, %v3737_v43 }
 0x209   : > { %v3955_v48 = vrot.slane %v3933_v45, %v5707_v27 }
 0x20a   : > { %v3440_v0 = vcombine.low %v3431_v44, %v3438_v46  ;;  %v3962_v49 = vrot.slane %v3934_v47, %v5707_v27 }
 0x20c   : > { %v3454_v51 = vrot.slane %v3440_v0, %v5707_v27  ;;  %v3964_v52 = vcombine.low %v3955_v48, %v3962_v49 }
 0x20e   : > { %v3455_v54 = vcombine.low %v3447_v50, %v3454_v51  ;;  %v3978_v55 = vrot.slane %v3964_v52, %v5707_v27 }
 0x210   : > { %3559 = vst [vmem:[%s5755_s26 + $0x8] sm:$0xff] %v3455_v54  ;;  %v3979_v56 = vcombine.low %v3971_v53, %v3978_v55 }
 0x212   : > { %4083 = vst [vmem:[%s5765_s29 + $0x8] sm:$0xff] %v3979_v56 }
 0x213   : > { %v2728_v57 = vpop.f32.mrb[16].mxu0  ;;  %v2771_v15 = vpop.f32.mrb[16].mxu1 }
 0x214   : > { %3054 = vst [vmem:[%s5696_s15 + $0x80] sm:$0xff] %v2728_v57  ;;  %v3578_v13 = vmul.f32 %v2728_v57, %v2728_v57  ;;  %v2730_v18 = vpop.f32.mrb[17].mxu0  ;;  %3056 = vst [vmem:[%s5696_s15 + $0x90] sm:$0xff] %v2771_v15  ;;  %v3580_v58 = vmul.f32 %v2771_v15, %v2771_v15  ;;  %v2773_v17 = vpop.f32.mrb[17].mxu1 }
 0x215   : > { %3055 = vst [vmem:[%s5696_s15 + $0x88] sm:$0xff] %v2730_v18  ;;  %v2732_v19 = vpop.f32.mrb[18].mxu0  ;;  %v3579_v20 = vmul.f32 %v2730_v18, %v2730_v18  ;;  %3057 = vst [vmem:[%s5696_s15 + $0x98] sm:$0xff] %v2773_v17  ;;  %v3581_v59 = vmul.f32 %v2773_v17, %v2773_v17  ;;  %v2775_v62 = vpop.f32.mrb[18].mxu1 }
 0x216   : > { %3086 = vst [vmem:[%s5696_s15 + $0x180] sm:$0xff] %v2732_v19  ;;  %v3214_v60 = vadd.f32 %v2732_v19, %v2728_v57  ;;  %v3610_v61 = vmul.f32 %v2732_v19, %v2732_v19  ;;  %v2734_v63 = vpop.f32.mrb[19].mxu0  ;;  %3088 = vst [vmem:[%s5696_s15 + $0x190] sm:$0xff] %v2775_v62  ;;  %v3228_v1 = vadd.f32 %v2775_v62, %v2771_v15  ;;  %v2777_v28 = vpop.f32.mrb[19].mxu1 }
 0x217   : > { %v3612_v2 = vmul.f32 %v2775_v62, %v2775_v62  ;;  %3087 = vst [vmem:[%s5696_s15 + $0x188] sm:$0xff] %v2734_v63  ;;  %v3221_v3 = vadd.f32 %v2734_v63, %v2730_v18  ;;  %v3611_v4 = vmul.f32 %v2734_v63, %v2734_v63  ;;  %3089 = vst [vmem:[%s5696_s15 + $0x198] sm:$0xff] %v2777_v28 }
 0x218   : > { %v3215_v35 = vrot.slane %v3214_v60, 4  ;;  %v3738_v37 = vadd.f32 %v3610_v61, %v3578_v13  ;;  %v3235_v5 = vadd.f32 %v2777_v28, %v2773_v17  ;;  %v3613_v10 = vmul.f32 %v2777_v28, %v2777_v28 }
 0x219   : > { %v3229_v38 = vrot.slane %v3228_v1, 4  ;;  %v3752_v39 = vadd.f32 %v3612_v2, %v3580_v58  ;;  %v3222_v6 = vrot.slane %v3221_v3, 4  ;;  %v3745_v7 = vadd.f32 %v3611_v4, %v3579_v20 }
 0x21a   : > { %v3216_v8 = vadd.f32 %v3215_v35, %v3214_v60  ;;  %v3739_v9 = vrot.slane %v3738_v37, 4  ;;  %v3236_v11 = vrot.slane %v3235_v5, 4  ;;  %v3759_v12 = vadd.f32 %v3613_v10, %v3581_v59 }
 0x21b   : > { %v3230_v14 = vadd.f32 %v3229_v38, %v3228_v1  ;;  %v3753_v16 = vrot.slane %v3752_v39, 4  ;;  %v3223_v21 = vadd.f32 %v3222_v6, %v3221_v3  ;;  %v3746_v22 = vrot.slane %v3745_v7, 4 }
 0x21c   : > { %v3217_v23 = vrot.slane %v3216_v8, 2  ;;  %v3740_v24 = vadd.f32 %v3739_v9, %v3738_v37  ;;  %v3237_v25 = vadd.f32 %v3236_v11, %v3235_v5  ;;  %v3760_v26 = vrot.slane %v3759_v12, 4 }
 0x21d   : > { %v3231_v29 = vrot.slane %v3230_v14, 2  ;;  %v3754_v30 = vadd.f32 %v3753_v16, %v3752_v39  ;;  %v3224_v31 = vrot.slane %v3223_v21, 2  ;;  %v3747_v32 = vadd.f32 %v3746_v22, %v3745_v7 }
 0x21e   : > { %v3218_v33 = vadd.f32 %v3217_v23, %v3216_v8  ;;  %v3741_v34 = vrot.slane %v3740_v24, 2  ;;  %v3238_v36 = vrot.slane %v3237_v25, 2  ;;  %v3761_v40 = vadd.f32 %v3760_v26, %v3759_v12 }
 0x21f   : > { %v3232_v41 = vadd.f32 %v3231_v29, %v3230_v14  ;;  %v3755_v42 = vrot.slane %v3754_v30, 2  ;;  %v3225_v43 = vadd.f32 %v3224_v31, %v3223_v21  ;;  %v3748_v44 = vrot.slane %v3747_v32, 2 }
 0x220   : > { %v3219_v45 = vrot.slane %v3218_v33, 1  ;;  %v3742_v46 = vadd.f32 %v3741_v34, %v3740_v24  ;;  %v3239_v47 = vadd.f32 %v3238_v36, %v3237_v25  ;;  %v3762_v48 = vrot.slane %v3761_v40, 2 }
 0x221   : > { %v3233_v0 = vrot.slane %v3232_v41, 1  ;;  %v3756_v49 = vadd.f32 %v3755_v42, %v3754_v30  ;;  %v3226_v50 = vrot.slane %v3225_v43, 1  ;;  %v3749_v51 = vadd.f32 %v3748_v44, %v3747_v32 }
 0x222   : > { %v3220_v52 = vadd.f32 %v3219_v45, %v3218_v33  ;;  %v3743_v53 = vrot.slane %v3742_v46, 1  ;;  %v3240_v54 = vrot.slane %v3239_v47, 1  ;;  %v3763_v55 = vadd.f32 %v3762_v48, %v3761_v40 }
 0x223   : > { %v3234_v56 = vadd.f32 %v3233_v0, %v3232_v41  ;;  %v3757_v57 = vrot.slane %v3756_v49, 1  ;;  %v3227_v13 = vadd.f32 %v3226_v50, %v3225_v43  ;;  %v3750_v15 = vrot.slane %v3749_v51, 1 }
 0x224   : > { %v3744_v18 = vadd.f32 %v3743_v53, %v3742_v46  ;;  %v3241_v58 = vadd.f32 %v3240_v54, %v3239_v47  ;;  %v3764_v17 = vrot.slane %v3763_v55, 1 }
 0x225   : > { %v3758_v19 = vadd.f32 %v3757_v57, %v3756_v49  ;;  %v3456_v20 = vcombine.low %v3220_v52, %v3227_v13  ;;  %v3751_v59 = vadd.f32 %v3750_v15, %v3749_v51 }
 0x226   : > { %v3457_v60 = vcombine.low %v3234_v56, %v3241_v58  ;;  %v3765_v61 = vadd.f32 %v3764_v17, %v3763_v55 }
 0x227   : > { %v5826_v62 = vrot.slane %v3456_v20, %v5707_v27  ;;  %v3980_v63 = vcombine.low %v3744_v18, %v3751_v59 }
 0x228   : > { %v5829_v1 = vrot.slane %v3457_v60, %v5707_v27  ;;  %v3981_v2 = vcombine.low %v3758_v19, %v3765_v61 }
 0x229   : > { %v5832_v3 = vrot.slane %v3980_v63, %v5707_v27 }
 0x22a   : > { %v3488_v4 = vcombine.low %v5826_v62, %v5829_v1  ;;  %v5837_v28 = vrot.slane %v3981_v2, %v5707_v27 }
 0x22c   : > { %v4012_v35 = vcombine.low %v5832_v3, %v5837_v28 }
 0x233   : > { %v2814_v37 = vpop.f32.mrb[20].mxu0  ;;  %v2857_v10 = vpop.f32.mrb[20].mxu1 }
 0x234   : > { %3058 = vst [vmem:[%s5696_s15 + $0xa0] sm:$0xff] %v2814_v37  ;;  %v3582_v5 = vmul.f32 %v2814_v37, %v2814_v37  ;;  %v2816_v38 = vpop.f32.mrb[21].mxu0  ;;  %3060 = vst [vmem:[%s5696_s15 + $0xb0] sm:$0xff] %v2857_v10  ;;  %v3584_v39 = vmul.f32 %v2857_v10, %v2857_v10  ;;  %v2859_v6 = vpop.f32.mrb[21].mxu1 }
 0x235   : > { %3059 = vst [vmem:[%s5696_s15 + $0xa8] sm:$0xff] %v2816_v38  ;;  %v2818_v7 = vpop.f32.mrb[22].mxu0  ;;  %v3583_v8 = vmul.f32 %v2816_v38, %v2816_v38  ;;  %3061 = vst [vmem:[%s5696_s15 + $0xb8] sm:$0xff] %v2859_v6  ;;  %v3585_v9 = vmul.f32 %v2859_v6, %v2859_v6  ;;  %v2861_v14 = vpop.f32.mrb[22].mxu1 }
 0x236   : > { %3090 = vst [vmem:[%s5696_s15 + $0x1a0] sm:$0xff] %v2818_v7  ;;  %v3242_v11 = vadd.f32 %v2818_v7, %v2814_v37  ;;  %v3614_v12 = vmul.f32 %v2818_v7, %v2818_v7  ;;  %v2820_v16 = vpop.f32.mrb[23].mxu0  ;;  %3092 = vst [vmem:[%s5696_s15 + $0x1b0] sm:$0xff] %v2861_v14  ;;  %v3256_v21 = vadd.f32 %v2861_v14, %v2857_v10  ;;  %v2863_v25 = vpop.f32.mrb[23].mxu1 }
 0x237   : > { %v3616_v22 = vmul.f32 %v2861_v14, %v2861_v14  ;;  %3091 = vst [vmem:[%s5696_s15 + $0x1a8] sm:$0xff] %v2820_v16  ;;  %v3249_v23 = vadd.f32 %v2820_v16, %v2816_v38  ;;  %v3615_v24 = vmul.f32 %v2820_v16, %v2820_v16  ;;  %3093 = vst [vmem:[%s5696_s15 + $0x1b8] sm:$0xff] %v2863_v25 }
 0x238   : > { %v3243_v26 = vrot.slane %v3242_v11, 4  ;;  %v3766_v29 = vadd.f32 %v3614_v12, %v3582_v5  ;;  %v3263_v30 = vadd.f32 %v2863_v25, %v2859_v6  ;;  %v3617_v31 = vmul.f32 %v2863_v25, %v2863_v25 }
 0x239   : > { %v3257_v32 = vrot.slane %v3256_v21, 4  ;;  %v3780_v33 = vadd.f32 %v3616_v22, %v3584_v39  ;;  %v3250_v34 = vrot.slane %v3249_v23, 4  ;;  %v3773_v36 = vadd.f32 %v3615_v24, %v3583_v8 }
 0x23a   : > { %v3244_v40 = vadd.f32 %v3243_v26, %v3242_v11  ;;  %v3767_v41 = vrot.slane %v3766_v29, 4  ;;  %v3264_v42 = vrot.slane %v3263_v30, 4  ;;  %v3787_v43 = vadd.f32 %v3617_v31, %v3585_v9 }
 0x23b   : > { %v3258_v44 = vadd.f32 %v3257_v32, %v3256_v21  ;;  %v3781_v45 = vrot.slane %v3780_v33, 4  ;;  %v3251_v46 = vadd.f32 %v3250_v34, %v3249_v23  ;;  %v3774_v47 = vrot.slane %v3773_v36, 4 }
 0x23c   : > { %v3245_v48 = vrot.slane %v3244_v40, 2  ;;  %v3768_v0 = vadd.f32 %v3767_v41, %v3766_v29  ;;  %v3265_v49 = vadd.f32 %v3264_v42, %v3263_v30  ;;  %v3788_v50 = vrot.slane %v3787_v43, 4 }
 0x23d   : > { %v3259_v51 = vrot.slane %v3258_v44, 2  ;;  %v3782_v52 = vadd.f32 %v3781_v45, %v3780_v33  ;;  %v3252_v53 = vrot.slane %v3251_v46, 2  ;;  %v3775_v54 = vadd.f32 %v3774_v47, %v3773_v36 }
 0x23e   : > { %v3246_v55 = vadd.f32 %v3245_v48, %v3244_v40  ;;  %v3769_v56 = vrot.slane %v3768_v0, 2  ;;  %v3266_v57 = vrot.slane %v3265_v49, 2  ;;  %v3789_v13 = vadd.f32 %v3788_v50, %v3787_v43 }
 0x23f   : > { %v3260_v15 = vadd.f32 %v3259_v51, %v3258_v44  ;;  %v3783_v18 = vrot.slane %v3782_v52, 2  ;;  %v3253_v58 = vadd.f32 %v3252_v53, %v3251_v46  ;;  %v3776_v17 = vrot.slane %v3775_v54, 2 }
 0x240   : > { %v3247_v19 = vrot.slane %v3246_v55, 1  ;;  %v3770_v20 = vadd.f32 %v3769_v56, %v3768_v0  ;;  %v3267_v59 = vadd.f32 %v3266_v57, %v3265_v49  ;;  %v3790_v60 = vrot.slane %v3789_v13, 2 }
 0x241   : > { %v3261_v61 = vrot.slane %v3260_v15, 1  ;;  %v3784_v63 = vadd.f32 %v3783_v18, %v3782_v52  ;;  %v3254_v2 = vrot.slane %v3253_v58, 1  ;;  %v3777_v37 = vadd.f32 %v3776_v17, %v3775_v54 }
 0x242   : > { %v3248_v5 = vadd.f32 %v3247_v19, %v3246_v55  ;;  %v3771_v10 = vrot.slane %v3770_v20, 1  ;;  %v3268_v38 = vrot.slane %v3267_v59, 1  ;;  %v3791_v39 = vadd.f32 %v3790_v60, %v3789_v13 }
 0x243   : > { %v3262_v6 = vadd.f32 %v3261_v61, %v3260_v15  ;;  %v3785_v7 = vrot.slane %v3784_v63, 1  ;;  %v3255_v8 = vadd.f32 %v3254_v2, %v3253_v58  ;;  %v3778_v9 = vrot.slane %v3777_v37, 1 }
 0x244   : > { %v3772_v11 = vadd.f32 %v3771_v10, %v3770_v20  ;;  %v3269_v12 = vadd.f32 %v3268_v38, %v3267_v59  ;;  %v3792_v14 = vrot.slane %v3791_v39, 1  ;;  %v3496_v34 = vrot.slane %v3488_v4, %v5707_v27 }
 0x245   : > { %v3786_v16 = vadd.f32 %v3785_v7, %v3784_v63  ;;  %v3458_v21 = vcombine.low %v3248_v5, %v3255_v8  ;;  %v3779_v22 = vadd.f32 %v3778_v9, %v3777_v37  ;;  %v4020_v41 = vrot.slane %v4012_v35, %v5707_v27 }
 0x246   : > { %v3459_v23 = vcombine.low %v3262_v6, %v3269_v12  ;;  %v3793_v24 = vadd.f32 %v3792_v14, %v3791_v39 }
 0x247   : > { %v3480_v25 = vrot.slane %v3458_v21, %v5707_v27  ;;  %v3982_v26 = vcombine.low %v3772_v11, %v3779_v22 }
 0x248   : > { %v3487_v29 = vrot.slane %v3459_v23, %v5707_v27  ;;  %v3983_v30 = vcombine.low %v3786_v16, %v3793_v24 }
 0x249   : > { %v4004_v31 = vrot.slane %v3982_v26, %v5707_v27 }
 0x24a   : > { %v3489_v32 = vcombine.low %v3480_v25, %v3487_v29  ;;  %v4011_v33 = vrot.slane %v3983_v30, %v5707_v27 }
 0x24c   : > { %v3503_v36 = vrot.slane %v3489_v32, %v5707_v27  ;;  %v4013_v40 = vcombine.low %v4004_v31, %v4011_v33 }
 0x24e   : > { %v3504_v42 = vcombine.low %v3496_v34, %v3503_v36  ;;  %v4027_v43 = vrot.slane %v4013_v40, %v5707_v27 }
 0x250   : > { %3560 = vst [vmem:[%s5755_s26 + $0x10] sm:$0xff] %v3504_v42  ;;  %v4028_v44 = vcombine.low %v4020_v41, %v4027_v43 }
 0x252   : > { %4084 = vst [vmem:[%s5765_s29 + $0x10] sm:$0xff] %v4028_v44 }
 0x253   : > { %v2900_v45 = vpop.f32.mrb[24].mxu0  ;;  %v2943_v1 = vpop.f32.mrb[24].mxu1 }
 0x254   : > { %3062 = vst [vmem:[%s5696_s15 + $0xc0] sm:$0xff] %v2900_v45  ;;  %v3586_v62 = vmul.f32 %v2900_v45, %v2900_v45  ;;  %v2902_v4 = vpop.f32.mrb[25].mxu0  ;;  %3064 = vst [vmem:[%s5696_s15 + $0xd0] sm:$0xff] %v2943_v1  ;;  %v3588_v46 = vmul.f32 %v2943_v1, %v2943_v1  ;;  %v2945_v3 = vpop.f32.mrb[25].mxu1 }
 0x255   : > { %3063 = vst [vmem:[%s5696_s15 + $0xc8] sm:$0xff] %v2902_v4  ;;  %v2904_v28 = vpop.f32.mrb[26].mxu0  ;;  %v3587_v35 = vmul.f32 %v2902_v4, %v2902_v4  ;;  %3065 = vst [vmem:[%s5696_s15 + $0xd8] sm:$0xff] %v2945_v3  ;;  %v3589_v47 = vmul.f32 %v2945_v3, %v2945_v3  ;;  %v2947_v49 = vpop.f32.mrb[26].mxu1 }
 0x256   : > { %3094 = vst [vmem:[%s5696_s15 + $0x1c0] sm:$0xff] %v2904_v28  ;;  %v3270_v48 = vadd.f32 %v2904_v28, %v2900_v45  ;;  %v3618_v0 = vmul.f32 %v2904_v28, %v2904_v28  ;;  %v2906_v50 = vpop.f32.mrb[27].mxu0  ;;  %3096 = vst [vmem:[%s5696_s15 + $0x1d0] sm:$0xff] %v2947_v49  ;;  %v3284_v51 = vadd.f32 %v2947_v49, %v2943_v1  ;;  %v2949_v55 = vpop.f32.mrb[27].mxu1 }
 0x257   : > { %v3620_v52 = vmul.f32 %v2947_v49, %v2947_v49  ;;  %3095 = vst [vmem:[%s5696_s15 + $0x1c8] sm:$0xff] %v2906_v50  ;;  %v3277_v53 = vadd.f32 %v2906_v50, %v2902_v4  ;;  %v3619_v54 = vmul.f32 %v2906_v50, %v2906_v50  ;;  %3097 = vst [vmem:[%s5696_s15 + $0x1d8] sm:$0xff] %v2949_v55 }
 0x258   : > { %v3271_v56 = vrot.slane %v3270_v48, 4  ;;  %v3794_v57 = vadd.f32 %v3618_v0, %v3586_v62  ;;  %v3291_v13 = vadd.f32 %v2949_v55, %v2945_v3  ;;  %v3621_v15 = vmul.f32 %v2949_v55, %v2949_v55 }
 0x259   : > { %v3285_v18 = vrot.slane %v3284_v51, 4  ;;  %v3808_v58 = vadd.f32 %v3620_v52, %v3588_v46  ;;  %v3278_v17 = vrot.slane %v3277_v53, 4  ;;  %v3801_v19 = vadd.f32 %v3619_v54, %v3587_v35 }
 0x25a   : > { %v3272_v20 = vadd.f32 %v3271_v56, %v3270_v48  ;;  %v3795_v59 = vrot.slane %v3794_v57, 4  ;;  %v3292_v60 = vrot.slane %v3291_v13, 4  ;;  %v3815_v61 = vadd.f32 %v3621_v15, %v3589_v47 }
 0x25b   : > { %v3286_v63 = vadd.f32 %v3285_v18, %v3284_v51  ;;  %v3809_v2 = vrot.slane %v3808_v58, 4  ;;  %v3279_v37 = vadd.f32 %v3278_v17, %v3277_v53  ;;  %v3802_v5 = vrot.slane %v3801_v19, 4 }
 0x25c   : > { %v3273_v10 = vrot.slane %v3272_v20, 2  ;;  %v3796_v38 = vadd.f32 %v3795_v59, %v3794_v57  ;;  %v3293_v39 = vadd.f32 %v3292_v60, %v3291_v13  ;;  %v3816_v6 = vrot.slane %v3815_v61, 4 }
 0x25d   : > { %v3287_v7 = vrot.slane %v3286_v63, 2  ;;  %v3810_v8 = vadd.f32 %v3809_v2, %v3808_v58  ;;  %v3280_v9 = vrot.slane %v3279_v37, 2  ;;  %v3803_v11 = vadd.f32 %v3802_v5, %v3801_v19 }
 0x25e   : > { %v3274_v12 = vadd.f32 %v3273_v10, %v3272_v20  ;;  %v3797_v14 = vrot.slane %v3796_v38, 2  ;;  %v3294_v16 = vrot.slane %v3293_v39, 2  ;;  %v3817_v21 = vadd.f32 %v3816_v6, %v3815_v61 }
 0x25f   : > { %v3288_v22 = vadd.f32 %v3287_v7, %v3286_v63  ;;  %v3811_v23 = vrot.slane %v3810_v8, 2  ;;  %v3281_v24 = vadd.f32 %v3280_v9, %v3279_v37  ;;  %v3804_v25 = vrot.slane %v3803_v11, 2 }
 0x260   : > { %v3275_v26 = vrot.slane %v3274_v12, 1  ;;  %v3798_v29 = vadd.f32 %v3797_v14, %v3796_v38  ;;  %v3295_v30 = vadd.f32 %v3294_v16, %v3293_v39  ;;  %v3818_v31 = vrot.slane %v3817_v21, 2 }
 0x261   : > { %v3289_v32 = vrot.slane %v3288_v22, 1  ;;  %v3812_v33 = vadd.f32 %v3811_v23, %v3810_v8  ;;  %v3282_v34 = vrot.slane %v3281_v24, 1  ;;  %v3805_v36 = vadd.f32 %v3804_v25, %v3803_v11 }
 0x262   : > { %v3276_v40 = vadd.f32 %v3275_v26, %v3274_v12  ;;  %v3799_v41 = vrot.slane %v3798_v29, 1  ;;  %v3296_v42 = vrot.slane %v3295_v30, 1  ;;  %v3819_v43 = vadd.f32 %v3818_v31, %v3817_v21 }
 0x263   : > { %v3290_v44 = vadd.f32 %v3289_v32, %v3288_v22  ;;  %v3813_v45 = vrot.slane %v3812_v33, 1  ;;  %v3283_v62 = vadd.f32 %v3282_v34, %v3281_v24  ;;  %v3806_v1 = vrot.slane %v3805_v36, 1 }
 0x264   : > { %v3800_v4 = vadd.f32 %v3799_v41, %v3798_v29  ;;  %v3297_v46 = vadd.f32 %v3296_v42, %v3295_v30  ;;  %v3820_v3 = vrot.slane %v3819_v43, 1 }
 0x265   : > { %v3814_v28 = vadd.f32 %v3813_v45, %v3812_v33  ;;  %v3505_v35 = vcombine.low %v3276_v40, %v3283_v62  ;;  %v3807_v47 = vadd.f32 %v3806_v1, %v3805_v36 }
 0x266   : > { %v3506_v48 = vcombine.low %v3290_v44, %v3297_v46  ;;  %v3821_v0 = vadd.f32 %v3820_v3, %v3819_v43 }
 0x267   : > { %v5874_v49 = vrot.slane %v3505_v35, %v5707_v27  ;;  %v4029_v50 = vcombine.low %v3800_v4, %v3807_v47 }
 0x268   : > { %v5877_v51 = vrot.slane %v3506_v48, %v5707_v27  ;;  %v4030_v52 = vcombine.low %v3814_v28, %v3821_v0 }
 0x269   : > { %v5880_v53 = vrot.slane %v4029_v50, %v5707_v27 }
 0x26a   : > { %v3537_v54 = vcombine.low %v5874_v49, %v5877_v51  ;;  %v5885_v55 = vrot.slane %v4030_v52, %v5707_v27  ;;  %v4126_v49 = vld [vmem:[%s5696_s15] sm:$0xff] (%p4838_p6)  ;;  %v4128_v51 = vld [vmem:[%s5696_s15 + $0x8] sm:$0xff] (%p4838_p6) }
 0x26b   : > { %4127 = vst [vmem:[%s5922_s7] sm:$0xff] (%p4838_p6), %v4126_v49  ;;  %4129 = vst [vmem:[%s5922_s7 + $0x8] sm:$0xff] (%p4838_p6), %v4128_v51 }
 0x26c   : > { %v4061_v56 = vcombine.low %v5880_v53, %v5885_v55  ;;  %v4132_v53 = vld [vmem:[%s5696_s15 + $0x18] sm:$0xff] (%p4838_p6)  ;;  %v4136_v55 = vld [vmem:[%s5696_s15 + $0x28] sm:$0xff] (%p4838_p6) }
 0x26d   : > { %4133 = vst [vmem:[%s5922_s7 + $0x18] sm:$0xff] (%p4838_p6), %v4132_v53  ;;  %4137 = vst [vmem:[%s5922_s7 + $0x28] sm:$0xff] (%p4838_p6), %v4136_v55 }
 0x273   : > { %v2986_v57 = vpop.f32.mrb[28].mxu0  ;;  %v3029_v13 = vpop.f32.mrb[28].mxu1 }
 0x274   : > { %3066 = vst [vmem:[%s5696_s15 + $0xe0] sm:$0xff] %v2986_v57  ;;  %v2988_v15 = vpop.f32.mrb[29].mxu0  ;;  %v3590_v18 = vmul.f32 %v2986_v57, %v2986_v57  ;;  %3068 = vst [vmem:[%s5696_s15 + $0xf0] sm:$0xff] %v3029_v13  ;;  %v3592_v58 = vmul.f32 %v3029_v13, %v3029_v13  ;;  %v3031_v17 = vpop.f32.mrb[29].mxu1 }
 0x275   : > { %3067 = vst [vmem:[%s5696_s15 + $0xe8] sm:$0xff] %v2988_v15  ;;  %v2990_v19 = vpop.f32.mrb[30].mxu0  ;;  %v3591_v20 = vmul.f32 %v2988_v15, %v2988_v15  ;;  %3069 = vst [vmem:[%s5696_s15 + $0xf8] sm:$0xff] %v3031_v17  ;;  %v3593_v59 = vmul.f32 %v3031_v17, %v3031_v17  ;;  %v3033_v63 = vpop.f32.mrb[30].mxu1 }
 0x276   : > { %3098 = vst [vmem:[%s5696_s15 + $0x1e0] sm:$0xff] %v2990_v19  ;;  %v3298_v60 = vadd.f32 %v2990_v19, %v2986_v57  ;;  %v3622_v61 = vmul.f32 %v2990_v19, %v2990_v19  ;;  %v2992_v2 = vpop.f32.mrb[31].mxu0  ;;  %3100 = vst [vmem:[%s5696_s15 + $0x1f0] sm:$0xff] %v3033_v63  ;;  %v3312_v37 = vadd.f32 %v3033_v63, %v3029_v13  ;;  %v3035_v39 = vpop.f32.mrb[31].mxu1 }
 0x277   : > { %v3624_v5 = vmul.f32 %v3033_v63, %v3033_v63  ;;  %3099 = vst [vmem:[%s5696_s15 + $0x1e8] sm:$0xff] %v2992_v2  ;;  %v3305_v10 = vadd.f32 %v2992_v2, %v2988_v15  ;;  %v3623_v38 = vmul.f32 %v2992_v2, %v2992_v2  ;;  %3101 = vst [vmem:[%s5696_s15 + $0x1f8] sm:$0xff] %v3035_v39 }
 0x278   : > { %v3299_v6 = vrot.slane %v3298_v60, 4  ;;  %v3822_v7 = vadd.f32 %v3622_v61, %v3590_v18  ;;  %v3319_v8 = vadd.f32 %v3035_v39, %v3031_v17  ;;  %v3625_v9 = vmul.f32 %v3035_v39, %v3035_v39 }
 0x279   : > { %v3313_v11 = vrot.slane %v3312_v37, 4  ;;  %v3836_v12 = vadd.f32 %v3624_v5, %v3592_v58  ;;  %v3306_v14 = vrot.slane %v3305_v10, 4  ;;  %v3829_v16 = vadd.f32 %v3623_v38, %v3591_v20 }
 0x27a   : > { %v3300_v21 = vadd.f32 %v3299_v6, %v3298_v60  ;;  %v3823_v22 = vrot.slane %v3822_v7, 4  ;;  %v3320_v23 = vrot.slane %v3319_v8, 4  ;;  %v3843_v24 = vadd.f32 %v3625_v9, %v3593_v59 }
 0x27b   : > { %v3314_v25 = vadd.f32 %v3313_v11, %v3312_v37  ;;  %v3837_v26 = vrot.slane %v3836_v12, 4  ;;  %v3307_v29 = vadd.f32 %v3306_v14, %v3305_v10  ;;  %v3830_v30 = vrot.slane %v3829_v16, 4 }
 0x27c   : > { %v3301_v31 = vrot.slane %v3300_v21, 2  ;;  %v3824_v32 = vadd.f32 %v3823_v22, %v3822_v7  ;;  %v3321_v33 = vadd.f32 %v3320_v23, %v3319_v8  ;;  %v3844_v34 = vrot.slane %v3843_v24, 4 }
 0x27d   : > { %v3315_v36 = vrot.slane %v3314_v25, 2  ;;  %v3838_v40 = vadd.f32 %v3837_v26, %v3836_v12  ;;  %v3308_v41 = vrot.slane %v3307_v29, 2  ;;  %v3831_v42 = vadd.f32 %v3830_v30, %v3829_v16  ;;  %v4140_v26 = vld [vmem:[%s5696_s15 + $0x38] sm:$0xff] (%p4838_p6)  ;;  %v4144_v30 = vld [vmem:[%s5696_s15 + $0x48] sm:$0xff] (%p4838_p6) }
 0x27e   : > { %v3302_v43 = vadd.f32 %v3301_v31, %v3300_v21  ;;  %v3825_v44 = vrot.slane %v3824_v32, 2  ;;  %v3322_v45 = vrot.slane %v3321_v33, 2  ;;  %v3845_v62 = vadd.f32 %v3844_v34, %v3843_v24  ;;  %4141 = vst [vmem:[%s5922_s7 + $0x38] sm:$0xff] (%p4838_p6), %v4140_v26  ;;  %v4146_v31 = vld [vmem:[%s5696_s15 + $0x50] sm:$0xff] (%p4838_p6)  ;;  %4145 = vst [vmem:[%s5922_s7 + $0x48] sm:$0xff] (%p4838_p6), %v4144_v30  ;;  %v4152_v34 = vld [vmem:[%s5696_s15 + $0x68] sm:$0xff] (%p4838_p6) }
 0x27f   : > { %v3316_v1 = vadd.f32 %v3315_v36, %v3314_v25  ;;  %v3839_v4 = vrot.slane %v3838_v40, 2  ;;  %v3309_v46 = vadd.f32 %v3308_v41, %v3307_v29  ;;  %v3832_v3 = vrot.slane %v3831_v42, 2  ;;  %v4142_v29 = vld [vmem:[%s5696_s15 + $0x40] sm:$0xff] (%p4838_p6)  ;;  %4147 = vst [vmem:[%s5922_s7 + $0x50] sm:$0xff] (%p4838_p6), %v4146_v31  ;;  %v4154_v36 = vld [vmem:[%s5696_s15 + $0x70] sm:$0xff] (%p4838_p6)  ;;  %4153 = vst [vmem:[%s5922_s7 + $0x68] sm:$0xff] (%p4838_p6), %v4152_v34 }
 0x280   : > { %v3303_v28 = vrot.slane %v3302_v43, 1  ;;  %v3826_v35 = vadd.f32 %v3825_v44, %v3824_v32  ;;  %v3323_v47 = vadd.f32 %v3322_v45, %v3321_v33  ;;  %v3846_v48 = vrot.slane %v3845_v62, 2  ;;  %4143 = vst [vmem:[%s5922_s7 + $0x40] sm:$0xff] (%p4838_p6), %v4142_v29  ;;  %v4148_v32 = vld [vmem:[%s5696_s15 + $0x58] sm:$0xff] (%p4838_p6)  ;;  %v4150_v33 = vld [vmem:[%s5696_s15 + $0x60] sm:$0xff] (%p4838_p6)  ;;  %4155 = vst [vmem:[%s5922_s7 + $0x70] sm:$0xff] (%p4838_p6), %v4154_v36 }
 0x281   : > { %v3317_v0 = vrot.slane %v3316_v1, 1  ;;  %v3840_v50 = vadd.f32 %v3839_v4, %v3838_v40  ;;  %v3310_v52 = vrot.slane %v3309_v46, 1  ;;  %v3833_v57 = vadd.f32 %v3832_v3, %v3831_v42  ;;  %4149 = vst [vmem:[%s5922_s7 + $0x58] sm:$0xff] (%p4838_p6), %v4148_v32  ;;  %4151 = vst [vmem:[%s5922_s7 + $0x60] sm:$0xff] (%p4838_p6), %v4150_v33  ;;  %v4156_v40 = vld [vmem:[%s5696_s15 + $0x78] sm:$0xff] (%p4838_p6)  ;;  %v4158_v41 = vld [vmem:[%s5696_s15 + $0x80] sm:$0xff] (%p4838_p6) }
 0x282   : > { %v3304_v13 = vadd.f32 %v3303_v28, %v3302_v43  ;;  %v3827_v15 = vrot.slane %v3826_v35, 1  ;;  %v3324_v18 = vrot.slane %v3323_v47, 1  ;;  %v3847_v58 = vadd.f32 %v3846_v48, %v3845_v62  ;;  %v4160_v42 = vld [vmem:[%s5696_s15 + $0x88] sm:$0xff] (%p4838_p6)  ;;  %4157 = vst [vmem:[%s5922_s7 + $0x78] sm:$0xff] (%p4838_p6), %v4156_v40  ;;  %4159 = vst [vmem:[%s5922_s7 + $0x80] sm:$0xff] (%p4838_p6), %v4158_v41  ;;  %v4162_v43 = vld [vmem:[%s5696_s15 + $0x90] sm:$0xff] (%p4838_p6) }
 0x283   : > { %v3318_v17 = vadd.f32 %v3317_v0, %v3316_v1  ;;  %v3841_v19 = vrot.slane %v3840_v50, 1  ;;  %v3311_v20 = vadd.f32 %v3310_v52, %v3309_v46  ;;  %v3834_v59 = vrot.slane %v3833_v57, 1  ;;  %4161 = vst [vmem:[%s5922_s7 + $0x88] sm:$0xff] (%p4838_p6), %v4160_v42  ;;  %v4164_v44 = vld [vmem:[%s5696_s15 + $0x98] sm:$0xff] (%p4838_p6)  ;;  %v4166_v45 = vld [vmem:[%s5696_s15 + $0xa0] sm:$0xff] (%p4838_p6)  ;;  %4163 = vst [vmem:[%s5922_s7 + $0x90] sm:$0xff] (%p4838_p6), %v4162_v43 }
 0x284   : > { %v3828_v60 = vadd.f32 %v3827_v15, %v3826_v35  ;;  %v3325_v61 = vadd.f32 %v3324_v18, %v3323_v47  ;;  %v3848_v63 = vrot.slane %v3847_v58, 1  ;;  %v3545_v14 = vrot.slane %v3537_v54, %v5707_v27  ;;  %v4134_v54 = vld [vmem:[%s5696_s15 + $0x20] sm:$0xff] (%p4838_p6)  ;;  %4165 = vst [vmem:[%s5922_s7 + $0x98] sm:$0xff] (%p4838_p6), %v4164_v44  ;;  %4167 = vst [vmem:[%s5922_s7 + $0xa0] sm:$0xff] (%p4838_p6), %v4166_v45  ;;  %v4168_v62 = vld [vmem:[%s5696_s15 + $0xa8] sm:$0xff] (%p4838_p6) }
 0x285   : > { %v3842_v2 = vadd.f32 %v3841_v19, %v3840_v50  ;;  %v3507_v37 = vcombine.low %v3304_v13, %v3311_v20  ;;  %v3835_v5 = vadd.f32 %v3834_v59, %v3833_v57  ;;  %v4069_v22 = vrot.slane %v4061_v56, %v5707_v27  ;;  %4135 = vst [vmem:[%s5922_s7 + $0x20] sm:$0xff] (%p4838_p6), %v4134_v54  ;;  %v4138_v56 = vld [vmem:[%s5696_s15 + $0x30] sm:$0xff] (%p4838_p6)  ;;  %v4172_v4 = vld [vmem:[%s5696_s15 + $0xb8] sm:$0xff] (%p4838_p6)  ;;  %v4174_v46 = vld [vmem:[%s5696_s15 + $0xc0] sm:$0xff] (%p4838_p6) }
 0x286   : > { %v3508_v10 = vcombine.low %v3318_v17, %v3325_v61  ;;  %v3849_v38 = vadd.f32 %v3848_v63, %v3847_v58  ;;  %4139 = vst [vmem:[%s5922_s7 + $0x30] sm:$0xff] (%p4838_p6), %v4138_v56  ;;  %v4170_v1 = vld [vmem:[%s5696_s15 + $0xb0] sm:$0xff] (%p4838_p6)  ;;  %4169 = vst [vmem:[%s5922_s7 + $0xa8] sm:$0xff] (%p4838_p6), %v4168_v62  ;;  %v4176_v3 = vld [vmem:[%s5696_s15 + $0xc8] sm:$0xff] (%p4838_p6) }
 0x287   : > { %v3529_v39 = vrot.slane %v3507_v37, %v5707_v27  ;;  %v4031_v6 = vcombine.low %v3828_v60, %v3835_v5  ;;  %4171 = vst [vmem:[%s5922_s7 + $0xb0] sm:$0xff] (%p4838_p6), %v4170_v1  ;;  %4173 = vst [vmem:[%s5922_s7 + $0xb8] sm:$0xff] (%p4838_p6), %v4172_v4  ;;  %v4178_v28 = vld [vmem:[%s5696_s15 + $0xd0] sm:$0xff] (%p4838_p6)  ;;  %v4180_v35 = vld [vmem:[%s5696_s15 + $0xd8] sm:$0xff] (%p4838_p6) }
 0x288   : > { %v3536_v7 = vrot.slane %v3508_v10, %v5707_v27  ;;  %v4032_v8 = vcombine.low %v3842_v2, %v3849_v38  ;;  %4175 = vst [vmem:[%s5922_s7 + $0xc0] sm:$0xff] (%p4838_p6), %v4174_v46  ;;  %4177 = vst [vmem:[%s5922_s7 + $0xc8] sm:$0xff] (%p4838_p6), %v4176_v3  ;;  %v4182_v47 = vld [vmem:[%s5696_s15 + $0xe0] sm:$0xff] (%p4838_p6)  ;;  %v4184_v48 = vld [vmem:[%s5696_s15 + $0xe8] sm:$0xff] (%p4838_p6) }
 0x289   : > { %v4053_v9 = vrot.slane %v4031_v6, %v5707_v27  ;;  %4179 = vst [vmem:[%s5922_s7 + $0xd0] sm:$0xff] (%p4838_p6), %v4178_v28  ;;  %4181 = vst [vmem:[%s5922_s7 + $0xd8] sm:$0xff] (%p4838_p6), %v4180_v35  ;;  %v4186_v0 = vld [vmem:[%s5696_s15 + $0xf0] sm:$0xff] (%p4838_p6)  ;;  %v4188_v50 = vld [vmem:[%s5696_s15 + $0xf8] sm:$0xff] (%p4838_p6) }
 0x28a   : > { %v3538_v11 = vcombine.low %v3529_v39, %v3536_v7  ;;  %v4060_v12 = vrot.slane %v4032_v8, %v5707_v27  ;;  %4183 = vst [vmem:[%s5922_s7 + $0xe0] sm:$0xff] (%p4838_p6), %v4182_v47  ;;  %4185 = vst [vmem:[%s5922_s7 + $0xe8] sm:$0xff] (%p4838_p6), %v4184_v48  ;;  %v4190_v52 = vld [vmem:[%s5696_s15 + $0x100] sm:$0xff] (%p4838_p6)  ;;  %v4192_v57 = vld [vmem:[%s5696_s15 + $0x108] sm:$0xff] (%p4838_p6) }
 0x28b   : > { %4187 = vst [vmem:[%s5922_s7 + $0xf0] sm:$0xff] (%p4838_p6), %v4186_v0  ;;  %4189 = vst [vmem:[%s5922_s7 + $0xf8] sm:$0xff] (%p4838_p6), %v4188_v50  ;;  %v4194_v13 = vld [vmem:[%s5696_s15 + $0x110] sm:$0xff] (%p4838_p6)  ;;  %v4196_v15 = vld [vmem:[%s5696_s15 + $0x118] sm:$0xff] (%p4838_p6) }
 0x28c   : > { %v3552_v16 = vrot.slane %v3538_v11, %v5707_v27  ;;  %v4062_v21 = vcombine.low %v4053_v9, %v4060_v12  ;;  %4108 = sbr.rel (!%p4838_p6) target bundleno = 670 (0x29e), region = 55  ;;  %4191 = vst [vmem:[%s5922_s7 + $0x200] sm:$0xff] (%p4838_p6), %v4190_v52  ;;  %4193 = vst [vmem:[%s5922_s7 + $0x208] sm:$0xff] (%p4838_p6), %v4192_v57  ;;  %v4198_v18 = vld [vmem:[%s5696_s15 + $0x120] sm:$0xff] (%p4838_p6)  ;;  %v4200_v58 = vld [vmem:[%s5696_s15 + $0x128] sm:$0xff] (%p4838_p6) }
 0x28d   : > { %4195 = vst [vmem:[%s5922_s7 + $0x210] sm:$0xff] (%p4838_p6), %v4194_v13  ;;  %4197 = vst [vmem:[%s5922_s7 + $0x218] sm:$0xff] (%p4838_p6), %v4196_v15  ;;  %v4202_v17 = vld [vmem:[%s5696_s15 + $0x130] sm:$0xff] (%p4838_p6)  ;;  %v4204_v19 = vld [vmem:[%s5696_s15 + $0x138] sm:$0xff] (%p4838_p6) }
 0x28e   : > { %v3553_v23 = vcombine.low %v3545_v14, %v3552_v16  ;;  %v4076_v24 = vrot.slane %v4062_v21, %v5707_v27  ;;  %v4130_v27 = vld [vmem:[%s5696_s15 + $0x10] sm:$0xff] (%p4838_p6)  ;;  %4199 = vst [vmem:[%s5922_s7 + $0x220] sm:$0xff] (%p4838_p6), %v4198_v18  ;;  %4201 = vst [vmem:[%s5922_s7 + $0x228] sm:$0xff] (%p4838_p6), %v4200_v58  ;;  %v4206_v20 = vld [vmem:[%s5696_s15 + $0x140] sm:$0xff] (%p4838_p6) }
 0x28f   : > { %4131 = vst [vmem:[%s5922_s7 + $0x10] sm:$0xff] (%p4838_p6), %v4130_v27  ;;  %4203 = vst [vmem:[%s5922_s7 + $0x230] sm:$0xff] (%p4838_p6), %v4202_v17  ;;  %v4208_v59 = vld [vmem:[%s5696_s15 + $0x148] sm:$0xff] (%p4838_p6)  ;;  %v4210_v60 = vld [vmem:[%s5696_s15 + $0x150] sm:$0xff] (%p4838_p6) }
 0x290   : > { %3561 = vst [vmem:[%s5755_s26 + $0x18] sm:$0xff] %v3553_v23  ;;  %v4077_v25 = vcombine.low %v4069_v22, %v4076_v24  ;;  %4205 = vst [vmem:[%s5922_s7 + $0x238] sm:$0xff] (%p4838_p6), %v4204_v19  ;;  %v4212_v61 = vld [vmem:[%s5696_s15 + $0x158] sm:$0xff] (%p4838_p6)  ;;  %v4214_v63 = vld [vmem:[%s5696_s15 + $0x160] sm:$0xff] (%p4838_p6) }
 0x291   : > { %4207 = vst [vmem:[%s5922_s7 + $0x240] sm:$0xff] (%p4838_p6), %v4206_v20  ;;  %4209 = vst [vmem:[%s5922_s7 + $0x248] sm:$0xff] (%p4838_p6), %v4208_v59  ;;  %v4216_v2 = vld [vmem:[%s5696_s15 + $0x168] sm:$0xff] (%p4838_p6)  ;;  %v4218_v37 = vld [vmem:[%s5696_s15 + $0x170] sm:$0xff] (%p4838_p6) }
 0x292   : > { %4085 = vst [vmem:[%s5765_s29 + $0x18] sm:$0xff] %v4077_v25  ;;  %4211 = vst [vmem:[%s5922_s7 + $0x250] sm:$0xff] (%p4838_p6), %v4210_v60  ;;  %v4220_v5 = vld [vmem:[%s5696_s15 + $0x178] sm:$0xff] (%p4838_p6)  ;;  %v4222_v10 = vld [vmem:[%s5696_s15 + $0x180] sm:$0xff] (%p4838_p6) }
 0x293   : > { %4213 = vst [vmem:[%s5922_s7 + $0x258] sm:$0xff] %v4212_v61  ;;  %4215 = vst [vmem:[%s5922_s7 + $0x260] sm:$0xff] %v4214_v63  ;;  %v4224_v38 = vld [vmem:[%s5696_s15 + $0x188] sm:$0xff]  ;;  %v4226_v39 = vld [vmem:[%s5696_s15 + $0x190] sm:$0xff] }
 0x294   : > { %4217 = vst [vmem:[%s5922_s7 + $0x268] sm:$0xff] %v4216_v2  ;;  %4219 = vst [vmem:[%s5922_s7 + $0x270] sm:$0xff] %v4218_v37  ;;  %v4228_v6 = vld [vmem:[%s5696_s15 + $0x198] sm:$0xff]  ;;  %v4230_v7 = vld [vmem:[%s5696_s15 + $0x1a0] sm:$0xff] }
 0x295   : > { %4221 = vst [vmem:[%s5922_s7 + $0x278] sm:$0xff] %v4220_v5  ;;  %4223 = vst [vmem:[%s5922_s7 + $0x280] sm:$0xff] %v4222_v10  ;;  %v4232_v8 = vld [vmem:[%s5696_s15 + $0x1a8] sm:$0xff]  ;;  %v4234_v9 = vld [vmem:[%s5696_s15 + $0x1b0] sm:$0xff] }
 0x296   : > { %4225 = vst [vmem:[%s5922_s7 + $0x288] sm:$0xff] %v4224_v38  ;;  %4227 = vst [vmem:[%s5922_s7 + $0x290] sm:$0xff] %v4226_v39  ;;  %v4236_v11 = vld [vmem:[%s5696_s15 + $0x1b8] sm:$0xff]  ;;  %v4238_v12 = vld [vmem:[%s5696_s15 + $0x1c0] sm:$0xff] }
 0x297   : > { %4229 = vst [vmem:[%s5922_s7 + $0x298] sm:$0xff] %v4228_v6  ;;  %4231 = vst [vmem:[%s5922_s7 + $0x2a0] sm:$0xff] %v4230_v7  ;;  %v4240_v14 = vld [vmem:[%s5696_s15 + $0x1c8] sm:$0xff]  ;;  %v4242_v16 = vld [vmem:[%s5696_s15 + $0x1d0] sm:$0xff] }
 0x298   : > { %4233 = vst [vmem:[%s5922_s7 + $0x2a8] sm:$0xff] %v4232_v8  ;;  %4235 = vst [vmem:[%s5922_s7 + $0x2b0] sm:$0xff] %v4234_v9  ;;  %v4244_v21 = vld [vmem:[%s5696_s15 + $0x1d8] sm:$0xff]  ;;  %v4246_v22 = vld [vmem:[%s5696_s15 + $0x1e0] sm:$0xff] }
 0x299   : > { %4237 = vst [vmem:[%s5922_s7 + $0x2b8] sm:$0xff] %v4236_v11  ;;  %4239 = vst [vmem:[%s5922_s7 + $0x2c0] sm:$0xff] %v4238_v12  ;;  %v4248_v23 = vld [vmem:[%s5696_s15 + $0x1e8] sm:$0xff]  ;;  %v4250_v24 = vld [vmem:[%s5696_s15 + $0x1f0] sm:$0xff] }
 0x29a   : > { %4241 = vst [vmem:[%s5922_s7 + $0x2c8] sm:$0xff] %v4240_v14  ;;  %4243 = vst [vmem:[%s5922_s7 + $0x2d0] sm:$0xff] %v4242_v16  ;;  %v4252_v25 = vld [vmem:[%s5696_s15 + $0x1f8] sm:$0xff] }
 0x29b   : > { %4245 = vst [vmem:[%s5922_s7 + $0x2d8] sm:$0xff] %v4244_v21  ;;  %4247 = vst [vmem:[%s5922_s7 + $0x2e0] sm:$0xff] %v4246_v22 }
 0x29c   : > { %4249 = vst [vmem:[%s5922_s7 + $0x2e8] sm:$0xff] %v4248_v23  ;;  %4251 = vst [vmem:[%s5922_s7 + $0x2f0] sm:$0xff] %v4250_v24 }
 0x29d   : > { %4253 = vst [vmem:[%s5922_s7 + $0x2f8] sm:$0xff] %v4252_v25 }
 0x29e PF: > { %s15_s19 = sadd.s32 1, %s4774_s19   ;;  %s6070_s15 = smov %s4762_s16 }
 0x29f   : > { %p12_p12 = scmp.ge.s32.totalorder %s15_s19, 4   ;;  %s6071_s16 = smov %s4843_s25 }
 0x2a0   : > { %s6072_s17 = smov %s4770_s18  ;;  %s6073_s18 = smov %s6075_s20 }
 0x2a1   :  { %14 = sbr.rel (!%p12_p12) target bundleno = 3 (0x3), region = 136 }

// kernel: generator_forward.6
= control target key start
LH: loop header
LB: loop body
LE: loop exit
PB: predicated region body
PF: predicated region fallthrough
CT: control target
= control target key end

     0   :  { %s3554_s15 = smov 0   ;;  %s3556_s16 = smov 0   ;;  %s3952_s0 = inlined_call_operand.vmem [shape: bf16[4,32,2048], index: 0, kind: input, shape index: {}]   ;;  %s3953_s1 = inlined_call_operand.vmem [shape: bf16[4,2048,256], index: 1, kind: input, shape index: {}]   ;;  %s3954_s2 = inlined_call_operand.vmem [shape: f32[4,32,256], index: 2, kind: output, shape index: {0}]   ;;  %s3955_s3 = inlined_call_operand.vmem [shape: f32[4,1,256], index: 3, kind: output, shape index: {1}]   ;;  %s3956_s4 = inlined_call_operand.vmem [shape: f32[4,1,256], index: 4, kind: output, shape index: {2}]  }
   0x1   :  { %s3558_s17 = smov 0  }
   0x2 LB: > { %s27_s18 = sadd.s32 1, %s3522_s16  ;;  %p2737_p0 = scmp.ge.s32.totalorder %s3526_s17, 1  ;;  %s3526_s17 = sphi %s3558_s17, %s15_s17   ;;  %s3522_s16 = sphi %s3556_s16, %s3958_s16   ;;  %s3518_s15 = sphi %s3554_s15, %s3957_s15  }
   0x3   : > { %p29_p1 = scmp.ge.s32.totalorder %s27_s18, 4  ;;  %p202_p2 = scmp.lt.s32.totalorder %s3526_s17, 5 }
   0x5   : > { %s3960_s18 = smov (%p29_p1, %s27_s18), 0  ;;  %p203_p3 = pnand %p2737_p0, %p202_p2 }
   0x6   : > { %p257_p4 = scmp.lt.s32.totalorder (!%p203_p3), %s3518_s15, 3 }
   0x7   : > { %206 = sbr.rel (%p203_p3) target bundleno = 523 (0x20b), region = 28 }
   0xe   : > { %s3962_s15 = smov (!%p257_p4, %s3518_s15), 3 }
   0xf   : > { %s3037_s19 = sshll.u32 %s3962_s15, 11  ;;  %s3036_s23 = sshll.u32 %s3962_s15, 8 }
  0x10   : > { %s3578_s22 = scalar_lea.vmem %s3953_s1, %s3037_s19  ;;  %s3628_s26 = scalar_lea.vmem %s3952_s0, %s3036_s23 }
  0x11   : > { %v3120_v0 = vld [vmem:[%s3578_s22 + $0x4] ss:$8 sps:$4 sm:$0xff]   ;;  %v3124_v2 = vld [vmem:[%s3578_s22] ss:$8 sps:$4 sm:$0xff]   ;;  %v3126_v4 = vld [vmem:[%s3578_s22 + $0x14] ss:$8 sps:$4 sm:$0xff]  }
  0x12   : > { %v3122_v1 = vld [vmem:[%s3578_s22 + $0x404] ss:$8 sps:$4 sm:$0xff]   ;;  %2028 = vmatprep.subr.bf16.mxu1 %v3120_v0  ;;  %v3125_v3 = vld [vmem:[%s3578_s22 + $0x400] ss:$8 sps:$4 sm:$0xff]   ;;  %v3128_v5 = vld [vmem:[%s3578_s22 + $0x414] ss:$8 sps:$4 sm:$0xff]  }
  0x13   : > { %2240 = vmatprep.subr.bf16.mxu0 %v3122_v1  ;;  %2029 = vmatpush1.bf16.msra.mxu1 %v3124_v2  ;;  %v3130_v6 = vld [vmem:[%s3578_s22 + $0x10] ss:$8 sps:$4 sm:$0xff]   ;;  %v3132_v8 = vld [vmem:[%s3578_s22 + $0x24] ss:$8 sps:$4 sm:$0xff]   ;;  %v3136_v10 = vld [vmem:[%s3578_s22 + $0x20] ss:$8 sps:$4 sm:$0xff]  }
  0x14   : > { %2241 = vmatpush1.bf16.msra.mxu0 %v3125_v3  ;;  %2030 = vmatprep.subr.bf16.mxu1 %v3126_v4  ;;  %v3131_v7 = vld [vmem:[%s3578_s22 + $0x410] ss:$8 sps:$4 sm:$0xff]   ;;  %v3134_v9 = vld [vmem:[%s3578_s22 + $0x424] ss:$8 sps:$4 sm:$0xff]   ;;  %v3137_v11 = vld [vmem:[%s3578_s22 + $0x420] ss:$8 sps:$4 sm:$0xff]  }
  0x15   : > { %2242 = vmatprep.subr.bf16.mxu0 %v3128_v5  ;;  %v3138_v12 = vld [vmem:[%s3578_s22 + $0x34] ss:$8 sps:$4 sm:$0xff]   ;;  %v3142_v14 = vld [vmem:[%s3578_s22 + $0x30] ss:$8 sps:$4 sm:$0xff]   ;;  %v3144_v16 = vld [vmem:[%s3578_s22 + $0x44] ss:$8 sps:$4 sm:$0xff]  }
  0x16   : > { %v3140_v13 = vld [vmem:[%s3578_s22 + $0x434] ss:$8 sps:$4 sm:$0xff]   ;;  %v3143_v15 = vld [vmem:[%s3578_s22 + $0x430] ss:$8 sps:$4 sm:$0xff]   ;;  %v3146_v17 = vld [vmem:[%s3578_s22 + $0x444] ss:$8 sps:$4 sm:$0xff]  }
  0x17   : > { %2031 = vmatpush1.bf16.msra.mxu1 %v3130_v6  ;;  %v3148_v18 = vld [vmem:[%s3578_s22 + $0x40] ss:$8 sps:$4 sm:$0xff]   ;;  %v3150_v20 = vld [vmem:[%s3578_s22 + $0x54] ss:$8 sps:$4 sm:$0xff]   ;;  %v3154_v22 = vld [vmem:[%s3578_s22 + $0x50] ss:$8 sps:$4 sm:$0xff]  }
  0x18   : > { %2243 = vmatpush1.bf16.msra.mxu0 %v3131_v7  ;;  %2032 = vmatprep.subr.bf16.mxu1 %v3132_v8  ;;  %v3149_v19 = vld [vmem:[%s3578_s22 + $0x440] ss:$8 sps:$4 sm:$0xff]   ;;  %v3152_v21 = vld [vmem:[%s3578_s22 + $0x454] ss:$8 sps:$4 sm:$0xff]   ;;  %v3155_v23 = vld [vmem:[%s3578_s22 + $0x450] ss:$8 sps:$4 sm:$0xff]  }
  0x19   : > { %2244 = vmatprep.subr.bf16.mxu0 %v3134_v9  ;;  %v3156_v24 = vld [vmem:[%s3578_s22 + $0x64] ss:$8 sps:$4 sm:$0xff]   ;;  %v3160_v26 = vld [vmem:[%s3578_s22 + $0x60] ss:$8 sps:$4 sm:$0xff]   ;;  %v3162_v28 = vld [vmem:[%s3578_s22 + $0x74] ss:$8 sps:$4 sm:$0xff]  }
  0x1a   : > { %v3158_v25 = vld [vmem:[%s3578_s22 + $0x464] ss:$8 sps:$4 sm:$0xff]   ;;  %v3161_v27 = vld [vmem:[%s3578_s22 + $0x460] ss:$8 sps:$4 sm:$0xff]   ;;  %v3164_v29 = vld [vmem:[%s3578_s22 + $0x474] ss:$8 sps:$4 sm:$0xff]  }
  0x1b   : > { %2033 = vmatpush1.bf16.msra.mxu1 %v3136_v10  ;;  %v3166_v30 = vld [vmem:[%s3578_s22 + $0x70] ss:$8 sps:$4 sm:$0xff]   ;;  %v3168_v32 = vld [vmem:[%s3578_s22 + $0x84] ss:$8 sps:$4 sm:$0xff]   ;;  %v3172_v34 = vld [vmem:[%s3578_s22 + $0x80] ss:$8 sps:$4 sm:$0xff]  }
  0x1c   : > { %2245 = vmatpush1.bf16.msra.mxu0 %v3137_v11  ;;  %2034 = vmatprep.subr.bf16.mxu1 %v3138_v12  ;;  %v3167_v31 = vld [vmem:[%s3578_s22 + $0x470] ss:$8 sps:$4 sm:$0xff]   ;;  %v3170_v33 = vld [vmem:[%s3578_s22 + $0x484] ss:$8 sps:$4 sm:$0xff]   ;;  %v3173_v35 = vld [vmem:[%s3578_s22 + $0x480] ss:$8 sps:$4 sm:$0xff]  }
  0x1d   : > { %2246 = vmatprep.subr.bf16.mxu0 %v3140_v13  ;;  %v3174_v36 = vld [vmem:[%s3578_s22 + $0x94] ss:$8 sps:$4 sm:$0xff]   ;;  %v3178_v38 = vld [vmem:[%s3578_s22 + $0x90] ss:$8 sps:$4 sm:$0xff]   ;;  %v3180_v40 = vld [vmem:[%s3578_s22 + $0xa4] ss:$8 sps:$4 sm:$0xff]  }
  0x1e   : > { %v3176_v37 = vld [vmem:[%s3578_s22 + $0x494] ss:$8 sps:$4 sm:$0xff]   ;;  %v3179_v39 = vld [vmem:[%s3578_s22 + $0x490] ss:$8 sps:$4 sm:$0xff]   ;;  %v3182_v41 = vld [vmem:[%s3578_s22 + $0x4a4] ss:$8 sps:$4 sm:$0xff]  }
  0x1f   : > { %2035 = vmatpush1.bf16.msra.mxu1 %v3142_v14  ;;  %v3184_v42 = vld [vmem:[%s3578_s22 + $0xa0] ss:$8 sps:$4 sm:$0xff]   ;;  %v3186_v44 = vld [vmem:[%s3578_s22 + $0xb4] ss:$8 sps:$4 sm:$0xff]   ;;  %v3190_v46 = vld [vmem:[%s3578_s22 + $0xb0] ss:$8 sps:$4 sm:$0xff]  }
  0x20   : > { %2247 = vmatpush1.bf16.msra.mxu0 %v3143_v15  ;;  %2036 = vmatprep.subr.bf16.mxu1 %v3144_v16  ;;  %v3185_v43 = vld [vmem:[%s3578_s22 + $0x4a0] ss:$8 sps:$4 sm:$0xff]   ;;  %v3188_v45 = vld [vmem:[%s3578_s22 + $0x4b4] ss:$8 sps:$4 sm:$0xff]   ;;  %v3191_v47 = vld [vmem:[%s3578_s22 + $0x4b0] ss:$8 sps:$4 sm:$0xff]  }
  0x21   : > { %2248 = vmatprep.subr.bf16.mxu0 %v3146_v17  ;;  %v300_v48 = vld [vmem:[%s3628_s26] sm:$0xff]  ;;  %v3198_v58 = vld [vmem:[%s3578_s22 + $0xd4] ss:$8 sps:$4 sm:$0xff]   ;;  %v3202_v60 = vld [vmem:[%s3578_s22 + $0xd0] ss:$8 sps:$4 sm:$0xff]   ;;  %s3038_s27 = sshll.u32 %s3962_s15, 6 }
  0x22   : > { %v308_v49 = vld [vmem:[%s3628_s26 + $0x40] sm:$0xff]  ;;  %v3200_v59 = vld [vmem:[%s3578_s22 + $0x4d4] ss:$8 sps:$4 sm:$0xff]   ;;  %v3203_v61 = vld [vmem:[%s3578_s22 + $0x4d0] ss:$8 sps:$4 sm:$0xff]   ;;  %s3926_s30 = scalar_lea.vmem %s3954_s2, %s3038_s27  ;;  %s2744_s5 = sshll.u32 %s3962_s15, 1 }
  0x23   : > { %2037 = vmatpush1.bf16.msra.mxu1 %v3148_v18  ;;  %v3192_v50 = vld [vmem:[%s3578_s22 + $0xc4] ss:$8 sps:$4 sm:$0xff]   ;;  %v2747_v52 = vcombine.high %v300_v48, %v308_v49  ;;  %v3196_v56 = vld [vmem:[%s3578_s22 + $0xc0] ss:$8 sps:$4 sm:$0xff]   ;;  %v3210_v2 = vld [vmem:[%s3578_s22 + $0xf4] ss:$8 sps:$4 sm:$0xff]   ;;  %v2746_v8 = vcombine.low %v300_v48, %v308_v49  ;;  %s289_s8 = scalar_lea.vmem %s3955_s3, %s2744_s5  ;;  %s298_s11 = scalar_lea.vmem %s3956_s4, %s2744_s5 }
  0x24   : > { %2249 = vmatpush1.bf16.msra.mxu0 %v3149_v19  ;;  %2038 = vmatprep.subr.bf16.mxu1 %v3150_v20  ;;  %v3194_v51 = vld [vmem:[%s3578_s22 + $0x4c4] ss:$8 sps:$4 sm:$0xff]   ;;  %v3197_v57 = vld [vmem:[%s3578_s22 + $0x4c0] ss:$8 sps:$4 sm:$0xff]   ;;  %v3212_v3 = vld [vmem:[%s3578_s22 + $0x4f4] ss:$8 sps:$4 sm:$0xff]  }
  0x25   : > { %2250 = vmatprep.subr.bf16.mxu0 %v3152_v21  ;;  %v304_v53 = vld [vmem:[%s3628_s26 + $0x20] sm:$0xff]  ;;  %2060 = vmatprep.mubr.bf16.mxu1 %v2747_v52  ;;  %v3214_v4 = vld [vmem:[%s3578_s22 + $0xf0] ss:$8 sps:$4 sm:$0xff]   ;;  %v3224_v12 = vld [vmem:[%s3578_s22 + $0x114] ss:$8 sps:$4 sm:$0xff]  }
  0x26   : > { %v312_v54 = vld [vmem:[%s3628_s26 + $0x60] sm:$0xff]  ;;  %v3215_v5 = vld [vmem:[%s3578_s22 + $0x4f0] ss:$8 sps:$4 sm:$0xff]   ;;  %v3227_v13 = vld [vmem:[%s3578_s22 + $0x514] ss:$8 sps:$4 sm:$0xff]  }
  0x27   : > { %2039 = vmatpush1.bf16.msra.mxu1 %v3154_v22  ;;  %v2755_v55 = vcombine.high %v304_v53, %v312_v54  ;;  %v3204_v62 = vld [vmem:[%s3578_s22 + $0xe4] ss:$8 sps:$4 sm:$0xff]   ;;  %v3208_v0 = vld [vmem:[%s3578_s22 + $0xe0] ss:$8 sps:$4 sm:$0xff]   ;;  %v2754_v10 = vcombine.low %v304_v53, %v312_v54  ;;  %v3222_v14 = vld [vmem:[%s3578_s22 + $0x110] ss:$8 sps:$4 sm:$0xff]  }
  0x28   : > { %2251 = vmatpush1.bf16.msra.mxu0 %v3155_v23  ;;  %2040 = vmatprep.subr.bf16.mxu1 %v3156_v24  ;;  %v3206_v63 = vld [vmem:[%s3578_s22 + $0x4e4] ss:$8 sps:$4 sm:$0xff]   ;;  %v3209_v1 = vld [vmem:[%s3578_s22 + $0x4e0] ss:$8 sps:$4 sm:$0xff]   ;;  %v3225_v15 = vld [vmem:[%s3578_s22 + $0x510] ss:$8 sps:$4 sm:$0xff]  }
  0x29   : > { %2252 = vmatprep.subr.bf16.mxu0 %v3158_v25  ;;  %2272 = vmatprep.mubr.bf16.mxu0 %v2755_v55  ;;  %v3218_v6 = vld [vmem:[%s3578_s22 + $0x104] ss:$8 sps:$4 sm:$0xff]   ;;  %v3216_v9 = vld [vmem:[%s3578_s22 + $0x100] ss:$8 sps:$4 sm:$0xff]   ;;  %v3236_v20 = vld [vmem:[%s3578_s22 + $0x134] ss:$8 sps:$4 sm:$0xff]  }
  0x2a   : > { %v3221_v7 = vld [vmem:[%s3578_s22 + $0x504] ss:$8 sps:$4 sm:$0xff]   ;;  %v3219_v11 = vld [vmem:[%s3578_s22 + $0x500] ss:$8 sps:$4 sm:$0xff]   ;;  %v3239_v21 = vld [vmem:[%s3578_s22 + $0x534] ss:$8 sps:$4 sm:$0xff]  }
  0x2b   : > { %2041 = vmatpush1.bf16.msra.mxu1 %v3160_v26  ;;  %v3230_v16 = vld [vmem:[%s3578_s22 + $0x124] ss:$8 sps:$4 sm:$0xff]   ;;  %v3228_v18 = vld [vmem:[%s3578_s22 + $0x120] ss:$8 sps:$4 sm:$0xff]   ;;  %v3234_v22 = vld [vmem:[%s3578_s22 + $0x130] ss:$8 sps:$4 sm:$0xff]  }
  0x2c   : > { %2253 = vmatpush1.bf16.msra.mxu0 %v3161_v27  ;;  %2042 = vmatprep.subr.bf16.mxu1 %v3162_v28  ;;  %v3233_v17 = vld [vmem:[%s3578_s22 + $0x524] ss:$8 sps:$4 sm:$0xff]   ;;  %v3231_v19 = vld [vmem:[%s3578_s22 + $0x520] ss:$8 sps:$4 sm:$0xff]   ;;  %v3237_v23 = vld [vmem:[%s3578_s22 + $0x530] ss:$8 sps:$4 sm:$0xff]  }
  0x2d   : > { %2254 = vmatprep.subr.bf16.mxu0 %v3164_v29  ;;  %v3242_v24 = vld [vmem:[%s3578_s22 + $0x144] ss:$8 sps:$4 sm:$0xff]   ;;  %v3240_v26 = vld [vmem:[%s3578_s22 + $0x140] ss:$8 sps:$4 sm:$0xff]   ;;  %v3248_v28 = vld [vmem:[%s3578_s22 + $0x154] ss:$8 sps:$4 sm:$0xff]  }
  0x2e   : > { %v3245_v25 = vld [vmem:[%s3578_s22 + $0x544] ss:$8 sps:$4 sm:$0xff]   ;;  %v3243_v27 = vld [vmem:[%s3578_s22 + $0x540] ss:$8 sps:$4 sm:$0xff]   ;;  %v3251_v29 = vld [vmem:[%s3578_s22 + $0x554] ss:$8 sps:$4 sm:$0xff]  }
  0x2f   : > { %2043 = vmatpush1.bf16.msra.mxu1 %v3166_v30  ;;  %v316_v30 = vld [vmem:[%s3628_s26 + $0x80] sm:$0xff]  ;;  %v3697_v49 = vld [vmem:[%s3628_s26 + $0x28] sm:$0xff]  ;;  %v3261_v52 = vld [vmem:[%s3578_s22 + $0x570] ss:$8 sps:$4 sm:$0xff]  }
  0x30   : > { %2255 = vmatpush1.bf16.msra.mxu0 %v3167_v31  ;;  %2044 = vmatprep.subr.bf16.mxu1 %v3168_v32  ;;  %v324_v31 = vld [vmem:[%s3628_s26 + $0xc0] sm:$0xff]  ;;  %v3246_v32 = vld [vmem:[%s3578_s22 + $0x150] ss:$8 sps:$4 sm:$0xff]  }
  0x31   : > { %2256 = vmatprep.subr.bf16.mxu0 %v3170_v33  ;;  %v2763_v33 = vcombine.high %v316_v30, %v324_v31  ;;  %v3266_v54 = vld [vmem:[%s3578_s22 + $0x184] ss:$8 sps:$4 sm:$0xff]  }
  0x32   : > { %v3269_v55 = vld [vmem:[%s3578_s22 + $0x584] ss:$8 sps:$4 sm:$0xff]  }
  0x33   : > { %2045 = vmatpush1.bf16.msra.mxu1 %v3172_v34  ;;  %v3249_v34 = vld [vmem:[%s3578_s22 + $0x550] ss:$8 sps:$4 sm:$0xff]  }
  0x34   : > { %2257 = vmatpush1.bf16.msra.mxu0 %v3173_v35  ;;  %2046 = vmatprep.subr.bf16.mxu1 %v3174_v36  ;;  %v320_v35 = vld [vmem:[%s3628_s26 + $0xa0] sm:$0xff] }
  0x35   : > { %2258 = vmatprep.subr.bf16.mxu0 %v3176_v37  ;;  %v328_v36 = vld [vmem:[%s3628_s26 + $0xe0] sm:$0xff]  ;;  %v2762_v37 = vcombine.low %v316_v30, %v324_v31  ;;  %v3320_v30 = vld [vmem:[%s3578_s22 + $0x214] ss:$8 sps:$4 sm:$0xff]  }
  0x36   : > { %v3323_v31 = vld [vmem:[%s3578_s22 + $0x614] ss:$8 sps:$4 sm:$0xff]  }
  0x37   : > { %2047 = vmatpush1.bf16.msra.mxu1 %v3178_v38  ;;  %v3254_v38 = vld [vmem:[%s3578_s22 + $0x164] ss:$8 sps:$4 sm:$0xff]  }
  0x38   : > { %2259 = vmatpush1.bf16.msra.mxu0 %v3179_v39  ;;  %2048 = vmatprep.subr.bf16.mxu1 %v3180_v40  ;;  %v2771_v39 = vcombine.high %v320_v35, %v328_v36  ;;  %v2770_v40 = vcombine.low %v320_v35, %v328_v36  ;;  %v3318_v36 = vld [vmem:[%s3578_s22 + $0x210] ss:$8 sps:$4 sm:$0xff]  }
  0x39   : > { %2260 = vmatprep.subr.bf16.mxu0 %v3182_v41  ;;  %v3257_v41 = vld [vmem:[%s3578_s22 + $0x564] ss:$8 sps:$4 sm:$0xff]  }
  0x3b   : > { %2049 = vmatpush1.bf16.msra.mxu1 %v3184_v42  ;;  %v3252_v42 = vld [vmem:[%s3578_s22 + $0x160] ss:$8 sps:$4 sm:$0xff]  }
  0x3c   : > { %2261 = vmatpush1.bf16.msra.mxu0 %v3185_v43  ;;  %2050 = vmatprep.subr.bf16.mxu1 %v3186_v44  ;;  %v3255_v43 = vld [vmem:[%s3578_s22 + $0x560] ss:$8 sps:$4 sm:$0xff]  }
  0x3d   : > { %2262 = vmatprep.subr.bf16.mxu0 %v3188_v45  ;;  %v3687_v44 = vld [vmem:[%s3628_s26 + $0x8] sm:$0xff] }
  0x3e   : > { %v3690_v45 = vld [vmem:[%s3628_s26 + $0x48] sm:$0xff] }
  0x3f   : > { %2051 = vmatpush1.bf16.msra.mxu1 %v3190_v46  ;;  %v3260_v46 = vld [vmem:[%s3578_s22 + $0x174] ss:$8 sps:$4 sm:$0xff]   ;;  %v2749_v48 = vcombine.high %v3687_v44, %v3690_v45 }
  0x40   : > { %2263 = vmatpush1.bf16.msra.mxu0 %v3191_v47  ;;  %2052 = vmatprep.subr.bf16.mxu1 %v3192_v50  ;;  %v3263_v47 = vld [vmem:[%s3578_s22 + $0x574] ss:$8 sps:$4 sm:$0xff]   ;;  %v3700_v50 = vld [vmem:[%s3628_s26 + $0x68] sm:$0xff] }
  0x41   : > { %2264 = vmatprep.subr.bf16.mxu0 %v3194_v51  ;;  %v3258_v51 = vld [vmem:[%s3578_s22 + $0x170] ss:$8 sps:$4 sm:$0xff]   ;;  %v2757_v53 = vcombine.high %v3697_v49, %v3700_v50 }
  0x43   : > { %2053 = vmatpush1.bf16.msra.mxu1 %v3196_v56  ;;  %v3264_v56 = vld [vmem:[%s3578_s22 + $0x180] ss:$8 sps:$4 sm:$0xff]  }
  0x44   : > { %2265 = vmatpush1.bf16.msra.mxu0 %v3197_v57  ;;  %2054 = vmatprep.subr.bf16.mxu1 %v3198_v58  ;;  %v3267_v57 = vld [vmem:[%s3578_s22 + $0x580] ss:$8 sps:$4 sm:$0xff]   ;;  %v3272_v58 = vld [vmem:[%s3578_s22 + $0x194] ss:$8 sps:$4 sm:$0xff]  }
  0x45   : > { %2266 = vmatprep.subr.bf16.mxu0 %v3200_v59  ;;  %v3275_v59 = vld [vmem:[%s3578_s22 + $0x594] ss:$8 sps:$4 sm:$0xff]  }
  0x47   : > { %2055 = vmatpush1.bf16.msra.mxu1 %v3202_v60  ;;  %v3270_v60 = vld [vmem:[%s3578_s22 + $0x190] ss:$8 sps:$4 sm:$0xff]  }
  0x48   : > { %2267 = vmatpush1.bf16.msra.mxu0 %v3203_v61  ;;  %2056 = vmatprep.subr.bf16.mxu1 %v3204_v62  ;;  %v3273_v61 = vld [vmem:[%s3578_s22 + $0x590] ss:$8 sps:$4 sm:$0xff]   ;;  %v3278_v62 = vld [vmem:[%s3578_s22 + $0x1a4] ss:$8 sps:$4 sm:$0xff]  }
  0x49   : > { %2268 = vmatprep.subr.bf16.mxu0 %v3206_v63  ;;  %v3281_v63 = vld [vmem:[%s3578_s22 + $0x5a4] ss:$8 sps:$4 sm:$0xff]  }
  0x4b   : > { %2057 = vmatpush1.bf16.msra.mxu1 %v3208_v0  ;;  %v3276_v0 = vld [vmem:[%s3578_s22 + $0x1a0] ss:$8 sps:$4 sm:$0xff]  }
  0x4c   : > { %2269 = vmatpush1.bf16.msra.mxu0 %v3209_v1  ;;  %2058 = vmatprep.subr.bf16.mxu1 %v3210_v2  ;;  %v3279_v1 = vld [vmem:[%s3578_s22 + $0x5a0] ss:$8 sps:$4 sm:$0xff]   ;;  %v3284_v2 = vld [vmem:[%s3578_s22 + $0x1b4] ss:$8 sps:$4 sm:$0xff]  }
  0x4d   : > { %2270 = vmatprep.subr.bf16.mxu0 %v3212_v3  ;;  %v3287_v3 = vld [vmem:[%s3578_s22 + $0x5b4] ss:$8 sps:$4 sm:$0xff]  }
  0x4f   : > { %2059 = vmatpush1.bf16.msra.mxu1 %v3214_v4  ;;  %v3282_v4 = vld [vmem:[%s3578_s22 + $0x1b0] ss:$8 sps:$4 sm:$0xff]  }
  0x50   : > { %2271 = vmatpush1.bf16.msra.mxu0 %v3215_v5  ;;  %2081 = vmatprep.subr.bf16.mxu1 %v3218_v6  ;;  %v3285_v5 = vld [vmem:[%s3578_s22 + $0x5b0] ss:$8 sps:$4 sm:$0xff]   ;;  %v3290_v6 = vld [vmem:[%s3578_s22 + $0x1c4] ss:$8 sps:$4 sm:$0xff]  }
  0x51   : > { %2293 = vmatprep.subr.bf16.mxu0 %v3221_v7  ;;  %v3293_v7 = vld [vmem:[%s3578_s22 + $0x5c4] ss:$8 sps:$4 sm:$0xff]  }
  0x52   : > { %2061 = vmatmul.mubr.bf16.vlgmr.msra.gmra.mrb[0].mxu1 %v2746_v8  ;;  %v3288_v8 = vld [vmem:[%s3578_s22 + $0x1c0] ss:$8 sps:$4 sm:$0xff]  }
  0x53   : > { %2273 = vmatmul.mubr.bf16.vlgmr.msra.gmra.mrb[0].mxu0 %v2754_v10  ;;  %2082 = vmatpush1.bf16.msra.mxu1 %v3216_v9  ;;  %v3291_v9 = vld [vmem:[%s3578_s22 + $0x5c0] ss:$8 sps:$4 sm:$0xff]   ;;  %v3296_v10 = vld [vmem:[%s3578_s22 + $0x1d4] ss:$8 sps:$4 sm:$0xff]  }
  0x54   : > { %2294 = vmatpush1.bf16.msra.mxu0 %v3219_v11  ;;  %2083 = vmatprep.subr.bf16.mxu1 %v3224_v12  ;;  %v3299_v11 = vld [vmem:[%s3578_s22 + $0x5d4] ss:$8 sps:$4 sm:$0xff]   ;;  %v3294_v12 = vld [vmem:[%s3578_s22 + $0x1d0] ss:$8 sps:$4 sm:$0xff]  }
  0x55   : > { %2295 = vmatprep.subr.bf16.mxu0 %v3227_v13  ;;  %2070 = vmatprep.mubr.bf16.mxu1 %v2763_v33  ;;  %v3297_v13 = vld [vmem:[%s3578_s22 + $0x5d0] ss:$8 sps:$4 sm:$0xff]   ;;  %v329_v33 = vld [vmem:[%s3628_s26 + $0xe8] sm:$0xff] }
  0x56   : > { %2282 = vmatprep.mubr.bf16.mxu0 %v2771_v39  ;;  %v3329_v39 = vld [vmem:[%s3578_s22 + $0x624] ss:$8 sps:$4 sm:$0xff]  }
  0x57   : > { %2084 = vmatpush1.bf16.msra.mxu1 %v3222_v14  ;;  %v3302_v14 = vld [vmem:[%s3578_s22 + $0x1e4] ss:$8 sps:$4 sm:$0xff]  }
  0x58   : > { %2296 = vmatpush1.bf16.msra.mxu0 %v3225_v15  ;;  %2085 = vmatprep.subr.bf16.mxu1 %v3230_v16  ;;  %v3305_v15 = vld [vmem:[%s3578_s22 + $0x5e4] ss:$8 sps:$4 sm:$0xff]   ;;  %v3300_v16 = vld [vmem:[%s3578_s22 + $0x1e0] ss:$8 sps:$4 sm:$0xff]  }
  0x59   : > { %2297 = vmatprep.subr.bf16.mxu0 %v3233_v17  ;;  %v3303_v17 = vld [vmem:[%s3578_s22 + $0x5e0] ss:$8 sps:$4 sm:$0xff]  }
  0x5a   : > { %2071 = vmatmul.mubr.bf16.gmra.mrb[4].mxu1 %v2762_v37  ;;  %v3321_v37 = vld [vmem:[%s3578_s22 + $0x610] ss:$8 sps:$4 sm:$0xff]  }
  0x5b   : > { %2086 = vmatpush1.bf16.msra.mxu1 %v3228_v18  ;;  %2283 = vmatmul.mubr.bf16.gmra.mrb[4].mxu0 %v2770_v40  ;;  %v3308_v18 = vld [vmem:[%s3578_s22 + $0x1f4] ss:$8 sps:$4 sm:$0xff]   ;;  %v3324_v40 = vld [vmem:[%s3578_s22 + $0x220] ss:$8 sps:$4 sm:$0xff]  }
  0x5c   : > { %2298 = vmatpush1.bf16.msra.mxu0 %v3231_v19  ;;  %2087 = vmatprep.subr.bf16.mxu1 %v3236_v20  ;;  %v3311_v19 = vld [vmem:[%s3578_s22 + $0x5f4] ss:$8 sps:$4 sm:$0xff]   ;;  %v3306_v20 = vld [vmem:[%s3578_s22 + $0x1f0] ss:$8 sps:$4 sm:$0xff]  }
  0x5d   : > { %2299 = vmatprep.subr.bf16.mxu0 %v3239_v21  ;;  %2113 = vmatprep.mubr.bf16.mxu1 %v2749_v48  ;;  %v3309_v21 = vld [vmem:[%s3578_s22 + $0x5f0] ss:$8 sps:$4 sm:$0xff]   ;;  %v3332_v48 = vld [vmem:[%s3578_s22 + $0x234] ss:$8 sps:$4 sm:$0xff]  }
  0x5e   : > { %2325 = vmatprep.mubr.bf16.mxu0 %v2757_v53  ;;  %v3333_v53 = vld [vmem:[%s3578_s22 + $0x630] ss:$8 sps:$4 sm:$0xff]  }
  0x5f   : > { %2088 = vmatpush1.bf16.msra.mxu1 %v3234_v22  ;;  %v3314_v22 = vld [vmem:[%s3578_s22 + $0x204] ss:$8 sps:$4 sm:$0xff]  }
  0x60   : > { %2300 = vmatpush1.bf16.msra.mxu0 %v3237_v23  ;;  %2089 = vmatprep.subr.bf16.mxu1 %v3242_v24  ;;  %v3317_v23 = vld [vmem:[%s3578_s22 + $0x604] ss:$8 sps:$4 sm:$0xff]   ;;  %v3312_v24 = vld [vmem:[%s3578_s22 + $0x200] ss:$8 sps:$4 sm:$0xff]  }
  0x61   : > { %2301 = vmatprep.subr.bf16.mxu0 %v3245_v25  ;;  %v3315_v25 = vld [vmem:[%s3578_s22 + $0x600] ss:$8 sps:$4 sm:$0xff]  }
  0x63   : > { %2090 = vmatpush1.bf16.msra.mxu1 %v3240_v26  ;;  %v317_v26 = vld [vmem:[%s3628_s26 + $0x88] sm:$0xff] }
  0x64   : > { %2302 = vmatpush1.bf16.msra.mxu0 %v3243_v27  ;;  %2091 = vmatprep.subr.bf16.mxu1 %v3248_v28  ;;  %v2748_v27 = vcombine.low %v3687_v44, %v3690_v45  ;;  %v2756_v28 = vcombine.low %v3697_v49, %v3700_v50  ;;  %v3762_v45 = vld [vmem:[%s3628_s26 + $0x50] sm:$0xff] }
  0x65   : > { %2303 = vmatprep.subr.bf16.mxu0 %v3251_v29  ;;  %v325_v29 = vld [vmem:[%s3628_s26 + $0xc8] sm:$0xff]  ;;  %v3335_v49 = vld [vmem:[%s3578_s22 + $0x634] ss:$8 sps:$4 sm:$0xff]  }
  0x67   : > { %2092 = vmatpush1.bf16.msra.mxu1 %v3246_v32  ;;  %v321_v32 = vld [vmem:[%s3628_s26 + $0xa8] sm:$0xff] }
  0x68   : > { %2304 = vmatpush1.bf16.msra.mxu0 %v3249_v34  ;;  %2093 = vmatprep.subr.bf16.mxu1 %v3254_v38  ;;  %v2765_v34 = vcombine.high %v317_v26, %v325_v29  ;;  %v2773_v35 = vcombine.high %v321_v32, %v329_v33  ;;  %v3326_v38 = vld [vmem:[%s3578_s22 + $0x224] ss:$8 sps:$4 sm:$0xff]   ;;  %v2772_v44 = vcombine.low %v321_v32, %v329_v33  ;;  %v3396_v32 = vld [vmem:[%s3578_s22 + $0x2e0] ss:$8 sps:$4 sm:$0xff]  }
  0x69   : > { %2305 = vmatprep.subr.bf16.mxu0 %v3257_v41  ;;  %v3327_v41 = vld [vmem:[%s3578_s22 + $0x620] ss:$8 sps:$4 sm:$0xff]  }
  0x6a   : > { %v3399_v33 = vld [vmem:[%s3578_s22 + $0x6e0] ss:$8 sps:$4 sm:$0xff]  }
  0x6b   : > { %2094 = vmatpush1.bf16.msra.mxu1 %v3252_v42  ;;  %v3759_v42 = vld [vmem:[%s3628_s26 + $0x10] sm:$0xff] }
  0x6c   : > { %2306 = vmatpush1.bf16.msra.mxu0 %v3255_v43  ;;  %2095 = vmatprep.subr.bf16.mxu1 %v3260_v46  ;;  %v2764_v43 = vcombine.low %v317_v26, %v325_v29  ;;  %v3765_v46 = vld [vmem:[%s3628_s26 + $0x30] sm:$0xff]  ;;  %v2751_v50 = vcombine.high %v3759_v42, %v3762_v45 }
  0x6d   : > { %2307 = vmatprep.subr.bf16.mxu0 %v3263_v47  ;;  %v3768_v47 = vld [vmem:[%s3628_s26 + $0x70] sm:$0xff] }
  0x6e   : > { %v3392_v26 = vld [vmem:[%s3578_s22 + $0x2d4] ss:$8 sps:$4 sm:$0xff]   ;;  %v3393_v29 = vld [vmem:[%s3578_s22 + $0x6d0] ss:$8 sps:$4 sm:$0xff]  }
  0x6f   : > { %2096 = vmatpush1.bf16.msra.mxu1 %v3258_v51  ;;  %v2759_v51 = vcombine.high %v3765_v46, %v3768_v47 }
  0x70   : > { %2308 = vmatpush1.bf16.msra.mxu0 %v3261_v52  ;;  %2097 = vmatprep.subr.bf16.mxu1 %v3266_v54  ;;  %v3330_v52 = vld [vmem:[%s3578_s22 + $0x230] ss:$8 sps:$4 sm:$0xff]   ;;  %v3338_v54 = vld [vmem:[%s3578_s22 + $0x244] ss:$8 sps:$4 sm:$0xff]  }
  0x71   : > { %2309 = vmatprep.subr.bf16.mxu0 %v3269_v55  ;;  %v3341_v55 = vld [vmem:[%s3578_s22 + $0x644] ss:$8 sps:$4 sm:$0xff]  }
  0x73   : > { %2098 = vmatpush1.bf16.msra.mxu1 %v3264_v56  ;;  %v3336_v56 = vld [vmem:[%s3578_s22 + $0x240] ss:$8 sps:$4 sm:$0xff]  }
  0x74   : > { %2310 = vmatpush1.bf16.msra.mxu0 %v3267_v57  ;;  %2099 = vmatprep.subr.bf16.mxu1 %v3272_v58  ;;  %v3339_v57 = vld [vmem:[%s3578_s22 + $0x640] ss:$8 sps:$4 sm:$0xff]   ;;  %v3344_v58 = vld [vmem:[%s3578_s22 + $0x254] ss:$8 sps:$4 sm:$0xff]  }
  0x75   : > { %2311 = vmatprep.subr.bf16.mxu0 %v3275_v59  ;;  %v3347_v59 = vld [vmem:[%s3578_s22 + $0x654] ss:$8 sps:$4 sm:$0xff]  }
  0x77   : > { %2100 = vmatpush1.bf16.msra.mxu1 %v3270_v60  ;;  %v3342_v60 = vld [vmem:[%s3578_s22 + $0x250] ss:$8 sps:$4 sm:$0xff]  }
  0x78   : > { %2312 = vmatpush1.bf16.msra.mxu0 %v3273_v61  ;;  %2101 = vmatprep.subr.bf16.mxu1 %v3278_v62  ;;  %v3345_v61 = vld [vmem:[%s3578_s22 + $0x650] ss:$8 sps:$4 sm:$0xff]   ;;  %v3350_v62 = vld [vmem:[%s3578_s22 + $0x264] ss:$8 sps:$4 sm:$0xff]  }
  0x79   : > { %2313 = vmatprep.subr.bf16.mxu0 %v3281_v63  ;;  %v3353_v63 = vld [vmem:[%s3578_s22 + $0x664] ss:$8 sps:$4 sm:$0xff]  }
  0x7b   : > { %2102 = vmatpush1.bf16.msra.mxu1 %v3276_v0  ;;  %v3348_v0 = vld [vmem:[%s3578_s22 + $0x260] ss:$8 sps:$4 sm:$0xff]  }
  0x7c   : > { %2314 = vmatpush1.bf16.msra.mxu0 %v3279_v1  ;;  %2103 = vmatprep.subr.bf16.mxu1 %v3284_v2  ;;  %v3351_v1 = vld [vmem:[%s3578_s22 + $0x660] ss:$8 sps:$4 sm:$0xff]   ;;  %v3356_v2 = vld [vmem:[%s3578_s22 + $0x274] ss:$8 sps:$4 sm:$0xff]  }
  0x7d   : > { %2315 = vmatprep.subr.bf16.mxu0 %v3287_v3  ;;  %v3359_v3 = vld [vmem:[%s3578_s22 + $0x674] ss:$8 sps:$4 sm:$0xff]  }
  0x7f   : > { %2104 = vmatpush1.bf16.msra.mxu1 %v3282_v4  ;;  %v3354_v4 = vld [vmem:[%s3578_s22 + $0x270] ss:$8 sps:$4 sm:$0xff]  }
  0x80   : > { %2316 = vmatpush1.bf16.msra.mxu0 %v3285_v5  ;;  %2105 = vmatprep.subr.bf16.mxu1 %v3290_v6  ;;  %v3357_v5 = vld [vmem:[%s3578_s22 + $0x670] ss:$8 sps:$4 sm:$0xff]   ;;  %v3362_v6 = vld [vmem:[%s3578_s22 + $0x284] ss:$8 sps:$4 sm:$0xff]  }
  0x81   : > { %2317 = vmatprep.subr.bf16.mxu0 %v3293_v7  ;;  %v3365_v7 = vld [vmem:[%s3578_s22 + $0x684] ss:$8 sps:$4 sm:$0xff]  }
  0x83   : > { %2106 = vmatpush1.bf16.msra.mxu1 %v3288_v8  ;;  %v3360_v8 = vld [vmem:[%s3578_s22 + $0x280] ss:$8 sps:$4 sm:$0xff]  }
  0x84   : > { %2318 = vmatpush1.bf16.msra.mxu0 %v3291_v9  ;;  %2107 = vmatprep.subr.bf16.mxu1 %v3296_v10  ;;  %v3363_v9 = vld [vmem:[%s3578_s22 + $0x680] ss:$8 sps:$4 sm:$0xff]   ;;  %v3368_v10 = vld [vmem:[%s3578_s22 + $0x294] ss:$8 sps:$4 sm:$0xff]  }
  0x85   : > { %2319 = vmatprep.subr.bf16.mxu0 %v3299_v11  ;;  %v3371_v11 = vld [vmem:[%s3578_s22 + $0x694] ss:$8 sps:$4 sm:$0xff]  }
  0x87   : > { %2108 = vmatpush1.bf16.msra.mxu1 %v3294_v12  ;;  %v3366_v12 = vld [vmem:[%s3578_s22 + $0x290] ss:$8 sps:$4 sm:$0xff]  }
  0x88   : > { %2320 = vmatpush1.bf16.msra.mxu0 %v3297_v13  ;;  %2109 = vmatprep.subr.bf16.mxu1 %v3302_v14  ;;  %v3369_v13 = vld [vmem:[%s3578_s22 + $0x690] ss:$8 sps:$4 sm:$0xff]   ;;  %v3374_v14 = vld [vmem:[%s3578_s22 + $0x2a4] ss:$8 sps:$4 sm:$0xff]  }
  0x89   : > { %2321 = vmatprep.subr.bf16.mxu0 %v3305_v15  ;;  %v3377_v15 = vld [vmem:[%s3578_s22 + $0x6a4] ss:$8 sps:$4 sm:$0xff]  }
  0x8b   : > { %2110 = vmatpush1.bf16.msra.mxu1 %v3300_v16  ;;  %v3372_v16 = vld [vmem:[%s3578_s22 + $0x2a0] ss:$8 sps:$4 sm:$0xff]  }
  0x8c   : > { %2322 = vmatpush1.bf16.msra.mxu0 %v3303_v17  ;;  %2111 = vmatprep.subr.bf16.mxu1 %v3308_v18  ;;  %v3375_v17 = vld [vmem:[%s3578_s22 + $0x6a0] ss:$8 sps:$4 sm:$0xff]   ;;  %v3380_v18 = vld [vmem:[%s3578_s22 + $0x2b4] ss:$8 sps:$4 sm:$0xff]  }
  0x8d   : > { %2323 = vmatprep.subr.bf16.mxu0 %v3311_v19  ;;  %v3383_v19 = vld [vmem:[%s3578_s22 + $0x6b4] ss:$8 sps:$4 sm:$0xff]  }
  0x8f   : > { %2112 = vmatpush1.bf16.msra.mxu1 %v3306_v20  ;;  %v3378_v20 = vld [vmem:[%s3578_s22 + $0x2b0] ss:$8 sps:$4 sm:$0xff]  }
  0x90   : > { %2324 = vmatpush1.bf16.msra.mxu0 %v3309_v21  ;;  %2134 = vmatprep.subr.bf16.mxu1 %v3314_v22  ;;  %v3381_v21 = vld [vmem:[%s3578_s22 + $0x6b0] ss:$8 sps:$4 sm:$0xff]   ;;  %v3386_v22 = vld [vmem:[%s3578_s22 + $0x2c4] ss:$8 sps:$4 sm:$0xff]  }
  0x91   : > { %2346 = vmatprep.subr.bf16.mxu0 %v3317_v23  ;;  %v3389_v23 = vld [vmem:[%s3578_s22 + $0x6c4] ss:$8 sps:$4 sm:$0xff]  }
  0x92   : > { %2114 = vmatmul.mubr.bf16.vlgmr.msra.gmra.mrb[0].mxu1 %v2748_v27  ;;  %v3395_v27 = vld [vmem:[%s3578_s22 + $0x6d4] ss:$8 sps:$4 sm:$0xff]  }
  0x93   : > { %2326 = vmatmul.mubr.bf16.vlgmr.msra.gmra.mrb[0].mxu0 %v2756_v28  ;;  %2135 = vmatpush1.bf16.msra.mxu1 %v3312_v24  ;;  %v3384_v24 = vld [vmem:[%s3578_s22 + $0x2c0] ss:$8 sps:$4 sm:$0xff]   ;;  %v3390_v28 = vld [vmem:[%s3578_s22 + $0x2d0] ss:$8 sps:$4 sm:$0xff]  }
  0x94   : > { %2347 = vmatpush1.bf16.msra.mxu0 %v3315_v25  ;;  %2136 = vmatprep.subr.bf16.mxu1 %v3320_v30  ;;  %v3387_v25 = vld [vmem:[%s3578_s22 + $0x6c0] ss:$8 sps:$4 sm:$0xff]   ;;  %v3398_v30 = vld [vmem:[%s3578_s22 + $0x2e4] ss:$8 sps:$4 sm:$0xff]  }
  0x95   : > { %2348 = vmatprep.subr.bf16.mxu0 %v3323_v31  ;;  %2123 = vmatprep.mubr.bf16.mxu1 %v2765_v34  ;;  %v3401_v31 = vld [vmem:[%s3578_s22 + $0x6e4] ss:$8 sps:$4 sm:$0xff]   ;;  %v3404_v34 = vld [vmem:[%s3578_s22 + $0x2f4] ss:$8 sps:$4 sm:$0xff]  }
  0x96   : > { %2335 = vmatprep.mubr.bf16.mxu0 %v2773_v35  ;;  %v3407_v35 = vld [vmem:[%s3578_s22 + $0x6f4] ss:$8 sps:$4 sm:$0xff]  }
  0x97   : > { %2137 = vmatpush1.bf16.msra.mxu1 %v3318_v36  ;;  %v3402_v36 = vld [vmem:[%s3578_s22 + $0x2f0] ss:$8 sps:$4 sm:$0xff]  }
  0x98   : > { %2349 = vmatpush1.bf16.msra.mxu0 %v3321_v37  ;;  %2138 = vmatprep.subr.bf16.mxu1 %v3326_v38  ;;  %v3405_v37 = vld [vmem:[%s3578_s22 + $0x6f0] ss:$8 sps:$4 sm:$0xff]   ;;  %v3410_v38 = vld [vmem:[%s3578_s22 + $0x304] ss:$8 sps:$4 sm:$0xff]  }
  0x99   : > { %2350 = vmatprep.subr.bf16.mxu0 %v3329_v39  ;;  %v3413_v39 = vld [vmem:[%s3578_s22 + $0x704] ss:$8 sps:$4 sm:$0xff]  }
  0x9a   : > { %2124 = vmatmul.mubr.bf16.gmra.mrb[4].mxu1 %v2764_v43  ;;  %v2758_v43 = vcombine.low %v3765_v46, %v3768_v47  ;;  %v3414_v46 = vld [vmem:[%s3578_s22 + $0x310] ss:$8 sps:$4 sm:$0xff]  }
  0x9b   : > { %2336 = vmatmul.mubr.bf16.gmra.mrb[4].mxu0 %v2772_v44  ;;  %2139 = vmatpush1.bf16.msra.mxu1 %v3324_v40  ;;  %v318_v40 = vld [vmem:[%s3628_s26 + $0x90] sm:$0xff] }
  0x9c   : > { %2351 = vmatpush1.bf16.msra.mxu0 %v3327_v41  ;;  %2140 = vmatprep.subr.bf16.mxu1 %v3332_v48  ;;  %v2750_v41 = vcombine.low %v3759_v42, %v3762_v45  ;;  %v326_v44 = vld [vmem:[%s3628_s26 + $0xd0] sm:$0xff] }
  0x9d   : > { %2352 = vmatprep.subr.bf16.mxu0 %v3335_v49  ;;  %2166 = vmatprep.mubr.bf16.mxu1 %v2751_v50  ;;  %v322_v48 = vld [vmem:[%s3628_s26 + $0xb0] sm:$0xff]  ;;  %v3408_v50 = vld [vmem:[%s3578_s22 + $0x300] ss:$8 sps:$4 sm:$0xff]   ;;  %v2767_v42 = vcombine.high %v318_v40, %v326_v44 }
  0x9e   : > { %2378 = vmatprep.mubr.bf16.mxu0 %v2759_v51  ;;  %v330_v49 = vld [vmem:[%s3628_s26 + $0xf0] sm:$0xff]  ;;  %v3411_v51 = vld [vmem:[%s3578_s22 + $0x700] ss:$8 sps:$4 sm:$0xff]  }
  0x9f   : > { %2141 = vmatpush1.bf16.msra.mxu1 %v3330_v52  ;;  %v3416_v52 = vld [vmem:[%s3578_s22 + $0x314] ss:$8 sps:$4 sm:$0xff]   ;;  %v2775_v45 = vcombine.high %v322_v48, %v330_v49  ;;  %v3417_v47 = vld [vmem:[%s3578_s22 + $0x710] ss:$8 sps:$4 sm:$0xff]  }
  0xa0   : > { %2353 = vmatpush1.bf16.msra.mxu0 %v3333_v53  ;;  %2142 = vmatprep.subr.bf16.mxu1 %v3338_v54  ;;  %v3419_v53 = vld [vmem:[%s3578_s22 + $0x714] ss:$8 sps:$4 sm:$0xff]   ;;  %v3422_v54 = vld [vmem:[%s3578_s22 + $0x324] ss:$8 sps:$4 sm:$0xff]  }
  0xa1   : > { %2354 = vmatprep.subr.bf16.mxu0 %v3341_v55  ;;  %v3425_v55 = vld [vmem:[%s3578_s22 + $0x724] ss:$8 sps:$4 sm:$0xff]  }
  0xa3   : > { %2143 = vmatpush1.bf16.msra.mxu1 %v3336_v56  ;;  %v3845_v56 = vld [vmem:[%s3628_s26 + $0x18] sm:$0xff] }
  0xa4   : > { %2355 = vmatpush1.bf16.msra.mxu0 %v3339_v57  ;;  %2144 = vmatprep.subr.bf16.mxu1 %v3344_v58  ;;  %v2766_v57 = vcombine.low %v318_v40, %v326_v44  ;;  %v2774_v58 = vcombine.low %v322_v48, %v330_v49  ;;  %v3480_v40 = vld [vmem:[%s3578_s22 + $0x3c0] ss:$8 sps:$4 sm:$0xff]   ;;  %v3491_v44 = vld [vmem:[%s3578_s22 + $0x7d4] ss:$8 sps:$4 sm:$0xff]   ;;  %v3486_v48 = vld [vmem:[%s3578_s22 + $0x3d0] ss:$8 sps:$4 sm:$0xff]  }
  0xa5   : > { %2356 = vmatprep.subr.bf16.mxu0 %v3347_v59  ;;  %v3848_v59 = vld [vmem:[%s3628_s26 + $0x58] sm:$0xff] }
  0xa6   : > { %v3489_v49 = vld [vmem:[%s3578_s22 + $0x7d0] ss:$8 sps:$4 sm:$0xff]  }
  0xa7   : > { %2145 = vmatpush1.bf16.msra.mxu1 %v3342_v60  ;;  %v3851_v60 = vld [vmem:[%s3628_s26 + $0x38] sm:$0xff] }
  0xa8   : > { %2357 = vmatpush1.bf16.msra.mxu0 %v3345_v61  ;;  %2146 = vmatprep.subr.bf16.mxu1 %v3350_v62  ;;  %v3854_v61 = vld [vmem:[%s3628_s26 + $0x78] sm:$0xff]  ;;  %v3420_v62 = vld [vmem:[%s3578_s22 + $0x320] ss:$8 sps:$4 sm:$0xff]  }
  0xa9   : > { %2358 = vmatprep.subr.bf16.mxu0 %v3353_v63  ;;  %v3423_v63 = vld [vmem:[%s3578_s22 + $0x720] ss:$8 sps:$4 sm:$0xff]  }
  0xab   : > { %2147 = vmatpush1.bf16.msra.mxu1 %v3348_v0  ;;  %v3428_v0 = vld [vmem:[%s3578_s22 + $0x334] ss:$8 sps:$4 sm:$0xff]  }
  0xac   : > { %2359 = vmatpush1.bf16.msra.mxu0 %v3351_v1  ;;  %2148 = vmatprep.subr.bf16.mxu1 %v3356_v2  ;;  %v3431_v1 = vld [vmem:[%s3578_s22 + $0x734] ss:$8 sps:$4 sm:$0xff]   ;;  %v2753_v2 = vcombine.high %v3845_v56, %v3848_v59 }
  0xad   : > { %2360 = vmatprep.subr.bf16.mxu0 %v3359_v3  ;;  %v2761_v3 = vcombine.high %v3851_v60, %v3854_v61 }
  0xaf   : > { %2149 = vmatpush1.bf16.msra.mxu1 %v3354_v4  ;;  %v3426_v4 = vld [vmem:[%s3578_s22 + $0x330] ss:$8 sps:$4 sm:$0xff]  }
  0xb0   : > { %2361 = vmatpush1.bf16.msra.mxu0 %v3357_v5  ;;  %2150 = vmatprep.subr.bf16.mxu1 %v3362_v6  ;;  %v3429_v5 = vld [vmem:[%s3578_s22 + $0x730] ss:$8 sps:$4 sm:$0xff]   ;;  %v3434_v6 = vld [vmem:[%s3578_s22 + $0x344] ss:$8 sps:$4 sm:$0xff]  }
  0xb1   : > { %2362 = vmatprep.subr.bf16.mxu0 %v3365_v7  ;;  %v3437_v7 = vld [vmem:[%s3578_s22 + $0x744] ss:$8 sps:$4 sm:$0xff]  }
  0xb3   : > { %2151 = vmatpush1.bf16.msra.mxu1 %v3360_v8  ;;  %v3432_v8 = vld [vmem:[%s3578_s22 + $0x340] ss:$8 sps:$4 sm:$0xff]  }
  0xb4   : > { %2363 = vmatpush1.bf16.msra.mxu0 %v3363_v9  ;;  %2152 = vmatprep.subr.bf16.mxu1 %v3368_v10  ;;  %v3435_v9 = vld [vmem:[%s3578_s22 + $0x740] ss:$8 sps:$4 sm:$0xff]   ;;  %v3440_v10 = vld [vmem:[%s3578_s22 + $0x354] ss:$8 sps:$4 sm:$0xff]  }
  0xb5   : > { %2364 = vmatprep.subr.bf16.mxu0 %v3371_v11  ;;  %v3443_v11 = vld [vmem:[%s3578_s22 + $0x754] ss:$8 sps:$4 sm:$0xff]  }
  0xb7   : > { %2153 = vmatpush1.bf16.msra.mxu1 %v3366_v12  ;;  %v3438_v12 = vld [vmem:[%s3578_s22 + $0x350] ss:$8 sps:$4 sm:$0xff]  }
  0xb8   : > { %2365 = vmatpush1.bf16.msra.mxu0 %v3369_v13  ;;  %2154 = vmatprep.subr.bf16.mxu1 %v3374_v14  ;;  %v3441_v13 = vld [vmem:[%s3578_s22 + $0x750] ss:$8 sps:$4 sm:$0xff]   ;;  %v3446_v14 = vld [vmem:[%s3578_s22 + $0x364] ss:$8 sps:$4 sm:$0xff]  }
  0xb9   : > { %2366 = vmatprep.subr.bf16.mxu0 %v3377_v15  ;;  %v3449_v15 = vld [vmem:[%s3578_s22 + $0x764] ss:$8 sps:$4 sm:$0xff]  }
  0xbb   : > { %2155 = vmatpush1.bf16.msra.mxu1 %v3372_v16  ;;  %v3444_v16 = vld [vmem:[%s3578_s22 + $0x360] ss:$8 sps:$4 sm:$0xff]  }
  0xbc   : > { %2367 = vmatpush1.bf16.msra.mxu0 %v3375_v17  ;;  %2156 = vmatprep.subr.bf16.mxu1 %v3380_v18  ;;  %v3447_v17 = vld [vmem:[%s3578_s22 + $0x760] ss:$8 sps:$4 sm:$0xff]   ;;  %v3452_v18 = vld [vmem:[%s3578_s22 + $0x374] ss:$8 sps:$4 sm:$0xff]  }
  0xbd   : > { %2368 = vmatprep.subr.bf16.mxu0 %v3383_v19  ;;  %v3455_v19 = vld [vmem:[%s3578_s22 + $0x774] ss:$8 sps:$4 sm:$0xff]  }
  0xbf   : > { %2157 = vmatpush1.bf16.msra.mxu1 %v3378_v20  ;;  %v3450_v20 = vld [vmem:[%s3578_s22 + $0x370] ss:$8 sps:$4 sm:$0xff]  }
  0xc0   : > { %2369 = vmatpush1.bf16.msra.mxu0 %v3381_v21  ;;  %2158 = vmatprep.subr.bf16.mxu1 %v3386_v22  ;;  %v3453_v21 = vld [vmem:[%s3578_s22 + $0x770] ss:$8 sps:$4 sm:$0xff]   ;;  %v3458_v22 = vld [vmem:[%s3578_s22 + $0x384] ss:$8 sps:$4 sm:$0xff]  }
  0xc1   : > { %2370 = vmatprep.subr.bf16.mxu0 %v3389_v23  ;;  %v3461_v23 = vld [vmem:[%s3578_s22 + $0x784] ss:$8 sps:$4 sm:$0xff]  }
  0xc3   : > { %2159 = vmatpush1.bf16.msra.mxu1 %v3384_v24  ;;  %v3456_v24 = vld [vmem:[%s3578_s22 + $0x380] ss:$8 sps:$4 sm:$0xff]  }
  0xc4   : > { %2371 = vmatpush1.bf16.msra.mxu0 %v3387_v25  ;;  %2160 = vmatprep.subr.bf16.mxu1 %v3392_v26  ;;  %v3459_v25 = vld [vmem:[%s3578_s22 + $0x780] ss:$8 sps:$4 sm:$0xff]   ;;  %v3464_v26 = vld [vmem:[%s3578_s22 + $0x394] ss:$8 sps:$4 sm:$0xff]  }
  0xc5   : > { %2372 = vmatprep.subr.bf16.mxu0 %v3395_v27  ;;  %v3467_v27 = vld [vmem:[%s3578_s22 + $0x794] ss:$8 sps:$4 sm:$0xff]  }
  0xc7   : > { %2161 = vmatpush1.bf16.msra.mxu1 %v3390_v28  ;;  %v3462_v28 = vld [vmem:[%s3578_s22 + $0x390] ss:$8 sps:$4 sm:$0xff]  }
  0xc8   : > { %2373 = vmatpush1.bf16.msra.mxu0 %v3393_v29  ;;  %2162 = vmatprep.subr.bf16.mxu1 %v3398_v30  ;;  %v3465_v29 = vld [vmem:[%s3578_s22 + $0x790] ss:$8 sps:$4 sm:$0xff]   ;;  %v3470_v30 = vld [vmem:[%s3578_s22 + $0x3a4] ss:$8 sps:$4 sm:$0xff]  }
  0xc9   : > { %2374 = vmatprep.subr.bf16.mxu0 %v3401_v31  ;;  %v3473_v31 = vld [vmem:[%s3578_s22 + $0x7a4] ss:$8 sps:$4 sm:$0xff]  }
  0xcb   : > { %2163 = vmatpush1.bf16.msra.mxu1 %v3396_v32  ;;  %v3468_v32 = vld [vmem:[%s3578_s22 + $0x3a0] ss:$8 sps:$4 sm:$0xff]  }
  0xcc   : > { %2375 = vmatpush1.bf16.msra.mxu0 %v3399_v33  ;;  %2164 = vmatprep.subr.bf16.mxu1 %v3404_v34  ;;  %v3471_v33 = vld [vmem:[%s3578_s22 + $0x7a0] ss:$8 sps:$4 sm:$0xff]   ;;  %v3476_v34 = vld [vmem:[%s3578_s22 + $0x3b4] ss:$8 sps:$4 sm:$0xff]  }
  0xcd   : > { %2376 = vmatprep.subr.bf16.mxu0 %v3407_v35  ;;  %v3479_v35 = vld [vmem:[%s3578_s22 + $0x7b4] ss:$8 sps:$4 sm:$0xff]  }
  0xcf   : > { %2165 = vmatpush1.bf16.msra.mxu1 %v3402_v36  ;;  %v3474_v36 = vld [vmem:[%s3578_s22 + $0x3b0] ss:$8 sps:$4 sm:$0xff]  }
  0xd0   : > { %2377 = vmatpush1.bf16.msra.mxu0 %v3405_v37  ;;  %2187 = vmatprep.subr.bf16.mxu1 %v3410_v38  ;;  %v3477_v37 = vld [vmem:[%s3578_s22 + $0x7b0] ss:$8 sps:$4 sm:$0xff]   ;;  %v3482_v38 = vld [vmem:[%s3578_s22 + $0x3c4] ss:$8 sps:$4 sm:$0xff]  }
  0xd1   : > { %2399 = vmatprep.subr.bf16.mxu0 %v3413_v39  ;;  %v3485_v39 = vld [vmem:[%s3578_s22 + $0x7c4] ss:$8 sps:$4 sm:$0xff]  }
  0xd2   : > { %2167 = vmatmul.mubr.bf16.vlgmr.msra.gmra.mrb[0].mxu1 %v2750_v41  ;;  %v3483_v41 = vld [vmem:[%s3578_s22 + $0x7c0] ss:$8 sps:$4 sm:$0xff]  }
  0xd3   : > { %2379 = vmatmul.mubr.bf16.vlgmr.msra.gmra.mrb[0].mxu0 %v2758_v43  ;;  %2188 = vmatpush1.bf16.msra.mxu1 %v3408_v50  ;;  %v3488_v43 = vld [vmem:[%s3578_s22 + $0x3d4] ss:$8 sps:$4 sm:$0xff]   ;;  %v3494_v50 = vld [vmem:[%s3578_s22 + $0x3e4] ss:$8 sps:$4 sm:$0xff]  }
  0xd4   : > { %2400 = vmatpush1.bf16.msra.mxu0 %v3411_v51  ;;  %2189 = vmatprep.subr.bf16.mxu1 %v3416_v52  ;;  %v3497_v51 = vld [vmem:[%s3578_s22 + $0x7e4] ss:$8 sps:$4 sm:$0xff]   ;;  %v3492_v52 = vld [vmem:[%s3578_s22 + $0x3e0] ss:$8 sps:$4 sm:$0xff]  }
  0xd5   : > { %2401 = vmatprep.subr.bf16.mxu0 %v3419_v53  ;;  %2176 = vmatprep.mubr.bf16.mxu1 %v2767_v42  ;;  %v3495_v53 = vld [vmem:[%s3578_s22 + $0x7e0] ss:$8 sps:$4 sm:$0xff]   ;;  %v3500_v42 = vld [vmem:[%s3578_s22 + $0x3f4] ss:$8 sps:$4 sm:$0xff]  }
  0xd6   : > { %2388 = vmatprep.mubr.bf16.mxu0 %v2775_v45  ;;  %v3503_v45 = vld [vmem:[%s3578_s22 + $0x7f4] ss:$8 sps:$4 sm:$0xff]  }
  0xd7   : > { %2190 = vmatpush1.bf16.msra.mxu1 %v3414_v46  ;;  %v3498_v46 = vld [vmem:[%s3578_s22 + $0x3f0] ss:$8 sps:$4 sm:$0xff]  }
  0xd8   : > { %2402 = vmatpush1.bf16.msra.mxu0 %v3417_v47  ;;  %2191 = vmatprep.subr.bf16.mxu1 %v3422_v54  ;;  %v3501_v47 = vld [vmem:[%s3578_s22 + $0x7f0] ss:$8 sps:$4 sm:$0xff]  }
  0xd9   : > { %2403 = vmatprep.subr.bf16.mxu0 %v3425_v55  ;;  %v319_v54 = vld [vmem:[%s3628_s26 + $0x98] sm:$0xff] }
  0xda   : > { %2177 = vmatmul.mubr.bf16.gmra.mrb[4].mxu1 %v2766_v57  ;;  %v327_v55 = vld [vmem:[%s3628_s26 + $0xd8] sm:$0xff] }
  0xdb   : > { %2389 = vmatmul.mubr.bf16.gmra.mrb[4].mxu0 %v2774_v58  ;;  %2192 = vmatpush1.bf16.msra.mxu1 %v3420_v62  ;;  %v323_v57 = vld [vmem:[%s3628_s26 + $0xb8] sm:$0xff]  ;;  %v2752_v62 = vcombine.low %v3845_v56, %v3848_v59 }
  0xdc   : > { %2404 = vmatpush1.bf16.msra.mxu0 %v3423_v63  ;;  %2193 = vmatprep.subr.bf16.mxu1 %v3428_v0  ;;  %v331_v58 = vld [vmem:[%s3628_s26 + $0xf8] sm:$0xff]  ;;  %v2760_v63 = vcombine.low %v3851_v60, %v3854_v61  ;;  %v2769_v0 = vcombine.high %v319_v54, %v327_v55 }
  0xdd   : > { %2405 = vmatprep.subr.bf16.mxu0 %v3431_v1  ;;  %2219 = vmatprep.mubr.bf16.mxu1 %v2753_v2  ;;  %v2777_v1 = vcombine.high %v323_v57, %v331_v58  ;;  %v2768_v2 = vcombine.low %v319_v54, %v327_v55 }
  0xde   : > { %2431 = vmatprep.mubr.bf16.mxu0 %v2761_v3  ;;  %v2776_v3 = vcombine.low %v323_v57, %v331_v58 }
  0xdf   : > { %2194 = vmatpush1.bf16.msra.mxu1 %v3426_v4 }
  0xe0   : > { %2406 = vmatpush1.bf16.msra.mxu0 %v3429_v5  ;;  %2195 = vmatprep.subr.bf16.mxu1 %v3434_v6 }
  0xe1   : > { %2407 = vmatprep.subr.bf16.mxu0 %v3437_v7 }
  0xe3   : > { %2196 = vmatpush1.bf16.msra.mxu1 %v3432_v8 }
  0xe4   : > { %2408 = vmatpush1.bf16.msra.mxu0 %v3435_v9  ;;  %2197 = vmatprep.subr.bf16.mxu1 %v3440_v10 }
  0xe5   : > { %2409 = vmatprep.subr.bf16.mxu0 %v3443_v11 }
  0xe7   : > { %2198 = vmatpush1.bf16.msra.mxu1 %v3438_v12 }
  0xe8   : > { %2410 = vmatpush1.bf16.msra.mxu0 %v3441_v13  ;;  %2199 = vmatprep.subr.bf16.mxu1 %v3446_v14 }
  0xe9   : > { %2411 = vmatprep.subr.bf16.mxu0 %v3449_v15 }
  0xeb   : > { %2200 = vmatpush1.bf16.msra.mxu1 %v3444_v16 }
  0xec   : > { %2412 = vmatpush1.bf16.msra.mxu0 %v3447_v17  ;;  %2201 = vmatprep.subr.bf16.mxu1 %v3452_v18 }
  0xed   : > { %2413 = vmatprep.subr.bf16.mxu0 %v3455_v19 }
  0xef   : > { %2202 = vmatpush1.bf16.msra.mxu1 %v3450_v20 }
  0xf0   : > { %2414 = vmatpush1.bf16.msra.mxu0 %v3453_v21  ;;  %2203 = vmatprep.subr.bf16.mxu1 %v3458_v22 }
  0xf1   : > { %2415 = vmatprep.subr.bf16.mxu0 %v3461_v23 }
  0xf3   : > { %2204 = vmatpush1.bf16.msra.mxu1 %v3456_v24 }
  0xf4   : > { %2416 = vmatpush1.bf16.msra.mxu0 %v3459_v25  ;;  %2205 = vmatprep.subr.bf16.mxu1 %v3464_v26 }
  0xf5   : > { %2417 = vmatprep.subr.bf16.mxu0 %v3467_v27 }
  0xf7   : > { %2206 = vmatpush1.bf16.msra.mxu1 %v3462_v28 }
  0xf8   : > { %2418 = vmatpush1.bf16.msra.mxu0 %v3465_v29  ;;  %2207 = vmatprep.subr.bf16.mxu1 %v3470_v30 }
  0xf9   : > { %2419 = vmatprep.subr.bf16.mxu0 %v3473_v31 }
  0xfb   : > { %2208 = vmatpush1.bf16.msra.mxu1 %v3468_v32 }
  0xfc   : > { %2420 = vmatpush1.bf16.msra.mxu0 %v3471_v33  ;;  %2209 = vmatprep.subr.bf16.mxu1 %v3476_v34 }
  0xfd   : > { %2421 = vmatprep.subr.bf16.mxu0 %v3479_v35 }
  0xff   : > { %2210 = vmatpush1.bf16.msra.mxu1 %v3474_v36 }
 0x100   : > { %2422 = vmatpush1.bf16.msra.mxu0 %v3477_v37  ;;  %2211 = vmatprep.subr.bf16.mxu1 %v3482_v38 }
 0x101   : > { %2423 = vmatprep.subr.bf16.mxu0 %v3485_v39 }
 0x103   : > { %2212 = vmatpush1.bf16.msra.mxu1 %v3480_v40 }
 0x104   : > { %2424 = vmatpush1.bf16.msra.mxu0 %v3483_v41  ;;  %2213 = vmatprep.subr.bf16.mxu1 %v3488_v43 }
 0x105   : > { %2425 = vmatprep.subr.bf16.mxu0 %v3491_v44 }
 0x107   : > { %2214 = vmatpush1.bf16.msra.mxu1 %v3486_v48 }
 0x108   : > { %2426 = vmatpush1.bf16.msra.mxu0 %v3489_v49  ;;  %2215 = vmatprep.subr.bf16.mxu1 %v3494_v50 }
 0x109   : > { %2427 = vmatprep.subr.bf16.mxu0 %v3497_v51 }
 0x10b   : > { %2216 = vmatpush1.bf16.msra.mxu1 %v3492_v52 }
 0x10c   : > { %2428 = vmatpush1.bf16.msra.mxu0 %v3495_v53  ;;  %2217 = vmatprep.subr.bf16.mxu1 %v3500_v42  ;;  %v3528_v53 = vmov 1966171168  }
 0x10d   : > { %2429 = vmatprep.subr.bf16.mxu0 %v3503_v45  ;;  %v2482_v42 = vunpack.c.l.s4 %v3528_v53  ;;  %v2484_v45 = vlaneseq }
 0x10f   : > { %2218 = vmatpush1.bf16.msra.mxu1 %v3498_v46  ;;  %vm2498_vm0 = vcmp.lt.s32.totalorder %v2484_v45, 256 }
 0x110   : > { %2430 = vmatpush1.bf16.msra.mxu0 %v3501_v47 }
 0x112   : > { %2220 = vmatmul.mubr.bf16.vlgmr.msra.gmra.mrb[0].mxu1 %v2752_v62 }
 0x113   : > { %2432 = vmatmul.mubr.bf16.vlgmr.msra.gmra.mrb[0].mxu0 %v2760_v63  ;;  %2229 = vmatprep.mubr.bf16.mxu1 %v2769_v0  ;;  %v2483_v0 = vunpack.c.0.s8 %v2482_v42 }
 0x114   : > { %2441 = vmatprep.mubr.bf16.mxu0 %v2777_v1  ;;  %v2485_v1 = vshrl.u32 %v2484_v45, 7 }
 0x11a   : > { %2230 = vmatmul.mubr.bf16.gmra.mrb[4].mxu1 %v2768_v2 }
 0x11b   : > { %2442 = vmatmul.mubr.bf16.gmra.mrb[4].mxu0 %v2776_v3 }
 0x1e5   : > { %v2221_v4 = vpop.f32.mrb[0].mxu1 }
 0x1e6   : > { %v2433_v56 = vpop.f32.mrb[0].mxu0  ;;  %v2223_v60 = vpop.f32.mrb[1].mxu1 }
 0x1e7   : > { %v3039_v59 = vadd.f32 %v2433_v56, %v2221_v4  ;;  %v2435_v61 = vpop.f32.mrb[1].mxu0  ;;  %v2225_v6 = vpop.f32.mrb[2].mxu1 }
 0x1e8   : > { %v3040_v5 = vadd.f32 %v2435_v61, %v2223_v60  ;;  %v2437_v7 = vpop.f32.mrb[2].mxu0  ;;  %v2227_v9 = vpop.f32.mrb[3].mxu1 }
 0x1e9   : > { %2452 = vst [vmem:[%s3926_s30] sm:$0xff] %v3039_v59  ;;  %v3041_v8 = vadd.f32 %v2437_v7, %v2225_v6  ;;  %v2439_v10 = vpop.f32.mrb[3].mxu0  ;;  %v2501_v12 = vmul.f32 %v3039_v59, %v3039_v59  ;;  %v2486_v6 = vsub.s32 %v2483_v0, %v2485_v1 }
 0x1ea   : > { %2453 = vst [vmem:[%s3926_s30 + $0x8] sm:$0xff] %v3040_v5  ;;  %v3042_v11 = vadd.f32 %v2439_v10, %v2227_v9  ;;  %v2502_v15 = vmul.f32 %v3040_v5, %v3040_v5 }
 0x1eb   : > { %2454 = vst [vmem:[%s3926_s30 + $0x10] sm:$0xff] %v3041_v8  ;;  %v2460_v13 = vadd.f32 %v3041_v8, %v3039_v59  ;;  %v2503_v14 = vmul.f32 %v3041_v8, %v3041_v8 }
 0x1ec   : > { %2455 = vst [vmem:[%s3926_s30 + $0x18] sm:$0xff] %v3042_v11  ;;  %v2469_v16 = vadd.f32 %v3042_v11, %v3040_v5  ;;  %v2504_v17 = vmul.f32 %v3042_v11, %v3042_v11 }
 0x1ed   : > { %v2509_v18 = vadd.f32 %v2503_v14, %v2501_v12  ;;  %v2231_v20 = vpop.f32.mrb[4].mxu1 }
 0x1ee   : > { %v2518_v19 = vadd.f32 %v2504_v17, %v2502_v15  ;;  %v2443_v21 = vpop.f32.mrb[4].mxu0  ;;  %v2233_v23 = vpop.f32.mrb[5].mxu1 }
 0x1ef   : > { %v3043_v22 = vadd.f32 %v2443_v21, %v2231_v20  ;;  %v2445_v24 = vpop.f32.mrb[5].mxu0  ;;  %v2235_v26 = vpop.f32.mrb[6].mxu1 }
 0x1f0   : > { %v3044_v25 = vadd.f32 %v2445_v24, %v2233_v23  ;;  %v2447_v27 = vpop.f32.mrb[6].mxu0  ;;  %v2237_v31 = vpop.f32.mrb[7].mxu1 }
 0x1f1   : > { %2456 = vst [vmem:[%s3926_s30 + $0x20] sm:$0xff] %v3043_v22  ;;  %v2461_v28 = vadd.f32 %v3043_v22, %v2460_v13  ;;  %v2505_v29 = vmul.f32 %v3043_v22, %v3043_v22  ;;  %v3045_v30 = vadd.f32 %v2447_v27, %v2235_v26  ;;  %v2449_v32 = vpop.f32.mrb[7].mxu0 }
 0x1f2   : > { %2457 = vst [vmem:[%s3926_s30 + $0x28] sm:$0xff] %v3044_v25  ;;  %v2470_v33 = vadd.f32 %v3044_v25, %v2469_v16  ;;  %v2506_v34 = vmul.f32 %v3044_v25, %v3044_v25  ;;  %v3046_v35 = vadd.f32 %v2449_v32, %v2237_v31 }
 0x1f3   : > { %v2510_v36 = vadd.f32 %v2509_v18, %v2505_v29  ;;  %2458 = vst [vmem:[%s3926_s30 + $0x30] sm:$0xff] %v3045_v30  ;;  %v2462_v37 = vadd.f32 %v3045_v30, %v2461_v28  ;;  %v2507_v38 = vmul.f32 %v3045_v30, %v3045_v30 }
 0x1f4   : > { %v2519_v39 = vadd.f32 %v2518_v19, %v2506_v34  ;;  %2459 = vst [vmem:[%s3926_s30 + $0x38] sm:$0xff] %v3046_v35  ;;  %v2471_v40 = vadd.f32 %v3046_v35, %v2470_v33  ;;  %v2508_v41 = vmul.f32 %v3046_v35, %v3046_v35 }
 0x1f5   : > { %v2463_v43 = vrot.slane %v2462_v37, 4  ;;  %v2511_v44 = vadd.f32 %v2510_v36, %v2507_v38 }
 0x1f6   : > { %v2472_v48 = vrot.slane %v2471_v40, 4  ;;  %v2520_v49 = vadd.f32 %v2519_v39, %v2508_v41 }
 0x1f7   : > { %v2464_v50 = vadd.f32 %v2463_v43, %v2462_v37  ;;  %v2512_v51 = vrot.slane %v2511_v44, 4 }
 0x1f8   : > { %v2473_v52 = vadd.f32 %v2472_v48, %v2471_v40  ;;  %v2521_v46 = vrot.slane %v2520_v49, 4 }
 0x1f9   : > { %v2465_v47 = vrot.slane %v2464_v50, 2  ;;  %v2513_v54 = vadd.f32 %v2512_v51, %v2511_v44 }
 0x1fa   : > { %v2474_v55 = vrot.slane %v2473_v52, 2  ;;  %v2522_v57 = vadd.f32 %v2521_v46, %v2520_v49 }
 0x1fb   : > { %v2466_v58 = vadd.f32 %v2465_v47, %v2464_v50  ;;  %v2514_v62 = vrot.slane %v2513_v54, 2 }
 0x1fc   : > { %v2475_v63 = vadd.f32 %v2474_v55, %v2473_v52  ;;  %v2523_v2 = vrot.slane %v2522_v57, 2 }
 0x1fd   : > { %v2467_v3 = vrot.slane %v2466_v58, 1  ;;  %v2515_v4 = vadd.f32 %v2514_v62, %v2513_v54 }
 0x1fe   : > { %v2476_v56 = vrot.slane %v2475_v63, 1  ;;  %v2524_v59 = vadd.f32 %v2523_v2, %v2522_v57 }
 0x1ff   : > { %v2468_v60 = vadd.f32 %v2467_v3, %v2466_v58  ;;  %v2516_v61 = vrot.slane %v2515_v4, 1 }
 0x200   : > { %v2477_v5 = vadd.f32 %v2476_v56, %v2475_v63  ;;  %v2525_v7 = vrot.slane %v2524_v59, 1 }
 0x201   : > { %v2517_v8 = vadd.f32 %v2516_v61, %v2515_v4 }
 0x202   : > { %v2480_v9 = vcombine.low %v2468_v60, %v2477_v5  ;;  %v2526_v10 = vadd.f32 %v2525_v7, %v2524_v59 }
 0x204   : > { %v2487_v11 = vrot.slane %v2480_v9, %v2486_v6  ;;  %v2529_v12 = vcombine.low %v2517_v8, %v2526_v10 }
 0x206   : > { %v2494_v13 = vrot.slane %v2487_v11, %v2486_v6  ;;  %v2536_v14 = vrot.slane %v2529_v12, %v2486_v6 }
 0x208   : > { %2500 = vst.msk [vmem:[%s289_s8] sm:$0x3] %vm2498_vm0, %v2494_v13  ;;  %v2543_v15 = vrot.slane %v2536_v14, %v2486_v6 }
 0x20a   : > { %2545 = vst.msk [vmem:[%s298_s11] sm:$0x3] %vm2498_vm0, %v2543_v15 }
 0x20b PF: > { %s15_s17 = sadd.s32 1, %s3526_s17   ;;  %s3957_s15 = smov %s3522_s16 }
 0x20c   : > { %p12_p5 = scmp.ge.s32.totalorder %s15_s17, 6   ;;  %s3958_s16 = smov %s3960_s18 }
 0x20e   :  { %14 = sbr.rel (!%p12_p5) target bundleno = 2 (0x2), region = 85 }

// kernel: generator_forward.7
= control target key start
LH: loop header
LB: loop body
LE: loop exit
PB: predicated region body
PF: predicated region fallthrough
CT: control target
= control target key end

     0   :  { %s2345_s15 = smov 0   ;;  %s2347_s16 = smov 0   ;;  %s2595_s0 = inlined_call_operand.vmem [shape: bf16[4,128,1024], index: 0, kind: input, shape index: {}]   ;;  %s2596_s1 = inlined_call_operand.vmem [shape: bf16[4,1024,128], index: 1, kind: input, shape index: {}]   ;;  %s2597_s2 = inlined_call_operand.vmem [shape: f32[4,128,128], index: 2, kind: output, shape index: {0}]   ;;  %s2598_s3 = inlined_call_operand.vmem [shape: f32[4,1,128], index: 3, kind: output, shape index: {1}]   ;;  %s2599_s4 = inlined_call_operand.vmem [shape: f32[4,1,128], index: 4, kind: output, shape index: {2}]  }
   0x1   :  { %s2349_s17 = smov 0  }
   0x2 LB: > { %s27_s18 = sadd.s32 1, %s2314_s16  ;;  %p1812_p0 = scmp.ge.s32.totalorder %s2318_s17, 1  ;;  %s2318_s17 = sphi %s2349_s17, %s15_s17   ;;  %s2314_s16 = sphi %s2347_s16, %s2601_s16   ;;  %s2310_s15 = sphi %s2345_s15, %s2600_s15  }
   0x3   : > { %p29_p1 = scmp.ge.s32.totalorder %s27_s18, 4  ;;  %p200_p2 = scmp.lt.s32.totalorder %s2318_s17, 5 }
   0x5   : > { %s2603_s18 = smov (%p29_p1, %s27_s18), 0  ;;  %p201_p3 = pnand %p1812_p0, %p200_p2 }
   0x6   : > { %p249_p4 = scmp.lt.s32.totalorder (!%p201_p3), %s2310_s15, 3 }
   0x7   : > { %204 = sbr.rel (%p201_p3) target bundleno = 409 (0x199), region = 28 }
   0xe   : > { %s2605_s15 = smov (!%p249_p4, %s2310_s15), 3 }
   0xf   : > { %s1949_s19 = sshll.u32 %s2605_s15, 9  ;;  %s1951_s26 = sshll.u32 %s2605_s15, 7 }
  0x10   : > { %s2371_s22 = scalar_lea.vmem %s2596_s1, %s1949_s19  ;;  %s2408_s25 = scalar_lea.vmem %s2595_s0, %s1949_s19 }
  0x11   : > { %v2232_v0 = vld [vmem:[%s2371_s22 + $0x40] sm:$0xff]   ;;  %v2236_v4 = vld [vmem:[%s2371_s22 + $0x48] sm:$0xff]   ;;  %v2240_v8 = vld [vmem:[%s2371_s22 + $0x50] sm:$0xff]   ;;  %s2545_s29 = scalar_lea.vmem %s2597_s2, %s1951_s26  ;;  %s275_s6 = scalar_lea.vmem %s2598_s3, %s2605_s15 }
  0x12   : > { %v2233_v1 = vld [vmem:[%s2371_s22 + $0xc0] sm:$0xff]   ;;  %1952 = vmatprep.subr.bf16.mxu0 %v2232_v0  ;;  %v2237_v5 = vld [vmem:[%s2371_s22 + $0xc8] sm:$0xff]   ;;  %v2241_v9 = vld [vmem:[%s2371_s22 + $0xd0] sm:$0xff]   ;;  %s281_s9 = scalar_lea.vmem %s2599_s4, %s2605_s15 }
  0x13   : > { %v2234_v2 = vld [vmem:[%s2371_s22] sm:$0xff]   ;;  %2016 = vmatprep.subr.bf16.mxu1 %v2233_v1  ;;  %v2238_v6 = vld [vmem:[%s2371_s22 + $0x8] sm:$0xff]   ;;  %v2242_v10 = vld [vmem:[%s2371_s22 + $0x10] sm:$0xff]  }
  0x14   : > { %v2235_v3 = vld [vmem:[%s2371_s22 + $0x80] sm:$0xff]   ;;  %1953 = vmatpush3.bf16.msra.mxu0 %v2234_v2  ;;  %v2239_v7 = vld [vmem:[%s2371_s22 + $0x88] sm:$0xff]   ;;  %v2243_v11 = vld [vmem:[%s2371_s22 + $0x90] sm:$0xff]  }
  0x15   : > { %2017 = vmatpush3.bf16.msra.mxu1 %v2235_v3  ;;  %1954 = vmatprep.subr.bf16.mxu0 %v2236_v4  ;;  %v2244_v12 = vld [vmem:[%s2371_s22 + $0x58] sm:$0xff]   ;;  %v2248_v16 = vld [vmem:[%s2371_s22 + $0x60] sm:$0xff]   ;;  %v2252_v20 = vld [vmem:[%s2371_s22 + $0x68] sm:$0xff]  }
  0x16   : > { %2018 = vmatprep.subr.bf16.mxu1 %v2237_v5  ;;  %v2245_v13 = vld [vmem:[%s2371_s22 + $0xd8] sm:$0xff]   ;;  %v2249_v17 = vld [vmem:[%s2371_s22 + $0xe0] sm:$0xff]   ;;  %v2253_v21 = vld [vmem:[%s2371_s22 + $0xe8] sm:$0xff]  }
  0x17   : > { %v2246_v14 = vld [vmem:[%s2371_s22 + $0x18] sm:$0xff]   ;;  %v2250_v18 = vld [vmem:[%s2371_s22 + $0x20] sm:$0xff]   ;;  %v2254_v22 = vld [vmem:[%s2371_s22 + $0x28] sm:$0xff]  }
  0x18   : > { %1955 = vmatpush3.bf16.msra.mxu0 %v2238_v6  ;;  %v2247_v15 = vld [vmem:[%s2371_s22 + $0x98] sm:$0xff]   ;;  %v2251_v19 = vld [vmem:[%s2371_s22 + $0xa0] sm:$0xff]   ;;  %v2255_v23 = vld [vmem:[%s2371_s22 + $0xa8] sm:$0xff]  }
  0x19   : > { %2019 = vmatpush3.bf16.msra.mxu1 %v2239_v7  ;;  %1956 = vmatprep.subr.bf16.mxu0 %v2240_v8  ;;  %v2256_v24 = vld [vmem:[%s2371_s22 + $0x70] sm:$0xff]   ;;  %v2260_v28 = vld [vmem:[%s2371_s22 + $0x78] sm:$0xff]   ;;  %v283_v32 = vld [vmem:[%s2408_s25] sm:$0xff] }
  0x1a   : > { %2020 = vmatprep.subr.bf16.mxu1 %v2241_v9  ;;  %v2257_v25 = vld [vmem:[%s2371_s22 + $0xf0] sm:$0xff]   ;;  %v2261_v29 = vld [vmem:[%s2371_s22 + $0xf8] sm:$0xff]   ;;  %v287_v33 = vld [vmem:[%s2408_s25 + $0x20] sm:$0xff] }
  0x1b   : > { %v2258_v26 = vld [vmem:[%s2371_s22 + $0x30] sm:$0xff]   ;;  %v2262_v30 = vld [vmem:[%s2371_s22 + $0x38] sm:$0xff]   ;;  %v284_v34 = vld [vmem:[%s2408_s25 + $0x8] sm:$0xff]  ;;  %v1819_v35 = vcombine.low %v283_v32, %v287_v33  ;;  %v1820_v36 = vcombine.high %v283_v32, %v287_v33 }
  0x1c   : > { %1957 = vmatpush3.bf16.msra.mxu0 %v2242_v10  ;;  %v2259_v27 = vld [vmem:[%s2371_s22 + $0xb0] sm:$0xff]   ;;  %v2263_v31 = vld [vmem:[%s2371_s22 + $0xb8] sm:$0xff]   ;;  %v288_v37 = vld [vmem:[%s2408_s25 + $0x28] sm:$0xff] }
  0x1d   : > { %2021 = vmatpush3.bf16.msra.mxu1 %v2243_v11  ;;  %1958 = vmatprep.subr.bf16.mxu0 %v2244_v12  ;;  %v1821_v38 = vcombine.low %v284_v34, %v288_v37  ;;  %v1822_v39 = vcombine.high %v284_v34, %v288_v37  ;;  %v2264_v40 = vld [vmem:[%s2371_s22 + $0x140] sm:$0xff]   ;;  %v292_v47 = vld [vmem:[%s2408_s25 + $0x48] sm:$0xff]  ;;  %v2272_v62 = vld [vmem:[%s2371_s22 + $0x150] sm:$0xff]  }
  0x1e   : > { %2022 = vmatprep.subr.bf16.mxu1 %v2245_v13  ;;  %1211 = vmatprep.mubr.bf16.mxu0 %v1820_v36  ;;  %v2265_v41 = vld [vmem:[%s2371_s22 + $0x100] sm:$0xff]   ;;  %v296_v48 = vld [vmem:[%s2408_s25 + $0x68] sm:$0xff]  ;;  %v2273_v63 = vld [vmem:[%s2371_s22 + $0x110] sm:$0xff]  }
  0x1f   : > { %1308 = vmatprep.mubr.bf16.mxu1 %v1822_v39  ;;  %v2266_v42 = vld [vmem:[%s2371_s22 + $0x1c0] sm:$0xff]   ;;  %v1830_v49 = vcombine.high %v292_v47, %v296_v48  ;;  %v2268_v50 = vld [vmem:[%s2371_s22 + $0x148] sm:$0xff]   ;;  %v1829_v53 = vcombine.low %v292_v47, %v296_v48  ;;  %v2274_v0 = vld [vmem:[%s2371_s22 + $0x1d0] sm:$0xff]  }
  0x20   : > { %1959 = vmatpush3.bf16.msra.mxu0 %v2246_v14  ;;  %v2267_v43 = vld [vmem:[%s2371_s22 + $0x180] sm:$0xff]   ;;  %v2269_v52 = vld [vmem:[%s2371_s22 + $0x108] sm:$0xff]   ;;  %v2275_v1 = vld [vmem:[%s2371_s22 + $0x190] sm:$0xff]  }
  0x21   : > { %2023 = vmatpush3.bf16.msra.mxu1 %v2247_v15  ;;  %1960 = vmatprep.subr.bf16.mxu0 %v2248_v16  ;;  %v291_v44 = vld [vmem:[%s2408_s25 + $0x40] sm:$0xff]  ;;  %v2270_v54 = vld [vmem:[%s2371_s22 + $0x1c8] sm:$0xff]   ;;  %v2276_v10 = vld [vmem:[%s2371_s22 + $0x158] sm:$0xff]  }
  0x22   : > { %2024 = vmatprep.subr.bf16.mxu1 %v2249_v17  ;;  %v295_v45 = vld [vmem:[%s2408_s25 + $0x60] sm:$0xff]  ;;  %v2271_v55 = vld [vmem:[%s2371_s22 + $0x188] sm:$0xff]   ;;  %v2277_v11 = vld [vmem:[%s2371_s22 + $0x118] sm:$0xff]  }
  0x23   : > { %v1828_v46 = vcombine.high %v291_v44, %v295_v45  ;;  %v1827_v51 = vcombine.low %v291_v44, %v295_v45  ;;  %v299_v56 = vld [vmem:[%s2408_s25 + $0x80] sm:$0xff]  ;;  %v300_v58 = vld [vmem:[%s2408_s25 + $0x88] sm:$0xff]  ;;  %v2278_v12 = vld [vmem:[%s2371_s22 + $0x1d8] sm:$0xff]  }
  0x24   : > { %1961 = vmatpush3.bf16.msra.mxu0 %v2250_v18  ;;  %v303_v57 = vld [vmem:[%s2408_s25 + $0xa0] sm:$0xff]  ;;  %v304_v59 = vld [vmem:[%s2408_s25 + $0xa8] sm:$0xff]  ;;  %v2279_v13 = vld [vmem:[%s2371_s22 + $0x198] sm:$0xff]  }
  0x25   : > { %2025 = vmatpush3.bf16.msra.mxu1 %v2251_v19  ;;  %1962 = vmatprep.subr.bf16.mxu0 %v2252_v20  ;;  %v1836_v60 = vcombine.high %v299_v56, %v303_v57  ;;  %v1838_v61 = vcombine.high %v300_v58, %v304_v59  ;;  %v1835_v2 = vcombine.low %v299_v56, %v303_v57  ;;  %v307_v3 = vld [vmem:[%s2408_s25 + $0xc0] sm:$0xff]  ;;  %v308_v5 = vld [vmem:[%s2408_s25 + $0xc8] sm:$0xff]  ;;  %v2289_v39 = vld [vmem:[%s2371_s22 + $0x130] sm:$0xff]  }
  0x26   : > { %2026 = vmatprep.subr.bf16.mxu1 %v2253_v21  ;;  %v311_v4 = vld [vmem:[%s2408_s25 + $0xe0] sm:$0xff]  ;;  %v1837_v6 = vcombine.low %v300_v58, %v304_v59  ;;  %v312_v8 = vld [vmem:[%s2408_s25 + $0xe8] sm:$0xff]  ;;  %v2293_v48 = vld [vmem:[%s2371_s22 + $0x138] sm:$0xff]  }
  0x27   : > { %v1844_v7 = vcombine.high %v307_v3, %v311_v4  ;;  %v1846_v9 = vcombine.high %v308_v5, %v312_v8  ;;  %v315_v14 = vld [vmem:[%s2408_s25 + $0x100] sm:$0xff]  ;;  %v316_v16 = vld [vmem:[%s2408_s25 + $0x108] sm:$0xff]  ;;  %v1843_v19 = vcombine.low %v307_v3, %v311_v4  ;;  %v1845_v21 = vcombine.low %v308_v5, %v312_v8  ;;  %v294_v8 = vld [vmem:[%s2408_s25 + $0x58] sm:$0xff] }
  0x28   : > { %1963 = vmatpush3.bf16.msra.mxu0 %v2254_v22  ;;  %v319_v15 = vld [vmem:[%s2408_s25 + $0x120] sm:$0xff]  ;;  %v320_v17 = vld [vmem:[%s2408_s25 + $0x128] sm:$0xff] }
  0x29   : > { %2027 = vmatpush3.bf16.msra.mxu1 %v2255_v23  ;;  %1964 = vmatprep.subr.bf16.mxu0 %v2256_v24  ;;  %v2280_v18 = vld [vmem:[%s2371_s22 + $0x160] sm:$0xff]   ;;  %v1852_v22 = vcombine.high %v315_v14, %v319_v15  ;;  %v1854_v24 = vcombine.high %v316_v16, %v320_v17  ;;  %v2286_v32 = vld [vmem:[%s2371_s22 + $0x1e8] sm:$0xff]   ;;  %v1851_v34 = vcombine.low %v315_v14, %v319_v15  ;;  %v301_v14 = vld [vmem:[%s2408_s25 + $0x90] sm:$0xff] }
  0x2a   : > { %2028 = vmatprep.subr.bf16.mxu1 %v2257_v25  ;;  %v2281_v20 = vld [vmem:[%s2371_s22 + $0x120] sm:$0xff]   ;;  %v2287_v33 = vld [vmem:[%s2371_s22 + $0x1a8] sm:$0xff]   ;;  %v305_v15 = vld [vmem:[%s2408_s25 + $0xb0] sm:$0xff] }
  0x2b   : > { %v2282_v23 = vld [vmem:[%s2371_s22 + $0x1e0] sm:$0xff]   ;;  %v332_v44 = vld [vmem:[%s2408_s25 + $0x188] sm:$0xff] }
  0x2c   : > { %1965 = vmatpush3.bf16.msra.mxu0 %v2258_v26  ;;  %v2283_v25 = vld [vmem:[%s2371_s22 + $0x1a0] sm:$0xff]   ;;  %v336_v45 = vld [vmem:[%s2408_s25 + $0x1a8] sm:$0xff] }
  0x2d   : > { %2029 = vmatpush3.bf16.msra.mxu1 %v2259_v27  ;;  %1966 = vmatprep.subr.bf16.mxu0 %v2260_v28  ;;  %v323_v26 = vld [vmem:[%s2408_s25 + $0x140] sm:$0xff]  ;;  %v2284_v28 = vld [vmem:[%s2371_s22 + $0x168] sm:$0xff]   ;;  %v1869_v59 = vcombine.low %v332_v44, %v336_v45 }
  0x2e   : > { %2030 = vmatprep.subr.bf16.mxu1 %v2261_v29  ;;  %v327_v27 = vld [vmem:[%s2408_s25 + $0x160] sm:$0xff]  ;;  %v324_v29 = vld [vmem:[%s2408_s25 + $0x148] sm:$0xff] }
  0x2f   : > { %v1860_v36 = vcombine.high %v323_v26, %v327_v27  ;;  %v1859_v47 = vcombine.low %v323_v26, %v327_v27  ;;  %v340_v56 = vld [vmem:[%s2408_s25 + $0x1c8] sm:$0xff]  ;;  %v1839_v26 = vcombine.low %v301_v14, %v305_v15 }
  0x30   : > { %1967 = vmatpush3.bf16.msra.mxu0 %v2262_v30  ;;  %v328_v30 = vld [vmem:[%s2408_s25 + $0x168] sm:$0xff] }
  0x31   : > { %2031 = vmatpush3.bf16.msra.mxu1 %v2263_v31  ;;  %2080 = vmatprep.subr.bf16.mxu0 %v2264_v40  ;;  %v2285_v31 = vld [vmem:[%s2371_s22 + $0x128] sm:$0xff]   ;;  %v1862_v37 = vcombine.high %v324_v29, %v328_v30  ;;  %v2290_v40 = vld [vmem:[%s2371_s22 + $0x1f0] sm:$0xff]  }
  0x32   : > { %2144 = vmatprep.subr.bf16.mxu1 %v2266_v42  ;;  %v335_v42 = vld [vmem:[%s2408_s25 + $0x1a0] sm:$0xff]  ;;  %v344_v57 = vld [vmem:[%s2408_s25 + $0x1e8] sm:$0xff] }
  0x33   : > { %1212 = vmatmul.mubr.bf16.vlgmr.msra.gmra.mrb[0].mxu0 %v1819_v35  ;;  %v1853_v35 = vcombine.low %v316_v16, %v320_v17  ;;  %v1877_v3 = vcombine.low %v340_v56, %v344_v57  ;;  %v302_v16 = vld [vmem:[%s2408_s25 + $0x98] sm:$0xff] }
  0x34   : > { %1309 = vmatmul.mubr.bf16.vlgmr.msra.gmra.mrb[0].mxu1 %v1821_v38  ;;  %2081 = vmatpush3.bf16.msra.mxu0 %v2265_v41  ;;  %v2288_v38 = vld [vmem:[%s2371_s22 + $0x170] sm:$0xff]   ;;  %v331_v41 = vld [vmem:[%s2408_s25 + $0x180] sm:$0xff]  ;;  %v306_v17 = vld [vmem:[%s2408_s25 + $0xb8] sm:$0xff] }
  0x35   : > { %2145 = vmatpush3.bf16.msra.mxu1 %v2267_v43  ;;  %1219 = vmatprep.mubr.bf16.mxu0 %v1828_v46  ;;  %v2291_v43 = vld [vmem:[%s2371_s22 + $0x1b0] sm:$0xff]   ;;  %v2292_v46 = vld [vmem:[%s2371_s22 + $0x178] sm:$0xff]   ;;  %v1867_v58 = vcombine.low %v331_v41, %v335_v42  ;;  %v1841_v27 = vcombine.low %v302_v16, %v306_v17 }
  0x36   : > { %1316 = vmatprep.mubr.bf16.mxu1 %v1830_v49  ;;  %2082 = vmatprep.subr.bf16.mxu0 %v2268_v50  ;;  %v1861_v49 = vcombine.low %v324_v29, %v328_v30  ;;  %v1868_v50 = vcombine.high %v331_v41, %v335_v42  ;;  %v317_v30 = vld [vmem:[%s2408_s25 + $0x110] sm:$0xff]  ;;  %v330_v41 = vld [vmem:[%s2408_s25 + $0x178] sm:$0xff] }
  0x37   : > { %2146 = vmatprep.subr.bf16.mxu1 %v2270_v54  ;;  %v339_v54 = vld [vmem:[%s2408_s25 + $0x1c0] sm:$0xff] }
  0x38   : > { %2083 = vmatpush3.bf16.msra.mxu0 %v2269_v52  ;;  %v1870_v52 = vcombine.high %v332_v44, %v336_v45 }
  0x39   : > { %2147 = vmatpush3.bf16.msra.mxu1 %v2271_v55  ;;  %2084 = vmatprep.subr.bf16.mxu0 %v2272_v62  ;;  %v343_v55 = vld [vmem:[%s2408_s25 + $0x1e0] sm:$0xff]  ;;  %v285_v62 = vld [vmem:[%s2408_s25 + $0x10] sm:$0xff] }
  0x3a   : > { %2148 = vmatprep.subr.bf16.mxu1 %v2274_v0  ;;  %v286_v0 = vld [vmem:[%s2408_s25 + $0x18] sm:$0xff] }
  0x3b   : > { %1220 = vmatmul.mubr.bf16.gmra.mrb[4].mxu0 %v1827_v51  ;;  %v2294_v51 = vld [vmem:[%s2371_s22 + $0x1f8] sm:$0xff]  }
  0x3c   : > { %1317 = vmatmul.mubr.bf16.gmra.mrb[4].mxu1 %v1829_v53  ;;  %1227 = vmatprep.mubr.bf16.mxu0 %v1836_v60  ;;  %v2295_v53 = vld [vmem:[%s2371_s22 + $0x1b8] sm:$0xff]   ;;  %v1876_v60 = vcombine.high %v339_v54, %v343_v55 }
  0x3d   : > { %1324 = vmatprep.mubr.bf16.mxu1 %v1838_v61  ;;  %2085 = vmatpush3.bf16.msra.mxu0 %v2273_v63  ;;  %v1878_v61 = vcombine.high %v340_v56, %v344_v57  ;;  %v289_v63 = vld [vmem:[%s2408_s25 + $0x30] sm:$0xff]  ;;  %v342_v56 = vld [vmem:[%s2408_s25 + $0x1d8] sm:$0xff] }
  0x3e   : > { %2149 = vmatpush3.bf16.msra.mxu1 %v2275_v1  ;;  %2086 = vmatprep.subr.bf16.mxu0 %v2276_v10  ;;  %v290_v1 = vld [vmem:[%s2408_s25 + $0x38] sm:$0xff]  ;;  %v1824_v4 = vcombine.high %v285_v62, %v289_v63  ;;  %v1823_v10 = vcombine.low %v285_v62, %v289_v63 }
  0x3f   : > { %2150 = vmatprep.subr.bf16.mxu1 %v2278_v12  ;;  %v1826_v5 = vcombine.high %v286_v0, %v290_v1  ;;  %v346_v57 = vld [vmem:[%s2408_s25 + $0x1f8] sm:$0xff] }
  0x40   : > { %v1881_v63 = vcombine.low %v342_v56, %v346_v57 }
  0x41   : > { %2087 = vmatpush3.bf16.msra.mxu0 %v2277_v11  ;;  %v1825_v11 = vcombine.low %v286_v0, %v290_v1 }
  0x42   : > { %2151 = vmatpush3.bf16.msra.mxu1 %v2279_v13  ;;  %2088 = vmatprep.subr.bf16.mxu0 %v2280_v18 }
  0x43   : > { %1228 = vmatmul.mubr.bf16.gmra.mrb[8].mxu0 %v1835_v2  ;;  %2152 = vmatprep.subr.bf16.mxu1 %v2282_v23  ;;  %v1875_v2 = vcombine.low %v339_v54, %v343_v55  ;;  %v313_v23 = vld [vmem:[%s2408_s25 + $0xf0] sm:$0xff] }
  0x44   : > { %1325 = vmatmul.mubr.bf16.gmra.mrb[8].mxu1 %v1837_v6  ;;  %1235 = vmatprep.mubr.bf16.mxu0 %v1844_v7  ;;  %v293_v6 = vld [vmem:[%s2408_s25 + $0x50] sm:$0xff] }
  0x45   : > { %1332 = vmatprep.mubr.bf16.mxu1 %v1846_v9  ;;  %2089 = vmatpush3.bf16.msra.mxu0 %v2281_v20  ;;  %v297_v7 = vld [vmem:[%s2408_s25 + $0x70] sm:$0xff]  ;;  %v298_v9 = vld [vmem:[%s2408_s25 + $0x78] sm:$0xff]  ;;  %v1840_v20 = vcombine.high %v301_v14, %v305_v15 }
  0x46   : > { %2153 = vmatpush3.bf16.msra.mxu1 %v2283_v25  ;;  %2090 = vmatprep.subr.bf16.mxu0 %v2284_v28  ;;  %v1832_v12 = vcombine.high %v293_v6, %v297_v7  ;;  %v1834_v13 = vcombine.high %v294_v8, %v298_v9  ;;  %v1831_v18 = vcombine.low %v293_v6, %v297_v7  ;;  %v314_v25 = vld [vmem:[%s2408_s25 + $0xf8] sm:$0xff]  ;;  %v341_v54 = vld [vmem:[%s2408_s25 + $0x1d0] sm:$0xff] }
  0x47   : > { %2154 = vmatprep.subr.bf16.mxu1 %v2286_v32  ;;  %v318_v32 = vld [vmem:[%s2408_s25 + $0x118] sm:$0xff]  ;;  %v345_v55 = vld [vmem:[%s2408_s25 + $0x1f0] sm:$0xff] }
  0x48   : > { %v1879_v62 = vcombine.low %v341_v54, %v345_v55 }
  0x49   : > { %2091 = vmatpush3.bf16.msra.mxu0 %v2285_v31  ;;  %v321_v31 = vld [vmem:[%s2408_s25 + $0x130] sm:$0xff] }
  0x4a   : > { %2155 = vmatpush3.bf16.msra.mxu1 %v2287_v33  ;;  %2092 = vmatprep.subr.bf16.mxu0 %v2288_v38  ;;  %v322_v33 = vld [vmem:[%s2408_s25 + $0x138] sm:$0xff]  ;;  %v325_v38 = vld [vmem:[%s2408_s25 + $0x150] sm:$0xff]  ;;  %v1855_v42 = vcombine.low %v317_v30, %v321_v31 }
  0x4b   : > { %1236 = vmatmul.mubr.bf16.gmra.mrb[12].mxu0 %v1843_v19  ;;  %2156 = vmatprep.subr.bf16.mxu1 %v2290_v40  ;;  %v1833_v19 = vcombine.low %v294_v8, %v298_v9  ;;  %v326_v40 = vld [vmem:[%s2408_s25 + $0x158] sm:$0xff] }
  0x4c   : > { %1333 = vmatmul.mubr.bf16.gmra.mrb[12].mxu1 %v1845_v21  ;;  %1243 = vmatprep.mubr.bf16.mxu0 %v1852_v22  ;;  %v1842_v21 = vcombine.high %v302_v16, %v306_v17  ;;  %v309_v22 = vld [vmem:[%s2408_s25 + $0xd0] sm:$0xff]  ;;  %v1866_v45 = vcombine.high %v326_v40, %v330_v41 }
  0x4d   : > { %1340 = vmatprep.mubr.bf16.mxu1 %v1854_v24  ;;  %2093 = vmatpush3.bf16.msra.mxu0 %v2289_v39  ;;  %v310_v24 = vld [vmem:[%s2408_s25 + $0xd8] sm:$0xff]  ;;  %v1848_v28 = vcombine.high %v309_v22, %v313_v23  ;;  %v329_v39 = vld [vmem:[%s2408_s25 + $0x170] sm:$0xff] }
  0x4e   : > { %2157 = vmatpush3.bf16.msra.mxu1 %v2291_v43  ;;  %2094 = vmatprep.subr.bf16.mxu0 %v2292_v46  ;;  %v1850_v29 = vcombine.high %v310_v24, %v314_v25  ;;  %v1857_v43 = vcombine.low %v318_v32, %v322_v33  ;;  %v1864_v44 = vcombine.high %v325_v38, %v329_v39  ;;  %v333_v46 = vld [vmem:[%s2408_s25 + $0x190] sm:$0xff] }
  0x4f   : > { %2158 = vmatprep.subr.bf16.mxu1 %v2294_v51  ;;  %v1865_v51 = vcombine.low %v326_v40, %v330_v41 }
  0x51   : > { %2095 = vmatpush3.bf16.msra.mxu0 %v2293_v48  ;;  %v334_v48 = vld [vmem:[%s2408_s25 + $0x198] sm:$0xff] }
  0x52   : > { %2159 = vmatpush3.bf16.msra.mxu1 %v2295_v53 }
  0x53   : > { %1244 = vmatmul.mubr.bf16.gmra.mrb[16].mxu0 %v1851_v34  ;;  %v1847_v34 = vcombine.low %v309_v22, %v313_v23 }
  0x54   : > { %1341 = vmatmul.mubr.bf16.gmra.mrb[16].mxu1 %v1853_v35  ;;  %1251 = vmatprep.mubr.bf16.mxu0 %v1860_v36  ;;  %v1849_v35 = vcombine.low %v310_v24, %v314_v25  ;;  %v1856_v36 = vcombine.high %v317_v30, %v321_v31 }
  0x55   : > { %1348 = vmatprep.mubr.bf16.mxu1 %v1862_v37  ;;  %v1858_v37 = vcombine.high %v318_v32, %v322_v33 }
  0x5b   : > { %1252 = vmatmul.mubr.bf16.gmra.mrb[20].mxu0 %v1859_v47  ;;  %v337_v47 = vld [vmem:[%s2408_s25 + $0x1b0] sm:$0xff] }
  0x5c   : > { %1349 = vmatmul.mubr.bf16.gmra.mrb[20].mxu1 %v1861_v49  ;;  %1259 = vmatprep.mubr.bf16.mxu0 %v1868_v50  ;;  %v338_v49 = vld [vmem:[%s2408_s25 + $0x1b8] sm:$0xff]  ;;  %v1863_v50 = vcombine.low %v325_v38, %v329_v39 }
  0x5d   : > { %1356 = vmatprep.mubr.bf16.mxu1 %v1870_v52  ;;  %v1872_v52 = vcombine.high %v333_v46, %v337_v47  ;;  %v1874_v53 = vcombine.high %v334_v48, %v338_v49 }
  0x63   : > { %1260 = vmatmul.mubr.bf16.gmra.mrb[24].mxu0 %v1867_v58  ;;  %v1871_v58 = vcombine.low %v333_v46, %v337_v47 }
  0x64   : > { %1357 = vmatmul.mubr.bf16.gmra.mrb[24].mxu1 %v1869_v59  ;;  %1267 = vmatprep.mubr.bf16.mxu0 %v1876_v60  ;;  %v1873_v59 = vcombine.low %v334_v48, %v338_v49  ;;  %v1880_v60 = vcombine.high %v341_v54, %v345_v55 }
  0x65   : > { %1364 = vmatprep.mubr.bf16.mxu1 %v1878_v61  ;;  %v1882_v61 = vcombine.high %v342_v56, %v346_v57 }
  0x6b   : > { %1268 = vmatmul.mubr.bf16.gmra.mrb[28].mxu0 %v1875_v2 }
  0x6c   : > { %1365 = vmatmul.mubr.bf16.gmra.mrb[28].mxu1 %v1877_v3  ;;  %1405 = vmatprep.mubr.bf16.mxu0 %v1824_v4 }
  0x6d   : > { %1502 = vmatprep.mubr.bf16.mxu1 %v1826_v5 }
  0x73   : > { %1406 = vmatmul.mubr.bf16.vlgmr.msra.gmra.mrb[32].mxu0 %v1823_v10 }
  0x74   : > { %1503 = vmatmul.mubr.bf16.vlgmr.msra.gmra.mrb[32].mxu1 %v1825_v11  ;;  %1413 = vmatprep.mubr.bf16.mxu0 %v1832_v12 }
  0x75   : > { %1510 = vmatprep.mubr.bf16.mxu1 %v1834_v13 }
  0x7b   : > { %1414 = vmatmul.mubr.bf16.gmra.mrb[36].mxu0 %v1831_v18 }
  0x7c   : > { %1511 = vmatmul.mubr.bf16.gmra.mrb[36].mxu1 %v1833_v19  ;;  %1421 = vmatprep.mubr.bf16.mxu0 %v1840_v20 }
  0x7d   : > { %1518 = vmatprep.mubr.bf16.mxu1 %v1842_v21 }
  0x83   : > { %1422 = vmatmul.mubr.bf16.gmra.mrb[40].mxu0 %v1839_v26 }
  0x84   : > { %1519 = vmatmul.mubr.bf16.gmra.mrb[40].mxu1 %v1841_v27  ;;  %1429 = vmatprep.mubr.bf16.mxu0 %v1848_v28 }
  0x85   : > { %1526 = vmatprep.mubr.bf16.mxu1 %v1850_v29 }
  0x8b   : > { %1430 = vmatmul.mubr.bf16.gmra.mrb[44].mxu0 %v1847_v34 }
  0x8c   : > { %1527 = vmatmul.mubr.bf16.gmra.mrb[44].mxu1 %v1849_v35  ;;  %1437 = vmatprep.mubr.bf16.mxu0 %v1856_v36 }
  0x8d   : > { %1534 = vmatprep.mubr.bf16.mxu1 %v1858_v37 }
  0x93   : > { %1438 = vmatmul.mubr.bf16.gmra.mrb[48].mxu0 %v1855_v42 }
  0x94   : > { %1535 = vmatmul.mubr.bf16.gmra.mrb[48].mxu1 %v1857_v43  ;;  %1445 = vmatprep.mubr.bf16.mxu0 %v1864_v44 }
  0x95   : > { %1542 = vmatprep.mubr.bf16.mxu1 %v1866_v45 }
  0x9b   : > { %1446 = vmatmul.mubr.bf16.gmra.mrb[52].mxu0 %v1863_v50 }
  0x9c   : > { %1543 = vmatmul.mubr.bf16.gmra.mrb[52].mxu1 %v1865_v51  ;;  %1453 = vmatprep.mubr.bf16.mxu0 %v1872_v52 }
  0x9d   : > { %1550 = vmatprep.mubr.bf16.mxu1 %v1874_v53 }
  0xa3   : > { %1454 = vmatmul.mubr.bf16.gmra.mrb[56].mxu0 %v1871_v58 }
  0xa4   : > { %1551 = vmatmul.mubr.bf16.gmra.mrb[56].mxu1 %v1873_v59  ;;  %1461 = vmatprep.mubr.bf16.mxu0 %v1880_v60 }
  0xa5   : > { %1558 = vmatprep.mubr.bf16.mxu1 %v1882_v61 }
  0xab   : > { %1462 = vmatmul.mubr.bf16.gmra.mrb[60].mxu0 %v1879_v62 }
  0xac   : > { %1559 = vmatmul.mubr.bf16.gmra.mrb[60].mxu1 %v1881_v63 }
 0x106   : > { %v1968_v0 = vpop.f32.mrb[0].mxu0 }
 0x107   : > { %v2032_v1 = vpop.f32.mrb[0].mxu1  ;;  %v1969_v2 = vpop.f32.mrb[1].mxu0 }
 0x108   : > { %v1970_v3 = vadd.f32 %v1969_v2, %v1968_v0  ;;  %v2033_v4 = vpop.f32.mrb[1].mxu1  ;;  %v1971_v5 = vpop.f32.mrb[2].mxu0 }
 0x109   : > { %v2034_v6 = vadd.f32 %v2033_v4, %v2032_v1  ;;  %v2035_v7 = vpop.f32.mrb[2].mxu1  ;;  %v1972_v8 = vpop.f32.mrb[3].mxu0 }
 0x10a   : > { %v1973_v9 = vadd.f32 %v1972_v8, %v1971_v5  ;;  %v2036_v10 = vpop.f32.mrb[3].mxu1 }
 0x10b   : > { %v2508_v11 = vadd.f32 %v2034_v6, %v1970_v3  ;;  %v2037_v12 = vadd.f32 %v2036_v10, %v2035_v7 }
 0x10d   : > { %v2510_v13 = vadd.f32 %v2037_v12, %v1973_v9 }
 0x10e   : > { %v1974_v14 = vpop.f32.mrb[4].mxu0 }
 0x10f   : > { %v2038_v15 = vpop.f32.mrb[4].mxu1  ;;  %v1975_v16 = vpop.f32.mrb[5].mxu0 }
 0x110   : > { %v1976_v17 = vadd.f32 %v1975_v16, %v1974_v14  ;;  %v2039_v18 = vpop.f32.mrb[5].mxu1  ;;  %v1977_v19 = vpop.f32.mrb[6].mxu0 }
 0x111   : > { %v2040_v20 = vadd.f32 %v2039_v18, %v2038_v15  ;;  %v2041_v21 = vpop.f32.mrb[6].mxu1  ;;  %v1978_v22 = vpop.f32.mrb[7].mxu0 }
 0x112   : > { %v1979_v23 = vadd.f32 %v1978_v22, %v1977_v19  ;;  %v2042_v24 = vpop.f32.mrb[7].mxu1 }
 0x113   : > { %v2512_v25 = vadd.f32 %v2040_v20, %v1976_v17  ;;  %v2043_v26 = vadd.f32 %v2042_v24, %v2041_v21 }
 0x115   : > { %v2514_v27 = vadd.f32 %v2043_v26, %v1979_v23 }
 0x116   : > { %v1980_v28 = vpop.f32.mrb[8].mxu0 }
 0x117   : > { %v2044_v29 = vpop.f32.mrb[8].mxu1  ;;  %v1981_v30 = vpop.f32.mrb[9].mxu0 }
 0x118   : > { %v1982_v31 = vadd.f32 %v1981_v30, %v1980_v28  ;;  %v2045_v32 = vpop.f32.mrb[9].mxu1  ;;  %v1983_v33 = vpop.f32.mrb[10].mxu0 }
 0x119   : > { %v2046_v34 = vadd.f32 %v2045_v32, %v2044_v29  ;;  %v2047_v35 = vpop.f32.mrb[10].mxu1  ;;  %v1984_v36 = vpop.f32.mrb[11].mxu0 }
 0x11a   : > { %v1985_v37 = vadd.f32 %v1984_v36, %v1983_v33  ;;  %v2048_v38 = vpop.f32.mrb[11].mxu1 }
 0x11b   : > { %v2516_v39 = vadd.f32 %v2046_v34, %v1982_v31  ;;  %v2049_v40 = vadd.f32 %v2048_v38, %v2047_v35 }
 0x11d   : > { %v2518_v41 = vadd.f32 %v2049_v40, %v1985_v37 }
 0x11e   : > { %v1986_v42 = vpop.f32.mrb[12].mxu0 }
 0x11f   : > { %v2050_v43 = vpop.f32.mrb[12].mxu1  ;;  %v1987_v44 = vpop.f32.mrb[13].mxu0 }
 0x120   : > { %v1988_v45 = vadd.f32 %v1987_v44, %v1986_v42  ;;  %v2051_v46 = vpop.f32.mrb[13].mxu1  ;;  %v1989_v47 = vpop.f32.mrb[14].mxu0 }
 0x121   : > { %v2052_v48 = vadd.f32 %v2051_v46, %v2050_v43  ;;  %v2053_v49 = vpop.f32.mrb[14].mxu1  ;;  %v1990_v50 = vpop.f32.mrb[15].mxu0 }
 0x122   : > { %v1991_v51 = vadd.f32 %v1990_v50, %v1989_v47  ;;  %v2054_v52 = vpop.f32.mrb[15].mxu1 }
 0x123   : > { %v2520_v53 = vadd.f32 %v2052_v48, %v1988_v45  ;;  %v2055_v54 = vadd.f32 %v2054_v52, %v2053_v49 }
 0x125   : > { %v2522_v55 = vadd.f32 %v2055_v54, %v1991_v51 }
 0x126   : > { %v1992_v56 = vpop.f32.mrb[16].mxu0 }
 0x127   : > { %v2056_v57 = vpop.f32.mrb[16].mxu1  ;;  %v1993_v58 = vpop.f32.mrb[17].mxu0 }
 0x128   : > { %v1994_v59 = vadd.f32 %v1993_v58, %v1992_v56  ;;  %v2057_v60 = vpop.f32.mrb[17].mxu1  ;;  %v1995_v61 = vpop.f32.mrb[18].mxu0 }
 0x129   : > { %v2058_v62 = vadd.f32 %v2057_v60, %v2056_v57  ;;  %v2059_v63 = vpop.f32.mrb[18].mxu1  ;;  %v1996_v0 = vpop.f32.mrb[19].mxu0 }
 0x12a   : > { %v1997_v1 = vadd.f32 %v1996_v0, %v1995_v61  ;;  %v2060_v2 = vpop.f32.mrb[19].mxu1 }
 0x12b   : > { %v2524_v3 = vadd.f32 %v2058_v62, %v1994_v59  ;;  %v2061_v4 = vadd.f32 %v2060_v2, %v2059_v63 }
 0x12d   : > { %v2526_v5 = vadd.f32 %v2061_v4, %v1997_v1 }
 0x12e   : > { %v1998_v6 = vpop.f32.mrb[20].mxu0 }
 0x12f   : > { %v2062_v7 = vpop.f32.mrb[20].mxu1  ;;  %v1999_v8 = vpop.f32.mrb[21].mxu0 }
 0x130   : > { %v2000_v9 = vadd.f32 %v1999_v8, %v1998_v6  ;;  %v2063_v10 = vpop.f32.mrb[21].mxu1  ;;  %v2001_v12 = vpop.f32.mrb[22].mxu0 }
 0x131   : > { %v2064_v14 = vadd.f32 %v2063_v10, %v2062_v7  ;;  %v2065_v15 = vpop.f32.mrb[22].mxu1  ;;  %v2002_v16 = vpop.f32.mrb[23].mxu0 }
 0x132   : > { %v2003_v17 = vadd.f32 %v2002_v16, %v2001_v12  ;;  %v2066_v18 = vpop.f32.mrb[23].mxu1 }
 0x133   : > { %v2528_v19 = vadd.f32 %v2064_v14, %v2000_v9  ;;  %v2067_v20 = vadd.f32 %v2066_v18, %v2065_v15 }
 0x135   : > { %v2530_v21 = vadd.f32 %v2067_v20, %v2003_v17 }
 0x136   : > { %v2004_v22 = vpop.f32.mrb[24].mxu0 }
 0x137   : > { %v2068_v23 = vpop.f32.mrb[24].mxu1  ;;  %v2005_v24 = vpop.f32.mrb[25].mxu0 }
 0x138   : > { %v2006_v26 = vadd.f32 %v2005_v24, %v2004_v22  ;;  %v2069_v28 = vpop.f32.mrb[25].mxu1  ;;  %v2007_v29 = vpop.f32.mrb[26].mxu0 }
 0x139   : > { %v2070_v30 = vadd.f32 %v2069_v28, %v2068_v23  ;;  %v2071_v31 = vpop.f32.mrb[26].mxu1  ;;  %v2008_v32 = vpop.f32.mrb[27].mxu0 }
 0x13a   : > { %v2009_v33 = vadd.f32 %v2008_v32, %v2007_v29  ;;  %v2072_v34 = vpop.f32.mrb[27].mxu1 }
 0x13b   : > { %v2532_v35 = vadd.f32 %v2070_v30, %v2006_v26  ;;  %v2073_v36 = vadd.f32 %v2072_v34, %v2071_v31 }
 0x13d   : > { %v2534_v37 = vadd.f32 %v2073_v36, %v2009_v33 }
 0x13e   : > { %v2010_v38 = vpop.f32.mrb[28].mxu0 }
 0x13f   : > { %v2074_v40 = vpop.f32.mrb[28].mxu1  ;;  %v2011_v42 = vpop.f32.mrb[29].mxu0 }
 0x140   : > { %v2012_v43 = vadd.f32 %v2011_v42, %v2010_v38  ;;  %v2075_v44 = vpop.f32.mrb[29].mxu1  ;;  %v2013_v45 = vpop.f32.mrb[30].mxu0 }
 0x141   : > { %v2076_v46 = vadd.f32 %v2075_v44, %v2074_v40  ;;  %v2077_v47 = vpop.f32.mrb[30].mxu1  ;;  %v2014_v48 = vpop.f32.mrb[31].mxu0 }
 0x142   : > { %v2015_v49 = vadd.f32 %v2014_v48, %v2013_v45  ;;  %v2078_v50 = vpop.f32.mrb[31].mxu1 }
 0x143   : > { %v2536_v51 = vadd.f32 %v2076_v46, %v2012_v43  ;;  %v2079_v52 = vadd.f32 %v2078_v50, %v2077_v47 }
 0x145   : > { %v2538_v54 = vadd.f32 %v2079_v52, %v2015_v49 }
 0x146   : > { %v2096_v56 = vpop.f32.mrb[32].mxu0 }
 0x147   : > { %v2160_v57 = vpop.f32.mrb[32].mxu1  ;;  %v2097_v58 = vpop.f32.mrb[33].mxu0 }
 0x148   : > { %v2098_v59 = vadd.f32 %v2097_v58, %v2096_v56  ;;  %v2161_v60 = vpop.f32.mrb[33].mxu1  ;;  %v2099_v61 = vpop.f32.mrb[34].mxu0 }
 0x149   : > { %v2162_v62 = vadd.f32 %v2161_v60, %v2160_v57  ;;  %v2163_v63 = vpop.f32.mrb[34].mxu1  ;;  %v2100_v0 = vpop.f32.mrb[35].mxu0 }
 0x14a   : > { %v1408_v1 = vadd.f32 %v2098_v59, %v2508_v11  ;;  %v2101_v2 = vadd.f32 %v2100_v0, %v2099_v61  ;;  %v2164_v4 = vpop.f32.mrb[35].mxu1 }
 0x14b   : > { %v2165_v6 = vadd.f32 %v2164_v4, %v2163_v63 }
 0x14c   : > { %v1505_v7 = vadd.f32 %v2162_v62, %v1408_v1  ;;  %v1411_v8 = vadd.f32 %v2101_v2, %v2510_v13 }
 0x14e   : > { %1567 = vst [vmem:[%s2545_s29] sm:$0xff] %v1505_v7  ;;  %v1508_v9 = vadd.f32 %v2165_v6, %v1411_v8  ;;  %v2102_v10 = vpop.f32.mrb[36].mxu0  ;;  %v1605_v15 = vmul.f32 %v1505_v7, %v1505_v7 }
 0x14f   : > { %v2166_v12 = vpop.f32.mrb[36].mxu1  ;;  %v2103_v14 = vpop.f32.mrb[37].mxu0 }
 0x150   : > { %1568 = vst [vmem:[%s2545_s29 + $0x8] sm:$0xff] %v1508_v9  ;;  %v1583_v11 = vadd.f32 %v1508_v9, %v1505_v7  ;;  %v1606_v16 = vmul.f32 %v1508_v9, %v1508_v9  ;;  %v2104_v17 = vadd.f32 %v2103_v14, %v2102_v10  ;;  %v2167_v18 = vpop.f32.mrb[37].mxu1  ;;  %v2105_v20 = vpop.f32.mrb[38].mxu0 }
 0x151   : > { %v2168_v22 = vadd.f32 %v2167_v18, %v2166_v12  ;;  %v2169_v23 = vpop.f32.mrb[38].mxu1  ;;  %v2106_v24 = vpop.f32.mrb[39].mxu0 }
 0x152   : > { %v1621_v26 = vadd.f32 %v1606_v16, %v1605_v15  ;;  %v1416_v13 = vadd.f32 %v2104_v17, %v2512_v25  ;;  %v2107_v28 = vadd.f32 %v2106_v24, %v2105_v20  ;;  %v2170_v29 = vpop.f32.mrb[39].mxu1 }
 0x153   : > { %v2171_v30 = vadd.f32 %v2170_v29, %v2169_v23 }
 0x154   : > { %v1513_v31 = vadd.f32 %v2168_v22, %v1416_v13  ;;  %v1419_v32 = vadd.f32 %v2107_v28, %v2514_v27 }
 0x156   : > { %1569 = vst [vmem:[%s2545_s29 + $0x10] sm:$0xff] %v1513_v31  ;;  %v1584_v33 = vadd.f32 %v1583_v11, %v1513_v31  ;;  %v1607_v34 = vmul.f32 %v1513_v31, %v1513_v31  ;;  %v1516_v36 = vadd.f32 %v2171_v30, %v1419_v32  ;;  %v2108_v38 = vpop.f32.mrb[40].mxu0 }
 0x157   : > { %v2172_v40 = vpop.f32.mrb[40].mxu1  ;;  %v2109_v42 = vpop.f32.mrb[41].mxu0 }
 0x158   : > { %v1622_v43 = vadd.f32 %v1621_v26, %v1607_v34  ;;  %1570 = vst [vmem:[%s2545_s29 + $0x18] sm:$0xff] %v1516_v36  ;;  %v1585_v44 = vadd.f32 %v1584_v33, %v1516_v36  ;;  %v1608_v45 = vmul.f32 %v1516_v36, %v1516_v36  ;;  %v2110_v46 = vadd.f32 %v2109_v42, %v2108_v38  ;;  %v2173_v25 = vpop.f32.mrb[41].mxu1  ;;  %v2111_v47 = vpop.f32.mrb[42].mxu0 }
 0x159   : > { %v2174_v48 = vadd.f32 %v2173_v25, %v2172_v40  ;;  %v2175_v49 = vpop.f32.mrb[42].mxu1  ;;  %v2112_v50 = vpop.f32.mrb[43].mxu0 }
 0x15a   : > { %v1623_v27 = vadd.f32 %v1622_v43, %v1608_v45  ;;  %v1424_v52 = vadd.f32 %v2110_v46, %v2516_v39  ;;  %v2113_v56 = vadd.f32 %v2112_v50, %v2111_v47  ;;  %v2176_v57 = vpop.f32.mrb[43].mxu1 }
 0x15b   : > { %v2177_v58 = vadd.f32 %v2176_v57, %v2175_v49 }
 0x15c   : > { %v1521_v59 = vadd.f32 %v2174_v48, %v1424_v52  ;;  %v1427_v60 = vadd.f32 %v2113_v56, %v2518_v41 }
 0x15e   : > { %1571 = vst [vmem:[%s2545_s29 + $0x20] sm:$0xff] %v1521_v59  ;;  %v1586_v61 = vadd.f32 %v1585_v44, %v1521_v59  ;;  %v1609_v62 = vmul.f32 %v1521_v59, %v1521_v59  ;;  %v1524_v63 = vadd.f32 %v2177_v58, %v1427_v60  ;;  %v2114_v0 = vpop.f32.mrb[44].mxu0 }
 0x15f   : > { %v2178_v1 = vpop.f32.mrb[44].mxu1  ;;  %v2115_v2 = vpop.f32.mrb[45].mxu0 }
 0x160   : > { %v1624_v4 = vadd.f32 %v1623_v27, %v1609_v62  ;;  %1572 = vst [vmem:[%s2545_s29 + $0x28] sm:$0xff] %v1524_v63  ;;  %v1587_v6 = vadd.f32 %v1586_v61, %v1524_v63  ;;  %v1610_v7 = vmul.f32 %v1524_v63, %v1524_v63  ;;  %v2116_v8 = vadd.f32 %v2115_v2, %v2114_v0  ;;  %v2179_v39 = vpop.f32.mrb[45].mxu1  ;;  %v2117_v9 = vpop.f32.mrb[46].mxu0 }
 0x161   : > { %v2180_v10 = vadd.f32 %v2179_v39, %v2178_v1  ;;  %v2181_v12 = vpop.f32.mrb[46].mxu1  ;;  %v2118_v14 = vpop.f32.mrb[47].mxu0 }
 0x162   : > { %v1625_v41 = vadd.f32 %v1624_v4, %v1610_v7  ;;  %v1432_v15 = vadd.f32 %v2116_v8, %v2520_v53  ;;  %v2119_v11 = vadd.f32 %v2118_v14, %v2117_v9  ;;  %v2182_v16 = vpop.f32.mrb[47].mxu1 }
 0x163   : > { %v2183_v17 = vadd.f32 %v2182_v16, %v2181_v12 }
 0x164   : > { %v1529_v18 = vadd.f32 %v2180_v10, %v1432_v15  ;;  %v1435_v20 = vadd.f32 %v2119_v11, %v2522_v55 }
 0x166   : > { %1573 = vst [vmem:[%s2545_s29 + $0x30] sm:$0xff] %v1529_v18  ;;  %v1588_v22 = vadd.f32 %v1587_v6, %v1529_v18  ;;  %v1611_v23 = vmul.f32 %v1529_v18, %v1529_v18  ;;  %v1532_v24 = vadd.f32 %v2183_v17, %v1435_v20  ;;  %v2120_v26 = vpop.f32.mrb[48].mxu0 }
 0x167   : > { %v2184_v13 = vpop.f32.mrb[48].mxu1  ;;  %v2121_v28 = vpop.f32.mrb[49].mxu0 }
 0x168   : > { %v1626_v29 = vadd.f32 %v1625_v41, %v1611_v23  ;;  %1574 = vst [vmem:[%s2545_s29 + $0x38] sm:$0xff] %v1532_v24  ;;  %v1589_v30 = vadd.f32 %v1588_v22, %v1532_v24  ;;  %v1612_v31 = vmul.f32 %v1532_v24, %v1532_v24  ;;  %v2122_v32 = vadd.f32 %v2121_v28, %v2120_v26  ;;  %v2185_v53 = vpop.f32.mrb[49].mxu1  ;;  %v2123_v33 = vpop.f32.mrb[50].mxu0 }
 0x169   : > { %v2186_v34 = vadd.f32 %v2185_v53, %v2184_v13  ;;  %v2187_v36 = vpop.f32.mrb[50].mxu1  ;;  %v2124_v38 = vpop.f32.mrb[51].mxu0 }
 0x16a   : > { %v1627_v55 = vadd.f32 %v1626_v29, %v1612_v31  ;;  %v1440_v40 = vadd.f32 %v2122_v32, %v2524_v3  ;;  %v2125_v42 = vadd.f32 %v2124_v38, %v2123_v33  ;;  %v2188_v43 = vpop.f32.mrb[51].mxu1 }
 0x16b   : > { %v2189_v44 = vadd.f32 %v2188_v43, %v2187_v36 }
 0x16c   : > { %v1537_v45 = vadd.f32 %v2186_v34, %v1440_v40  ;;  %v1443_v46 = vadd.f32 %v2125_v42, %v2526_v5 }
 0x16e   : > { %1575 = vst [vmem:[%s2545_s29 + $0x40] sm:$0xff] %v1537_v45  ;;  %v1590_v25 = vadd.f32 %v1589_v30, %v1537_v45  ;;  %v1613_v47 = vmul.f32 %v1537_v45, %v1537_v45  ;;  %v1540_v48 = vadd.f32 %v2189_v44, %v1443_v46  ;;  %v2126_v49 = vpop.f32.mrb[52].mxu0 }
 0x16f   : > { %v2190_v50 = vpop.f32.mrb[52].mxu1  ;;  %v2127_v27 = vpop.f32.mrb[53].mxu0 }
 0x170   : > { %v1628_v52 = vadd.f32 %v1627_v55, %v1613_v47  ;;  %1576 = vst [vmem:[%s2545_s29 + $0x48] sm:$0xff] %v1540_v48  ;;  %v1591_v56 = vadd.f32 %v1590_v25, %v1540_v48  ;;  %v1614_v57 = vmul.f32 %v1540_v48, %v1540_v48  ;;  %v2128_v58 = vadd.f32 %v2127_v27, %v2126_v49  ;;  %v2191_v3 = vpop.f32.mrb[53].mxu1  ;;  %v2129_v59 = vpop.f32.mrb[54].mxu0 }
 0x171   : > { %v2192_v60 = vadd.f32 %v2191_v3, %v2190_v50  ;;  %v2193_v61 = vpop.f32.mrb[54].mxu1  ;;  %v2130_v62 = vpop.f32.mrb[55].mxu0 }
 0x172   : > { %v1629_v5 = vadd.f32 %v1628_v52, %v1614_v57  ;;  %v1448_v63 = vadd.f32 %v2128_v58, %v2528_v19  ;;  %v2131_v0 = vadd.f32 %v2130_v62, %v2129_v59  ;;  %v2194_v1 = vpop.f32.mrb[55].mxu1 }
 0x173   : > { %v2195_v2 = vadd.f32 %v2194_v1, %v2193_v61 }
 0x174   : > { %v1545_v4 = vadd.f32 %v2192_v60, %v1448_v63  ;;  %v1451_v6 = vadd.f32 %v2131_v0, %v2530_v21 }
 0x176   : > { %1577 = vst [vmem:[%s2545_s29 + $0x50] sm:$0xff] %v1545_v4  ;;  %v1592_v7 = vadd.f32 %v1591_v56, %v1545_v4  ;;  %v1615_v8 = vmul.f32 %v1545_v4, %v1545_v4  ;;  %v1548_v39 = vadd.f32 %v2195_v2, %v1451_v6  ;;  %v2132_v9 = vpop.f32.mrb[56].mxu0 }
 0x177   : > { %v2196_v10 = vpop.f32.mrb[56].mxu1  ;;  %v2133_v12 = vpop.f32.mrb[57].mxu0 }
 0x178   : > { %v1630_v14 = vadd.f32 %v1629_v5, %v1615_v8  ;;  %1578 = vst [vmem:[%s2545_s29 + $0x58] sm:$0xff] %v1548_v39  ;;  %v1593_v41 = vadd.f32 %v1592_v7, %v1548_v39  ;;  %v1616_v15 = vmul.f32 %v1548_v39, %v1548_v39  ;;  %v2134_v11 = vadd.f32 %v2133_v12, %v2132_v9  ;;  %v2197_v19 = vpop.f32.mrb[57].mxu1  ;;  %v2135_v16 = vpop.f32.mrb[58].mxu0 }
 0x179   : > { %v2198_v17 = vadd.f32 %v2197_v19, %v2196_v10  ;;  %v2199_v18 = vpop.f32.mrb[58].mxu1  ;;  %v2136_v20 = vpop.f32.mrb[59].mxu0 }
 0x17a   : > { %v1631_v21 = vadd.f32 %v1630_v14, %v1616_v15  ;;  %v1456_v22 = vadd.f32 %v2134_v11, %v2532_v35  ;;  %v2137_v23 = vadd.f32 %v2136_v20, %v2135_v16  ;;  %v2200_v24 = vpop.f32.mrb[59].mxu1 }
 0x17b   : > { %v2201_v26 = vadd.f32 %v2200_v24, %v2199_v18 }
 0x17c   : > { %v1553_v13 = vadd.f32 %v2198_v17, %v1456_v22  ;;  %v1459_v28 = vadd.f32 %v2137_v23, %v2534_v37 }
 0x17e   : > { %1579 = vst [vmem:[%s2545_s29 + $0x60] sm:$0xff] %v1553_v13  ;;  %v1594_v29 = vadd.f32 %v1593_v41, %v1553_v13  ;;  %v1617_v30 = vmul.f32 %v1553_v13, %v1553_v13  ;;  %v1556_v31 = vadd.f32 %v2201_v26, %v1459_v28  ;;  %v2138_v32 = vpop.f32.mrb[60].mxu0 }
 0x17f   : > { %v2202_v53 = vpop.f32.mrb[60].mxu1  ;;  %v2139_v33 = vpop.f32.mrb[61].mxu0 }
 0x180   : > { %v1632_v34 = vadd.f32 %v1631_v21, %v1617_v30  ;;  %1580 = vst [vmem:[%s2545_s29 + $0x68] sm:$0xff] %v1556_v31  ;;  %v1595_v36 = vadd.f32 %v1594_v29, %v1556_v31  ;;  %v1618_v38 = vmul.f32 %v1556_v31, %v1556_v31  ;;  %v2140_v55 = vadd.f32 %v2139_v33, %v2138_v32  ;;  %v2203_v35 = vpop.f32.mrb[61].mxu1  ;;  %v2141_v40 = vpop.f32.mrb[62].mxu0 }
 0x181   : > { %v2204_v42 = vadd.f32 %v2203_v35, %v2202_v53  ;;  %v2205_v43 = vpop.f32.mrb[62].mxu1  ;;  %v2142_v44 = vpop.f32.mrb[63].mxu0 }
 0x182   : > { %v1633_v37 = vadd.f32 %v1632_v34, %v1618_v38  ;;  %v1464_v45 = vadd.f32 %v2140_v55, %v2536_v51  ;;  %v2143_v46 = vadd.f32 %v2142_v44, %v2141_v40  ;;  %v2206_v25 = vpop.f32.mrb[63].mxu1 }
 0x183   : > { %v2207_v47 = vadd.f32 %v2206_v25, %v2205_v43 }
 0x184   : > { %v1561_v48 = vadd.f32 %v2204_v42, %v1464_v45  ;;  %v1467_v49 = vadd.f32 %v2143_v46, %v2538_v54 }
 0x186   : > { %1581 = vst [vmem:[%s2545_s29 + $0x70] sm:$0xff] %v1561_v48  ;;  %v1596_v50 = vadd.f32 %v1595_v36, %v1561_v48  ;;  %v1619_v27 = vmul.f32 %v1561_v48, %v1561_v48  ;;  %v1564_v52 = vadd.f32 %v2207_v47, %v1467_v49 }
 0x188   : > { %v1634_v56 = vadd.f32 %v1633_v37, %v1619_v27  ;;  %1582 = vst [vmem:[%s2545_s29 + $0x78] sm:$0xff] %v1564_v52  ;;  %v1597_v57 = vadd.f32 %v1596_v50, %v1564_v52  ;;  %v1620_v58 = vmul.f32 %v1564_v52, %v1564_v52 }
 0x18a   : > { %v1598_v3 = vrot.slane %v1597_v57, 4  ;;  %v1635_v59 = vadd.f32 %v1634_v56, %v1620_v58 }
 0x18c   : > { %v1599_v60 = vadd.f32 %v1598_v3, %v1597_v57  ;;  %v1636_v51 = vrot.slane %v1635_v59, 4 }
 0x18e   : > { %v1600_v61 = vrot.slane %v1599_v60, 2  ;;  %v1637_v62 = vadd.f32 %v1636_v51, %v1635_v59 }
 0x190   : > { %v1601_v5 = vadd.f32 %v1600_v61, %v1599_v60  ;;  %v1638_v63 = vrot.slane %v1637_v62, 2 }
 0x192   : > { %v1602_v0 = vrot.slane %v1601_v5, 1  ;;  %v1639_v54 = vadd.f32 %v1638_v63, %v1637_v62 }
 0x194   : > { %v1603_v1 = vadd.f32 %v1602_v0, %v1601_v5  ;;  %v1640_v2 = vrot.slane %v1639_v54, 1 }
 0x196   : > { %1604 = vst [vmem:[%s275_s6] sm:$0x1] %v1603_v1  ;;  %v1641_v4 = vadd.f32 %v1640_v2, %v1639_v54 }
 0x198   : > { %1642 = vst [vmem:[%s281_s9] sm:$0x1] %v1641_v4 }
 0x199 PF: > { %s15_s17 = sadd.s32 1, %s2318_s17   ;;  %s2600_s15 = smov %s2314_s16 }
 0x19a   : > { %p12_p5 = scmp.ge.s32.totalorder %s15_s17, 6   ;;  %s2601_s16 = smov %s2603_s18 }
 0x19c   :  { %14 = sbr.rel (!%p12_p5) target bundleno = 2 (0x2), region = 85 }

// kernel: generator_forward.8
= control target key start
LH: loop header
LB: loop body
LE: loop exit
PB: predicated region body
PF: predicated region fallthrough
CT: control target
= control target key end

     0   :  { %s2857_s15 = smov 0   ;;  %s2859_s16 = smov 0   ;;  %s3168_s0 = inlined_call_operand.vmem [shape: bf16[4,512,512], index: 0, kind: input, shape index: {}]   ;;  %s3169_s1 = inlined_call_operand.vmem [shape: bf16[4,512,128], index: 1, kind: input, shape index: {}]   ;;  %s3170_s2 = inlined_call_operand.vmem [shape: f32[4,512,128], index: 2, kind: output, shape index: {0}]   ;;  %s3171_s3 = inlined_call_operand.vmem [shape: f32[4,1,128], index: 3, kind: output, shape index: {1}]   ;;  %s3172_s4 = inlined_call_operand.vmem [shape: f32[4,1,128], index: 4, kind: output, shape index: {2}]  }
   0x1   :  { %s2861_s17 = smov 0  }
   0x2 LB: > { %s27_s18 = sadd.s32 1, %s2825_s16  ;;  %p2322_p0 = scmp.ge.s32.totalorder %s2829_s17, 1  ;;  %s2829_s17 = sphi %s2861_s17, %s15_s17   ;;  %s2825_s16 = sphi %s2859_s16, %s3174_s16   ;;  %s2821_s15 = sphi %s2857_s15, %s3173_s15  }
   0x3   : > { %p29_p1 = scmp.ge.s32.totalorder %s27_s18, 4  ;;  %p200_p2 = scmp.lt.s32.totalorder %s2829_s17, 5 }
   0x5   : > { %s3176_s18 = smov (%p29_p1, %s27_s18), 0  ;;  %p201_p3 = pnand %p2322_p0, %p200_p2 }
   0x6   : > { %p249_p4 = scmp.lt.s32.totalorder (!%p201_p3), %s2821_s15, 3  ;;  %v2831_v0 = vmov (!%p201_p3), 0  }
   0x7   : > { %204 = sbr.rel (%p201_p3) target bundleno = 563 (0x233), region = 28  ;;  %1307 = vmatprep.subr.bf16.mxu1 (!%p201_p3), %v2831_v0  ;;  %1596 = vmatprep.subr.bf16.mxu0 (!%p201_p3), %v2831_v0 }
   0xe   : > { %s3178_s15 = smov (!%p249_p4, %s2821_s15), 3 }
   0xf   : > { %s2492_s19 = sshll.u32 %s3178_s15, 8  ;;  %s2491_s23 = sshll.u32 %s3178_s15, 10 }
  0x10   : > { %s2883_s22 = scalar_lea.vmem %s3169_s1, %s2492_s19  ;;  %s2920_s26 = scalar_lea.vmem %s3168_s0, %s2491_s23 }
  0x11   : > { %v2583_v1 = vld [vmem:[%s2883_s22] sm:$0xff]   ;;  %v2585_v3 = vld [vmem:[%s2883_s22 + $0x8] sm:$0xff]   ;;  %v2587_v5 = vld [vmem:[%s2883_s22 + $0x10] sm:$0xff]   ;;  %s2493_s27 = sshll.u32 %s3178_s15, 9  ;;  %s275_s7 = scalar_lea.vmem %s3171_s3, %s3178_s15 }
  0x12   : > { %v2584_v2 = vld [vmem:[%s2883_s22 + $0x80] sm:$0xff]   ;;  %1308 = vmatpush1.bf16.msra.mxu1 %v2583_v1  ;;  %v2586_v4 = vld [vmem:[%s2883_s22 + $0x88] sm:$0xff]   ;;  %v2588_v6 = vld [vmem:[%s2883_s22 + $0x90] sm:$0xff]   ;;  %s3067_s30 = scalar_lea.vmem %s3170_s2, %s2493_s27  ;;  %s281_s10 = scalar_lea.vmem %s3172_s4, %s3178_s15 }
  0x13   : > { %1597 = vmatpush1.bf16.msra.mxu0 %v2584_v2  ;;  %1309 = vmatprep.subr.bf16.mxu1 %v2831_v0  ;;  %v2589_v7 = vld [vmem:[%s2883_s22 + $0x18] sm:$0xff]   ;;  %v2591_v9 = vld [vmem:[%s2883_s22 + $0x20] sm:$0xff]   ;;  %v2593_v11 = vld [vmem:[%s2883_s22 + $0x28] sm:$0xff]  }
  0x14   : > { %1598 = vmatprep.subr.bf16.mxu0 %v2831_v0  ;;  %v2590_v8 = vld [vmem:[%s2883_s22 + $0x98] sm:$0xff]   ;;  %v2592_v10 = vld [vmem:[%s2883_s22 + $0xa0] sm:$0xff]   ;;  %v2594_v12 = vld [vmem:[%s2883_s22 + $0xa8] sm:$0xff]  }
  0x15   : > { %v2595_v13 = vld [vmem:[%s2883_s22 + $0x30] sm:$0xff]   ;;  %v2597_v15 = vld [vmem:[%s2883_s22 + $0x38] sm:$0xff]   ;;  %v2599_v17 = vld [vmem:[%s2883_s22 + $0x40] sm:$0xff]  }
  0x16   : > { %1310 = vmatpush1.bf16.msra.mxu1 %v2585_v3  ;;  %v2596_v14 = vld [vmem:[%s2883_s22 + $0xb0] sm:$0xff]   ;;  %v2598_v16 = vld [vmem:[%s2883_s22 + $0xb8] sm:$0xff]   ;;  %v2600_v18 = vld [vmem:[%s2883_s22 + $0xc0] sm:$0xff]  }
  0x17   : > { %1599 = vmatpush1.bf16.msra.mxu0 %v2586_v4  ;;  %1311 = vmatprep.subr.bf16.mxu1 %v2831_v0  ;;  %v2617_v19 = vld [vmem:[%s2920_s26 + $0x4] ss:$16 sps:$4 sm:$0xff]   ;;  %v2601_v20 = vld [vmem:[%s2883_s22 + $0x48] sm:$0xff]   ;;  %v2605_v25 = vld [vmem:[%s2883_s22 + $0x58] sm:$0xff]  }
  0x18   : > { %1600 = vmatprep.subr.bf16.mxu0 %v2831_v0  ;;  %v2620_v21 = vld [vmem:[%s2920_s26 + $0xc] ss:$16 sps:$4 sm:$0xff]   ;;  %1339 = vmatprep.mubr.bf16.mxu1 %v2617_v19  ;;  %v2603_v23 = vld [vmem:[%s2883_s22 + $0x50] sm:$0xff]   ;;  %v2607_v27 = vld [vmem:[%s2883_s22 + $0x60] sm:$0xff]  }
  0x19   : > { %v2602_v22 = vld [vmem:[%s2883_s22 + $0xc8] sm:$0xff]   ;;  %1628 = vmatprep.mubr.bf16.mxu0 %v2620_v21  ;;  %v2604_v24 = vld [vmem:[%s2883_s22 + $0xd0] sm:$0xff]   ;;  %v2606_v26 = vld [vmem:[%s2883_s22 + $0xd8] sm:$0xff]  }
  0x1a   : > { %1312 = vmatpush1.bf16.msra.mxu1 %v2587_v5  ;;  %v2608_v28 = vld [vmem:[%s2883_s22 + $0xe0] sm:$0xff]   ;;  %v2609_v29 = vld [vmem:[%s2883_s22 + $0x68] sm:$0xff]   ;;  %v2611_v31 = vld [vmem:[%s2883_s22 + $0x70] sm:$0xff]  }
  0x1b   : > { %1601 = vmatpush1.bf16.msra.mxu0 %v2588_v6  ;;  %1313 = vmatprep.subr.bf16.mxu1 %v2831_v0  ;;  %v2610_v30 = vld [vmem:[%s2883_s22 + $0xe8] sm:$0xff]   ;;  %v2612_v32 = vld [vmem:[%s2883_s22 + $0xf0] sm:$0xff]   ;;  %v2613_v33 = vld [vmem:[%s2883_s22 + $0x78] sm:$0xff]  }
  0x1c   : > { %1602 = vmatprep.subr.bf16.mxu0 %v2831_v0  ;;  %v2614_v34 = vld [vmem:[%s2883_s22 + $0xf8] sm:$0xff]   ;;  %v2615_v35 = vld [vmem:[%s2920_s26] ss:$16 sps:$4 sm:$0xff]   ;;  %v2621_v37 = vld [vmem:[%s2920_s26 + $0x24] ss:$16 sps:$4 sm:$0xff]  }
  0x1d   : > { %v2618_v36 = vld [vmem:[%s2920_s26 + $0x8] ss:$16 sps:$4 sm:$0xff]   ;;  %v2623_v38 = vld [vmem:[%s2920_s26 + $0x2c] ss:$16 sps:$4 sm:$0xff]   ;;  %v2625_v39 = vld [vmem:[%s2920_s26 + $0x20] ss:$16 sps:$4 sm:$0xff]  }
  0x1e   : > { %1314 = vmatpush1.bf16.msra.mxu1 %v2589_v7  ;;  %v2626_v40 = vld [vmem:[%s2920_s26 + $0x28] ss:$16 sps:$4 sm:$0xff]   ;;  %v2627_v41 = vld [vmem:[%s2920_s26 + $0x44] ss:$16 sps:$4 sm:$0xff]   ;;  %v2629_v42 = vld [vmem:[%s2920_s26 + $0x4c] ss:$16 sps:$4 sm:$0xff]  }
  0x1f   : > { %1603 = vmatpush1.bf16.msra.mxu0 %v2590_v8  ;;  %1315 = vmatprep.subr.bf16.mxu1 %v2831_v0  ;;  %v2631_v43 = vld [vmem:[%s2920_s26 + $0x40] ss:$16 sps:$4 sm:$0xff]   ;;  %v2632_v44 = vld [vmem:[%s2920_s26 + $0x48] ss:$16 sps:$4 sm:$0xff]   ;;  %v2633_v45 = vld [vmem:[%s2920_s26 + $0x64] ss:$16 sps:$4 sm:$0xff]  }
  0x20   : > { %1604 = vmatprep.subr.bf16.mxu0 %v2831_v0  ;;  %v2635_v46 = vld [vmem:[%s2920_s26 + $0x6c] ss:$16 sps:$4 sm:$0xff]   ;;  %v2637_v47 = vld [vmem:[%s2920_s26 + $0x60] ss:$16 sps:$4 sm:$0xff]   ;;  %v2638_v48 = vld [vmem:[%s2920_s26 + $0x68] ss:$16 sps:$4 sm:$0xff]  }
  0x21   : > { %v2639_v49 = vld [vmem:[%s2920_s26 + $0x84] ss:$16 sps:$4 sm:$0xff]   ;;  %v2641_v50 = vld [vmem:[%s2920_s26 + $0x8c] ss:$16 sps:$4 sm:$0xff]   ;;  %v2643_v51 = vld [vmem:[%s2920_s26 + $0x80] ss:$16 sps:$4 sm:$0xff]  }
  0x22   : > { %1316 = vmatpush1.bf16.msra.mxu1 %v2591_v9  ;;  %v2644_v52 = vld [vmem:[%s2920_s26 + $0x88] ss:$16 sps:$4 sm:$0xff]   ;;  %v2645_v53 = vld [vmem:[%s2920_s26 + $0xa4] ss:$16 sps:$4 sm:$0xff]   ;;  %v2647_v54 = vld [vmem:[%s2920_s26 + $0xac] ss:$16 sps:$4 sm:$0xff]  }
  0x23   : > { %1605 = vmatpush1.bf16.msra.mxu0 %v2592_v10  ;;  %1317 = vmatprep.subr.bf16.mxu1 %v2831_v0  ;;  %v2649_v55 = vld [vmem:[%s2920_s26 + $0xa0] ss:$16 sps:$4 sm:$0xff]   ;;  %v2650_v56 = vld [vmem:[%s2920_s26 + $0xa8] ss:$16 sps:$4 sm:$0xff]   ;;  %v2651_v57 = vld [vmem:[%s2920_s26 + $0xc4] ss:$16 sps:$4 sm:$0xff]  }
  0x24   : > { %1606 = vmatprep.subr.bf16.mxu0 %v2831_v0  ;;  %v2653_v58 = vld [vmem:[%s2920_s26 + $0xcc] ss:$16 sps:$4 sm:$0xff]   ;;  %v2655_v59 = vld [vmem:[%s2920_s26 + $0xc0] ss:$16 sps:$4 sm:$0xff]   ;;  %v2656_v60 = vld [vmem:[%s2920_s26 + $0xc8] ss:$16 sps:$4 sm:$0xff]  }
  0x25   : > { %v2657_v61 = vld [vmem:[%s2920_s26 + $0xe4] ss:$16 sps:$4 sm:$0xff]   ;;  %v2659_v62 = vld [vmem:[%s2920_s26 + $0xec] ss:$16 sps:$4 sm:$0xff]   ;;  %v2661_v63 = vld [vmem:[%s2920_s26 + $0xe0] ss:$16 sps:$4 sm:$0xff]  }
  0x26   : > { %1318 = vmatpush1.bf16.msra.mxu1 %v2593_v11  ;;  %v2663_v1 = vld [vmem:[%s2920_s26 + $0x104] ss:$16 sps:$4 sm:$0xff]   ;;  %v2665_v2 = vld [vmem:[%s2920_s26 + $0x10c] ss:$16 sps:$4 sm:$0xff]   ;;  %v2667_v3 = vld [vmem:[%s2920_s26 + $0x100] ss:$16 sps:$4 sm:$0xff]  }
  0x27   : > { %1607 = vmatpush1.bf16.msra.mxu0 %v2594_v12  ;;  %1319 = vmatprep.subr.bf16.mxu1 %v2831_v0  ;;  %v2668_v4 = vld [vmem:[%s2920_s26 + $0x108] ss:$16 sps:$4 sm:$0xff]   ;;  %v2669_v5 = vld [vmem:[%s2920_s26 + $0x124] ss:$16 sps:$4 sm:$0xff]   ;;  %v2671_v6 = vld [vmem:[%s2920_s26 + $0x12c] ss:$16 sps:$4 sm:$0xff]  }
  0x28   : > { %1608 = vmatprep.subr.bf16.mxu0 %v2831_v0  ;;  %v2673_v7 = vld [vmem:[%s2920_s26 + $0x120] ss:$16 sps:$4 sm:$0xff]   ;;  %v2674_v8 = vld [vmem:[%s2920_s26 + $0x128] ss:$16 sps:$4 sm:$0xff]   ;;  %v2675_v9 = vld [vmem:[%s2920_s26 + $0x144] ss:$16 sps:$4 sm:$0xff]  }
  0x29   : > { %v2677_v10 = vld [vmem:[%s2920_s26 + $0x14c] ss:$16 sps:$4 sm:$0xff]   ;;  %v2679_v11 = vld [vmem:[%s2920_s26 + $0x140] ss:$16 sps:$4 sm:$0xff]   ;;  %v2680_v12 = vld [vmem:[%s2920_s26 + $0x148] ss:$16 sps:$4 sm:$0xff]  }
  0x2a   : > { %1320 = vmatpush1.bf16.msra.mxu1 %v2595_v13  ;;  %v2681_v13 = vld [vmem:[%s2920_s26 + $0x164] ss:$16 sps:$4 sm:$0xff]   ;;  %v2691_v19 = vld [vmem:[%s2920_s26 + $0x180] ss:$16 sps:$4 sm:$0xff]  }
  0x2b   : > { %1609 = vmatpush1.bf16.msra.mxu0 %v2596_v14  ;;  %1321 = vmatprep.subr.bf16.mxu1 %v2831_v0  ;;  %v2683_v14 = vld [vmem:[%s2920_s26 + $0x16c] ss:$16 sps:$4 sm:$0xff]   ;;  %v2693_v21 = vld [vmem:[%s2920_s26 + $0x1a4] ss:$16 sps:$4 sm:$0xff]  }
  0x2c   : > { %1610 = vmatprep.subr.bf16.mxu0 %v2831_v0 }
  0x2e   : > { %1322 = vmatpush1.bf16.msra.mxu1 %v2597_v15  ;;  %v2685_v15 = vld [vmem:[%s2920_s26 + $0x160] ss:$16 sps:$4 sm:$0xff]  }
  0x2f   : > { %1611 = vmatpush1.bf16.msra.mxu0 %v2598_v16  ;;  %1323 = vmatprep.subr.bf16.mxu1 %v2831_v0  ;;  %v2686_v16 = vld [vmem:[%s2920_s26 + $0x168] ss:$16 sps:$4 sm:$0xff]  }
  0x30   : > { %1612 = vmatprep.subr.bf16.mxu0 %v2831_v0 }
  0x32   : > { %1324 = vmatpush1.bf16.msra.mxu1 %v2599_v17  ;;  %v2687_v17 = vld [vmem:[%s2920_s26 + $0x184] ss:$16 sps:$4 sm:$0xff]  }
  0x33   : > { %1613 = vmatpush1.bf16.msra.mxu0 %v2600_v18  ;;  %1325 = vmatprep.subr.bf16.mxu1 %v2831_v0  ;;  %v2689_v18 = vld [vmem:[%s2920_s26 + $0x18c] ss:$16 sps:$4 sm:$0xff]  }
  0x34   : > { %1614 = vmatprep.subr.bf16.mxu0 %v2831_v0 }
  0x36   : > { %1326 = vmatpush1.bf16.msra.mxu1 %v2601_v20  ;;  %v2692_v20 = vld [vmem:[%s2920_s26 + $0x188] ss:$16 sps:$4 sm:$0xff]  }
  0x37   : > { %1615 = vmatpush1.bf16.msra.mxu0 %v2602_v22  ;;  %1327 = vmatprep.subr.bf16.mxu1 %v2831_v0  ;;  %v2695_v22 = vld [vmem:[%s2920_s26 + $0x1ac] ss:$16 sps:$4 sm:$0xff]  }
  0x38   : > { %1616 = vmatprep.subr.bf16.mxu0 %v2831_v0 }
  0x3a   : > { %1328 = vmatpush1.bf16.msra.mxu1 %v2603_v23  ;;  %v2697_v23 = vld [vmem:[%s2920_s26 + $0x1a0] ss:$16 sps:$4 sm:$0xff]  }
  0x3b   : > { %1617 = vmatpush1.bf16.msra.mxu0 %v2604_v24  ;;  %1329 = vmatprep.subr.bf16.mxu1 %v2831_v0  ;;  %v2698_v24 = vld [vmem:[%s2920_s26 + $0x1a8] ss:$16 sps:$4 sm:$0xff]  }
  0x3c   : > { %1618 = vmatprep.subr.bf16.mxu0 %v2831_v0 }
  0x3e   : > { %1330 = vmatpush1.bf16.msra.mxu1 %v2605_v25  ;;  %v2699_v25 = vld [vmem:[%s2920_s26 + $0x1c4] ss:$16 sps:$4 sm:$0xff]  }
  0x3f   : > { %1619 = vmatpush1.bf16.msra.mxu0 %v2606_v26  ;;  %1331 = vmatprep.subr.bf16.mxu1 %v2831_v0  ;;  %v2701_v26 = vld [vmem:[%s2920_s26 + $0x1cc] ss:$16 sps:$4 sm:$0xff]  }
  0x40   : > { %1620 = vmatprep.subr.bf16.mxu0 %v2831_v0 }
  0x42   : > { %1332 = vmatpush1.bf16.msra.mxu1 %v2607_v27  ;;  %v2703_v27 = vld [vmem:[%s2920_s26 + $0x1c0] ss:$16 sps:$4 sm:$0xff]  }
  0x43   : > { %1621 = vmatpush1.bf16.msra.mxu0 %v2608_v28  ;;  %1333 = vmatprep.subr.bf16.mxu1 %v2831_v0  ;;  %v2704_v28 = vld [vmem:[%s2920_s26 + $0x1c8] ss:$16 sps:$4 sm:$0xff]  }
  0x44   : > { %1622 = vmatprep.subr.bf16.mxu0 %v2831_v0 }
  0x46   : > { %1334 = vmatpush1.bf16.msra.mxu1 %v2609_v29  ;;  %v2705_v29 = vld [vmem:[%s2920_s26 + $0x1e4] ss:$16 sps:$4 sm:$0xff]  }
  0x47   : > { %1623 = vmatpush1.bf16.msra.mxu0 %v2610_v30  ;;  %1335 = vmatprep.subr.bf16.mxu1 %v2831_v0  ;;  %v2707_v30 = vld [vmem:[%s2920_s26 + $0x1ec] ss:$16 sps:$4 sm:$0xff]  }
  0x48   : > { %1624 = vmatprep.subr.bf16.mxu0 %v2831_v0 }
  0x4a   : > { %1336 = vmatpush1.bf16.msra.mxu1 %v2611_v31  ;;  %v2709_v31 = vld [vmem:[%s2920_s26 + $0x1e0] ss:$16 sps:$4 sm:$0xff]  }
  0x4b   : > { %1625 = vmatpush1.bf16.msra.mxu0 %v2612_v32  ;;  %1337 = vmatprep.subr.bf16.mxu1 %v2831_v0  ;;  %v2710_v32 = vld [vmem:[%s2920_s26 + $0x1e8] ss:$16 sps:$4 sm:$0xff]  }
  0x4c   : > { %1626 = vmatprep.subr.bf16.mxu0 %v2831_v0  ;;  %v2662_v0 = vld [vmem:[%s2920_s26 + $0xe8] ss:$16 sps:$4 sm:$0xff]  }
  0x4e   : > { %1338 = vmatpush1.bf16.msra.mxu1 %v2613_v33  ;;  %v2711_v33 = vld [vmem:[%s2920_s26 + $0x204] ss:$16 sps:$4 sm:$0xff]  }
  0x4f   : > { %1627 = vmatpush1.bf16.msra.mxu0 %v2614_v34  ;;  %v2713_v34 = vld [vmem:[%s2920_s26 + $0x20c] ss:$16 sps:$4 sm:$0xff]  }
  0x51   : > { %1340 = vmatmul.mubr.bf16.vlgmr.msra.gmra.mrb[0].mxu1 %v2615_v35  ;;  %v2715_v35 = vld [vmem:[%s2920_s26 + $0x200] ss:$16 sps:$4 sm:$0xff]  }
  0x52   : > { %1629 = vmatmul.mubr.bf16.vlgmr.msra.gmra.mrb[0].mxu0 %v2618_v36  ;;  %1347 = vmatprep.mubr.bf16.mxu1 %v2621_v37  ;;  %v2716_v36 = vld [vmem:[%s2920_s26 + $0x208] ss:$16 sps:$4 sm:$0xff]   ;;  %v2717_v37 = vld [vmem:[%s2920_s26 + $0x224] ss:$16 sps:$4 sm:$0xff]  }
  0x53   : > { %1636 = vmatprep.mubr.bf16.mxu0 %v2623_v38  ;;  %v2719_v38 = vld [vmem:[%s2920_s26 + $0x22c] ss:$16 sps:$4 sm:$0xff]  }
  0x59   : > { %1348 = vmatmul.mubr.bf16.gmra.mrb[4].mxu1 %v2625_v39  ;;  %v2721_v39 = vld [vmem:[%s2920_s26 + $0x220] ss:$16 sps:$4 sm:$0xff]  }
  0x5a   : > { %1637 = vmatmul.mubr.bf16.gmra.mrb[4].mxu0 %v2626_v40  ;;  %1355 = vmatprep.mubr.bf16.mxu1 %v2627_v41  ;;  %v2722_v40 = vld [vmem:[%s2920_s26 + $0x228] ss:$16 sps:$4 sm:$0xff]   ;;  %v2723_v41 = vld [vmem:[%s2920_s26 + $0x244] ss:$16 sps:$4 sm:$0xff]  }
  0x5b   : > { %1644 = vmatprep.mubr.bf16.mxu0 %v2629_v42  ;;  %v2725_v42 = vld [vmem:[%s2920_s26 + $0x24c] ss:$16 sps:$4 sm:$0xff]  }
  0x61   : > { %1356 = vmatmul.mubr.bf16.gmra.mrb[8].mxu1 %v2631_v43  ;;  %v2727_v43 = vld [vmem:[%s2920_s26 + $0x240] ss:$16 sps:$4 sm:$0xff]  }
  0x62   : > { %1645 = vmatmul.mubr.bf16.gmra.mrb[8].mxu0 %v2632_v44  ;;  %1363 = vmatprep.mubr.bf16.mxu1 %v2633_v45  ;;  %v2728_v44 = vld [vmem:[%s2920_s26 + $0x248] ss:$16 sps:$4 sm:$0xff]   ;;  %v2729_v45 = vld [vmem:[%s2920_s26 + $0x264] ss:$16 sps:$4 sm:$0xff]  }
  0x63   : > { %1652 = vmatprep.mubr.bf16.mxu0 %v2635_v46  ;;  %v2731_v46 = vld [vmem:[%s2920_s26 + $0x26c] ss:$16 sps:$4 sm:$0xff]  }
  0x69   : > { %1364 = vmatmul.mubr.bf16.gmra.mrb[12].mxu1 %v2637_v47  ;;  %v2733_v47 = vld [vmem:[%s2920_s26 + $0x260] ss:$16 sps:$4 sm:$0xff]  }
  0x6a   : > { %1653 = vmatmul.mubr.bf16.gmra.mrb[12].mxu0 %v2638_v48  ;;  %1371 = vmatprep.mubr.bf16.mxu1 %v2639_v49  ;;  %v2734_v48 = vld [vmem:[%s2920_s26 + $0x268] ss:$16 sps:$4 sm:$0xff]   ;;  %v2735_v49 = vld [vmem:[%s2920_s26 + $0x284] ss:$16 sps:$4 sm:$0xff]  }
  0x6b   : > { %1660 = vmatprep.mubr.bf16.mxu0 %v2641_v50  ;;  %v2737_v50 = vld [vmem:[%s2920_s26 + $0x28c] ss:$16 sps:$4 sm:$0xff]  }
  0x71   : > { %1372 = vmatmul.mubr.bf16.gmra.mrb[16].mxu1 %v2643_v51  ;;  %v2739_v51 = vld [vmem:[%s2920_s26 + $0x280] ss:$16 sps:$4 sm:$0xff]  }
  0x72   : > { %1661 = vmatmul.mubr.bf16.gmra.mrb[16].mxu0 %v2644_v52  ;;  %1379 = vmatprep.mubr.bf16.mxu1 %v2645_v53  ;;  %v2740_v52 = vld [vmem:[%s2920_s26 + $0x288] ss:$16 sps:$4 sm:$0xff]   ;;  %v2741_v53 = vld [vmem:[%s2920_s26 + $0x2a4] ss:$16 sps:$4 sm:$0xff]  }
  0x73   : > { %1668 = vmatprep.mubr.bf16.mxu0 %v2647_v54  ;;  %v2743_v54 = vld [vmem:[%s2920_s26 + $0x2ac] ss:$16 sps:$4 sm:$0xff]  }
  0x79   : > { %1380 = vmatmul.mubr.bf16.gmra.mrb[20].mxu1 %v2649_v55  ;;  %v2745_v55 = vld [vmem:[%s2920_s26 + $0x2a0] ss:$16 sps:$4 sm:$0xff]  }
  0x7a   : > { %1669 = vmatmul.mubr.bf16.gmra.mrb[20].mxu0 %v2650_v56  ;;  %1387 = vmatprep.mubr.bf16.mxu1 %v2651_v57  ;;  %v2746_v56 = vld [vmem:[%s2920_s26 + $0x2a8] ss:$16 sps:$4 sm:$0xff]   ;;  %v2747_v57 = vld [vmem:[%s2920_s26 + $0x2c4] ss:$16 sps:$4 sm:$0xff]  }
  0x7b   : > { %1676 = vmatprep.mubr.bf16.mxu0 %v2653_v58  ;;  %v2749_v58 = vld [vmem:[%s2920_s26 + $0x2cc] ss:$16 sps:$4 sm:$0xff]  }
  0x81   : > { %1388 = vmatmul.mubr.bf16.gmra.mrb[24].mxu1 %v2655_v59  ;;  %v2751_v59 = vld [vmem:[%s2920_s26 + $0x2c0] ss:$16 sps:$4 sm:$0xff]  }
  0x82   : > { %1677 = vmatmul.mubr.bf16.gmra.mrb[24].mxu0 %v2656_v60  ;;  %1395 = vmatprep.mubr.bf16.mxu1 %v2657_v61  ;;  %v2752_v60 = vld [vmem:[%s2920_s26 + $0x2c8] ss:$16 sps:$4 sm:$0xff]   ;;  %v2753_v61 = vld [vmem:[%s2920_s26 + $0x2e4] ss:$16 sps:$4 sm:$0xff]  }
  0x83   : > { %1684 = vmatprep.mubr.bf16.mxu0 %v2659_v62  ;;  %v2755_v62 = vld [vmem:[%s2920_s26 + $0x2ec] ss:$16 sps:$4 sm:$0xff]  }
  0x89   : > { %1396 = vmatmul.mubr.bf16.gmra.mrb[28].mxu1 %v2661_v63  ;;  %v2757_v63 = vld [vmem:[%s2920_s26 + $0x2e0] ss:$16 sps:$4 sm:$0xff]  }
  0x8a   : > { %1685 = vmatmul.mubr.bf16.gmra.mrb[28].mxu0 %v2662_v0  ;;  %1403 = vmatprep.mubr.bf16.mxu1 %v2663_v1  ;;  %v2758_v0 = vld [vmem:[%s2920_s26 + $0x2e8] ss:$16 sps:$4 sm:$0xff]   ;;  %v2759_v1 = vld [vmem:[%s2920_s26 + $0x304] ss:$16 sps:$4 sm:$0xff]  }
  0x8b   : > { %1692 = vmatprep.mubr.bf16.mxu0 %v2665_v2  ;;  %v2761_v2 = vld [vmem:[%s2920_s26 + $0x30c] ss:$16 sps:$4 sm:$0xff]  }
  0x91   : > { %1404 = vmatmul.mubr.bf16.gmra.mrb[32].mxu1 %v2667_v3  ;;  %v2763_v3 = vld [vmem:[%s2920_s26 + $0x300] ss:$16 sps:$4 sm:$0xff]  }
  0x92   : > { %1693 = vmatmul.mubr.bf16.gmra.mrb[32].mxu0 %v2668_v4  ;;  %1411 = vmatprep.mubr.bf16.mxu1 %v2669_v5  ;;  %v2764_v4 = vld [vmem:[%s2920_s26 + $0x308] ss:$16 sps:$4 sm:$0xff]   ;;  %v2765_v5 = vld [vmem:[%s2920_s26 + $0x324] ss:$16 sps:$4 sm:$0xff]  }
  0x93   : > { %1700 = vmatprep.mubr.bf16.mxu0 %v2671_v6  ;;  %v2767_v6 = vld [vmem:[%s2920_s26 + $0x32c] ss:$16 sps:$4 sm:$0xff]  }
  0x99   : > { %1412 = vmatmul.mubr.bf16.gmra.mrb[36].mxu1 %v2673_v7  ;;  %v2769_v7 = vld [vmem:[%s2920_s26 + $0x320] ss:$16 sps:$4 sm:$0xff]  }
  0x9a   : > { %1701 = vmatmul.mubr.bf16.gmra.mrb[36].mxu0 %v2674_v8  ;;  %1419 = vmatprep.mubr.bf16.mxu1 %v2675_v9  ;;  %v2770_v8 = vld [vmem:[%s2920_s26 + $0x328] ss:$16 sps:$4 sm:$0xff]   ;;  %v2771_v9 = vld [vmem:[%s2920_s26 + $0x344] ss:$16 sps:$4 sm:$0xff]  }
  0x9b   : > { %1708 = vmatprep.mubr.bf16.mxu0 %v2677_v10  ;;  %v2773_v10 = vld [vmem:[%s2920_s26 + $0x34c] ss:$16 sps:$4 sm:$0xff]  }
  0xa1   : > { %1420 = vmatmul.mubr.bf16.gmra.mrb[40].mxu1 %v2679_v11  ;;  %v2775_v11 = vld [vmem:[%s2920_s26 + $0x340] ss:$16 sps:$4 sm:$0xff]  }
  0xa2   : > { %1709 = vmatmul.mubr.bf16.gmra.mrb[40].mxu0 %v2680_v12  ;;  %1427 = vmatprep.mubr.bf16.mxu1 %v2681_v13  ;;  %v2776_v12 = vld [vmem:[%s2920_s26 + $0x348] ss:$16 sps:$4 sm:$0xff]   ;;  %v2777_v13 = vld [vmem:[%s2920_s26 + $0x364] ss:$16 sps:$4 sm:$0xff]  }
  0xa3   : > { %1716 = vmatprep.mubr.bf16.mxu0 %v2683_v14  ;;  %v2779_v14 = vld [vmem:[%s2920_s26 + $0x36c] ss:$16 sps:$4 sm:$0xff]  }
  0xa9   : > { %1428 = vmatmul.mubr.bf16.gmra.mrb[44].mxu1 %v2685_v15 }
  0xaa   : > { %1717 = vmatmul.mubr.bf16.gmra.mrb[44].mxu0 %v2686_v16  ;;  %1435 = vmatprep.mubr.bf16.mxu1 %v2687_v17 }
  0xab   : > { %1724 = vmatprep.mubr.bf16.mxu0 %v2689_v18  ;;  %v2781_v18 = vld [vmem:[%s2920_s26 + $0x360] ss:$16 sps:$4 sm:$0xff]  }
  0xb1   : > { %1436 = vmatmul.mubr.bf16.gmra.mrb[48].mxu1 %v2691_v19 }
  0xb2   : > { %1725 = vmatmul.mubr.bf16.gmra.mrb[48].mxu0 %v2692_v20  ;;  %1443 = vmatprep.mubr.bf16.mxu1 %v2693_v21 }
  0xb3   : > { %1732 = vmatprep.mubr.bf16.mxu0 %v2695_v22  ;;  %v2782_v22 = vld [vmem:[%s2920_s26 + $0x368] ss:$16 sps:$4 sm:$0xff]  }
  0xb9   : > { %1444 = vmatmul.mubr.bf16.gmra.mrb[52].mxu1 %v2697_v23  ;;  %v2783_v23 = vld [vmem:[%s2920_s26 + $0x384] ss:$16 sps:$4 sm:$0xff]  }
  0xba   : > { %1733 = vmatmul.mubr.bf16.gmra.mrb[52].mxu0 %v2698_v24  ;;  %1451 = vmatprep.mubr.bf16.mxu1 %v2699_v25 }
  0xbb   : > { %1740 = vmatprep.mubr.bf16.mxu0 %v2701_v26  ;;  %v2785_v26 = vld [vmem:[%s2920_s26 + $0x38c] ss:$16 sps:$4 sm:$0xff]  }
  0xc1   : > { %1452 = vmatmul.mubr.bf16.gmra.mrb[56].mxu1 %v2703_v27 }
  0xc2   : > { %1741 = vmatmul.mubr.bf16.gmra.mrb[56].mxu0 %v2704_v28  ;;  %1459 = vmatprep.mubr.bf16.mxu1 %v2705_v29 }
  0xc3   : > { %1748 = vmatprep.mubr.bf16.mxu0 %v2707_v30 }
  0xc9   : > { %1460 = vmatmul.mubr.bf16.gmra.mrb[60].mxu1 %v2709_v31 }
  0xca   : > { %1749 = vmatmul.mubr.bf16.gmra.mrb[60].mxu0 %v2710_v32  ;;  %1467 = vmatprep.mubr.bf16.mxu1 %v2711_v33 }
  0xcb   : > { %1756 = vmatprep.mubr.bf16.mxu0 %v2713_v34 }
  0xd1   : > { %1468 = vmatmul.mubr.bf16.gmra.mrb[64].mxu1 %v2715_v35 }
  0xd2   : > { %1757 = vmatmul.mubr.bf16.gmra.mrb[64].mxu0 %v2716_v36  ;;  %1475 = vmatprep.mubr.bf16.mxu1 %v2717_v37  ;;  %v2787_v36 = vld [vmem:[%s2920_s26 + $0x380] ss:$16 sps:$4 sm:$0xff]  }
  0xd3   : > { %1764 = vmatprep.mubr.bf16.mxu0 %v2719_v38 }
  0xd9   : > { %1476 = vmatmul.mubr.bf16.gmra.mrb[68].mxu1 %v2721_v39 }
  0xda   : > { %1765 = vmatmul.mubr.bf16.gmra.mrb[68].mxu0 %v2722_v40  ;;  %1483 = vmatprep.mubr.bf16.mxu1 %v2723_v41  ;;  %v2788_v40 = vld [vmem:[%s2920_s26 + $0x388] ss:$16 sps:$4 sm:$0xff]   ;;  %v2789_v41 = vld [vmem:[%s2920_s26 + $0x3a4] ss:$16 sps:$4 sm:$0xff]  }
  0xdb   : > { %1772 = vmatprep.mubr.bf16.mxu0 %v2725_v42 }
  0xe1   : > { %1484 = vmatmul.mubr.bf16.gmra.mrb[72].mxu1 %v2727_v43 }
  0xe2   : > { %1773 = vmatmul.mubr.bf16.gmra.mrb[72].mxu0 %v2728_v44  ;;  %1491 = vmatprep.mubr.bf16.mxu1 %v2729_v45  ;;  %v2791_v44 = vld [vmem:[%s2920_s26 + $0x3ac] ss:$16 sps:$4 sm:$0xff]  }
  0xe3   : > { %1780 = vmatprep.mubr.bf16.mxu0 %v2731_v46 }
  0xe9   : > { %1492 = vmatmul.mubr.bf16.gmra.mrb[76].mxu1 %v2733_v47 }
  0xea   : > { %1781 = vmatmul.mubr.bf16.gmra.mrb[76].mxu0 %v2734_v48  ;;  %1499 = vmatprep.mubr.bf16.mxu1 %v2735_v49 }
  0xeb   : > { %1788 = vmatprep.mubr.bf16.mxu0 %v2737_v50 }
  0xf1   : > { %1500 = vmatmul.mubr.bf16.gmra.mrb[80].mxu1 %v2739_v51 }
  0xf2   : > { %1789 = vmatmul.mubr.bf16.gmra.mrb[80].mxu0 %v2740_v52  ;;  %1507 = vmatprep.mubr.bf16.mxu1 %v2741_v53 }
  0xf3   : > { %1796 = vmatprep.mubr.bf16.mxu0 %v2743_v54 }
  0xf9   : > { %1508 = vmatmul.mubr.bf16.gmra.mrb[84].mxu1 %v2745_v55 }
  0xfa   : > { %1797 = vmatmul.mubr.bf16.gmra.mrb[84].mxu0 %v2746_v56  ;;  %1515 = vmatprep.mubr.bf16.mxu1 %v2747_v57  ;;  %v2793_v56 = vld [vmem:[%s2920_s26 + $0x3a0] ss:$16 sps:$4 sm:$0xff]  }
  0xfb   : > { %1804 = vmatprep.mubr.bf16.mxu0 %v2749_v58 }
 0x101   : > { %1516 = vmatmul.mubr.bf16.gmra.mrb[88].mxu1 %v2751_v59 }
 0x102   : > { %1805 = vmatmul.mubr.bf16.gmra.mrb[88].mxu0 %v2752_v60  ;;  %1523 = vmatprep.mubr.bf16.mxu1 %v2753_v61  ;;  %v2794_v60 = vld [vmem:[%s2920_s26 + $0x3a8] ss:$16 sps:$4 sm:$0xff]   ;;  %v2795_v61 = vld [vmem:[%s2920_s26 + $0x3c4] ss:$16 sps:$4 sm:$0xff]  }
 0x103   : > { %1812 = vmatprep.mubr.bf16.mxu0 %v2755_v62 }
 0x109   : > { %1524 = vmatmul.mubr.bf16.gmra.mrb[92].mxu1 %v2757_v63 }
 0x10a   : > { %1813 = vmatmul.mubr.bf16.gmra.mrb[92].mxu0 %v2758_v0  ;;  %1531 = vmatprep.mubr.bf16.mxu1 %v2759_v1  ;;  %v2797_v0 = vld [vmem:[%s2920_s26 + $0x3cc] ss:$16 sps:$4 sm:$0xff]  }
 0x10b   : > { %1820 = vmatprep.mubr.bf16.mxu0 %v2761_v2 }
 0x111   : > { %1532 = vmatmul.mubr.bf16.gmra.mrb[96].mxu1 %v2763_v3 }
 0x112   : > { %1821 = vmatmul.mubr.bf16.gmra.mrb[96].mxu0 %v2764_v4  ;;  %1539 = vmatprep.mubr.bf16.mxu1 %v2765_v5 }
 0x113   : > { %1828 = vmatprep.mubr.bf16.mxu0 %v2767_v6 }
 0x119   : > { %1540 = vmatmul.mubr.bf16.gmra.mrb[100].mxu1 %v2769_v7 }
 0x11a   : > { %1829 = vmatmul.mubr.bf16.gmra.mrb[100].mxu0 %v2770_v8  ;;  %1547 = vmatprep.mubr.bf16.mxu1 %v2771_v9 }
 0x11b   : > { %1836 = vmatprep.mubr.bf16.mxu0 %v2773_v10 }
 0x121   : > { %1548 = vmatmul.mubr.bf16.gmra.mrb[104].mxu1 %v2775_v11 }
 0x122   : > { %1837 = vmatmul.mubr.bf16.gmra.mrb[104].mxu0 %v2776_v12  ;;  %1555 = vmatprep.mubr.bf16.mxu1 %v2777_v13  ;;  %v2799_v12 = vld [vmem:[%s2920_s26 + $0x3c0] ss:$16 sps:$4 sm:$0xff]  }
 0x123   : > { %1844 = vmatprep.mubr.bf16.mxu0 %v2779_v14 }
 0x124   : > { %v1341_v15 = vpop.f32.mrb[0].mxu1 }
 0x125   : > { %v1630_v16 = vpop.f32.mrb[0].mxu0  ;;  %v1343_v17 = vpop.f32.mrb[1].mxu1 }
 0x126   : > { %v1631_v19 = vadd.f32 %v1630_v16, %v1341_v15  ;;  %v1632_v20 = vpop.f32.mrb[1].mxu0  ;;  %v1344_v21 = vpop.f32.mrb[2].mxu1  ;;  %v2800_v16 = vld [vmem:[%s2920_s26 + $0x3c8] ss:$16 sps:$4 sm:$0xff]   ;;  %v2801_v17 = vld [vmem:[%s2920_s26 + $0x3e4] ss:$16 sps:$4 sm:$0xff]  }
 0x127   : > { %v1633_v24 = vpop.f32.mrb[2].mxu0  ;;  %v1346_v25 = vpop.f32.mrb[3].mxu1  ;;  %v2803_v20 = vld [vmem:[%s2920_s26 + $0x3ec] ss:$16 sps:$4 sm:$0xff]  }
 0x128   : > { %1885 = vst [vmem:[%s3067_s30] sm:$0xff] %v1631_v19  ;;  %v1634_v27 = vadd.f32 %v1633_v24, %v1344_v21  ;;  %v1635_v28 = vpop.f32.mrb[3].mxu0  ;;  %v2019_v29 = vmul.f32 %v1631_v19, %v1631_v19 }
 0x129   : > { %1556 = vmatmul.mubr.bf16.gmra.mrb[108].mxu1 %v2781_v18 }
 0x12a   : > { %1886 = vst [vmem:[%s3067_s30 + $0x8] sm:$0xff] %v1634_v27  ;;  %v1949_v30 = vadd.f32 %v1634_v27, %v1631_v19  ;;  %v2020_v31 = vmul.f32 %v1634_v27, %v1634_v27  ;;  %1845 = vmatmul.mubr.bf16.gmra.mrb[108].mxu0 %v2782_v22  ;;  %1563 = vmatprep.mubr.bf16.mxu1 %v2783_v23 }
 0x12b   : > { %1852 = vmatprep.mubr.bf16.mxu0 %v2785_v26 }
 0x12c   : > { %v2083_v32 = vadd.f32 %v2020_v31, %v2019_v29  ;;  %v1349_v33 = vpop.f32.mrb[4].mxu1 }
 0x12d   : > { %v1638_v34 = vpop.f32.mrb[4].mxu0  ;;  %v1351_v35 = vpop.f32.mrb[5].mxu1 }
 0x12e   : > { %v1639_v37 = vadd.f32 %v1638_v34, %v1349_v33  ;;  %v1640_v38 = vpop.f32.mrb[5].mxu0  ;;  %v1352_v39 = vpop.f32.mrb[6].mxu1 }
 0x12f   : > { %v1641_v42 = vpop.f32.mrb[6].mxu0  ;;  %v1354_v43 = vpop.f32.mrb[7].mxu1 }
 0x130   : > { %1887 = vst [vmem:[%s3067_s30 + $0x10] sm:$0xff] %v1639_v37  ;;  %v1950_v45 = vadd.f32 %v1949_v30, %v1639_v37  ;;  %v2021_v46 = vmul.f32 %v1639_v37, %v1639_v37  ;;  %v1642_v47 = vadd.f32 %v1641_v42, %v1352_v39  ;;  %v1643_v48 = vpop.f32.mrb[7].mxu0 }
 0x131   : > { %1564 = vmatmul.mubr.bf16.gmra.mrb[112].mxu1 %v2787_v36  ;;  %v2806_v36 = vld [vmem:[%s2920_s26 + $0x3e8] ss:$16 sps:$4 sm:$0xff]  }
 0x132   : > { %v2084_v49 = vadd.f32 %v2083_v32, %v2021_v46  ;;  %1888 = vst [vmem:[%s3067_s30 + $0x18] sm:$0xff] %v1642_v47  ;;  %v1951_v50 = vadd.f32 %v1950_v45, %v1642_v47  ;;  %v2022_v51 = vmul.f32 %v1642_v47, %v1642_v47  ;;  %1853 = vmatmul.mubr.bf16.gmra.mrb[112].mxu0 %v2788_v40  ;;  %v2805_v32 = vld [vmem:[%s2920_s26 + $0x3e0] ss:$16 sps:$4 sm:$0xff]  }
 0x133   : > { %1571 = vmatprep.mubr.bf16.mxu1 %v2789_v41  ;;  %1860 = vmatprep.mubr.bf16.mxu0 %v2791_v44 }
 0x134   : > { %v2085_v52 = vadd.f32 %v2084_v49, %v2022_v51  ;;  %v1357_v53 = vpop.f32.mrb[8].mxu1 }
 0x135   : > { %v1646_v54 = vpop.f32.mrb[8].mxu0  ;;  %v1359_v55 = vpop.f32.mrb[9].mxu1 }
 0x136   : > { %v1647_v57 = vadd.f32 %v1646_v54, %v1357_v53  ;;  %v1648_v58 = vpop.f32.mrb[9].mxu0  ;;  %v1360_v59 = vpop.f32.mrb[10].mxu1 }
 0x137   : > { %v1649_v62 = vpop.f32.mrb[10].mxu0  ;;  %v1362_v63 = vpop.f32.mrb[11].mxu1 }
 0x138   : > { %1889 = vst [vmem:[%s3067_s30 + $0x20] sm:$0xff] %v1647_v57  ;;  %v1952_v1 = vadd.f32 %v1951_v50, %v1647_v57  ;;  %v2023_v2 = vmul.f32 %v1647_v57, %v1647_v57  ;;  %v1650_v3 = vadd.f32 %v1649_v62, %v1360_v59  ;;  %v1651_v4 = vpop.f32.mrb[11].mxu0 }
 0x139   : > { %1572 = vmatmul.mubr.bf16.gmra.mrb[116].mxu1 %v2793_v56 }
 0x13a   : > { %v2086_v5 = vadd.f32 %v2085_v52, %v2023_v2  ;;  %1890 = vst [vmem:[%s3067_s30 + $0x28] sm:$0xff] %v1650_v3  ;;  %v1953_v6 = vadd.f32 %v1952_v1, %v1650_v3  ;;  %v2024_v7 = vmul.f32 %v1650_v3, %v1650_v3  ;;  %1861 = vmatmul.mubr.bf16.gmra.mrb[116].mxu0 %v2794_v60 }
 0x13b   : > { %1579 = vmatprep.mubr.bf16.mxu1 %v2795_v61  ;;  %1868 = vmatprep.mubr.bf16.mxu0 %v2797_v0 }
 0x13c   : > { %v2087_v8 = vadd.f32 %v2086_v5, %v2024_v7  ;;  %v1365_v9 = vpop.f32.mrb[12].mxu1 }
 0x13d   : > { %v1654_v10 = vpop.f32.mrb[12].mxu0  ;;  %v1367_v11 = vpop.f32.mrb[13].mxu1 }
 0x13e   : > { %v1655_v13 = vadd.f32 %v1654_v10, %v1365_v9  ;;  %v1656_v14 = vpop.f32.mrb[13].mxu0  ;;  %v1368_v15 = vpop.f32.mrb[14].mxu1 }
 0x13f   : > { %v1657_v18 = vpop.f32.mrb[14].mxu0  ;;  %v1370_v19 = vpop.f32.mrb[15].mxu1 }
 0x140   : > { %1891 = vst [vmem:[%s3067_s30 + $0x30] sm:$0xff] %v1655_v13  ;;  %v1954_v21 = vadd.f32 %v1953_v6, %v1655_v13  ;;  %v2025_v22 = vmul.f32 %v1655_v13, %v1655_v13  ;;  %v1658_v23 = vadd.f32 %v1657_v18, %v1368_v15  ;;  %v1659_v24 = vpop.f32.mrb[15].mxu0 }
 0x141   : > { %1580 = vmatmul.mubr.bf16.gmra.mrb[120].mxu1 %v2799_v12 }
 0x142   : > { %v2088_v25 = vadd.f32 %v2087_v8, %v2025_v22  ;;  %1892 = vst [vmem:[%s3067_s30 + $0x38] sm:$0xff] %v1658_v23  ;;  %v1955_v26 = vadd.f32 %v1954_v21, %v1658_v23  ;;  %v2026_v27 = vmul.f32 %v1658_v23, %v1658_v23  ;;  %1869 = vmatmul.mubr.bf16.gmra.mrb[120].mxu0 %v2800_v16 }
 0x143   : > { %1587 = vmatprep.mubr.bf16.mxu1 %v2801_v17  ;;  %1876 = vmatprep.mubr.bf16.mxu0 %v2803_v20 }
 0x144   : > { %v2089_v28 = vadd.f32 %v2088_v25, %v2026_v27  ;;  %v1373_v29 = vpop.f32.mrb[16].mxu1 }
 0x145   : > { %v1662_v30 = vpop.f32.mrb[16].mxu0  ;;  %v1375_v31 = vpop.f32.mrb[17].mxu1 }
 0x146   : > { %v1663_v33 = vadd.f32 %v1662_v30, %v1373_v29  ;;  %v1664_v34 = vpop.f32.mrb[17].mxu0  ;;  %v1376_v35 = vpop.f32.mrb[18].mxu1 }
 0x147   : > { %v1665_v37 = vpop.f32.mrb[18].mxu0  ;;  %v1378_v38 = vpop.f32.mrb[19].mxu1 }
 0x148   : > { %1893 = vst [vmem:[%s3067_s30 + $0x40] sm:$0xff] %v1663_v33  ;;  %v1956_v39 = vadd.f32 %v1955_v26, %v1663_v33  ;;  %v2027_v40 = vmul.f32 %v1663_v33, %v1663_v33  ;;  %v1666_v41 = vadd.f32 %v1665_v37, %v1376_v35  ;;  %v1667_v42 = vpop.f32.mrb[19].mxu0 }
 0x149   : > { %1588 = vmatmul.mubr.bf16.gmra.mrb[124].mxu1 %v2805_v32 }
 0x14a   : > { %v2090_v43 = vadd.f32 %v2089_v28, %v2027_v40  ;;  %1894 = vst [vmem:[%s3067_s30 + $0x48] sm:$0xff] %v1666_v41  ;;  %v1957_v44 = vadd.f32 %v1956_v39, %v1666_v41  ;;  %v2028_v45 = vmul.f32 %v1666_v41, %v1666_v41  ;;  %1877 = vmatmul.mubr.bf16.gmra.mrb[124].mxu0 %v2806_v36 }
 0x14c   : > { %v2091_v46 = vadd.f32 %v2090_v43, %v2028_v45  ;;  %v1381_v47 = vpop.f32.mrb[20].mxu1 }
 0x14d   : > { %v1670_v48 = vpop.f32.mrb[20].mxu0  ;;  %v1383_v49 = vpop.f32.mrb[21].mxu1 }
 0x14e   : > { %v1671_v50 = vadd.f32 %v1670_v48, %v1381_v47  ;;  %v1672_v51 = vpop.f32.mrb[21].mxu0  ;;  %v1384_v52 = vpop.f32.mrb[22].mxu1 }
 0x14f   : > { %v1673_v53 = vpop.f32.mrb[22].mxu0  ;;  %v1386_v54 = vpop.f32.mrb[23].mxu1 }
 0x150   : > { %1895 = vst [vmem:[%s3067_s30 + $0x50] sm:$0xff] %v1671_v50  ;;  %v1958_v55 = vadd.f32 %v1957_v44, %v1671_v50  ;;  %v2029_v56 = vmul.f32 %v1671_v50, %v1671_v50  ;;  %v1674_v57 = vadd.f32 %v1673_v53, %v1384_v52  ;;  %v1675_v58 = vpop.f32.mrb[23].mxu0 }
 0x152   : > { %v2092_v59 = vadd.f32 %v2091_v46, %v2029_v56  ;;  %1896 = vst [vmem:[%s3067_s30 + $0x58] sm:$0xff] %v1674_v57  ;;  %v1959_v60 = vadd.f32 %v1958_v55, %v1674_v57  ;;  %v2030_v61 = vmul.f32 %v1674_v57, %v1674_v57 }
 0x154   : > { %v2093_v62 = vadd.f32 %v2092_v59, %v2030_v61  ;;  %v1389_v63 = vpop.f32.mrb[24].mxu1 }
 0x155   : > { %v1678_v0 = vpop.f32.mrb[24].mxu0  ;;  %v1391_v1 = vpop.f32.mrb[25].mxu1 }
 0x156   : > { %v1679_v2 = vadd.f32 %v1678_v0, %v1389_v63  ;;  %v1680_v3 = vpop.f32.mrb[25].mxu0  ;;  %v1392_v4 = vpop.f32.mrb[26].mxu1 }
 0x157   : > { %v1681_v5 = vpop.f32.mrb[26].mxu0  ;;  %v1394_v6 = vpop.f32.mrb[27].mxu1 }
 0x158   : > { %1897 = vst [vmem:[%s3067_s30 + $0x60] sm:$0xff] %v1679_v2  ;;  %v1960_v7 = vadd.f32 %v1959_v60, %v1679_v2  ;;  %v2031_v8 = vmul.f32 %v1679_v2, %v1679_v2  ;;  %v1682_v9 = vadd.f32 %v1681_v5, %v1392_v4  ;;  %v1683_v10 = vpop.f32.mrb[27].mxu0 }
 0x15a   : > { %v2094_v11 = vadd.f32 %v2093_v62, %v2031_v8  ;;  %1898 = vst [vmem:[%s3067_s30 + $0x68] sm:$0xff] %v1682_v9  ;;  %v1961_v12 = vadd.f32 %v1960_v7, %v1682_v9  ;;  %v2032_v13 = vmul.f32 %v1682_v9, %v1682_v9 }
 0x15c   : > { %v2095_v14 = vadd.f32 %v2094_v11, %v2032_v13  ;;  %v1397_v15 = vpop.f32.mrb[28].mxu1 }
 0x15d   : > { %v1686_v16 = vpop.f32.mrb[28].mxu0  ;;  %v1399_v17 = vpop.f32.mrb[29].mxu1 }
 0x15e   : > { %v1687_v18 = vadd.f32 %v1686_v16, %v1397_v15  ;;  %v1688_v19 = vpop.f32.mrb[29].mxu0  ;;  %v1400_v20 = vpop.f32.mrb[30].mxu1 }
 0x15f   : > { %v1689_v21 = vpop.f32.mrb[30].mxu0  ;;  %v1402_v22 = vpop.f32.mrb[31].mxu1 }
 0x160   : > { %1899 = vst [vmem:[%s3067_s30 + $0x70] sm:$0xff] %v1687_v18  ;;  %v1962_v23 = vadd.f32 %v1961_v12, %v1687_v18  ;;  %v2033_v24 = vmul.f32 %v1687_v18, %v1687_v18  ;;  %v1690_v25 = vadd.f32 %v1689_v21, %v1400_v20  ;;  %v1691_v26 = vpop.f32.mrb[31].mxu0 }
 0x162   : > { %v2096_v27 = vadd.f32 %v2095_v14, %v2033_v24  ;;  %1900 = vst [vmem:[%s3067_s30 + $0x78] sm:$0xff] %v1690_v25  ;;  %v1963_v28 = vadd.f32 %v1962_v23, %v1690_v25  ;;  %v2034_v29 = vmul.f32 %v1690_v25, %v1690_v25 }
 0x164   : > { %v2097_v30 = vadd.f32 %v2096_v27, %v2034_v29  ;;  %v1405_v31 = vpop.f32.mrb[32].mxu1 }
 0x165   : > { %v1694_v32 = vpop.f32.mrb[32].mxu0  ;;  %v1407_v33 = vpop.f32.mrb[33].mxu1 }
 0x166   : > { %v1695_v34 = vadd.f32 %v1694_v32, %v1405_v31  ;;  %v1696_v35 = vpop.f32.mrb[33].mxu0  ;;  %v1408_v36 = vpop.f32.mrb[34].mxu1 }
 0x167   : > { %v1697_v37 = vpop.f32.mrb[34].mxu0  ;;  %v1410_v38 = vpop.f32.mrb[35].mxu1 }
 0x168   : > { %1901 = vst [vmem:[%s3067_s30 + $0x80] sm:$0xff] %v1695_v34  ;;  %v1964_v39 = vadd.f32 %v1963_v28, %v1695_v34  ;;  %v2035_v40 = vmul.f32 %v1695_v34, %v1695_v34  ;;  %v1698_v41 = vadd.f32 %v1697_v37, %v1408_v36  ;;  %v1699_v42 = vpop.f32.mrb[35].mxu0 }
 0x16a   : > { %v2098_v43 = vadd.f32 %v2097_v30, %v2035_v40  ;;  %1902 = vst [vmem:[%s3067_s30 + $0x88] sm:$0xff] %v1698_v41  ;;  %v1965_v44 = vadd.f32 %v1964_v39, %v1698_v41  ;;  %v2036_v45 = vmul.f32 %v1698_v41, %v1698_v41 }
 0x16c   : > { %v2099_v46 = vadd.f32 %v2098_v43, %v2036_v45  ;;  %v1413_v47 = vpop.f32.mrb[36].mxu1 }
 0x16d   : > { %v1702_v48 = vpop.f32.mrb[36].mxu0  ;;  %v1415_v49 = vpop.f32.mrb[37].mxu1 }
 0x16e   : > { %v1703_v50 = vadd.f32 %v1702_v48, %v1413_v47  ;;  %v1704_v51 = vpop.f32.mrb[37].mxu0  ;;  %v1416_v52 = vpop.f32.mrb[38].mxu1 }
 0x16f   : > { %v1705_v53 = vpop.f32.mrb[38].mxu0  ;;  %v1418_v54 = vpop.f32.mrb[39].mxu1 }
 0x170   : > { %1903 = vst [vmem:[%s3067_s30 + $0x90] sm:$0xff] %v1703_v50  ;;  %v1966_v55 = vadd.f32 %v1965_v44, %v1703_v50  ;;  %v2037_v56 = vmul.f32 %v1703_v50, %v1703_v50  ;;  %v1706_v57 = vadd.f32 %v1705_v53, %v1416_v52  ;;  %v1707_v58 = vpop.f32.mrb[39].mxu0 }
 0x172   : > { %v2100_v59 = vadd.f32 %v2099_v46, %v2037_v56  ;;  %1904 = vst [vmem:[%s3067_s30 + $0x98] sm:$0xff] %v1706_v57  ;;  %v1967_v60 = vadd.f32 %v1966_v55, %v1706_v57  ;;  %v2038_v61 = vmul.f32 %v1706_v57, %v1706_v57 }
 0x174   : > { %v2101_v62 = vadd.f32 %v2100_v59, %v2038_v61  ;;  %v1421_v63 = vpop.f32.mrb[40].mxu1 }
 0x175   : > { %v1710_v0 = vpop.f32.mrb[40].mxu0  ;;  %v1423_v1 = vpop.f32.mrb[41].mxu1 }
 0x176   : > { %v1711_v2 = vadd.f32 %v1710_v0, %v1421_v63  ;;  %v1712_v3 = vpop.f32.mrb[41].mxu0  ;;  %v1424_v4 = vpop.f32.mrb[42].mxu1 }
 0x177   : > { %v1713_v5 = vpop.f32.mrb[42].mxu0  ;;  %v1426_v6 = vpop.f32.mrb[43].mxu1 }
 0x178   : > { %1905 = vst [vmem:[%s3067_s30 + $0xa0] sm:$0xff] %v1711_v2  ;;  %v1968_v7 = vadd.f32 %v1967_v60, %v1711_v2  ;;  %v2039_v8 = vmul.f32 %v1711_v2, %v1711_v2  ;;  %v1714_v9 = vadd.f32 %v1713_v5, %v1424_v4  ;;  %v1715_v10 = vpop.f32.mrb[43].mxu0 }
 0x17a   : > { %v2102_v11 = vadd.f32 %v2101_v62, %v2039_v8  ;;  %1906 = vst [vmem:[%s3067_s30 + $0xa8] sm:$0xff] %v1714_v9  ;;  %v1969_v12 = vadd.f32 %v1968_v7, %v1714_v9  ;;  %v2040_v13 = vmul.f32 %v1714_v9, %v1714_v9 }
 0x17c   : > { %v2103_v14 = vadd.f32 %v2102_v11, %v2040_v13  ;;  %v1429_v15 = vpop.f32.mrb[44].mxu1 }
 0x17d   : > { %v1718_v16 = vpop.f32.mrb[44].mxu0  ;;  %v1431_v17 = vpop.f32.mrb[45].mxu1 }
 0x17e   : > { %v1719_v18 = vadd.f32 %v1718_v16, %v1429_v15  ;;  %v1720_v19 = vpop.f32.mrb[45].mxu0  ;;  %v1432_v20 = vpop.f32.mrb[46].mxu1 }
 0x17f   : > { %v1721_v21 = vpop.f32.mrb[46].mxu0  ;;  %v1434_v22 = vpop.f32.mrb[47].mxu1 }
 0x180   : > { %1907 = vst [vmem:[%s3067_s30 + $0xb0] sm:$0xff] %v1719_v18  ;;  %v1970_v23 = vadd.f32 %v1969_v12, %v1719_v18  ;;  %v2041_v24 = vmul.f32 %v1719_v18, %v1719_v18  ;;  %v1722_v25 = vadd.f32 %v1721_v21, %v1432_v20  ;;  %v1723_v26 = vpop.f32.mrb[47].mxu0 }
 0x182   : > { %v2104_v27 = vadd.f32 %v2103_v14, %v2041_v24  ;;  %1908 = vst [vmem:[%s3067_s30 + $0xb8] sm:$0xff] %v1722_v25  ;;  %v1971_v28 = vadd.f32 %v1970_v23, %v1722_v25  ;;  %v2042_v29 = vmul.f32 %v1722_v25, %v1722_v25 }
 0x184   : > { %v2105_v30 = vadd.f32 %v2104_v27, %v2042_v29  ;;  %v1437_v31 = vpop.f32.mrb[48].mxu1 }
 0x185   : > { %v1726_v32 = vpop.f32.mrb[48].mxu0  ;;  %v1439_v33 = vpop.f32.mrb[49].mxu1 }
 0x186   : > { %v1727_v34 = vadd.f32 %v1726_v32, %v1437_v31  ;;  %v1728_v35 = vpop.f32.mrb[49].mxu0  ;;  %v1440_v36 = vpop.f32.mrb[50].mxu1 }
 0x187   : > { %v1729_v37 = vpop.f32.mrb[50].mxu0  ;;  %v1442_v38 = vpop.f32.mrb[51].mxu1 }
 0x188   : > { %1909 = vst [vmem:[%s3067_s30 + $0xc0] sm:$0xff] %v1727_v34  ;;  %v1972_v39 = vadd.f32 %v1971_v28, %v1727_v34  ;;  %v2043_v40 = vmul.f32 %v1727_v34, %v1727_v34  ;;  %v1730_v41 = vadd.f32 %v1729_v37, %v1440_v36  ;;  %v1731_v42 = vpop.f32.mrb[51].mxu0 }
 0x18a   : > { %v2106_v43 = vadd.f32 %v2105_v30, %v2043_v40  ;;  %1910 = vst [vmem:[%s3067_s30 + $0xc8] sm:$0xff] %v1730_v41  ;;  %v1973_v44 = vadd.f32 %v1972_v39, %v1730_v41  ;;  %v2044_v45 = vmul.f32 %v1730_v41, %v1730_v41 }
 0x18c   : > { %v2107_v46 = vadd.f32 %v2106_v43, %v2044_v45  ;;  %v1445_v47 = vpop.f32.mrb[52].mxu1 }
 0x18d   : > { %v1734_v48 = vpop.f32.mrb[52].mxu0  ;;  %v1447_v49 = vpop.f32.mrb[53].mxu1 }
 0x18e   : > { %v1735_v50 = vadd.f32 %v1734_v48, %v1445_v47  ;;  %v1736_v51 = vpop.f32.mrb[53].mxu0  ;;  %v1448_v52 = vpop.f32.mrb[54].mxu1 }
 0x18f   : > { %v1737_v53 = vpop.f32.mrb[54].mxu0  ;;  %v1450_v54 = vpop.f32.mrb[55].mxu1 }
 0x190   : > { %1911 = vst [vmem:[%s3067_s30 + $0xd0] sm:$0xff] %v1735_v50  ;;  %v1974_v55 = vadd.f32 %v1973_v44, %v1735_v50  ;;  %v2045_v56 = vmul.f32 %v1735_v50, %v1735_v50  ;;  %v1738_v57 = vadd.f32 %v1737_v53, %v1448_v52  ;;  %v1739_v58 = vpop.f32.mrb[55].mxu0 }
 0x192   : > { %v2108_v59 = vadd.f32 %v2107_v46, %v2045_v56  ;;  %1912 = vst [vmem:[%s3067_s30 + $0xd8] sm:$0xff] %v1738_v57  ;;  %v1975_v60 = vadd.f32 %v1974_v55, %v1738_v57  ;;  %v2046_v61 = vmul.f32 %v1738_v57, %v1738_v57 }
 0x194   : > { %v2109_v62 = vadd.f32 %v2108_v59, %v2046_v61  ;;  %v1453_v63 = vpop.f32.mrb[56].mxu1 }
 0x195   : > { %v1742_v0 = vpop.f32.mrb[56].mxu0  ;;  %v1455_v1 = vpop.f32.mrb[57].mxu1 }
 0x196   : > { %v1743_v2 = vadd.f32 %v1742_v0, %v1453_v63  ;;  %v1744_v3 = vpop.f32.mrb[57].mxu0  ;;  %v1456_v4 = vpop.f32.mrb[58].mxu1 }
 0x197   : > { %v1745_v5 = vpop.f32.mrb[58].mxu0  ;;  %v1458_v6 = vpop.f32.mrb[59].mxu1 }
 0x198   : > { %1913 = vst [vmem:[%s3067_s30 + $0xe0] sm:$0xff] %v1743_v2  ;;  %v1976_v7 = vadd.f32 %v1975_v60, %v1743_v2  ;;  %v2047_v8 = vmul.f32 %v1743_v2, %v1743_v2  ;;  %v1746_v9 = vadd.f32 %v1745_v5, %v1456_v4  ;;  %v1747_v10 = vpop.f32.mrb[59].mxu0 }
 0x19a   : > { %v2110_v11 = vadd.f32 %v2109_v62, %v2047_v8  ;;  %1914 = vst [vmem:[%s3067_s30 + $0xe8] sm:$0xff] %v1746_v9  ;;  %v1977_v12 = vadd.f32 %v1976_v7, %v1746_v9  ;;  %v2048_v13 = vmul.f32 %v1746_v9, %v1746_v9 }
 0x19c   : > { %v2111_v14 = vadd.f32 %v2110_v11, %v2048_v13  ;;  %v1461_v15 = vpop.f32.mrb[60].mxu1 }
 0x19d   : > { %v1750_v16 = vpop.f32.mrb[60].mxu0  ;;  %v1463_v17 = vpop.f32.mrb[61].mxu1 }
 0x19e   : > { %v1751_v18 = vadd.f32 %v1750_v16, %v1461_v15  ;;  %v1752_v19 = vpop.f32.mrb[61].mxu0  ;;  %v1464_v20 = vpop.f32.mrb[62].mxu1 }
 0x19f   : > { %v1753_v21 = vpop.f32.mrb[62].mxu0  ;;  %v1466_v22 = vpop.f32.mrb[63].mxu1 }
 0x1a0   : > { %1915 = vst [vmem:[%s3067_s30 + $0xf0] sm:$0xff] %v1751_v18  ;;  %v1978_v23 = vadd.f32 %v1977_v12, %v1751_v18  ;;  %v2049_v24 = vmul.f32 %v1751_v18, %v1751_v18  ;;  %v1754_v25 = vadd.f32 %v1753_v21, %v1464_v20  ;;  %v1755_v26 = vpop.f32.mrb[63].mxu0 }
 0x1a2   : > { %v2112_v27 = vadd.f32 %v2111_v14, %v2049_v24  ;;  %1916 = vst [vmem:[%s3067_s30 + $0xf8] sm:$0xff] %v1754_v25  ;;  %v1979_v28 = vadd.f32 %v1978_v23, %v1754_v25  ;;  %v2050_v29 = vmul.f32 %v1754_v25, %v1754_v25 }
 0x1a4   : > { %v2113_v30 = vadd.f32 %v2112_v27, %v2050_v29  ;;  %v1469_v31 = vpop.f32.mrb[64].mxu1 }
 0x1a5   : > { %v1758_v32 = vpop.f32.mrb[64].mxu0  ;;  %v1471_v33 = vpop.f32.mrb[65].mxu1 }
 0x1a6   : > { %v1759_v34 = vadd.f32 %v1758_v32, %v1469_v31  ;;  %v1760_v35 = vpop.f32.mrb[65].mxu0  ;;  %v1472_v36 = vpop.f32.mrb[66].mxu1 }
 0x1a7   : > { %v1761_v37 = vpop.f32.mrb[66].mxu0  ;;  %v1474_v38 = vpop.f32.mrb[67].mxu1 }
 0x1a8   : > { %1917 = vst [vmem:[%s3067_s30 + $0x100] sm:$0xff] %v1759_v34  ;;  %v1980_v39 = vadd.f32 %v1979_v28, %v1759_v34  ;;  %v2051_v40 = vmul.f32 %v1759_v34, %v1759_v34  ;;  %v1762_v41 = vadd.f32 %v1761_v37, %v1472_v36  ;;  %v1763_v42 = vpop.f32.mrb[67].mxu0 }
 0x1aa   : > { %v2114_v43 = vadd.f32 %v2113_v30, %v2051_v40  ;;  %1918 = vst [vmem:[%s3067_s30 + $0x108] sm:$0xff] %v1762_v41  ;;  %v1981_v44 = vadd.f32 %v1980_v39, %v1762_v41  ;;  %v2052_v45 = vmul.f32 %v1762_v41, %v1762_v41 }
 0x1ac   : > { %v2115_v46 = vadd.f32 %v2114_v43, %v2052_v45  ;;  %v1477_v47 = vpop.f32.mrb[68].mxu1 }
 0x1ad   : > { %v1766_v48 = vpop.f32.mrb[68].mxu0  ;;  %v1479_v49 = vpop.f32.mrb[69].mxu1 }
 0x1ae   : > { %v1767_v50 = vadd.f32 %v1766_v48, %v1477_v47  ;;  %v1768_v51 = vpop.f32.mrb[69].mxu0  ;;  %v1480_v52 = vpop.f32.mrb[70].mxu1 }
 0x1af   : > { %v1769_v53 = vpop.f32.mrb[70].mxu0  ;;  %v1482_v54 = vpop.f32.mrb[71].mxu1 }
 0x1b0   : > { %1919 = vst [vmem:[%s3067_s30 + $0x110] sm:$0xff] %v1767_v50  ;;  %v1982_v55 = vadd.f32 %v1981_v44, %v1767_v50  ;;  %v2053_v56 = vmul.f32 %v1767_v50, %v1767_v50  ;;  %v1770_v57 = vadd.f32 %v1769_v53, %v1480_v52  ;;  %v1771_v58 = vpop.f32.mrb[71].mxu0 }
 0x1b2   : > { %v2116_v59 = vadd.f32 %v2115_v46, %v2053_v56  ;;  %1920 = vst [vmem:[%s3067_s30 + $0x118] sm:$0xff] %v1770_v57  ;;  %v1983_v60 = vadd.f32 %v1982_v55, %v1770_v57  ;;  %v2054_v61 = vmul.f32 %v1770_v57, %v1770_v57 }
 0x1b4   : > { %v2117_v62 = vadd.f32 %v2116_v59, %v2054_v61  ;;  %v1485_v63 = vpop.f32.mrb[72].mxu1 }
 0x1b5   : > { %v1774_v0 = vpop.f32.mrb[72].mxu0  ;;  %v1487_v1 = vpop.f32.mrb[73].mxu1 }
 0x1b6   : > { %v1775_v2 = vadd.f32 %v1774_v0, %v1485_v63  ;;  %v1776_v3 = vpop.f32.mrb[73].mxu0  ;;  %v1488_v4 = vpop.f32.mrb[74].mxu1 }
 0x1b7   : > { %v1777_v5 = vpop.f32.mrb[74].mxu0  ;;  %v1490_v6 = vpop.f32.mrb[75].mxu1 }
 0x1b8   : > { %1921 = vst [vmem:[%s3067_s30 + $0x120] sm:$0xff] %v1775_v2  ;;  %v1984_v7 = vadd.f32 %v1983_v60, %v1775_v2  ;;  %v2055_v8 = vmul.f32 %v1775_v2, %v1775_v2  ;;  %v1778_v9 = vadd.f32 %v1777_v5, %v1488_v4  ;;  %v1779_v10 = vpop.f32.mrb[75].mxu0 }
 0x1ba   : > { %v2118_v11 = vadd.f32 %v2117_v62, %v2055_v8  ;;  %1922 = vst [vmem:[%s3067_s30 + $0x128] sm:$0xff] %v1778_v9  ;;  %v1985_v12 = vadd.f32 %v1984_v7, %v1778_v9  ;;  %v2056_v13 = vmul.f32 %v1778_v9, %v1778_v9 }
 0x1bc   : > { %v2119_v14 = vadd.f32 %v2118_v11, %v2056_v13  ;;  %v1493_v15 = vpop.f32.mrb[76].mxu1 }
 0x1bd   : > { %v1782_v16 = vpop.f32.mrb[76].mxu0  ;;  %v1495_v17 = vpop.f32.mrb[77].mxu1 }
 0x1be   : > { %v1783_v18 = vadd.f32 %v1782_v16, %v1493_v15  ;;  %v1784_v19 = vpop.f32.mrb[77].mxu0  ;;  %v1496_v20 = vpop.f32.mrb[78].mxu1 }
 0x1bf   : > { %v1785_v21 = vpop.f32.mrb[78].mxu0  ;;  %v1498_v22 = vpop.f32.mrb[79].mxu1 }
 0x1c0   : > { %1923 = vst [vmem:[%s3067_s30 + $0x130] sm:$0xff] %v1783_v18  ;;  %v1986_v23 = vadd.f32 %v1985_v12, %v1783_v18  ;;  %v2057_v24 = vmul.f32 %v1783_v18, %v1783_v18  ;;  %v1786_v25 = vadd.f32 %v1785_v21, %v1496_v20  ;;  %v1787_v26 = vpop.f32.mrb[79].mxu0 }
 0x1c2   : > { %v2120_v27 = vadd.f32 %v2119_v14, %v2057_v24  ;;  %1924 = vst [vmem:[%s3067_s30 + $0x138] sm:$0xff] %v1786_v25  ;;  %v1987_v28 = vadd.f32 %v1986_v23, %v1786_v25  ;;  %v2058_v29 = vmul.f32 %v1786_v25, %v1786_v25 }
 0x1c4   : > { %v2121_v30 = vadd.f32 %v2120_v27, %v2058_v29  ;;  %v1501_v31 = vpop.f32.mrb[80].mxu1 }
 0x1c5   : > { %v1790_v32 = vpop.f32.mrb[80].mxu0  ;;  %v1503_v33 = vpop.f32.mrb[81].mxu1 }
 0x1c6   : > { %v1791_v34 = vadd.f32 %v1790_v32, %v1501_v31  ;;  %v1792_v35 = vpop.f32.mrb[81].mxu0  ;;  %v1504_v36 = vpop.f32.mrb[82].mxu1 }
 0x1c7   : > { %v1793_v37 = vpop.f32.mrb[82].mxu0  ;;  %v1506_v38 = vpop.f32.mrb[83].mxu1 }
 0x1c8   : > { %1925 = vst [vmem:[%s3067_s30 + $0x140] sm:$0xff] %v1791_v34  ;;  %v1988_v39 = vadd.f32 %v1987_v28, %v1791_v34  ;;  %v2059_v40 = vmul.f32 %v1791_v34, %v1791_v34  ;;  %v1794_v41 = vadd.f32 %v1793_v37, %v1504_v36  ;;  %v1795_v42 = vpop.f32.mrb[83].mxu0 }
 0x1ca   : > { %v2122_v43 = vadd.f32 %v2121_v30, %v2059_v40  ;;  %1926 = vst [vmem:[%s3067_s30 + $0x148] sm:$0xff] %v1794_v41  ;;  %v1989_v44 = vadd.f32 %v1988_v39, %v1794_v41  ;;  %v2060_v45 = vmul.f32 %v1794_v41, %v1794_v41 }
 0x1cc   : > { %v2123_v46 = vadd.f32 %v2122_v43, %v2060_v45  ;;  %v1509_v47 = vpop.f32.mrb[84].mxu1 }
 0x1cd   : > { %v1798_v48 = vpop.f32.mrb[84].mxu0  ;;  %v1511_v49 = vpop.f32.mrb[85].mxu1 }
 0x1ce   : > { %v1799_v50 = vadd.f32 %v1798_v48, %v1509_v47  ;;  %v1800_v51 = vpop.f32.mrb[85].mxu0  ;;  %v1512_v52 = vpop.f32.mrb[86].mxu1 }
 0x1cf   : > { %v1801_v53 = vpop.f32.mrb[86].mxu0  ;;  %v1514_v54 = vpop.f32.mrb[87].mxu1 }
 0x1d0   : > { %1927 = vst [vmem:[%s3067_s30 + $0x150] sm:$0xff] %v1799_v50  ;;  %v1990_v55 = vadd.f32 %v1989_v44, %v1799_v50  ;;  %v2061_v56 = vmul.f32 %v1799_v50, %v1799_v50  ;;  %v1802_v57 = vadd.f32 %v1801_v53, %v1512_v52  ;;  %v1803_v58 = vpop.f32.mrb[87].mxu0 }
 0x1d2   : > { %v2124_v59 = vadd.f32 %v2123_v46, %v2061_v56  ;;  %1928 = vst [vmem:[%s3067_s30 + $0x158] sm:$0xff] %v1802_v57  ;;  %v1991_v60 = vadd.f32 %v1990_v55, %v1802_v57  ;;  %v2062_v61 = vmul.f32 %v1802_v57, %v1802_v57 }
 0x1d4   : > { %v2125_v62 = vadd.f32 %v2124_v59, %v2062_v61  ;;  %v1517_v63 = vpop.f32.mrb[88].mxu1 }
 0x1d5   : > { %v1806_v0 = vpop.f32.mrb[88].mxu0  ;;  %v1519_v1 = vpop.f32.mrb[89].mxu1 }
 0x1d6   : > { %v1807_v2 = vadd.f32 %v1806_v0, %v1517_v63  ;;  %v1808_v3 = vpop.f32.mrb[89].mxu0  ;;  %v1520_v4 = vpop.f32.mrb[90].mxu1 }
 0x1d7   : > { %v1809_v5 = vpop.f32.mrb[90].mxu0  ;;  %v1522_v6 = vpop.f32.mrb[91].mxu1 }
 0x1d8   : > { %1929 = vst [vmem:[%s3067_s30 + $0x160] sm:$0xff] %v1807_v2  ;;  %v1992_v7 = vadd.f32 %v1991_v60, %v1807_v2  ;;  %v2063_v8 = vmul.f32 %v1807_v2, %v1807_v2  ;;  %v1810_v9 = vadd.f32 %v1809_v5, %v1520_v4  ;;  %v1811_v10 = vpop.f32.mrb[91].mxu0 }
 0x1da   : > { %v2126_v11 = vadd.f32 %v2125_v62, %v2063_v8  ;;  %1930 = vst [vmem:[%s3067_s30 + $0x168] sm:$0xff] %v1810_v9  ;;  %v1993_v12 = vadd.f32 %v1992_v7, %v1810_v9  ;;  %v2064_v13 = vmul.f32 %v1810_v9, %v1810_v9 }
 0x1dc   : > { %v2127_v14 = vadd.f32 %v2126_v11, %v2064_v13  ;;  %v1525_v15 = vpop.f32.mrb[92].mxu1 }
 0x1dd   : > { %v1814_v16 = vpop.f32.mrb[92].mxu0  ;;  %v1527_v17 = vpop.f32.mrb[93].mxu1 }
 0x1de   : > { %v1815_v18 = vadd.f32 %v1814_v16, %v1525_v15  ;;  %v1816_v19 = vpop.f32.mrb[93].mxu0  ;;  %v1528_v20 = vpop.f32.mrb[94].mxu1 }
 0x1df   : > { %v1817_v21 = vpop.f32.mrb[94].mxu0  ;;  %v1530_v22 = vpop.f32.mrb[95].mxu1 }
 0x1e0   : > { %1931 = vst [vmem:[%s3067_s30 + $0x170] sm:$0xff] %v1815_v18  ;;  %v1994_v23 = vadd.f32 %v1993_v12, %v1815_v18  ;;  %v2065_v24 = vmul.f32 %v1815_v18, %v1815_v18  ;;  %v1818_v25 = vadd.f32 %v1817_v21, %v1528_v20  ;;  %v1819_v26 = vpop.f32.mrb[95].mxu0 }
 0x1e2   : > { %v2128_v27 = vadd.f32 %v2127_v14, %v2065_v24  ;;  %1932 = vst [vmem:[%s3067_s30 + $0x178] sm:$0xff] %v1818_v25  ;;  %v1995_v28 = vadd.f32 %v1994_v23, %v1818_v25  ;;  %v2066_v29 = vmul.f32 %v1818_v25, %v1818_v25 }
 0x1e4   : > { %v2129_v30 = vadd.f32 %v2128_v27, %v2066_v29  ;;  %v1533_v31 = vpop.f32.mrb[96].mxu1 }
 0x1e5   : > { %v1822_v32 = vpop.f32.mrb[96].mxu0  ;;  %v1535_v33 = vpop.f32.mrb[97].mxu1 }
 0x1e6   : > { %v1823_v34 = vadd.f32 %v1822_v32, %v1533_v31  ;;  %v1824_v35 = vpop.f32.mrb[97].mxu0  ;;  %v1536_v36 = vpop.f32.mrb[98].mxu1 }
 0x1e7   : > { %v1825_v37 = vpop.f32.mrb[98].mxu0  ;;  %v1538_v38 = vpop.f32.mrb[99].mxu1 }
 0x1e8   : > { %1933 = vst [vmem:[%s3067_s30 + $0x180] sm:$0xff] %v1823_v34  ;;  %v1996_v39 = vadd.f32 %v1995_v28, %v1823_v34  ;;  %v2067_v40 = vmul.f32 %v1823_v34, %v1823_v34  ;;  %v1826_v41 = vadd.f32 %v1825_v37, %v1536_v36  ;;  %v1827_v42 = vpop.f32.mrb[99].mxu0 }
 0x1ea   : > { %v2130_v43 = vadd.f32 %v2129_v30, %v2067_v40  ;;  %1934 = vst [vmem:[%s3067_s30 + $0x188] sm:$0xff] %v1826_v41  ;;  %v1997_v44 = vadd.f32 %v1996_v39, %v1826_v41  ;;  %v2068_v45 = vmul.f32 %v1826_v41, %v1826_v41 }
 0x1ec   : > { %v2131_v46 = vadd.f32 %v2130_v43, %v2068_v45  ;;  %v1541_v47 = vpop.f32.mrb[100].mxu1 }
 0x1ed   : > { %v1830_v48 = vpop.f32.mrb[100].mxu0  ;;  %v1543_v49 = vpop.f32.mrb[101].mxu1 }
 0x1ee   : > { %v1831_v50 = vadd.f32 %v1830_v48, %v1541_v47  ;;  %v1832_v51 = vpop.f32.mrb[101].mxu0  ;;  %v1544_v52 = vpop.f32.mrb[102].mxu1 }
 0x1ef   : > { %v1833_v53 = vpop.f32.mrb[102].mxu0  ;;  %v1546_v54 = vpop.f32.mrb[103].mxu1 }
 0x1f0   : > { %1935 = vst [vmem:[%s3067_s30 + $0x190] sm:$0xff] %v1831_v50  ;;  %v1998_v55 = vadd.f32 %v1997_v44, %v1831_v50  ;;  %v2069_v56 = vmul.f32 %v1831_v50, %v1831_v50  ;;  %v1834_v57 = vadd.f32 %v1833_v53, %v1544_v52  ;;  %v1835_v58 = vpop.f32.mrb[103].mxu0 }
 0x1f2   : > { %v2132_v59 = vadd.f32 %v2131_v46, %v2069_v56  ;;  %1936 = vst [vmem:[%s3067_s30 + $0x198] sm:$0xff] %v1834_v57  ;;  %v1999_v60 = vadd.f32 %v1998_v55, %v1834_v57  ;;  %v2070_v61 = vmul.f32 %v1834_v57, %v1834_v57 }
 0x1f4   : > { %v2133_v62 = vadd.f32 %v2132_v59, %v2070_v61  ;;  %v1549_v63 = vpop.f32.mrb[104].mxu1 }
 0x1f5   : > { %v1838_v0 = vpop.f32.mrb[104].mxu0  ;;  %v1551_v1 = vpop.f32.mrb[105].mxu1 }
 0x1f6   : > { %v1839_v2 = vadd.f32 %v1838_v0, %v1549_v63  ;;  %v1840_v3 = vpop.f32.mrb[105].mxu0  ;;  %v1552_v4 = vpop.f32.mrb[106].mxu1 }
 0x1f7   : > { %v1841_v5 = vpop.f32.mrb[106].mxu0  ;;  %v1554_v6 = vpop.f32.mrb[107].mxu1 }
 0x1f8   : > { %1937 = vst [vmem:[%s3067_s30 + $0x1a0] sm:$0xff] %v1839_v2  ;;  %v2000_v7 = vadd.f32 %v1999_v60, %v1839_v2  ;;  %v2071_v8 = vmul.f32 %v1839_v2, %v1839_v2  ;;  %v1842_v9 = vadd.f32 %v1841_v5, %v1552_v4  ;;  %v1843_v10 = vpop.f32.mrb[107].mxu0 }
 0x1fa   : > { %v2134_v11 = vadd.f32 %v2133_v62, %v2071_v8  ;;  %1938 = vst [vmem:[%s3067_s30 + $0x1a8] sm:$0xff] %v1842_v9  ;;  %v2001_v12 = vadd.f32 %v2000_v7, %v1842_v9  ;;  %v2072_v13 = vmul.f32 %v1842_v9, %v1842_v9 }
 0x1fc   : > { %v2135_v14 = vadd.f32 %v2134_v11, %v2072_v13  ;;  %v1557_v15 = vpop.f32.mrb[108].mxu1 }
 0x1fd   : > { %v1846_v16 = vpop.f32.mrb[108].mxu0  ;;  %v1559_v17 = vpop.f32.mrb[109].mxu1 }
 0x1fe   : > { %v1847_v18 = vadd.f32 %v1846_v16, %v1557_v15  ;;  %v1848_v19 = vpop.f32.mrb[109].mxu0  ;;  %v1560_v20 = vpop.f32.mrb[110].mxu1 }
 0x1ff   : > { %v1849_v21 = vpop.f32.mrb[110].mxu0  ;;  %v1562_v22 = vpop.f32.mrb[111].mxu1 }
 0x200   : > { %1939 = vst [vmem:[%s3067_s30 + $0x1b0] sm:$0xff] %v1847_v18  ;;  %v2002_v23 = vadd.f32 %v2001_v12, %v1847_v18  ;;  %v2073_v24 = vmul.f32 %v1847_v18, %v1847_v18  ;;  %v1850_v25 = vadd.f32 %v1849_v21, %v1560_v20  ;;  %v1851_v26 = vpop.f32.mrb[111].mxu0 }
 0x202   : > { %v2136_v27 = vadd.f32 %v2135_v14, %v2073_v24  ;;  %1940 = vst [vmem:[%s3067_s30 + $0x1b8] sm:$0xff] %v1850_v25  ;;  %v2003_v28 = vadd.f32 %v2002_v23, %v1850_v25  ;;  %v2074_v29 = vmul.f32 %v1850_v25, %v1850_v25 }
 0x204   : > { %v2137_v30 = vadd.f32 %v2136_v27, %v2074_v29  ;;  %v1565_v31 = vpop.f32.mrb[112].mxu1 }
 0x205   : > { %v1854_v32 = vpop.f32.mrb[112].mxu0  ;;  %v1567_v33 = vpop.f32.mrb[113].mxu1 }
 0x206   : > { %v1855_v34 = vadd.f32 %v1854_v32, %v1565_v31  ;;  %v1856_v35 = vpop.f32.mrb[113].mxu0  ;;  %v1568_v36 = vpop.f32.mrb[114].mxu1 }
 0x207   : > { %v1857_v37 = vpop.f32.mrb[114].mxu0  ;;  %v1570_v38 = vpop.f32.mrb[115].mxu1 }
 0x208   : > { %1941 = vst [vmem:[%s3067_s30 + $0x1c0] sm:$0xff] %v1855_v34  ;;  %v2004_v39 = vadd.f32 %v2003_v28, %v1855_v34  ;;  %v2075_v40 = vmul.f32 %v1855_v34, %v1855_v34  ;;  %v1858_v41 = vadd.f32 %v1857_v37, %v1568_v36  ;;  %v1859_v42 = vpop.f32.mrb[115].mxu0 }
 0x20a   : > { %v2138_v43 = vadd.f32 %v2137_v30, %v2075_v40  ;;  %1942 = vst [vmem:[%s3067_s30 + $0x1c8] sm:$0xff] %v1858_v41  ;;  %v2005_v44 = vadd.f32 %v2004_v39, %v1858_v41  ;;  %v2076_v45 = vmul.f32 %v1858_v41, %v1858_v41 }
 0x20c   : > { %v2139_v46 = vadd.f32 %v2138_v43, %v2076_v45  ;;  %v1573_v47 = vpop.f32.mrb[116].mxu1 }
 0x20d   : > { %v1862_v48 = vpop.f32.mrb[116].mxu0  ;;  %v1575_v49 = vpop.f32.mrb[117].mxu1 }
 0x20e   : > { %v1863_v50 = vadd.f32 %v1862_v48, %v1573_v47  ;;  %v1864_v51 = vpop.f32.mrb[117].mxu0  ;;  %v1576_v52 = vpop.f32.mrb[118].mxu1 }
 0x20f   : > { %v1865_v53 = vpop.f32.mrb[118].mxu0  ;;  %v1578_v54 = vpop.f32.mrb[119].mxu1 }
 0x210   : > { %1943 = vst [vmem:[%s3067_s30 + $0x1d0] sm:$0xff] %v1863_v50  ;;  %v2006_v55 = vadd.f32 %v2005_v44, %v1863_v50  ;;  %v2077_v56 = vmul.f32 %v1863_v50, %v1863_v50  ;;  %v1866_v57 = vadd.f32 %v1865_v53, %v1576_v52  ;;  %v1867_v58 = vpop.f32.mrb[119].mxu0 }
 0x212   : > { %v2140_v59 = vadd.f32 %v2139_v46, %v2077_v56  ;;  %1944 = vst [vmem:[%s3067_s30 + $0x1d8] sm:$0xff] %v1866_v57  ;;  %v2007_v60 = vadd.f32 %v2006_v55, %v1866_v57  ;;  %v2078_v61 = vmul.f32 %v1866_v57, %v1866_v57 }
 0x214   : > { %v2141_v62 = vadd.f32 %v2140_v59, %v2078_v61  ;;  %v1581_v63 = vpop.f32.mrb[120].mxu1 }
 0x215   : > { %v1870_v0 = vpop.f32.mrb[120].mxu0  ;;  %v1583_v1 = vpop.f32.mrb[121].mxu1 }
 0x216   : > { %v1871_v2 = vadd.f32 %v1870_v0, %v1581_v63  ;;  %v1872_v3 = vpop.f32.mrb[121].mxu0  ;;  %v1584_v4 = vpop.f32.mrb[122].mxu1 }
 0x217   : > { %v1873_v5 = vpop.f32.mrb[122].mxu0  ;;  %v1586_v6 = vpop.f32.mrb[123].mxu1 }
 0x218   : > { %1945 = vst [vmem:[%s3067_s30 + $0x1e0] sm:$0xff] %v1871_v2  ;;  %v2008_v7 = vadd.f32 %v2007_v60, %v1871_v2  ;;  %v2079_v8 = vmul.f32 %v1871_v2, %v1871_v2  ;;  %v1874_v9 = vadd.f32 %v1873_v5, %v1584_v4  ;;  %v1875_v10 = vpop.f32.mrb[123].mxu0 }
 0x21a   : > { %v2142_v11 = vadd.f32 %v2141_v62, %v2079_v8  ;;  %1946 = vst [vmem:[%s3067_s30 + $0x1e8] sm:$0xff] %v1874_v9  ;;  %v2009_v12 = vadd.f32 %v2008_v7, %v1874_v9  ;;  %v2080_v13 = vmul.f32 %v1874_v9, %v1874_v9 }
 0x21c   : > { %v2143_v14 = vadd.f32 %v2142_v11, %v2080_v13  ;;  %v1589_v15 = vpop.f32.mrb[124].mxu1 }
 0x21d   : > { %v1878_v16 = vpop.f32.mrb[124].mxu0  ;;  %v1591_v17 = vpop.f32.mrb[125].mxu1 }
 0x21e   : > { %v1879_v18 = vadd.f32 %v1878_v16, %v1589_v15  ;;  %v1880_v19 = vpop.f32.mrb[125].mxu0  ;;  %v1592_v20 = vpop.f32.mrb[126].mxu1 }
 0x21f   : > { %v1881_v21 = vpop.f32.mrb[126].mxu0  ;;  %v1594_v22 = vpop.f32.mrb[127].mxu1 }
 0x220   : > { %1947 = vst [vmem:[%s3067_s30 + $0x1f0] sm:$0xff] %v1879_v18  ;;  %v2010_v23 = vadd.f32 %v2009_v12, %v1879_v18  ;;  %v2081_v24 = vmul.f32 %v1879_v18, %v1879_v18  ;;  %v1882_v25 = vadd.f32 %v1881_v21, %v1592_v20  ;;  %v1883_v26 = vpop.f32.mrb[127].mxu0 }
 0x222   : > { %v2144_v27 = vadd.f32 %v2143_v14, %v2081_v24  ;;  %1948 = vst [vmem:[%s3067_s30 + $0x1f8] sm:$0xff] %v1882_v25  ;;  %v2011_v28 = vadd.f32 %v2010_v23, %v1882_v25  ;;  %v2082_v29 = vmul.f32 %v1882_v25, %v1882_v25 }
 0x224   : > { %v2012_v30 = vrot.slane %v2011_v28, 4  ;;  %v2145_v31 = vadd.f32 %v2144_v27, %v2082_v29 }
 0x226   : > { %v2013_v32 = vadd.f32 %v2012_v30, %v2011_v28  ;;  %v2146_v33 = vrot.slane %v2145_v31, 4 }
 0x228   : > { %v2014_v34 = vrot.slane %v2013_v32, 2  ;;  %v2147_v35 = vadd.f32 %v2146_v33, %v2145_v31 }
 0x22a   : > { %v2015_v36 = vadd.f32 %v2014_v34, %v2013_v32  ;;  %v2148_v37 = vrot.slane %v2147_v35, 2 }
 0x22c   : > { %v2016_v38 = vrot.slane %v2015_v36, 1  ;;  %v2149_v39 = vadd.f32 %v2148_v37, %v2147_v35 }
 0x22e   : > { %v2017_v40 = vadd.f32 %v2016_v38, %v2015_v36  ;;  %v2150_v41 = vrot.slane %v2149_v39, 1 }
 0x230   : > { %2018 = vst [vmem:[%s275_s7] sm:$0x1] %v2017_v40  ;;  %v2151_v42 = vadd.f32 %v2150_v41, %v2149_v39 }
 0x232   : > { %2152 = vst [vmem:[%s281_s10] sm:$0x1] %v2151_v42 }
 0x233 PF: > { %s15_s17 = sadd.s32 1, %s2829_s17   ;;  %s3173_s15 = smov %s2825_s16 }
 0x234   : > { %p12_p5 = scmp.ge.s32.totalorder %s15_s17, 6   ;;  %s3174_s16 = smov %s3176_s18 }
 0x236   :  { %14 = sbr.rel (!%p12_p5) target bundleno = 2 (0x2), region = 85 }

// kernel: generator_forward.9
= control target key start
LH: loop header
LB: loop body
LE: loop exit
PB: predicated region body
PF: predicated region fallthrough
CT: control target
= control target key end

     0   :  { %s4821_s9 = smov 0   ;;  %s4823_s10 = smov 0   ;;  %s5431_s0 = inlined_call_operand.vmem [shape: bf16[4,2048,256], index: 0, kind: input, shape index: {}]   ;;  %s5432_s1 = inlined_call_operand.vmem [shape: bf16[4,256,128], index: 1, kind: input, shape index: {}]   ;;  %s5433_s2 = inlined_call_operand.vmem [shape: f32[4,2048,128], index: 2, kind: output, shape index: {}]  }
   0x1   :  { %s4825_s11 = smov 0  }
   0x2 LB: > { %s24_s12 = sadd.s32 1, %s4799_s10  ;;  %p3528_p0 = scmp.ge.s32.totalorder %s4803_s11, 1  ;;  %s4803_s11 = sphi %s4825_s11, %s12_s11   ;;  %s4799_s10 = sphi %s4823_s10, %s5435_s10   ;;  %s4795_s9 = sphi %s4821_s9, %s5434_s9  }
   0x3   : > { %p26_p1 = scmp.ge.s32.totalorder %s24_s12, 4  ;;  %p141_p2 = scmp.lt.s32.totalorder %s4803_s11, 5 }
   0x5   : > { %s5437_s12 = smov (%p26_p1, %s24_s12), 0  ;;  %p142_p3 = pnand %p3528_p0, %p141_p2 }
   0x6   : > { %p174_p4 = scmp.lt.s32.totalorder (!%p142_p3), %s4795_s9, 3  ;;  %v4805_v0 = vmov (!%p142_p3), 0  }
   0x7   : > { %145 = sbr.rel (%p142_p3) target bundleno = 812 (0x32c), region = 28  ;;  %1860 = vmatprep.subr.bf16.mxu0 (!%p142_p3), %v4805_v0  ;;  %3812 = vmatprep.subr.bf16.mxu1 (!%p142_p3), %v4805_v0 }
   0xe   : > { %s5439_s9 = smov (!%p174_p4, %s4795_s9), 3 }
   0xf   : > { %s3810_s13 = sshll.u32 %s5439_s9, 7  ;;  %s3809_s17 = sshll.u32 %s5439_s9, 11 }
  0x10   : > { %s4847_s16 = scalar_lea.vmem %s5432_s1, %s3810_s13  ;;  %s4866_s20 = scalar_lea.vmem %s5431_s0, %s3809_s17 }
  0x11   : > { %v3869_v1 = vld [vmem:[%s4847_s16] sm:$0xff]   ;;  %v3870_v2 = vld [vmem:[%s4847_s16 + $0x8] sm:$0xff]   ;;  %v3871_v3 = vld [vmem:[%s4847_s16 + $0x10] sm:$0xff]   ;;  %s5022_s23 = scalar_lea.vmem %s5433_s2, %s3809_s17 }
  0x12   : > { %1861 = vmatpush1.bf16.msra.mxu0 %v3869_v1  ;;  %3828 = vmatpush1.bf16.msra.mxu1 %v3869_v1  ;;  %v3872_v4 = vld [vmem:[%s4847_s16 + $0x18] sm:$0xff]   ;;  %v3873_v5 = vld [vmem:[%s4847_s16 + $0x20] sm:$0xff]   ;;  %v3874_v7 = vld [vmem:[%s4847_s16 + $0x28] sm:$0xff]  }
  0x13   : > { %1862 = vmatprep.subr.bf16.mxu0 %v4805_v0  ;;  %3813 = vmatprep.subr.bf16.mxu1 %v4805_v0  ;;  %v3887_v6 = vld [vmem:[%s4866_s20 + $0x4] ss:$8 sps:$4 sm:$0xff]   ;;  %v3875_v9 = vld [vmem:[%s4847_s16 + $0x30] sm:$0xff]   ;;  %v3876_v10 = vld [vmem:[%s4847_s16 + $0x38] sm:$0xff]  }
  0x14   : > { %v3890_v8 = vld [vmem:[%s4866_s20 + $0x404] ss:$8 sps:$4 sm:$0xff]   ;;  %1892 = vmatprep.mubr.bf16.mxu0 %v3887_v6  ;;  %v3879_v13 = vld [vmem:[%s4847_s16 + $0x50] sm:$0xff]   ;;  %v3880_v14 = vld [vmem:[%s4847_s16 + $0x58] sm:$0xff]  }
  0x15   : > { %2404 = vmatprep.mubr.bf16.mxu1 %v3890_v8  ;;  %v3877_v11 = vld [vmem:[%s4847_s16 + $0x40] sm:$0xff]   ;;  %v3878_v12 = vld [vmem:[%s4847_s16 + $0x48] sm:$0xff]   ;;  %v3883_v17 = vld [vmem:[%s4847_s16 + $0x70] sm:$0xff]  }
  0x16   : > { %1863 = vmatpush1.bf16.msra.mxu0 %v3870_v2  ;;  %3829 = vmatpush1.bf16.msra.mxu1 %v3870_v2  ;;  %v3881_v15 = vld [vmem:[%s4847_s16 + $0x60] sm:$0xff]   ;;  %v3882_v16 = vld [vmem:[%s4847_s16 + $0x68] sm:$0xff]   ;;  %v3884_v18 = vld [vmem:[%s4847_s16 + $0x78] sm:$0xff]  }
  0x17   : > { %1864 = vmatprep.subr.bf16.mxu0 %v4805_v0  ;;  %3814 = vmatprep.subr.bf16.mxu1 %v4805_v0  ;;  %v3885_v19 = vld [vmem:[%s4866_s20] ss:$8 sps:$4 sm:$0xff]   ;;  %v3891_v21 = vld [vmem:[%s4866_s20 + $0x14] ss:$8 sps:$4 sm:$0xff]   ;;  %v3895_v23 = vld [vmem:[%s4866_s20 + $0x10] ss:$8 sps:$4 sm:$0xff]  }
  0x18   : > { %v3888_v20 = vld [vmem:[%s4866_s20 + $0x400] ss:$8 sps:$4 sm:$0xff]   ;;  %v3893_v22 = vld [vmem:[%s4866_s20 + $0x414] ss:$8 sps:$4 sm:$0xff]   ;;  %v3896_v24 = vld [vmem:[%s4866_s20 + $0x410] ss:$8 sps:$4 sm:$0xff]  }
  0x19   : > { %v3897_v25 = vld [vmem:[%s4866_s20 + $0x24] ss:$8 sps:$4 sm:$0xff]   ;;  %v3901_v27 = vld [vmem:[%s4866_s20 + $0x20] ss:$8 sps:$4 sm:$0xff]   ;;  %v3903_v29 = vld [vmem:[%s4866_s20 + $0x34] ss:$8 sps:$4 sm:$0xff]  }
  0x1a   : > { %1865 = vmatpush1.bf16.msra.mxu0 %v3871_v3  ;;  %3830 = vmatpush1.bf16.msra.mxu1 %v3871_v3  ;;  %v3899_v26 = vld [vmem:[%s4866_s20 + $0x424] ss:$8 sps:$4 sm:$0xff]   ;;  %v3902_v28 = vld [vmem:[%s4866_s20 + $0x420] ss:$8 sps:$4 sm:$0xff]   ;;  %v3905_v30 = vld [vmem:[%s4866_s20 + $0x434] ss:$8 sps:$4 sm:$0xff]  }
  0x1b   : > { %1866 = vmatprep.subr.bf16.mxu0 %v4805_v0  ;;  %3815 = vmatprep.subr.bf16.mxu1 %v4805_v0  ;;  %v3907_v31 = vld [vmem:[%s4866_s20 + $0x30] ss:$8 sps:$4 sm:$0xff]   ;;  %v3909_v33 = vld [vmem:[%s4866_s20 + $0x44] ss:$8 sps:$4 sm:$0xff]   ;;  %v3913_v35 = vld [vmem:[%s4866_s20 + $0x40] ss:$8 sps:$4 sm:$0xff]  }
  0x1c   : > { %v3908_v32 = vld [vmem:[%s4866_s20 + $0x430] ss:$8 sps:$4 sm:$0xff]   ;;  %v3911_v34 = vld [vmem:[%s4866_s20 + $0x444] ss:$8 sps:$4 sm:$0xff]   ;;  %v3914_v36 = vld [vmem:[%s4866_s20 + $0x440] ss:$8 sps:$4 sm:$0xff]  }
  0x1d   : > { %v3915_v37 = vld [vmem:[%s4866_s20 + $0x54] ss:$8 sps:$4 sm:$0xff]   ;;  %v3919_v39 = vld [vmem:[%s4866_s20 + $0x50] ss:$8 sps:$4 sm:$0xff]   ;;  %v3921_v41 = vld [vmem:[%s4866_s20 + $0x64] ss:$8 sps:$4 sm:$0xff]  }
  0x1e   : > { %1867 = vmatpush1.bf16.msra.mxu0 %v3872_v4  ;;  %3831 = vmatpush1.bf16.msra.mxu1 %v3872_v4  ;;  %v3917_v38 = vld [vmem:[%s4866_s20 + $0x454] ss:$8 sps:$4 sm:$0xff]   ;;  %v3920_v40 = vld [vmem:[%s4866_s20 + $0x450] ss:$8 sps:$4 sm:$0xff]   ;;  %v3923_v42 = vld [vmem:[%s4866_s20 + $0x464] ss:$8 sps:$4 sm:$0xff]  }
  0x1f   : > { %1868 = vmatprep.subr.bf16.mxu0 %v4805_v0  ;;  %3816 = vmatprep.subr.bf16.mxu1 %v4805_v0  ;;  %v3925_v43 = vld [vmem:[%s4866_s20 + $0x60] ss:$8 sps:$4 sm:$0xff]   ;;  %v3927_v45 = vld [vmem:[%s4866_s20 + $0x74] ss:$8 sps:$4 sm:$0xff]   ;;  %v3931_v47 = vld [vmem:[%s4866_s20 + $0x70] ss:$8 sps:$4 sm:$0xff]  }
  0x20   : > { %v3926_v44 = vld [vmem:[%s4866_s20 + $0x460] ss:$8 sps:$4 sm:$0xff]   ;;  %v3929_v46 = vld [vmem:[%s4866_s20 + $0x474] ss:$8 sps:$4 sm:$0xff]   ;;  %v3932_v48 = vld [vmem:[%s4866_s20 + $0x470] ss:$8 sps:$4 sm:$0xff]  }
  0x21   : > { %v3933_v49 = vld [vmem:[%s4866_s20 + $0x84] ss:$8 sps:$4 sm:$0xff]   ;;  %v3937_v51 = vld [vmem:[%s4866_s20 + $0x80] ss:$8 sps:$4 sm:$0xff]   ;;  %v3939_v53 = vld [vmem:[%s4866_s20 + $0x94] ss:$8 sps:$4 sm:$0xff]  }
  0x22   : > { %1869 = vmatpush1.bf16.msra.mxu0 %v3873_v5  ;;  %3832 = vmatpush1.bf16.msra.mxu1 %v3873_v5  ;;  %v3935_v50 = vld [vmem:[%s4866_s20 + $0x484] ss:$8 sps:$4 sm:$0xff]   ;;  %v3938_v52 = vld [vmem:[%s4866_s20 + $0x480] ss:$8 sps:$4 sm:$0xff]   ;;  %v3941_v54 = vld [vmem:[%s4866_s20 + $0x494] ss:$8 sps:$4 sm:$0xff]  }
  0x23   : > { %1870 = vmatprep.subr.bf16.mxu0 %v4805_v0  ;;  %3817 = vmatprep.subr.bf16.mxu1 %v4805_v0  ;;  %v3943_v55 = vld [vmem:[%s4866_s20 + $0x90] ss:$8 sps:$4 sm:$0xff]   ;;  %v3945_v57 = vld [vmem:[%s4866_s20 + $0xa4] ss:$8 sps:$4 sm:$0xff]   ;;  %v3949_v59 = vld [vmem:[%s4866_s20 + $0xa0] ss:$8 sps:$4 sm:$0xff]  }
  0x24   : > { %v3944_v56 = vld [vmem:[%s4866_s20 + $0x490] ss:$8 sps:$4 sm:$0xff]   ;;  %v3947_v58 = vld [vmem:[%s4866_s20 + $0x4a4] ss:$8 sps:$4 sm:$0xff]   ;;  %v3950_v60 = vld [vmem:[%s4866_s20 + $0x4a0] ss:$8 sps:$4 sm:$0xff]  }
  0x25   : > { %v3951_v61 = vld [vmem:[%s4866_s20 + $0xb4] ss:$8 sps:$4 sm:$0xff]   ;;  %v3955_v63 = vld [vmem:[%s4866_s20 + $0xb0] ss:$8 sps:$4 sm:$0xff]   ;;  %v3957_v1 = vld [vmem:[%s4866_s20 + $0xc4] ss:$8 sps:$4 sm:$0xff]  }
  0x26   : > { %1871 = vmatpush1.bf16.msra.mxu0 %v3874_v7  ;;  %3833 = vmatpush1.bf16.msra.mxu1 %v3874_v7  ;;  %v3953_v62 = vld [vmem:[%s4866_s20 + $0x4b4] ss:$8 sps:$4 sm:$0xff]   ;;  %v3959_v2 = vld [vmem:[%s4866_s20 + $0x4c4] ss:$8 sps:$4 sm:$0xff]   ;;  %v3961_v3 = vld [vmem:[%s4866_s20 + $0xc0] ss:$8 sps:$4 sm:$0xff]  }
  0x27   : > { %1872 = vmatprep.subr.bf16.mxu0 %v4805_v0  ;;  %3818 = vmatprep.subr.bf16.mxu1 %v4805_v0  ;;  %v3962_v4 = vld [vmem:[%s4866_s20 + $0x4c0] ss:$8 sps:$4 sm:$0xff]   ;;  %v3963_v5 = vld [vmem:[%s4866_s20 + $0xd4] ss:$8 sps:$4 sm:$0xff]   ;;  %v3967_v7 = vld [vmem:[%s4866_s20 + $0xd0] ss:$8 sps:$4 sm:$0xff]  }
  0x28   : > { %v3965_v6 = vld [vmem:[%s4866_s20 + $0x4d4] ss:$8 sps:$4 sm:$0xff]   ;;  %v3968_v8 = vld [vmem:[%s4866_s20 + $0x4d0] ss:$8 sps:$4 sm:$0xff]  }
  0x2a   : > { %1873 = vmatpush1.bf16.msra.mxu0 %v3875_v9  ;;  %3834 = vmatpush1.bf16.msra.mxu1 %v3875_v9  ;;  %v3969_v9 = vld [vmem:[%s4866_s20 + $0xe4] ss:$8 sps:$4 sm:$0xff]  }
  0x2b   : > { %1874 = vmatprep.subr.bf16.mxu0 %v4805_v0  ;;  %3819 = vmatprep.subr.bf16.mxu1 %v4805_v0 }
  0x2e   : > { %1875 = vmatpush1.bf16.msra.mxu0 %v3876_v10  ;;  %3835 = vmatpush1.bf16.msra.mxu1 %v3876_v10  ;;  %v3971_v10 = vld [vmem:[%s4866_s20 + $0x4e4] ss:$8 sps:$4 sm:$0xff]  }
  0x2f   : > { %1876 = vmatprep.subr.bf16.mxu0 %v4805_v0  ;;  %3820 = vmatprep.subr.bf16.mxu1 %v4805_v0 }
  0x32   : > { %1877 = vmatpush1.bf16.msra.mxu0 %v3877_v11  ;;  %3836 = vmatpush1.bf16.msra.mxu1 %v3877_v11  ;;  %v3973_v11 = vld [vmem:[%s4866_s20 + $0xe0] ss:$8 sps:$4 sm:$0xff]  }
  0x33   : > { %1878 = vmatprep.subr.bf16.mxu0 %v4805_v0  ;;  %3821 = vmatprep.subr.bf16.mxu1 %v4805_v0 }
  0x36   : > { %1879 = vmatpush1.bf16.msra.mxu0 %v3878_v12  ;;  %3837 = vmatpush1.bf16.msra.mxu1 %v3878_v12  ;;  %v3974_v12 = vld [vmem:[%s4866_s20 + $0x4e0] ss:$8 sps:$4 sm:$0xff]  }
  0x37   : > { %1880 = vmatprep.subr.bf16.mxu0 %v4805_v0  ;;  %3822 = vmatprep.subr.bf16.mxu1 %v4805_v0 }
  0x3a   : > { %1881 = vmatpush1.bf16.msra.mxu0 %v3879_v13  ;;  %3838 = vmatpush1.bf16.msra.mxu1 %v3879_v13  ;;  %v3975_v13 = vld [vmem:[%s4866_s20 + $0xf4] ss:$8 sps:$4 sm:$0xff]  }
  0x3b   : > { %1882 = vmatprep.subr.bf16.mxu0 %v4805_v0  ;;  %3823 = vmatprep.subr.bf16.mxu1 %v4805_v0 }
  0x3e   : > { %1883 = vmatpush1.bf16.msra.mxu0 %v3880_v14  ;;  %3839 = vmatpush1.bf16.msra.mxu1 %v3880_v14  ;;  %v3977_v14 = vld [vmem:[%s4866_s20 + $0x4f4] ss:$8 sps:$4 sm:$0xff]  }
  0x3f   : > { %1884 = vmatprep.subr.bf16.mxu0 %v4805_v0  ;;  %3824 = vmatprep.subr.bf16.mxu1 %v4805_v0 }
  0x42   : > { %1885 = vmatpush1.bf16.msra.mxu0 %v3881_v15  ;;  %3840 = vmatpush1.bf16.msra.mxu1 %v3881_v15  ;;  %v3979_v15 = vld [vmem:[%s4866_s20 + $0xf0] ss:$8 sps:$4 sm:$0xff]  }
  0x43   : > { %1886 = vmatprep.subr.bf16.mxu0 %v4805_v0  ;;  %3825 = vmatprep.subr.bf16.mxu1 %v4805_v0 }
  0x46   : > { %1887 = vmatpush1.bf16.msra.mxu0 %v3882_v16  ;;  %3841 = vmatpush1.bf16.msra.mxu1 %v3882_v16  ;;  %v3980_v16 = vld [vmem:[%s4866_s20 + $0x4f0] ss:$8 sps:$4 sm:$0xff]  }
  0x47   : > { %1888 = vmatprep.subr.bf16.mxu0 %v4805_v0  ;;  %3826 = vmatprep.subr.bf16.mxu1 %v4805_v0 }
  0x4a   : > { %1889 = vmatpush1.bf16.msra.mxu0 %v3883_v17  ;;  %3842 = vmatpush1.bf16.msra.mxu1 %v3883_v17  ;;  %v3981_v17 = vld [vmem:[%s4866_s20 + $0x104] ss:$8 sps:$4 sm:$0xff]  }
  0x4b   : > { %1890 = vmatprep.subr.bf16.mxu0 %v4805_v0  ;;  %3827 = vmatprep.subr.bf16.mxu1 %v4805_v0  ;;  %v3956_v0 = vld [vmem:[%s4866_s20 + $0x4b0] ss:$8 sps:$4 sm:$0xff]  }
  0x4e   : > { %1891 = vmatpush1.bf16.msra.mxu0 %v3884_v18  ;;  %3843 = vmatpush1.bf16.msra.mxu1 %v3884_v18  ;;  %v3983_v18 = vld [vmem:[%s4866_s20 + $0x504] ss:$8 sps:$4 sm:$0xff]  }
  0x51   : > { %1893 = vmatmul.mubr.bf16.vlgmr.msra.gmra.mrb[0].mxu0 %v3885_v19  ;;  %2405 = vmatmul.mubr.bf16.vlgmr.msra.gmra.mrb[0].mxu1 %v3888_v20  ;;  %v3985_v19 = vld [vmem:[%s4866_s20 + $0x100] ss:$8 sps:$4 sm:$0xff]  }
  0x52   : > { %1900 = vmatprep.mubr.bf16.mxu0 %v3891_v21  ;;  %2412 = vmatprep.mubr.bf16.mxu1 %v3893_v22  ;;  %v3986_v20 = vld [vmem:[%s4866_s20 + $0x500] ss:$8 sps:$4 sm:$0xff]   ;;  %v3987_v21 = vld [vmem:[%s4866_s20 + $0x114] ss:$8 sps:$4 sm:$0xff]  }
  0x53   : > { %v3989_v22 = vld [vmem:[%s4866_s20 + $0x514] ss:$8 sps:$4 sm:$0xff]  }
  0x59   : > { %1901 = vmatmul.mubr.bf16.gmra.mrb[4].mxu0 %v3895_v23  ;;  %2413 = vmatmul.mubr.bf16.gmra.mrb[4].mxu1 %v3896_v24  ;;  %v3991_v23 = vld [vmem:[%s4866_s20 + $0x110] ss:$8 sps:$4 sm:$0xff]  }
  0x5a   : > { %1908 = vmatprep.mubr.bf16.mxu0 %v3897_v25  ;;  %2420 = vmatprep.mubr.bf16.mxu1 %v3899_v26  ;;  %v3992_v24 = vld [vmem:[%s4866_s20 + $0x510] ss:$8 sps:$4 sm:$0xff]   ;;  %v3993_v25 = vld [vmem:[%s4866_s20 + $0x124] ss:$8 sps:$4 sm:$0xff]  }
  0x5b   : > { %v3995_v26 = vld [vmem:[%s4866_s20 + $0x524] ss:$8 sps:$4 sm:$0xff]  }
  0x61   : > { %1909 = vmatmul.mubr.bf16.gmra.mrb[8].mxu0 %v3901_v27  ;;  %2421 = vmatmul.mubr.bf16.gmra.mrb[8].mxu1 %v3902_v28  ;;  %v3997_v27 = vld [vmem:[%s4866_s20 + $0x120] ss:$8 sps:$4 sm:$0xff]  }
  0x62   : > { %1916 = vmatprep.mubr.bf16.mxu0 %v3903_v29  ;;  %2428 = vmatprep.mubr.bf16.mxu1 %v3905_v30  ;;  %v3998_v28 = vld [vmem:[%s4866_s20 + $0x520] ss:$8 sps:$4 sm:$0xff]   ;;  %v3999_v29 = vld [vmem:[%s4866_s20 + $0x134] ss:$8 sps:$4 sm:$0xff]  }
  0x63   : > { %v4001_v30 = vld [vmem:[%s4866_s20 + $0x534] ss:$8 sps:$4 sm:$0xff]  }
  0x69   : > { %1917 = vmatmul.mubr.bf16.gmra.mrb[12].mxu0 %v3907_v31  ;;  %2429 = vmatmul.mubr.bf16.gmra.mrb[12].mxu1 %v3908_v32  ;;  %v4003_v31 = vld [vmem:[%s4866_s20 + $0x130] ss:$8 sps:$4 sm:$0xff]  }
  0x6a   : > { %1924 = vmatprep.mubr.bf16.mxu0 %v3909_v33  ;;  %2436 = vmatprep.mubr.bf16.mxu1 %v3911_v34  ;;  %v4004_v32 = vld [vmem:[%s4866_s20 + $0x530] ss:$8 sps:$4 sm:$0xff]   ;;  %v4005_v33 = vld [vmem:[%s4866_s20 + $0x144] ss:$8 sps:$4 sm:$0xff]  }
  0x6b   : > { %v4007_v34 = vld [vmem:[%s4866_s20 + $0x544] ss:$8 sps:$4 sm:$0xff]  }
  0x71   : > { %1925 = vmatmul.mubr.bf16.gmra.mrb[16].mxu0 %v3913_v35  ;;  %2437 = vmatmul.mubr.bf16.gmra.mrb[16].mxu1 %v3914_v36  ;;  %v4009_v35 = vld [vmem:[%s4866_s20 + $0x140] ss:$8 sps:$4 sm:$0xff]  }
  0x72   : > { %1932 = vmatprep.mubr.bf16.mxu0 %v3915_v37  ;;  %2444 = vmatprep.mubr.bf16.mxu1 %v3917_v38  ;;  %v4010_v36 = vld [vmem:[%s4866_s20 + $0x540] ss:$8 sps:$4 sm:$0xff]   ;;  %v4011_v37 = vld [vmem:[%s4866_s20 + $0x154] ss:$8 sps:$4 sm:$0xff]  }
  0x73   : > { %v4013_v38 = vld [vmem:[%s4866_s20 + $0x554] ss:$8 sps:$4 sm:$0xff]  }
  0x79   : > { %1933 = vmatmul.mubr.bf16.gmra.mrb[20].mxu0 %v3919_v39  ;;  %2445 = vmatmul.mubr.bf16.gmra.mrb[20].mxu1 %v3920_v40  ;;  %v4015_v39 = vld [vmem:[%s4866_s20 + $0x150] ss:$8 sps:$4 sm:$0xff]  }
  0x7a   : > { %1940 = vmatprep.mubr.bf16.mxu0 %v3921_v41  ;;  %2452 = vmatprep.mubr.bf16.mxu1 %v3923_v42  ;;  %v4016_v40 = vld [vmem:[%s4866_s20 + $0x550] ss:$8 sps:$4 sm:$0xff]   ;;  %v4017_v41 = vld [vmem:[%s4866_s20 + $0x164] ss:$8 sps:$4 sm:$0xff]  }
  0x7b   : > { %v4019_v42 = vld [vmem:[%s4866_s20 + $0x564] ss:$8 sps:$4 sm:$0xff]  }
  0x81   : > { %1941 = vmatmul.mubr.bf16.gmra.mrb[24].mxu0 %v3925_v43  ;;  %2453 = vmatmul.mubr.bf16.gmra.mrb[24].mxu1 %v3926_v44  ;;  %v4021_v43 = vld [vmem:[%s4866_s20 + $0x160] ss:$8 sps:$4 sm:$0xff]  }
  0x82   : > { %1948 = vmatprep.mubr.bf16.mxu0 %v3927_v45  ;;  %2460 = vmatprep.mubr.bf16.mxu1 %v3929_v46  ;;  %v4022_v44 = vld [vmem:[%s4866_s20 + $0x560] ss:$8 sps:$4 sm:$0xff]   ;;  %v4023_v45 = vld [vmem:[%s4866_s20 + $0x174] ss:$8 sps:$4 sm:$0xff]  }
  0x83   : > { %v4025_v46 = vld [vmem:[%s4866_s20 + $0x574] ss:$8 sps:$4 sm:$0xff]  }
  0x89   : > { %1949 = vmatmul.mubr.bf16.gmra.mrb[28].mxu0 %v3931_v47  ;;  %2461 = vmatmul.mubr.bf16.gmra.mrb[28].mxu1 %v3932_v48  ;;  %v4027_v47 = vld [vmem:[%s4866_s20 + $0x170] ss:$8 sps:$4 sm:$0xff]  }
  0x8a   : > { %1956 = vmatprep.mubr.bf16.mxu0 %v3933_v49  ;;  %2468 = vmatprep.mubr.bf16.mxu1 %v3935_v50  ;;  %v4028_v48 = vld [vmem:[%s4866_s20 + $0x570] ss:$8 sps:$4 sm:$0xff]   ;;  %v4029_v49 = vld [vmem:[%s4866_s20 + $0x184] ss:$8 sps:$4 sm:$0xff]  }
  0x8b   : > { %v4031_v50 = vld [vmem:[%s4866_s20 + $0x584] ss:$8 sps:$4 sm:$0xff]  }
  0x91   : > { %1957 = vmatmul.mubr.bf16.gmra.mrb[32].mxu0 %v3937_v51  ;;  %2469 = vmatmul.mubr.bf16.gmra.mrb[32].mxu1 %v3938_v52  ;;  %v4033_v51 = vld [vmem:[%s4866_s20 + $0x180] ss:$8 sps:$4 sm:$0xff]  }
  0x92   : > { %1964 = vmatprep.mubr.bf16.mxu0 %v3939_v53  ;;  %2476 = vmatprep.mubr.bf16.mxu1 %v3941_v54  ;;  %v4034_v52 = vld [vmem:[%s4866_s20 + $0x580] ss:$8 sps:$4 sm:$0xff]   ;;  %v4035_v53 = vld [vmem:[%s4866_s20 + $0x194] ss:$8 sps:$4 sm:$0xff]  }
  0x93   : > { %v4037_v54 = vld [vmem:[%s4866_s20 + $0x594] ss:$8 sps:$4 sm:$0xff]  }
  0x99   : > { %1965 = vmatmul.mubr.bf16.gmra.mrb[36].mxu0 %v3943_v55  ;;  %2477 = vmatmul.mubr.bf16.gmra.mrb[36].mxu1 %v3944_v56  ;;  %v4039_v55 = vld [vmem:[%s4866_s20 + $0x190] ss:$8 sps:$4 sm:$0xff]  }
  0x9a   : > { %1972 = vmatprep.mubr.bf16.mxu0 %v3945_v57  ;;  %2484 = vmatprep.mubr.bf16.mxu1 %v3947_v58  ;;  %v4040_v56 = vld [vmem:[%s4866_s20 + $0x590] ss:$8 sps:$4 sm:$0xff]   ;;  %v4041_v57 = vld [vmem:[%s4866_s20 + $0x1a4] ss:$8 sps:$4 sm:$0xff]  }
  0x9b   : > { %v4043_v58 = vld [vmem:[%s4866_s20 + $0x5a4] ss:$8 sps:$4 sm:$0xff]  }
  0xa1   : > { %1973 = vmatmul.mubr.bf16.gmra.mrb[40].mxu0 %v3949_v59  ;;  %2485 = vmatmul.mubr.bf16.gmra.mrb[40].mxu1 %v3950_v60  ;;  %v4045_v59 = vld [vmem:[%s4866_s20 + $0x1a0] ss:$8 sps:$4 sm:$0xff]  }
  0xa2   : > { %1980 = vmatprep.mubr.bf16.mxu0 %v3951_v61  ;;  %2492 = vmatprep.mubr.bf16.mxu1 %v3953_v62  ;;  %v4046_v60 = vld [vmem:[%s4866_s20 + $0x5a0] ss:$8 sps:$4 sm:$0xff]   ;;  %v4047_v61 = vld [vmem:[%s4866_s20 + $0x1b4] ss:$8 sps:$4 sm:$0xff]  }
  0xa3   : > { %v4049_v62 = vld [vmem:[%s4866_s20 + $0x5b4] ss:$8 sps:$4 sm:$0xff]  }
  0xa9   : > { %1981 = vmatmul.mubr.bf16.gmra.mrb[44].mxu0 %v3955_v63  ;;  %2493 = vmatmul.mubr.bf16.gmra.mrb[44].mxu1 %v3956_v0 }
  0xaa   : > { %1988 = vmatprep.mubr.bf16.mxu0 %v3957_v1  ;;  %2500 = vmatprep.mubr.bf16.mxu1 %v3959_v2 }
  0xb1   : > { %1989 = vmatmul.mubr.bf16.gmra.mrb[48].mxu0 %v3961_v3  ;;  %2501 = vmatmul.mubr.bf16.gmra.mrb[48].mxu1 %v3962_v4  ;;  %v4051_v3 = vld [vmem:[%s4866_s20 + $0x1b0] ss:$8 sps:$4 sm:$0xff]  }
  0xb2   : > { %1996 = vmatprep.mubr.bf16.mxu0 %v3963_v5  ;;  %2508 = vmatprep.mubr.bf16.mxu1 %v3965_v6  ;;  %v4052_v4 = vld [vmem:[%s4866_s20 + $0x5b0] ss:$8 sps:$4 sm:$0xff]  }
  0xb9   : > { %1997 = vmatmul.mubr.bf16.gmra.mrb[52].mxu0 %v3967_v7  ;;  %2509 = vmatmul.mubr.bf16.gmra.mrb[52].mxu1 %v3968_v8  ;;  %v4053_v7 = vld [vmem:[%s4866_s20 + $0x1c4] ss:$8 sps:$4 sm:$0xff]  }
  0xba   : > { %2004 = vmatprep.mubr.bf16.mxu0 %v3969_v9  ;;  %2516 = vmatprep.mubr.bf16.mxu1 %v3971_v10  ;;  %v4055_v8 = vld [vmem:[%s4866_s20 + $0x5c4] ss:$8 sps:$4 sm:$0xff]  }
  0xc1   : > { %2005 = vmatmul.mubr.bf16.gmra.mrb[56].mxu0 %v3973_v11  ;;  %2517 = vmatmul.mubr.bf16.gmra.mrb[56].mxu1 %v3974_v12 }
  0xc2   : > { %2012 = vmatprep.mubr.bf16.mxu0 %v3975_v13  ;;  %2524 = vmatprep.mubr.bf16.mxu1 %v3977_v14 }
  0xc9   : > { %2013 = vmatmul.mubr.bf16.gmra.mrb[60].mxu0 %v3979_v15  ;;  %2525 = vmatmul.mubr.bf16.gmra.mrb[60].mxu1 %v3980_v16  ;;  %v4057_v15 = vld [vmem:[%s4866_s20 + $0x1c0] ss:$8 sps:$4 sm:$0xff]  }
  0xca   : > { %2020 = vmatprep.mubr.bf16.mxu0 %v3981_v17  ;;  %2532 = vmatprep.mubr.bf16.mxu1 %v3983_v18  ;;  %v4058_v16 = vld [vmem:[%s4866_s20 + $0x5c0] ss:$8 sps:$4 sm:$0xff]  }
  0xd1   : > { %2021 = vmatmul.mubr.bf16.gmra.mrb[64].mxu0 %v3985_v19  ;;  %2533 = vmatmul.mubr.bf16.gmra.mrb[64].mxu1 %v3986_v20  ;;  %v4059_v19 = vld [vmem:[%s4866_s20 + $0x1d4] ss:$8 sps:$4 sm:$0xff]  }
  0xd2   : > { %2028 = vmatprep.mubr.bf16.mxu0 %v3987_v21  ;;  %2540 = vmatprep.mubr.bf16.mxu1 %v3989_v22  ;;  %v4061_v20 = vld [vmem:[%s4866_s20 + $0x5d4] ss:$8 sps:$4 sm:$0xff]  }
  0xd9   : > { %2029 = vmatmul.mubr.bf16.gmra.mrb[68].mxu0 %v3991_v23  ;;  %2541 = vmatmul.mubr.bf16.gmra.mrb[68].mxu1 %v3992_v24 }
  0xda   : > { %2036 = vmatprep.mubr.bf16.mxu0 %v3993_v25  ;;  %2548 = vmatprep.mubr.bf16.mxu1 %v3995_v26 }
  0xe1   : > { %2037 = vmatmul.mubr.bf16.gmra.mrb[72].mxu0 %v3997_v27  ;;  %2549 = vmatmul.mubr.bf16.gmra.mrb[72].mxu1 %v3998_v28 }
  0xe2   : > { %2044 = vmatprep.mubr.bf16.mxu0 %v3999_v29  ;;  %2556 = vmatprep.mubr.bf16.mxu1 %v4001_v30 }
  0xe9   : > { %2045 = vmatmul.mubr.bf16.gmra.mrb[76].mxu0 %v4003_v31  ;;  %2557 = vmatmul.mubr.bf16.gmra.mrb[76].mxu1 %v4004_v32  ;;  %v4063_v31 = vld [vmem:[%s4866_s20 + $0x1d0] ss:$8 sps:$4 sm:$0xff]  }
  0xea   : > { %2052 = vmatprep.mubr.bf16.mxu0 %v4005_v33  ;;  %2564 = vmatprep.mubr.bf16.mxu1 %v4007_v34  ;;  %v4064_v32 = vld [vmem:[%s4866_s20 + $0x5d0] ss:$8 sps:$4 sm:$0xff]  }
  0xf1   : > { %2053 = vmatmul.mubr.bf16.gmra.mrb[80].mxu0 %v4009_v35  ;;  %2565 = vmatmul.mubr.bf16.gmra.mrb[80].mxu1 %v4010_v36  ;;  %v4065_v35 = vld [vmem:[%s4866_s20 + $0x1e4] ss:$8 sps:$4 sm:$0xff]  }
  0xf2   : > { %2060 = vmatprep.mubr.bf16.mxu0 %v4011_v37  ;;  %2572 = vmatprep.mubr.bf16.mxu1 %v4013_v38  ;;  %v4067_v36 = vld [vmem:[%s4866_s20 + $0x5e4] ss:$8 sps:$4 sm:$0xff]  }
  0xf9   : > { %2061 = vmatmul.mubr.bf16.gmra.mrb[84].mxu0 %v4015_v39  ;;  %2573 = vmatmul.mubr.bf16.gmra.mrb[84].mxu1 %v4016_v40 }
  0xfa   : > { %2068 = vmatprep.mubr.bf16.mxu0 %v4017_v41  ;;  %2580 = vmatprep.mubr.bf16.mxu1 %v4019_v42 }
 0x101   : > { %2069 = vmatmul.mubr.bf16.gmra.mrb[88].mxu0 %v4021_v43  ;;  %2581 = vmatmul.mubr.bf16.gmra.mrb[88].mxu1 %v4022_v44 }
 0x102   : > { %2076 = vmatprep.mubr.bf16.mxu0 %v4023_v45  ;;  %2588 = vmatprep.mubr.bf16.mxu1 %v4025_v46 }
 0x109   : > { %2077 = vmatmul.mubr.bf16.gmra.mrb[92].mxu0 %v4027_v47  ;;  %2589 = vmatmul.mubr.bf16.gmra.mrb[92].mxu1 %v4028_v48  ;;  %v4069_v47 = vld [vmem:[%s4866_s20 + $0x1e0] ss:$8 sps:$4 sm:$0xff]  }
 0x10a   : > { %2084 = vmatprep.mubr.bf16.mxu0 %v4029_v49  ;;  %2596 = vmatprep.mubr.bf16.mxu1 %v4031_v50  ;;  %v4070_v48 = vld [vmem:[%s4866_s20 + $0x5e0] ss:$8 sps:$4 sm:$0xff]  }
 0x111   : > { %2085 = vmatmul.mubr.bf16.gmra.mrb[96].mxu0 %v4033_v51  ;;  %2597 = vmatmul.mubr.bf16.gmra.mrb[96].mxu1 %v4034_v52  ;;  %v4071_v51 = vld [vmem:[%s4866_s20 + $0x1f4] ss:$8 sps:$4 sm:$0xff]  }
 0x112   : > { %2092 = vmatprep.mubr.bf16.mxu0 %v4035_v53  ;;  %2604 = vmatprep.mubr.bf16.mxu1 %v4037_v54  ;;  %v4073_v52 = vld [vmem:[%s4866_s20 + $0x5f4] ss:$8 sps:$4 sm:$0xff]  }
 0x119   : > { %2093 = vmatmul.mubr.bf16.gmra.mrb[100].mxu0 %v4039_v55  ;;  %2605 = vmatmul.mubr.bf16.gmra.mrb[100].mxu1 %v4040_v56 }
 0x11a   : > { %2100 = vmatprep.mubr.bf16.mxu0 %v4041_v57  ;;  %2612 = vmatprep.mubr.bf16.mxu1 %v4043_v58 }
 0x121   : > { %2101 = vmatmul.mubr.bf16.gmra.mrb[104].mxu0 %v4045_v59  ;;  %2613 = vmatmul.mubr.bf16.gmra.mrb[104].mxu1 %v4046_v60 }
 0x122   : > { %2108 = vmatprep.mubr.bf16.mxu0 %v4047_v61  ;;  %2620 = vmatprep.mubr.bf16.mxu1 %v4049_v62 }
 0x124   : > { %v1894_v63 = vpop.f32.mrb[0].mxu0  ;;  %v2406_v0 = vpop.f32.mrb[0].mxu1 }
 0x125   : > { %4269 = vtanh.f32 %v1894_v63  ;;  %v1896_v1 = vpop.f32.mrb[1].mxu0  ;;  %v2408_v2 = vpop.f32.mrb[1].mxu1  ;;  %v4075_v63 = vld [vmem:[%s4866_s20 + $0x1f0] ss:$8 sps:$4 sm:$0xff]  }
 0x126   : > { %4271 = vtanh.f32 %v2406_v0  ;;  %v1897_v5 = vpop.f32.mrb[2].mxu0  ;;  %v2409_v6 = vpop.f32.mrb[2].mxu1  ;;  %v4076_v0 = vld [vmem:[%s4866_s20 + $0x5f0] ss:$8 sps:$4 sm:$0xff]  }
 0x127   : > { %4273 = vtanh.f32 %v1897_v5  ;;  %v1899_v9 = vpop.f32.mrb[3].mxu0  ;;  %v2411_v10 = vpop.f32.mrb[3].mxu1 }
 0x128   : > { %4275 = vtanh.f32 %v2409_v6 }
 0x129   : > { %2109 = vmatmul.mubr.bf16.gmra.mrb[108].mxu0 %v4051_v3  ;;  %2621 = vmatmul.mubr.bf16.gmra.mrb[108].mxu1 %v4052_v4  ;;  %v4077_v3 = vld [vmem:[%s4866_s20 + $0x204] ss:$8 sps:$4 sm:$0xff]  }
 0x12a   : > { %2116 = vmatprep.mubr.bf16.mxu0 %v4053_v7  ;;  %2628 = vmatprep.mubr.bf16.mxu1 %v4055_v8  ;;  %v4079_v4 = vld [vmem:[%s4866_s20 + $0x604] ss:$8 sps:$4 sm:$0xff]  }
 0x12c   : > { %v1902_v11 = vpop.f32.mrb[4].mxu0  ;;  %v2414_v12 = vpop.f32.mrb[4].mxu1 }
 0x12d   : > { %4277 = vtanh.f32 %v1902_v11  ;;  %v1904_v13 = vpop.f32.mrb[5].mxu0  ;;  %v2416_v14 = vpop.f32.mrb[5].mxu1 }
 0x12e   : > { %4279 = vtanh.f32 %v2414_v12  ;;  %v1905_v17 = vpop.f32.mrb[6].mxu0  ;;  %v2417_v18 = vpop.f32.mrb[6].mxu1 }
 0x12f   : > { %v4270_v21 = vpop.eup %4269  ;;  %4281 = vtanh.f32 %v1905_v17  ;;  %v1907_v22 = vpop.f32.mrb[7].mxu0 }
 0x130   : > { %v2419_v23 = vpop.f32.mrb[7].mxu1  ;;  %v4272_v24 = vpop.eup %4271  ;;  %3173 = vst [vmem:[%s5022_s23] sm:$0xff] %v4270_v21  ;;  %4283 = vtanh.f32 %v2417_v18 }
 0x131   : > { %v4274_v25 = vpop.eup %4273  ;;  %3301 = vst [vmem:[%s5022_s23 + $0x400] sm:$0xff] %v4272_v24  ;;  %2117 = vmatmul.mubr.bf16.gmra.mrb[112].mxu0 %v4057_v15  ;;  %2629 = vmatmul.mubr.bf16.gmra.mrb[112].mxu1 %v4058_v16  ;;  %v4081_v15 = vld [vmem:[%s4866_s20 + $0x200] ss:$8 sps:$4 sm:$0xff]  }
 0x132   : > { %v4276_v26 = vpop.eup %4275  ;;  %3174 = vst [vmem:[%s5022_s23 + $0x8] sm:$0xff] %v4274_v25  ;;  %2124 = vmatprep.mubr.bf16.mxu0 %v4059_v19  ;;  %2636 = vmatprep.mubr.bf16.mxu1 %v4061_v20  ;;  %v4082_v16 = vld [vmem:[%s4866_s20 + $0x600] ss:$8 sps:$4 sm:$0xff]   ;;  %v4083_v19 = vld [vmem:[%s4866_s20 + $0x214] ss:$8 sps:$4 sm:$0xff]  }
 0x133   : > { %3302 = vst [vmem:[%s5022_s23 + $0x408] sm:$0xff] %v4276_v26  ;;  %v4085_v20 = vld [vmem:[%s4866_s20 + $0x614] ss:$8 sps:$4 sm:$0xff]  }
 0x134   : > { %v1910_v27 = vpop.f32.mrb[8].mxu0  ;;  %v2422_v28 = vpop.f32.mrb[8].mxu1 }
 0x135   : > { %4285 = vtanh.f32 %v1910_v27  ;;  %v1912_v29 = vpop.f32.mrb[9].mxu0  ;;  %v2424_v30 = vpop.f32.mrb[9].mxu1 }
 0x136   : > { %4287 = vtanh.f32 %v2422_v28  ;;  %v1913_v33 = vpop.f32.mrb[10].mxu0  ;;  %v2425_v34 = vpop.f32.mrb[10].mxu1 }
 0x137   : > { %v4278_v37 = vpop.eup %4277  ;;  %4289 = vtanh.f32 %v1913_v33  ;;  %v1915_v38 = vpop.f32.mrb[11].mxu0 }
 0x138   : > { %v2427_v39 = vpop.f32.mrb[11].mxu1  ;;  %v4280_v40 = vpop.eup %4279  ;;  %3175 = vst [vmem:[%s5022_s23 + $0x10] sm:$0xff] %v4278_v37  ;;  %4291 = vtanh.f32 %v2425_v34 }
 0x139   : > { %v4282_v41 = vpop.eup %4281  ;;  %3303 = vst [vmem:[%s5022_s23 + $0x410] sm:$0xff] %v4280_v40  ;;  %2125 = vmatmul.mubr.bf16.gmra.mrb[116].mxu0 %v4063_v31  ;;  %2637 = vmatmul.mubr.bf16.gmra.mrb[116].mxu1 %v4064_v32  ;;  %v4087_v31 = vld [vmem:[%s4866_s20 + $0x210] ss:$8 sps:$4 sm:$0xff]  }
 0x13a   : > { %v4284_v42 = vpop.eup %4283  ;;  %3176 = vst [vmem:[%s5022_s23 + $0x18] sm:$0xff] %v4282_v41  ;;  %2132 = vmatprep.mubr.bf16.mxu0 %v4065_v35  ;;  %2644 = vmatprep.mubr.bf16.mxu1 %v4067_v36  ;;  %v4088_v32 = vld [vmem:[%s4866_s20 + $0x610] ss:$8 sps:$4 sm:$0xff]   ;;  %v4089_v35 = vld [vmem:[%s4866_s20 + $0x224] ss:$8 sps:$4 sm:$0xff]  }
 0x13b   : > { %3304 = vst [vmem:[%s5022_s23 + $0x418] sm:$0xff] %v4284_v42  ;;  %v4091_v36 = vld [vmem:[%s4866_s20 + $0x624] ss:$8 sps:$4 sm:$0xff]  }
 0x13c   : > { %v1918_v43 = vpop.f32.mrb[12].mxu0  ;;  %v2430_v44 = vpop.f32.mrb[12].mxu1 }
 0x13d   : > { %4293 = vtanh.f32 %v1918_v43  ;;  %v1920_v45 = vpop.f32.mrb[13].mxu0  ;;  %v2432_v46 = vpop.f32.mrb[13].mxu1 }
 0x13e   : > { %4295 = vtanh.f32 %v2430_v44  ;;  %v1921_v49 = vpop.f32.mrb[14].mxu0  ;;  %v2433_v50 = vpop.f32.mrb[14].mxu1 }
 0x13f   : > { %v4286_v53 = vpop.eup %4285  ;;  %4297 = vtanh.f32 %v1921_v49  ;;  %v1923_v54 = vpop.f32.mrb[15].mxu0 }
 0x140   : > { %v2435_v55 = vpop.f32.mrb[15].mxu1  ;;  %v4288_v56 = vpop.eup %4287  ;;  %3177 = vst [vmem:[%s5022_s23 + $0x20] sm:$0xff] %v4286_v53  ;;  %4299 = vtanh.f32 %v2433_v50 }
 0x141   : > { %v4290_v57 = vpop.eup %4289  ;;  %3305 = vst [vmem:[%s5022_s23 + $0x420] sm:$0xff] %v4288_v56  ;;  %2133 = vmatmul.mubr.bf16.gmra.mrb[120].mxu0 %v4069_v47  ;;  %2645 = vmatmul.mubr.bf16.gmra.mrb[120].mxu1 %v4070_v48  ;;  %v4093_v47 = vld [vmem:[%s4866_s20 + $0x220] ss:$8 sps:$4 sm:$0xff]  }
 0x142   : > { %v4292_v58 = vpop.eup %4291  ;;  %3178 = vst [vmem:[%s5022_s23 + $0x28] sm:$0xff] %v4290_v57  ;;  %2140 = vmatprep.mubr.bf16.mxu0 %v4071_v51  ;;  %2652 = vmatprep.mubr.bf16.mxu1 %v4073_v52  ;;  %v4094_v48 = vld [vmem:[%s4866_s20 + $0x620] ss:$8 sps:$4 sm:$0xff]   ;;  %v4095_v51 = vld [vmem:[%s4866_s20 + $0x234] ss:$8 sps:$4 sm:$0xff]  }
 0x143   : > { %3306 = vst [vmem:[%s5022_s23 + $0x428] sm:$0xff] %v4292_v58  ;;  %v4097_v52 = vld [vmem:[%s4866_s20 + $0x634] ss:$8 sps:$4 sm:$0xff]  }
 0x144   : > { %v1926_v59 = vpop.f32.mrb[16].mxu0  ;;  %v2438_v60 = vpop.f32.mrb[16].mxu1 }
 0x145   : > { %4301 = vtanh.f32 %v1926_v59  ;;  %v1928_v61 = vpop.f32.mrb[17].mxu0  ;;  %v2440_v62 = vpop.f32.mrb[17].mxu1 }
 0x146   : > { %4303 = vtanh.f32 %v2438_v60  ;;  %v1929_v1 = vpop.f32.mrb[18].mxu0  ;;  %v2441_v2 = vpop.f32.mrb[18].mxu1 }
 0x147   : > { %v4294_v5 = vpop.eup %4293  ;;  %4305 = vtanh.f32 %v1929_v1  ;;  %v1931_v6 = vpop.f32.mrb[19].mxu0 }
 0x148   : > { %v2443_v7 = vpop.f32.mrb[19].mxu1  ;;  %v4296_v8 = vpop.eup %4295  ;;  %3179 = vst [vmem:[%s5022_s23 + $0x30] sm:$0xff] %v4294_v5  ;;  %4307 = vtanh.f32 %v2441_v2 }
 0x149   : > { %v4298_v9 = vpop.eup %4297  ;;  %3307 = vst [vmem:[%s5022_s23 + $0x430] sm:$0xff] %v4296_v8  ;;  %2141 = vmatmul.mubr.bf16.gmra.mrb[124].mxu0 %v4075_v63  ;;  %2653 = vmatmul.mubr.bf16.gmra.mrb[124].mxu1 %v4076_v0  ;;  %v4099_v63 = vld [vmem:[%s4866_s20 + $0x230] ss:$8 sps:$4 sm:$0xff]  }
 0x14a   : > { %v4300_v10 = vpop.eup %4299  ;;  %3180 = vst [vmem:[%s5022_s23 + $0x38] sm:$0xff] %v4298_v9  ;;  %2148 = vmatprep.mubr.bf16.mxu0 %v4077_v3  ;;  %2660 = vmatprep.mubr.bf16.mxu1 %v4079_v4  ;;  %v4100_v0 = vld [vmem:[%s4866_s20 + $0x630] ss:$8 sps:$4 sm:$0xff]   ;;  %v4101_v3 = vld [vmem:[%s4866_s20 + $0x244] ss:$8 sps:$4 sm:$0xff]  }
 0x14b   : > { %3308 = vst [vmem:[%s5022_s23 + $0x438] sm:$0xff] %v4300_v10  ;;  %v4103_v4 = vld [vmem:[%s4866_s20 + $0x644] ss:$8 sps:$4 sm:$0xff]  }
 0x14c   : > { %v1934_v11 = vpop.f32.mrb[20].mxu0  ;;  %v2446_v12 = vpop.f32.mrb[20].mxu1 }
 0x14d   : > { %4309 = vtanh.f32 %v1934_v11  ;;  %v1936_v13 = vpop.f32.mrb[21].mxu0  ;;  %v2448_v14 = vpop.f32.mrb[21].mxu1 }
 0x14e   : > { %4311 = vtanh.f32 %v2446_v12  ;;  %v1937_v17 = vpop.f32.mrb[22].mxu0  ;;  %v2449_v18 = vpop.f32.mrb[22].mxu1 }
 0x14f   : > { %v4302_v21 = vpop.eup %4301  ;;  %4313 = vtanh.f32 %v1937_v17  ;;  %v1939_v22 = vpop.f32.mrb[23].mxu0 }
 0x150   : > { %v2451_v23 = vpop.f32.mrb[23].mxu1  ;;  %v4304_v24 = vpop.eup %4303  ;;  %3181 = vst [vmem:[%s5022_s23 + $0x40] sm:$0xff] %v4302_v21  ;;  %4315 = vtanh.f32 %v2449_v18 }
 0x151   : > { %v4306_v25 = vpop.eup %4305  ;;  %3309 = vst [vmem:[%s5022_s23 + $0x440] sm:$0xff] %v4304_v24  ;;  %2149 = vmatmul.mubr.bf16.gmra.mrb[128].mxu0 %v4081_v15  ;;  %2661 = vmatmul.mubr.bf16.gmra.mrb[128].mxu1 %v4082_v16  ;;  %v4105_v15 = vld [vmem:[%s4866_s20 + $0x240] ss:$8 sps:$4 sm:$0xff]  }
 0x152   : > { %v4308_v26 = vpop.eup %4307  ;;  %3182 = vst [vmem:[%s5022_s23 + $0x48] sm:$0xff] %v4306_v25  ;;  %2156 = vmatprep.mubr.bf16.mxu0 %v4083_v19  ;;  %2668 = vmatprep.mubr.bf16.mxu1 %v4085_v20  ;;  %v4106_v16 = vld [vmem:[%s4866_s20 + $0x640] ss:$8 sps:$4 sm:$0xff]   ;;  %v4107_v19 = vld [vmem:[%s4866_s20 + $0x254] ss:$8 sps:$4 sm:$0xff]  }
 0x153   : > { %3310 = vst [vmem:[%s5022_s23 + $0x448] sm:$0xff] %v4308_v26  ;;  %v4109_v20 = vld [vmem:[%s4866_s20 + $0x654] ss:$8 sps:$4 sm:$0xff]  }
 0x154   : > { %v1942_v27 = vpop.f32.mrb[24].mxu0  ;;  %v2454_v28 = vpop.f32.mrb[24].mxu1 }
 0x155   : > { %4317 = vtanh.f32 %v1942_v27  ;;  %v1944_v29 = vpop.f32.mrb[25].mxu0  ;;  %v2456_v30 = vpop.f32.mrb[25].mxu1 }
 0x156   : > { %4319 = vtanh.f32 %v2454_v28  ;;  %v1945_v33 = vpop.f32.mrb[26].mxu0  ;;  %v2457_v34 = vpop.f32.mrb[26].mxu1 }
 0x157   : > { %v4310_v37 = vpop.eup %4309  ;;  %4321 = vtanh.f32 %v1945_v33  ;;  %v1947_v38 = vpop.f32.mrb[27].mxu0 }
 0x158   : > { %v2459_v39 = vpop.f32.mrb[27].mxu1  ;;  %v4312_v40 = vpop.eup %4311  ;;  %3183 = vst [vmem:[%s5022_s23 + $0x50] sm:$0xff] %v4310_v37  ;;  %4323 = vtanh.f32 %v2457_v34 }
 0x159   : > { %v4314_v41 = vpop.eup %4313  ;;  %3311 = vst [vmem:[%s5022_s23 + $0x450] sm:$0xff] %v4312_v40  ;;  %2157 = vmatmul.mubr.bf16.gmra.mrb[132].mxu0 %v4087_v31  ;;  %2669 = vmatmul.mubr.bf16.gmra.mrb[132].mxu1 %v4088_v32  ;;  %v4111_v31 = vld [vmem:[%s4866_s20 + $0x250] ss:$8 sps:$4 sm:$0xff]  }
 0x15a   : > { %v4316_v42 = vpop.eup %4315  ;;  %3184 = vst [vmem:[%s5022_s23 + $0x58] sm:$0xff] %v4314_v41  ;;  %2164 = vmatprep.mubr.bf16.mxu0 %v4089_v35  ;;  %2676 = vmatprep.mubr.bf16.mxu1 %v4091_v36  ;;  %v4112_v32 = vld [vmem:[%s4866_s20 + $0x650] ss:$8 sps:$4 sm:$0xff]   ;;  %v4113_v35 = vld [vmem:[%s4866_s20 + $0x264] ss:$8 sps:$4 sm:$0xff]  }
 0x15b   : > { %3312 = vst [vmem:[%s5022_s23 + $0x458] sm:$0xff] %v4316_v42  ;;  %v4115_v36 = vld [vmem:[%s4866_s20 + $0x664] ss:$8 sps:$4 sm:$0xff]  }
 0x15c   : > { %v1950_v43 = vpop.f32.mrb[28].mxu0  ;;  %v2462_v44 = vpop.f32.mrb[28].mxu1 }
 0x15d   : > { %4325 = vtanh.f32 %v1950_v43  ;;  %v1952_v45 = vpop.f32.mrb[29].mxu0  ;;  %v2464_v46 = vpop.f32.mrb[29].mxu1 }
 0x15e   : > { %4327 = vtanh.f32 %v2462_v44  ;;  %v1953_v49 = vpop.f32.mrb[30].mxu0  ;;  %v2465_v50 = vpop.f32.mrb[30].mxu1 }
 0x15f   : > { %v4318_v53 = vpop.eup %4317  ;;  %4329 = vtanh.f32 %v1953_v49  ;;  %v1955_v54 = vpop.f32.mrb[31].mxu0 }
 0x160   : > { %v2467_v55 = vpop.f32.mrb[31].mxu1  ;;  %v4320_v56 = vpop.eup %4319  ;;  %3185 = vst [vmem:[%s5022_s23 + $0x60] sm:$0xff] %v4318_v53  ;;  %4331 = vtanh.f32 %v2465_v50 }
 0x161   : > { %v4322_v57 = vpop.eup %4321  ;;  %3313 = vst [vmem:[%s5022_s23 + $0x460] sm:$0xff] %v4320_v56  ;;  %2165 = vmatmul.mubr.bf16.gmra.mrb[136].mxu0 %v4093_v47  ;;  %2677 = vmatmul.mubr.bf16.gmra.mrb[136].mxu1 %v4094_v48  ;;  %v4117_v47 = vld [vmem:[%s4866_s20 + $0x260] ss:$8 sps:$4 sm:$0xff]  }
 0x162   : > { %v4324_v58 = vpop.eup %4323  ;;  %3186 = vst [vmem:[%s5022_s23 + $0x68] sm:$0xff] %v4322_v57  ;;  %2172 = vmatprep.mubr.bf16.mxu0 %v4095_v51  ;;  %2684 = vmatprep.mubr.bf16.mxu1 %v4097_v52  ;;  %v4118_v48 = vld [vmem:[%s4866_s20 + $0x660] ss:$8 sps:$4 sm:$0xff]   ;;  %v4119_v51 = vld [vmem:[%s4866_s20 + $0x274] ss:$8 sps:$4 sm:$0xff]  }
 0x163   : > { %3314 = vst [vmem:[%s5022_s23 + $0x468] sm:$0xff] %v4324_v58  ;;  %v4121_v52 = vld [vmem:[%s4866_s20 + $0x674] ss:$8 sps:$4 sm:$0xff]  }
 0x164   : > { %v1958_v59 = vpop.f32.mrb[32].mxu0  ;;  %v2470_v60 = vpop.f32.mrb[32].mxu1 }
 0x165   : > { %4333 = vtanh.f32 %v1958_v59  ;;  %v1960_v61 = vpop.f32.mrb[33].mxu0  ;;  %v2472_v62 = vpop.f32.mrb[33].mxu1 }
 0x166   : > { %4335 = vtanh.f32 %v2470_v60  ;;  %v1961_v1 = vpop.f32.mrb[34].mxu0  ;;  %v2473_v2 = vpop.f32.mrb[34].mxu1 }
 0x167   : > { %v4326_v5 = vpop.eup %4325  ;;  %4337 = vtanh.f32 %v1961_v1  ;;  %v1963_v6 = vpop.f32.mrb[35].mxu0 }
 0x168   : > { %v2475_v7 = vpop.f32.mrb[35].mxu1  ;;  %v4328_v8 = vpop.eup %4327  ;;  %3187 = vst [vmem:[%s5022_s23 + $0x70] sm:$0xff] %v4326_v5  ;;  %4339 = vtanh.f32 %v2473_v2 }
 0x169   : > { %v4330_v9 = vpop.eup %4329  ;;  %3315 = vst [vmem:[%s5022_s23 + $0x470] sm:$0xff] %v4328_v8  ;;  %2173 = vmatmul.mubr.bf16.gmra.mrb[140].mxu0 %v4099_v63  ;;  %2685 = vmatmul.mubr.bf16.gmra.mrb[140].mxu1 %v4100_v0  ;;  %v4123_v63 = vld [vmem:[%s4866_s20 + $0x270] ss:$8 sps:$4 sm:$0xff]  }
 0x16a   : > { %v4332_v10 = vpop.eup %4331  ;;  %3188 = vst [vmem:[%s5022_s23 + $0x78] sm:$0xff] %v4330_v9  ;;  %2180 = vmatprep.mubr.bf16.mxu0 %v4101_v3  ;;  %2692 = vmatprep.mubr.bf16.mxu1 %v4103_v4  ;;  %v4124_v0 = vld [vmem:[%s4866_s20 + $0x670] ss:$8 sps:$4 sm:$0xff]   ;;  %v4125_v3 = vld [vmem:[%s4866_s20 + $0x284] ss:$8 sps:$4 sm:$0xff]  }
 0x16b   : > { %3316 = vst [vmem:[%s5022_s23 + $0x478] sm:$0xff] %v4332_v10  ;;  %v4127_v4 = vld [vmem:[%s4866_s20 + $0x684] ss:$8 sps:$4 sm:$0xff]  }
 0x16c   : > { %v1966_v11 = vpop.f32.mrb[36].mxu0  ;;  %v2478_v12 = vpop.f32.mrb[36].mxu1 }
 0x16d   : > { %4341 = vtanh.f32 %v1966_v11  ;;  %v1968_v13 = vpop.f32.mrb[37].mxu0  ;;  %v2480_v14 = vpop.f32.mrb[37].mxu1 }
 0x16e   : > { %4343 = vtanh.f32 %v2478_v12  ;;  %v1969_v17 = vpop.f32.mrb[38].mxu0  ;;  %v2481_v18 = vpop.f32.mrb[38].mxu1 }
 0x16f   : > { %v4334_v21 = vpop.eup %4333  ;;  %4345 = vtanh.f32 %v1969_v17  ;;  %v1971_v22 = vpop.f32.mrb[39].mxu0 }
 0x170   : > { %v2483_v23 = vpop.f32.mrb[39].mxu1  ;;  %v4336_v24 = vpop.eup %4335  ;;  %3189 = vst [vmem:[%s5022_s23 + $0x80] sm:$0xff] %v4334_v21  ;;  %4347 = vtanh.f32 %v2481_v18 }
 0x171   : > { %v4338_v25 = vpop.eup %4337  ;;  %3317 = vst [vmem:[%s5022_s23 + $0x480] sm:$0xff] %v4336_v24  ;;  %2181 = vmatmul.mubr.bf16.gmra.mrb[144].mxu0 %v4105_v15  ;;  %2693 = vmatmul.mubr.bf16.gmra.mrb[144].mxu1 %v4106_v16  ;;  %v4129_v15 = vld [vmem:[%s4866_s20 + $0x280] ss:$8 sps:$4 sm:$0xff]  }
 0x172   : > { %v4340_v26 = vpop.eup %4339  ;;  %3190 = vst [vmem:[%s5022_s23 + $0x88] sm:$0xff] %v4338_v25  ;;  %2188 = vmatprep.mubr.bf16.mxu0 %v4107_v19  ;;  %2700 = vmatprep.mubr.bf16.mxu1 %v4109_v20  ;;  %v4130_v16 = vld [vmem:[%s4866_s20 + $0x680] ss:$8 sps:$4 sm:$0xff]   ;;  %v4131_v19 = vld [vmem:[%s4866_s20 + $0x294] ss:$8 sps:$4 sm:$0xff]  }
 0x173   : > { %3318 = vst [vmem:[%s5022_s23 + $0x488] sm:$0xff] %v4340_v26  ;;  %v4133_v20 = vld [vmem:[%s4866_s20 + $0x694] ss:$8 sps:$4 sm:$0xff]  }
 0x174   : > { %v1974_v27 = vpop.f32.mrb[40].mxu0  ;;  %v2486_v28 = vpop.f32.mrb[40].mxu1 }
 0x175   : > { %4349 = vtanh.f32 %v1974_v27  ;;  %v1976_v29 = vpop.f32.mrb[41].mxu0  ;;  %v2488_v30 = vpop.f32.mrb[41].mxu1 }
 0x176   : > { %4351 = vtanh.f32 %v2486_v28  ;;  %v1977_v33 = vpop.f32.mrb[42].mxu0  ;;  %v2489_v34 = vpop.f32.mrb[42].mxu1 }
 0x177   : > { %v4342_v37 = vpop.eup %4341  ;;  %4353 = vtanh.f32 %v1977_v33  ;;  %v1979_v38 = vpop.f32.mrb[43].mxu0 }
 0x178   : > { %v2491_v39 = vpop.f32.mrb[43].mxu1  ;;  %v4344_v40 = vpop.eup %4343  ;;  %3191 = vst [vmem:[%s5022_s23 + $0x90] sm:$0xff] %v4342_v37  ;;  %4355 = vtanh.f32 %v2489_v34 }
 0x179   : > { %v4346_v41 = vpop.eup %4345  ;;  %3319 = vst [vmem:[%s5022_s23 + $0x490] sm:$0xff] %v4344_v40  ;;  %2189 = vmatmul.mubr.bf16.gmra.mrb[148].mxu0 %v4111_v31  ;;  %2701 = vmatmul.mubr.bf16.gmra.mrb[148].mxu1 %v4112_v32  ;;  %v4135_v31 = vld [vmem:[%s4866_s20 + $0x290] ss:$8 sps:$4 sm:$0xff]  }
 0x17a   : > { %v4348_v42 = vpop.eup %4347  ;;  %3192 = vst [vmem:[%s5022_s23 + $0x98] sm:$0xff] %v4346_v41  ;;  %2196 = vmatprep.mubr.bf16.mxu0 %v4113_v35  ;;  %2708 = vmatprep.mubr.bf16.mxu1 %v4115_v36  ;;  %v4136_v32 = vld [vmem:[%s4866_s20 + $0x690] ss:$8 sps:$4 sm:$0xff]   ;;  %v4137_v35 = vld [vmem:[%s4866_s20 + $0x2a4] ss:$8 sps:$4 sm:$0xff]  }
 0x17b   : > { %3320 = vst [vmem:[%s5022_s23 + $0x498] sm:$0xff] %v4348_v42  ;;  %v4139_v36 = vld [vmem:[%s4866_s20 + $0x6a4] ss:$8 sps:$4 sm:$0xff]  }
 0x17c   : > { %v1982_v43 = vpop.f32.mrb[44].mxu0  ;;  %v2494_v44 = vpop.f32.mrb[44].mxu1 }
 0x17d   : > { %4357 = vtanh.f32 %v1982_v43  ;;  %v1984_v45 = vpop.f32.mrb[45].mxu0  ;;  %v2496_v46 = vpop.f32.mrb[45].mxu1 }
 0x17e   : > { %4359 = vtanh.f32 %v2494_v44  ;;  %v1985_v49 = vpop.f32.mrb[46].mxu0  ;;  %v2497_v50 = vpop.f32.mrb[46].mxu1 }
 0x17f   : > { %v4350_v53 = vpop.eup %4349  ;;  %4361 = vtanh.f32 %v1985_v49  ;;  %v1987_v54 = vpop.f32.mrb[47].mxu0 }
 0x180   : > { %v2499_v55 = vpop.f32.mrb[47].mxu1  ;;  %v4352_v56 = vpop.eup %4351  ;;  %3193 = vst [vmem:[%s5022_s23 + $0xa0] sm:$0xff] %v4350_v53  ;;  %4363 = vtanh.f32 %v2497_v50 }
 0x181   : > { %v4354_v57 = vpop.eup %4353  ;;  %3321 = vst [vmem:[%s5022_s23 + $0x4a0] sm:$0xff] %v4352_v56  ;;  %2197 = vmatmul.mubr.bf16.gmra.mrb[152].mxu0 %v4117_v47  ;;  %2709 = vmatmul.mubr.bf16.gmra.mrb[152].mxu1 %v4118_v48  ;;  %v4141_v47 = vld [vmem:[%s4866_s20 + $0x2a0] ss:$8 sps:$4 sm:$0xff]  }
 0x182   : > { %v4356_v58 = vpop.eup %4355  ;;  %3194 = vst [vmem:[%s5022_s23 + $0xa8] sm:$0xff] %v4354_v57  ;;  %2204 = vmatprep.mubr.bf16.mxu0 %v4119_v51  ;;  %2716 = vmatprep.mubr.bf16.mxu1 %v4121_v52  ;;  %v4142_v48 = vld [vmem:[%s4866_s20 + $0x6a0] ss:$8 sps:$4 sm:$0xff]   ;;  %v4143_v51 = vld [vmem:[%s4866_s20 + $0x2b4] ss:$8 sps:$4 sm:$0xff]  }
 0x183   : > { %3322 = vst [vmem:[%s5022_s23 + $0x4a8] sm:$0xff] %v4356_v58  ;;  %v4145_v52 = vld [vmem:[%s4866_s20 + $0x6b4] ss:$8 sps:$4 sm:$0xff]  }
 0x184   : > { %v1990_v59 = vpop.f32.mrb[48].mxu0  ;;  %v2502_v60 = vpop.f32.mrb[48].mxu1 }
 0x185   : > { %4365 = vtanh.f32 %v1990_v59  ;;  %v1992_v61 = vpop.f32.mrb[49].mxu0  ;;  %v2504_v62 = vpop.f32.mrb[49].mxu1 }
 0x186   : > { %4367 = vtanh.f32 %v2502_v60  ;;  %v1993_v1 = vpop.f32.mrb[50].mxu0  ;;  %v2505_v2 = vpop.f32.mrb[50].mxu1 }
 0x187   : > { %v4358_v5 = vpop.eup %4357  ;;  %4369 = vtanh.f32 %v1993_v1  ;;  %v1995_v6 = vpop.f32.mrb[51].mxu0 }
 0x188   : > { %v2507_v7 = vpop.f32.mrb[51].mxu1  ;;  %v4360_v8 = vpop.eup %4359  ;;  %3195 = vst [vmem:[%s5022_s23 + $0xb0] sm:$0xff] %v4358_v5  ;;  %4371 = vtanh.f32 %v2505_v2 }
 0x189   : > { %v4362_v9 = vpop.eup %4361  ;;  %3323 = vst [vmem:[%s5022_s23 + $0x4b0] sm:$0xff] %v4360_v8  ;;  %2205 = vmatmul.mubr.bf16.gmra.mrb[156].mxu0 %v4123_v63  ;;  %2717 = vmatmul.mubr.bf16.gmra.mrb[156].mxu1 %v4124_v0  ;;  %v4147_v63 = vld [vmem:[%s4866_s20 + $0x2b0] ss:$8 sps:$4 sm:$0xff]  }
 0x18a   : > { %v4364_v10 = vpop.eup %4363  ;;  %3196 = vst [vmem:[%s5022_s23 + $0xb8] sm:$0xff] %v4362_v9  ;;  %2212 = vmatprep.mubr.bf16.mxu0 %v4125_v3  ;;  %2724 = vmatprep.mubr.bf16.mxu1 %v4127_v4  ;;  %v4148_v0 = vld [vmem:[%s4866_s20 + $0x6b0] ss:$8 sps:$4 sm:$0xff]   ;;  %v4149_v3 = vld [vmem:[%s4866_s20 + $0x2c4] ss:$8 sps:$4 sm:$0xff]  }
 0x18b   : > { %3324 = vst [vmem:[%s5022_s23 + $0x4b8] sm:$0xff] %v4364_v10  ;;  %v4151_v4 = vld [vmem:[%s4866_s20 + $0x6c4] ss:$8 sps:$4 sm:$0xff]  }
 0x18c   : > { %v1998_v11 = vpop.f32.mrb[52].mxu0  ;;  %v2510_v12 = vpop.f32.mrb[52].mxu1 }
 0x18d   : > { %4373 = vtanh.f32 %v1998_v11  ;;  %v2000_v13 = vpop.f32.mrb[53].mxu0  ;;  %v2512_v14 = vpop.f32.mrb[53].mxu1 }
 0x18e   : > { %4375 = vtanh.f32 %v2510_v12  ;;  %v2001_v17 = vpop.f32.mrb[54].mxu0  ;;  %v2513_v18 = vpop.f32.mrb[54].mxu1 }
 0x18f   : > { %v4366_v21 = vpop.eup %4365  ;;  %4377 = vtanh.f32 %v2001_v17  ;;  %v2003_v22 = vpop.f32.mrb[55].mxu0 }
 0x190   : > { %v2515_v23 = vpop.f32.mrb[55].mxu1  ;;  %v4368_v24 = vpop.eup %4367  ;;  %3197 = vst [vmem:[%s5022_s23 + $0xc0] sm:$0xff] %v4366_v21  ;;  %4379 = vtanh.f32 %v2513_v18 }
 0x191   : > { %v4370_v25 = vpop.eup %4369  ;;  %3325 = vst [vmem:[%s5022_s23 + $0x4c0] sm:$0xff] %v4368_v24  ;;  %2213 = vmatmul.mubr.bf16.gmra.mrb[160].mxu0 %v4129_v15  ;;  %2725 = vmatmul.mubr.bf16.gmra.mrb[160].mxu1 %v4130_v16  ;;  %v4153_v15 = vld [vmem:[%s4866_s20 + $0x2c0] ss:$8 sps:$4 sm:$0xff]  }
 0x192   : > { %v4372_v26 = vpop.eup %4371  ;;  %3198 = vst [vmem:[%s5022_s23 + $0xc8] sm:$0xff] %v4370_v25  ;;  %2220 = vmatprep.mubr.bf16.mxu0 %v4131_v19  ;;  %2732 = vmatprep.mubr.bf16.mxu1 %v4133_v20  ;;  %v4154_v16 = vld [vmem:[%s4866_s20 + $0x6c0] ss:$8 sps:$4 sm:$0xff]   ;;  %v4155_v19 = vld [vmem:[%s4866_s20 + $0x2d4] ss:$8 sps:$4 sm:$0xff]  }
 0x193   : > { %3326 = vst [vmem:[%s5022_s23 + $0x4c8] sm:$0xff] %v4372_v26  ;;  %v4157_v20 = vld [vmem:[%s4866_s20 + $0x6d4] ss:$8 sps:$4 sm:$0xff]  }
 0x194   : > { %v2006_v27 = vpop.f32.mrb[56].mxu0  ;;  %v2518_v28 = vpop.f32.mrb[56].mxu1 }
 0x195   : > { %4381 = vtanh.f32 %v2006_v27  ;;  %v2008_v29 = vpop.f32.mrb[57].mxu0  ;;  %v2520_v30 = vpop.f32.mrb[57].mxu1 }
 0x196   : > { %4383 = vtanh.f32 %v2518_v28  ;;  %v2009_v33 = vpop.f32.mrb[58].mxu0  ;;  %v2521_v34 = vpop.f32.mrb[58].mxu1 }
 0x197   : > { %v4374_v37 = vpop.eup %4373  ;;  %4385 = vtanh.f32 %v2009_v33  ;;  %v2011_v38 = vpop.f32.mrb[59].mxu0 }
 0x198   : > { %v2523_v39 = vpop.f32.mrb[59].mxu1  ;;  %v4376_v40 = vpop.eup %4375  ;;  %3199 = vst [vmem:[%s5022_s23 + $0xd0] sm:$0xff] %v4374_v37  ;;  %4387 = vtanh.f32 %v2521_v34 }
 0x199   : > { %v4378_v41 = vpop.eup %4377  ;;  %3327 = vst [vmem:[%s5022_s23 + $0x4d0] sm:$0xff] %v4376_v40  ;;  %2221 = vmatmul.mubr.bf16.gmra.mrb[164].mxu0 %v4135_v31  ;;  %2733 = vmatmul.mubr.bf16.gmra.mrb[164].mxu1 %v4136_v32  ;;  %v4159_v31 = vld [vmem:[%s4866_s20 + $0x2d0] ss:$8 sps:$4 sm:$0xff]  }
 0x19a   : > { %v4380_v42 = vpop.eup %4379  ;;  %3200 = vst [vmem:[%s5022_s23 + $0xd8] sm:$0xff] %v4378_v41  ;;  %2228 = vmatprep.mubr.bf16.mxu0 %v4137_v35  ;;  %2740 = vmatprep.mubr.bf16.mxu1 %v4139_v36  ;;  %v4160_v32 = vld [vmem:[%s4866_s20 + $0x6d0] ss:$8 sps:$4 sm:$0xff]   ;;  %v4161_v35 = vld [vmem:[%s4866_s20 + $0x2e4] ss:$8 sps:$4 sm:$0xff]  }
 0x19b   : > { %3328 = vst [vmem:[%s5022_s23 + $0x4d8] sm:$0xff] %v4380_v42  ;;  %v4163_v36 = vld [vmem:[%s4866_s20 + $0x6e4] ss:$8 sps:$4 sm:$0xff]  }
 0x19c   : > { %v2014_v43 = vpop.f32.mrb[60].mxu0  ;;  %v2526_v44 = vpop.f32.mrb[60].mxu1 }
 0x19d   : > { %4389 = vtanh.f32 %v2014_v43  ;;  %v2016_v45 = vpop.f32.mrb[61].mxu0  ;;  %v2528_v46 = vpop.f32.mrb[61].mxu1 }
 0x19e   : > { %4391 = vtanh.f32 %v2526_v44  ;;  %v2017_v49 = vpop.f32.mrb[62].mxu0  ;;  %v2529_v50 = vpop.f32.mrb[62].mxu1 }
 0x19f   : > { %v4382_v53 = vpop.eup %4381  ;;  %4393 = vtanh.f32 %v2017_v49  ;;  %v2019_v54 = vpop.f32.mrb[63].mxu0 }
 0x1a0   : > { %v2531_v55 = vpop.f32.mrb[63].mxu1  ;;  %v4384_v56 = vpop.eup %4383  ;;  %3201 = vst [vmem:[%s5022_s23 + $0xe0] sm:$0xff] %v4382_v53  ;;  %4395 = vtanh.f32 %v2529_v50 }
 0x1a1   : > { %v4386_v57 = vpop.eup %4385  ;;  %3329 = vst [vmem:[%s5022_s23 + $0x4e0] sm:$0xff] %v4384_v56  ;;  %2229 = vmatmul.mubr.bf16.gmra.mrb[168].mxu0 %v4141_v47  ;;  %2741 = vmatmul.mubr.bf16.gmra.mrb[168].mxu1 %v4142_v48  ;;  %v4165_v47 = vld [vmem:[%s4866_s20 + $0x2e0] ss:$8 sps:$4 sm:$0xff]  }
 0x1a2   : > { %v4388_v58 = vpop.eup %4387  ;;  %3202 = vst [vmem:[%s5022_s23 + $0xe8] sm:$0xff] %v4386_v57  ;;  %2236 = vmatprep.mubr.bf16.mxu0 %v4143_v51  ;;  %2748 = vmatprep.mubr.bf16.mxu1 %v4145_v52  ;;  %v4166_v48 = vld [vmem:[%s4866_s20 + $0x6e0] ss:$8 sps:$4 sm:$0xff]   ;;  %v4167_v51 = vld [vmem:[%s4866_s20 + $0x2f4] ss:$8 sps:$4 sm:$0xff]  }
 0x1a3   : > { %3330 = vst [vmem:[%s5022_s23 + $0x4e8] sm:$0xff] %v4388_v58  ;;  %v4169_v52 = vld [vmem:[%s4866_s20 + $0x6f4] ss:$8 sps:$4 sm:$0xff]  }
 0x1a4   : > { %v2022_v59 = vpop.f32.mrb[64].mxu0  ;;  %v2534_v60 = vpop.f32.mrb[64].mxu1 }
 0x1a5   : > { %4397 = vtanh.f32 %v2022_v59  ;;  %v2024_v61 = vpop.f32.mrb[65].mxu0  ;;  %v2536_v62 = vpop.f32.mrb[65].mxu1 }
 0x1a6   : > { %4399 = vtanh.f32 %v2534_v60  ;;  %v2025_v1 = vpop.f32.mrb[66].mxu0  ;;  %v2537_v2 = vpop.f32.mrb[66].mxu1 }
 0x1a7   : > { %v4390_v5 = vpop.eup %4389  ;;  %4401 = vtanh.f32 %v2025_v1  ;;  %v2027_v6 = vpop.f32.mrb[67].mxu0 }
 0x1a8   : > { %v2539_v7 = vpop.f32.mrb[67].mxu1  ;;  %v4392_v8 = vpop.eup %4391  ;;  %3203 = vst [vmem:[%s5022_s23 + $0xf0] sm:$0xff] %v4390_v5  ;;  %4403 = vtanh.f32 %v2537_v2 }
 0x1a9   : > { %v4394_v9 = vpop.eup %4393  ;;  %3331 = vst [vmem:[%s5022_s23 + $0x4f0] sm:$0xff] %v4392_v8  ;;  %2237 = vmatmul.mubr.bf16.gmra.mrb[172].mxu0 %v4147_v63  ;;  %2749 = vmatmul.mubr.bf16.gmra.mrb[172].mxu1 %v4148_v0  ;;  %v4171_v63 = vld [vmem:[%s4866_s20 + $0x2f0] ss:$8 sps:$4 sm:$0xff]  }
 0x1aa   : > { %v4396_v10 = vpop.eup %4395  ;;  %3204 = vst [vmem:[%s5022_s23 + $0xf8] sm:$0xff] %v4394_v9  ;;  %2244 = vmatprep.mubr.bf16.mxu0 %v4149_v3  ;;  %2756 = vmatprep.mubr.bf16.mxu1 %v4151_v4  ;;  %v4172_v0 = vld [vmem:[%s4866_s20 + $0x6f0] ss:$8 sps:$4 sm:$0xff]   ;;  %v4173_v3 = vld [vmem:[%s4866_s20 + $0x304] ss:$8 sps:$4 sm:$0xff]  }
 0x1ab   : > { %3332 = vst [vmem:[%s5022_s23 + $0x4f8] sm:$0xff] %v4396_v10  ;;  %v4175_v4 = vld [vmem:[%s4866_s20 + $0x704] ss:$8 sps:$4 sm:$0xff]  }
 0x1ac   : > { %v2030_v11 = vpop.f32.mrb[68].mxu0  ;;  %v2542_v12 = vpop.f32.mrb[68].mxu1 }
 0x1ad   : > { %4405 = vtanh.f32 %v2030_v11  ;;  %v2032_v13 = vpop.f32.mrb[69].mxu0  ;;  %v2544_v14 = vpop.f32.mrb[69].mxu1 }
 0x1ae   : > { %4407 = vtanh.f32 %v2542_v12  ;;  %v2033_v17 = vpop.f32.mrb[70].mxu0  ;;  %v2545_v18 = vpop.f32.mrb[70].mxu1 }
 0x1af   : > { %v4398_v21 = vpop.eup %4397  ;;  %4409 = vtanh.f32 %v2033_v17  ;;  %v2035_v22 = vpop.f32.mrb[71].mxu0 }
 0x1b0   : > { %v2547_v23 = vpop.f32.mrb[71].mxu1  ;;  %v4400_v24 = vpop.eup %4399  ;;  %3205 = vst [vmem:[%s5022_s23 + $0x100] sm:$0xff] %v4398_v21  ;;  %4411 = vtanh.f32 %v2545_v18 }
 0x1b1   : > { %v4402_v25 = vpop.eup %4401  ;;  %3333 = vst [vmem:[%s5022_s23 + $0x500] sm:$0xff] %v4400_v24  ;;  %2245 = vmatmul.mubr.bf16.gmra.mrb[176].mxu0 %v4153_v15  ;;  %2757 = vmatmul.mubr.bf16.gmra.mrb[176].mxu1 %v4154_v16  ;;  %v4177_v15 = vld [vmem:[%s4866_s20 + $0x300] ss:$8 sps:$4 sm:$0xff]  }
 0x1b2   : > { %v4404_v26 = vpop.eup %4403  ;;  %3206 = vst [vmem:[%s5022_s23 + $0x108] sm:$0xff] %v4402_v25  ;;  %2252 = vmatprep.mubr.bf16.mxu0 %v4155_v19  ;;  %2764 = vmatprep.mubr.bf16.mxu1 %v4157_v20  ;;  %v4178_v16 = vld [vmem:[%s4866_s20 + $0x700] ss:$8 sps:$4 sm:$0xff]   ;;  %v4179_v19 = vld [vmem:[%s4866_s20 + $0x314] ss:$8 sps:$4 sm:$0xff]  }
 0x1b3   : > { %3334 = vst [vmem:[%s5022_s23 + $0x508] sm:$0xff] %v4404_v26  ;;  %v4181_v20 = vld [vmem:[%s4866_s20 + $0x714] ss:$8 sps:$4 sm:$0xff]  }
 0x1b4   : > { %v2038_v27 = vpop.f32.mrb[72].mxu0  ;;  %v2550_v28 = vpop.f32.mrb[72].mxu1 }
 0x1b5   : > { %4413 = vtanh.f32 %v2038_v27  ;;  %v2040_v29 = vpop.f32.mrb[73].mxu0  ;;  %v2552_v30 = vpop.f32.mrb[73].mxu1 }
 0x1b6   : > { %4415 = vtanh.f32 %v2550_v28  ;;  %v2041_v33 = vpop.f32.mrb[74].mxu0  ;;  %v2553_v34 = vpop.f32.mrb[74].mxu1 }
 0x1b7   : > { %v4406_v37 = vpop.eup %4405  ;;  %4417 = vtanh.f32 %v2041_v33  ;;  %v2043_v38 = vpop.f32.mrb[75].mxu0 }
 0x1b8   : > { %v2555_v39 = vpop.f32.mrb[75].mxu1  ;;  %v4408_v40 = vpop.eup %4407  ;;  %3207 = vst [vmem:[%s5022_s23 + $0x110] sm:$0xff] %v4406_v37  ;;  %4419 = vtanh.f32 %v2553_v34 }
 0x1b9   : > { %v4410_v41 = vpop.eup %4409  ;;  %3335 = vst [vmem:[%s5022_s23 + $0x510] sm:$0xff] %v4408_v40  ;;  %2253 = vmatmul.mubr.bf16.gmra.mrb[180].mxu0 %v4159_v31  ;;  %2765 = vmatmul.mubr.bf16.gmra.mrb[180].mxu1 %v4160_v32  ;;  %v4183_v31 = vld [vmem:[%s4866_s20 + $0x310] ss:$8 sps:$4 sm:$0xff]  }
 0x1ba   : > { %v4412_v42 = vpop.eup %4411  ;;  %3208 = vst [vmem:[%s5022_s23 + $0x118] sm:$0xff] %v4410_v41  ;;  %2260 = vmatprep.mubr.bf16.mxu0 %v4161_v35  ;;  %2772 = vmatprep.mubr.bf16.mxu1 %v4163_v36  ;;  %v4184_v32 = vld [vmem:[%s4866_s20 + $0x710] ss:$8 sps:$4 sm:$0xff]   ;;  %v4185_v35 = vld [vmem:[%s4866_s20 + $0x324] ss:$8 sps:$4 sm:$0xff]  }
 0x1bb   : > { %3336 = vst [vmem:[%s5022_s23 + $0x518] sm:$0xff] %v4412_v42  ;;  %v4187_v36 = vld [vmem:[%s4866_s20 + $0x724] ss:$8 sps:$4 sm:$0xff]  }
 0x1bc   : > { %v2046_v43 = vpop.f32.mrb[76].mxu0  ;;  %v2558_v44 = vpop.f32.mrb[76].mxu1 }
 0x1bd   : > { %4421 = vtanh.f32 %v2046_v43  ;;  %v2048_v45 = vpop.f32.mrb[77].mxu0  ;;  %v2560_v46 = vpop.f32.mrb[77].mxu1 }
 0x1be   : > { %4423 = vtanh.f32 %v2558_v44  ;;  %v2049_v49 = vpop.f32.mrb[78].mxu0  ;;  %v2561_v50 = vpop.f32.mrb[78].mxu1 }
 0x1bf   : > { %v4414_v53 = vpop.eup %4413  ;;  %4425 = vtanh.f32 %v2049_v49  ;;  %v2051_v54 = vpop.f32.mrb[79].mxu0 }
 0x1c0   : > { %v2563_v55 = vpop.f32.mrb[79].mxu1  ;;  %v4416_v56 = vpop.eup %4415  ;;  %3209 = vst [vmem:[%s5022_s23 + $0x120] sm:$0xff] %v4414_v53  ;;  %4427 = vtanh.f32 %v2561_v50 }
 0x1c1   : > { %v4418_v57 = vpop.eup %4417  ;;  %3337 = vst [vmem:[%s5022_s23 + $0x520] sm:$0xff] %v4416_v56  ;;  %2261 = vmatmul.mubr.bf16.gmra.mrb[184].mxu0 %v4165_v47  ;;  %2773 = vmatmul.mubr.bf16.gmra.mrb[184].mxu1 %v4166_v48  ;;  %v4189_v47 = vld [vmem:[%s4866_s20 + $0x320] ss:$8 sps:$4 sm:$0xff]  }
 0x1c2   : > { %v4420_v58 = vpop.eup %4419  ;;  %3210 = vst [vmem:[%s5022_s23 + $0x128] sm:$0xff] %v4418_v57  ;;  %2268 = vmatprep.mubr.bf16.mxu0 %v4167_v51  ;;  %2780 = vmatprep.mubr.bf16.mxu1 %v4169_v52  ;;  %v4190_v48 = vld [vmem:[%s4866_s20 + $0x720] ss:$8 sps:$4 sm:$0xff]   ;;  %v4191_v51 = vld [vmem:[%s4866_s20 + $0x334] ss:$8 sps:$4 sm:$0xff]  }
 0x1c3   : > { %3338 = vst [vmem:[%s5022_s23 + $0x528] sm:$0xff] %v4420_v58  ;;  %v4193_v52 = vld [vmem:[%s4866_s20 + $0x734] ss:$8 sps:$4 sm:$0xff]  }
 0x1c4   : > { %v2054_v59 = vpop.f32.mrb[80].mxu0  ;;  %v2566_v60 = vpop.f32.mrb[80].mxu1 }
 0x1c5   : > { %4429 = vtanh.f32 %v2054_v59  ;;  %v2056_v61 = vpop.f32.mrb[81].mxu0  ;;  %v2568_v62 = vpop.f32.mrb[81].mxu1 }
 0x1c6   : > { %4431 = vtanh.f32 %v2566_v60  ;;  %v2057_v1 = vpop.f32.mrb[82].mxu0  ;;  %v2569_v2 = vpop.f32.mrb[82].mxu1 }
 0x1c7   : > { %v4422_v5 = vpop.eup %4421  ;;  %4433 = vtanh.f32 %v2057_v1  ;;  %v2059_v6 = vpop.f32.mrb[83].mxu0 }
 0x1c8   : > { %v2571_v7 = vpop.f32.mrb[83].mxu1  ;;  %v4424_v8 = vpop.eup %4423  ;;  %3211 = vst [vmem:[%s5022_s23 + $0x130] sm:$0xff] %v4422_v5  ;;  %4435 = vtanh.f32 %v2569_v2 }
 0x1c9   : > { %v4426_v9 = vpop.eup %4425  ;;  %3339 = vst [vmem:[%s5022_s23 + $0x530] sm:$0xff] %v4424_v8  ;;  %2269 = vmatmul.mubr.bf16.gmra.mrb[188].mxu0 %v4171_v63  ;;  %2781 = vmatmul.mubr.bf16.gmra.mrb[188].mxu1 %v4172_v0  ;;  %v4195_v63 = vld [vmem:[%s4866_s20 + $0x330] ss:$8 sps:$4 sm:$0xff]  }
 0x1ca   : > { %v4428_v10 = vpop.eup %4427  ;;  %3212 = vst [vmem:[%s5022_s23 + $0x138] sm:$0xff] %v4426_v9  ;;  %2276 = vmatprep.mubr.bf16.mxu0 %v4173_v3  ;;  %2788 = vmatprep.mubr.bf16.mxu1 %v4175_v4  ;;  %v4196_v0 = vld [vmem:[%s4866_s20 + $0x730] ss:$8 sps:$4 sm:$0xff]   ;;  %v4197_v3 = vld [vmem:[%s4866_s20 + $0x344] ss:$8 sps:$4 sm:$0xff]  }
 0x1cb   : > { %3340 = vst [vmem:[%s5022_s23 + $0x538] sm:$0xff] %v4428_v10  ;;  %v4199_v4 = vld [vmem:[%s4866_s20 + $0x744] ss:$8 sps:$4 sm:$0xff]  }
 0x1cc   : > { %v2062_v11 = vpop.f32.mrb[84].mxu0  ;;  %v2574_v12 = vpop.f32.mrb[84].mxu1 }
 0x1cd   : > { %4437 = vtanh.f32 %v2062_v11  ;;  %v2064_v13 = vpop.f32.mrb[85].mxu0  ;;  %v2576_v14 = vpop.f32.mrb[85].mxu1 }
 0x1ce   : > { %4439 = vtanh.f32 %v2574_v12  ;;  %v2065_v17 = vpop.f32.mrb[86].mxu0  ;;  %v2577_v18 = vpop.f32.mrb[86].mxu1 }
 0x1cf   : > { %v4430_v21 = vpop.eup %4429  ;;  %4441 = vtanh.f32 %v2065_v17  ;;  %v2067_v22 = vpop.f32.mrb[87].mxu0 }
 0x1d0   : > { %v2579_v23 = vpop.f32.mrb[87].mxu1  ;;  %v4432_v24 = vpop.eup %4431  ;;  %3213 = vst [vmem:[%s5022_s23 + $0x140] sm:$0xff] %v4430_v21  ;;  %4443 = vtanh.f32 %v2577_v18 }
 0x1d1   : > { %v4434_v25 = vpop.eup %4433  ;;  %3341 = vst [vmem:[%s5022_s23 + $0x540] sm:$0xff] %v4432_v24  ;;  %2277 = vmatmul.mubr.bf16.gmra.mrb[192].mxu0 %v4177_v15  ;;  %2789 = vmatmul.mubr.bf16.gmra.mrb[192].mxu1 %v4178_v16  ;;  %v4201_v15 = vld [vmem:[%s4866_s20 + $0x340] ss:$8 sps:$4 sm:$0xff]  }
 0x1d2   : > { %v4436_v26 = vpop.eup %4435  ;;  %3214 = vst [vmem:[%s5022_s23 + $0x148] sm:$0xff] %v4434_v25  ;;  %2284 = vmatprep.mubr.bf16.mxu0 %v4179_v19  ;;  %2796 = vmatprep.mubr.bf16.mxu1 %v4181_v20  ;;  %v4202_v16 = vld [vmem:[%s4866_s20 + $0x740] ss:$8 sps:$4 sm:$0xff]   ;;  %v4203_v19 = vld [vmem:[%s4866_s20 + $0x354] ss:$8 sps:$4 sm:$0xff]  }
 0x1d3   : > { %3342 = vst [vmem:[%s5022_s23 + $0x548] sm:$0xff] %v4436_v26  ;;  %v4205_v20 = vld [vmem:[%s4866_s20 + $0x754] ss:$8 sps:$4 sm:$0xff]  }
 0x1d4   : > { %v2070_v27 = vpop.f32.mrb[88].mxu0  ;;  %v2582_v28 = vpop.f32.mrb[88].mxu1 }
 0x1d5   : > { %4445 = vtanh.f32 %v2070_v27  ;;  %v2072_v29 = vpop.f32.mrb[89].mxu0  ;;  %v2584_v30 = vpop.f32.mrb[89].mxu1 }
 0x1d6   : > { %4447 = vtanh.f32 %v2582_v28  ;;  %v2073_v33 = vpop.f32.mrb[90].mxu0  ;;  %v2585_v34 = vpop.f32.mrb[90].mxu1 }
 0x1d7   : > { %v4438_v37 = vpop.eup %4437  ;;  %4449 = vtanh.f32 %v2073_v33  ;;  %v2075_v38 = vpop.f32.mrb[91].mxu0 }
 0x1d8   : > { %v2587_v39 = vpop.f32.mrb[91].mxu1  ;;  %v4440_v40 = vpop.eup %4439  ;;  %3215 = vst [vmem:[%s5022_s23 + $0x150] sm:$0xff] %v4438_v37  ;;  %4451 = vtanh.f32 %v2585_v34 }
 0x1d9   : > { %v4442_v41 = vpop.eup %4441  ;;  %3343 = vst [vmem:[%s5022_s23 + $0x550] sm:$0xff] %v4440_v40  ;;  %2285 = vmatmul.mubr.bf16.gmra.mrb[196].mxu0 %v4183_v31  ;;  %2797 = vmatmul.mubr.bf16.gmra.mrb[196].mxu1 %v4184_v32  ;;  %v4207_v31 = vld [vmem:[%s4866_s20 + $0x350] ss:$8 sps:$4 sm:$0xff]  }
 0x1da   : > { %v4444_v42 = vpop.eup %4443  ;;  %3216 = vst [vmem:[%s5022_s23 + $0x158] sm:$0xff] %v4442_v41  ;;  %2292 = vmatprep.mubr.bf16.mxu0 %v4185_v35  ;;  %2804 = vmatprep.mubr.bf16.mxu1 %v4187_v36  ;;  %v4208_v32 = vld [vmem:[%s4866_s20 + $0x750] ss:$8 sps:$4 sm:$0xff]   ;;  %v4209_v35 = vld [vmem:[%s4866_s20 + $0x364] ss:$8 sps:$4 sm:$0xff]  }
 0x1db   : > { %3344 = vst [vmem:[%s5022_s23 + $0x558] sm:$0xff] %v4444_v42  ;;  %v4211_v36 = vld [vmem:[%s4866_s20 + $0x764] ss:$8 sps:$4 sm:$0xff]  }
 0x1dc   : > { %v2078_v43 = vpop.f32.mrb[92].mxu0  ;;  %v2590_v44 = vpop.f32.mrb[92].mxu1 }
 0x1dd   : > { %4453 = vtanh.f32 %v2078_v43  ;;  %v2080_v45 = vpop.f32.mrb[93].mxu0  ;;  %v2592_v46 = vpop.f32.mrb[93].mxu1 }
 0x1de   : > { %4455 = vtanh.f32 %v2590_v44  ;;  %v2081_v49 = vpop.f32.mrb[94].mxu0  ;;  %v2593_v50 = vpop.f32.mrb[94].mxu1 }
 0x1df   : > { %v4446_v53 = vpop.eup %4445  ;;  %4457 = vtanh.f32 %v2081_v49  ;;  %v2083_v54 = vpop.f32.mrb[95].mxu0 }
 0x1e0   : > { %v2595_v55 = vpop.f32.mrb[95].mxu1  ;;  %v4448_v56 = vpop.eup %4447  ;;  %3217 = vst [vmem:[%s5022_s23 + $0x160] sm:$0xff] %v4446_v53  ;;  %4459 = vtanh.f32 %v2593_v50 }
 0x1e1   : > { %v4450_v57 = vpop.eup %4449  ;;  %3345 = vst [vmem:[%s5022_s23 + $0x560] sm:$0xff] %v4448_v56  ;;  %2293 = vmatmul.mubr.bf16.gmra.mrb[200].mxu0 %v4189_v47  ;;  %2805 = vmatmul.mubr.bf16.gmra.mrb[200].mxu1 %v4190_v48  ;;  %v4213_v47 = vld [vmem:[%s4866_s20 + $0x360] ss:$8 sps:$4 sm:$0xff]  }
 0x1e2   : > { %v4452_v58 = vpop.eup %4451  ;;  %3218 = vst [vmem:[%s5022_s23 + $0x168] sm:$0xff] %v4450_v57  ;;  %2300 = vmatprep.mubr.bf16.mxu0 %v4191_v51  ;;  %2812 = vmatprep.mubr.bf16.mxu1 %v4193_v52  ;;  %v4214_v48 = vld [vmem:[%s4866_s20 + $0x760] ss:$8 sps:$4 sm:$0xff]   ;;  %v4215_v51 = vld [vmem:[%s4866_s20 + $0x374] ss:$8 sps:$4 sm:$0xff]  }
 0x1e3   : > { %3346 = vst [vmem:[%s5022_s23 + $0x568] sm:$0xff] %v4452_v58  ;;  %v4217_v52 = vld [vmem:[%s4866_s20 + $0x774] ss:$8 sps:$4 sm:$0xff]  }
 0x1e4   : > { %v2086_v59 = vpop.f32.mrb[96].mxu0  ;;  %v2598_v60 = vpop.f32.mrb[96].mxu1 }
 0x1e5   : > { %4461 = vtanh.f32 %v2086_v59  ;;  %v2088_v61 = vpop.f32.mrb[97].mxu0  ;;  %v2600_v62 = vpop.f32.mrb[97].mxu1 }
 0x1e6   : > { %4463 = vtanh.f32 %v2598_v60  ;;  %v2089_v1 = vpop.f32.mrb[98].mxu0  ;;  %v2601_v2 = vpop.f32.mrb[98].mxu1 }
 0x1e7   : > { %v4454_v5 = vpop.eup %4453  ;;  %4465 = vtanh.f32 %v2089_v1  ;;  %v2091_v6 = vpop.f32.mrb[99].mxu0 }
 0x1e8   : > { %v2603_v7 = vpop.f32.mrb[99].mxu1  ;;  %v4456_v8 = vpop.eup %4455  ;;  %3219 = vst [vmem:[%s5022_s23 + $0x170] sm:$0xff] %v4454_v5  ;;  %4467 = vtanh.f32 %v2601_v2 }
 0x1e9   : > { %v4458_v9 = vpop.eup %4457  ;;  %3347 = vst [vmem:[%s5022_s23 + $0x570] sm:$0xff] %v4456_v8  ;;  %2301 = vmatmul.mubr.bf16.gmra.mrb[204].mxu0 %v4195_v63  ;;  %2813 = vmatmul.mubr.bf16.gmra.mrb[204].mxu1 %v4196_v0  ;;  %v4219_v63 = vld [vmem:[%s4866_s20 + $0x370] ss:$8 sps:$4 sm:$0xff]  }
 0x1ea   : > { %v4460_v10 = vpop.eup %4459  ;;  %3220 = vst [vmem:[%s5022_s23 + $0x178] sm:$0xff] %v4458_v9  ;;  %2308 = vmatprep.mubr.bf16.mxu0 %v4197_v3  ;;  %2820 = vmatprep.mubr.bf16.mxu1 %v4199_v4  ;;  %v4220_v0 = vld [vmem:[%s4866_s20 + $0x770] ss:$8 sps:$4 sm:$0xff]   ;;  %v4221_v3 = vld [vmem:[%s4866_s20 + $0x384] ss:$8 sps:$4 sm:$0xff]  }
 0x1eb   : > { %3348 = vst [vmem:[%s5022_s23 + $0x578] sm:$0xff] %v4460_v10  ;;  %v4223_v4 = vld [vmem:[%s4866_s20 + $0x784] ss:$8 sps:$4 sm:$0xff]  }
 0x1ec   : > { %v2094_v11 = vpop.f32.mrb[100].mxu0  ;;  %v2606_v12 = vpop.f32.mrb[100].mxu1 }
 0x1ed   : > { %4469 = vtanh.f32 %v2094_v11  ;;  %v2096_v13 = vpop.f32.mrb[101].mxu0  ;;  %v2608_v14 = vpop.f32.mrb[101].mxu1 }
 0x1ee   : > { %4471 = vtanh.f32 %v2606_v12  ;;  %v2097_v17 = vpop.f32.mrb[102].mxu0  ;;  %v2609_v18 = vpop.f32.mrb[102].mxu1 }
 0x1ef   : > { %v4462_v21 = vpop.eup %4461  ;;  %4473 = vtanh.f32 %v2097_v17  ;;  %v2099_v22 = vpop.f32.mrb[103].mxu0 }
 0x1f0   : > { %v2611_v23 = vpop.f32.mrb[103].mxu1  ;;  %v4464_v24 = vpop.eup %4463  ;;  %3221 = vst [vmem:[%s5022_s23 + $0x180] sm:$0xff] %v4462_v21  ;;  %4475 = vtanh.f32 %v2609_v18 }
 0x1f1   : > { %v4466_v25 = vpop.eup %4465  ;;  %3349 = vst [vmem:[%s5022_s23 + $0x580] sm:$0xff] %v4464_v24  ;;  %2309 = vmatmul.mubr.bf16.gmra.mrb[208].mxu0 %v4201_v15  ;;  %2821 = vmatmul.mubr.bf16.gmra.mrb[208].mxu1 %v4202_v16  ;;  %v4225_v15 = vld [vmem:[%s4866_s20 + $0x380] ss:$8 sps:$4 sm:$0xff]  }
 0x1f2   : > { %v4468_v26 = vpop.eup %4467  ;;  %3222 = vst [vmem:[%s5022_s23 + $0x188] sm:$0xff] %v4466_v25  ;;  %2316 = vmatprep.mubr.bf16.mxu0 %v4203_v19  ;;  %2828 = vmatprep.mubr.bf16.mxu1 %v4205_v20  ;;  %v4226_v16 = vld [vmem:[%s4866_s20 + $0x780] ss:$8 sps:$4 sm:$0xff]   ;;  %v4227_v19 = vld [vmem:[%s4866_s20 + $0x394] ss:$8 sps:$4 sm:$0xff]  }
 0x1f3   : > { %3350 = vst [vmem:[%s5022_s23 + $0x588] sm:$0xff] %v4468_v26  ;;  %v4229_v20 = vld [vmem:[%s4866_s20 + $0x794] ss:$8 sps:$4 sm:$0xff]  }
 0x1f4   : > { %v2102_v27 = vpop.f32.mrb[104].mxu0  ;;  %v2614_v28 = vpop.f32.mrb[104].mxu1 }
 0x1f5   : > { %4477 = vtanh.f32 %v2102_v27  ;;  %v2104_v29 = vpop.f32.mrb[105].mxu0  ;;  %v2616_v30 = vpop.f32.mrb[105].mxu1 }
 0x1f6   : > { %4479 = vtanh.f32 %v2614_v28  ;;  %v2105_v33 = vpop.f32.mrb[106].mxu0  ;;  %v2617_v34 = vpop.f32.mrb[106].mxu1 }
 0x1f7   : > { %v4470_v37 = vpop.eup %4469  ;;  %4481 = vtanh.f32 %v2105_v33  ;;  %v2107_v38 = vpop.f32.mrb[107].mxu0 }
 0x1f8   : > { %v2619_v39 = vpop.f32.mrb[107].mxu1  ;;  %v4472_v40 = vpop.eup %4471  ;;  %3223 = vst [vmem:[%s5022_s23 + $0x190] sm:$0xff] %v4470_v37  ;;  %4483 = vtanh.f32 %v2617_v34 }
 0x1f9   : > { %v4474_v41 = vpop.eup %4473  ;;  %3351 = vst [vmem:[%s5022_s23 + $0x590] sm:$0xff] %v4472_v40  ;;  %2317 = vmatmul.mubr.bf16.gmra.mrb[212].mxu0 %v4207_v31  ;;  %2829 = vmatmul.mubr.bf16.gmra.mrb[212].mxu1 %v4208_v32  ;;  %v4231_v31 = vld [vmem:[%s4866_s20 + $0x390] ss:$8 sps:$4 sm:$0xff]  }
 0x1fa   : > { %v4476_v42 = vpop.eup %4475  ;;  %3224 = vst [vmem:[%s5022_s23 + $0x198] sm:$0xff] %v4474_v41  ;;  %2324 = vmatprep.mubr.bf16.mxu0 %v4209_v35  ;;  %2836 = vmatprep.mubr.bf16.mxu1 %v4211_v36  ;;  %v4232_v32 = vld [vmem:[%s4866_s20 + $0x790] ss:$8 sps:$4 sm:$0xff]   ;;  %v4233_v35 = vld [vmem:[%s4866_s20 + $0x3a4] ss:$8 sps:$4 sm:$0xff]  }
 0x1fb   : > { %3352 = vst [vmem:[%s5022_s23 + $0x598] sm:$0xff] %v4476_v42  ;;  %v4235_v36 = vld [vmem:[%s4866_s20 + $0x7a4] ss:$8 sps:$4 sm:$0xff]  }
 0x1fc   : > { %v2110_v43 = vpop.f32.mrb[108].mxu0  ;;  %v2622_v44 = vpop.f32.mrb[108].mxu1 }
 0x1fd   : > { %4485 = vtanh.f32 %v2110_v43  ;;  %v2112_v45 = vpop.f32.mrb[109].mxu0  ;;  %v2624_v46 = vpop.f32.mrb[109].mxu1 }
 0x1fe   : > { %4487 = vtanh.f32 %v2622_v44  ;;  %v2113_v49 = vpop.f32.mrb[110].mxu0  ;;  %v2625_v50 = vpop.f32.mrb[110].mxu1 }
 0x1ff   : > { %v4478_v53 = vpop.eup %4477  ;;  %4489 = vtanh.f32 %v2113_v49  ;;  %v2115_v54 = vpop.f32.mrb[111].mxu0 }
 0x200   : > { %v2627_v55 = vpop.f32.mrb[111].mxu1  ;;  %v4480_v56 = vpop.eup %4479  ;;  %3225 = vst [vmem:[%s5022_s23 + $0x1a0] sm:$0xff] %v4478_v53  ;;  %4491 = vtanh.f32 %v2625_v50 }
 0x201   : > { %v4482_v57 = vpop.eup %4481  ;;  %3353 = vst [vmem:[%s5022_s23 + $0x5a0] sm:$0xff] %v4480_v56  ;;  %2325 = vmatmul.mubr.bf16.gmra.mrb[216].mxu0 %v4213_v47  ;;  %2837 = vmatmul.mubr.bf16.gmra.mrb[216].mxu1 %v4214_v48  ;;  %v4237_v47 = vld [vmem:[%s4866_s20 + $0x3a0] ss:$8 sps:$4 sm:$0xff]  }
 0x202   : > { %v4484_v58 = vpop.eup %4483  ;;  %3226 = vst [vmem:[%s5022_s23 + $0x1a8] sm:$0xff] %v4482_v57  ;;  %2332 = vmatprep.mubr.bf16.mxu0 %v4215_v51  ;;  %2844 = vmatprep.mubr.bf16.mxu1 %v4217_v52  ;;  %v4238_v48 = vld [vmem:[%s4866_s20 + $0x7a0] ss:$8 sps:$4 sm:$0xff]   ;;  %v4239_v51 = vld [vmem:[%s4866_s20 + $0x3b4] ss:$8 sps:$4 sm:$0xff]  }
 0x203   : > { %3354 = vst [vmem:[%s5022_s23 + $0x5a8] sm:$0xff] %v4484_v58  ;;  %v4241_v52 = vld [vmem:[%s4866_s20 + $0x7b4] ss:$8 sps:$4 sm:$0xff]  }
 0x204   : > { %v2118_v59 = vpop.f32.mrb[112].mxu0  ;;  %v2630_v60 = vpop.f32.mrb[112].mxu1 }
 0x205   : > { %4493 = vtanh.f32 %v2118_v59  ;;  %v2120_v61 = vpop.f32.mrb[113].mxu0  ;;  %v2632_v62 = vpop.f32.mrb[113].mxu1 }
 0x206   : > { %4495 = vtanh.f32 %v2630_v60  ;;  %v2121_v1 = vpop.f32.mrb[114].mxu0  ;;  %v2633_v2 = vpop.f32.mrb[114].mxu1 }
 0x207   : > { %v4486_v5 = vpop.eup %4485  ;;  %4497 = vtanh.f32 %v2121_v1  ;;  %v2123_v6 = vpop.f32.mrb[115].mxu0 }
 0x208   : > { %v2635_v7 = vpop.f32.mrb[115].mxu1  ;;  %v4488_v8 = vpop.eup %4487  ;;  %3227 = vst [vmem:[%s5022_s23 + $0x1b0] sm:$0xff] %v4486_v5  ;;  %4499 = vtanh.f32 %v2633_v2 }
 0x209   : > { %v4490_v9 = vpop.eup %4489  ;;  %3355 = vst [vmem:[%s5022_s23 + $0x5b0] sm:$0xff] %v4488_v8  ;;  %2333 = vmatmul.mubr.bf16.gmra.mrb[220].mxu0 %v4219_v63  ;;  %2845 = vmatmul.mubr.bf16.gmra.mrb[220].mxu1 %v4220_v0  ;;  %v4243_v63 = vld [vmem:[%s4866_s20 + $0x3b0] ss:$8 sps:$4 sm:$0xff]  }
 0x20a   : > { %v4492_v10 = vpop.eup %4491  ;;  %3228 = vst [vmem:[%s5022_s23 + $0x1b8] sm:$0xff] %v4490_v9  ;;  %2340 = vmatprep.mubr.bf16.mxu0 %v4221_v3  ;;  %2852 = vmatprep.mubr.bf16.mxu1 %v4223_v4  ;;  %v4244_v0 = vld [vmem:[%s4866_s20 + $0x7b0] ss:$8 sps:$4 sm:$0xff]   ;;  %v4245_v3 = vld [vmem:[%s4866_s20 + $0x3c4] ss:$8 sps:$4 sm:$0xff]  }
 0x20b   : > { %3356 = vst [vmem:[%s5022_s23 + $0x5b8] sm:$0xff] %v4492_v10  ;;  %v4247_v4 = vld [vmem:[%s4866_s20 + $0x7c4] ss:$8 sps:$4 sm:$0xff]  }
 0x20c   : > { %v2126_v11 = vpop.f32.mrb[116].mxu0  ;;  %v2638_v12 = vpop.f32.mrb[116].mxu1 }
 0x20d   : > { %4501 = vtanh.f32 %v2126_v11  ;;  %v2128_v13 = vpop.f32.mrb[117].mxu0  ;;  %v2640_v14 = vpop.f32.mrb[117].mxu1 }
 0x20e   : > { %4503 = vtanh.f32 %v2638_v12  ;;  %v2129_v17 = vpop.f32.mrb[118].mxu0  ;;  %v2641_v18 = vpop.f32.mrb[118].mxu1 }
 0x20f   : > { %v4494_v21 = vpop.eup %4493  ;;  %4505 = vtanh.f32 %v2129_v17  ;;  %v2131_v22 = vpop.f32.mrb[119].mxu0 }
 0x210   : > { %v2643_v23 = vpop.f32.mrb[119].mxu1  ;;  %v4496_v24 = vpop.eup %4495  ;;  %3229 = vst [vmem:[%s5022_s23 + $0x1c0] sm:$0xff] %v4494_v21  ;;  %4507 = vtanh.f32 %v2641_v18 }
 0x211   : > { %v4498_v25 = vpop.eup %4497  ;;  %3357 = vst [vmem:[%s5022_s23 + $0x5c0] sm:$0xff] %v4496_v24  ;;  %2341 = vmatmul.mubr.bf16.gmra.mrb[224].mxu0 %v4225_v15  ;;  %2853 = vmatmul.mubr.bf16.gmra.mrb[224].mxu1 %v4226_v16  ;;  %v4249_v15 = vld [vmem:[%s4866_s20 + $0x3c0] ss:$8 sps:$4 sm:$0xff]  }
 0x212   : > { %v4500_v26 = vpop.eup %4499  ;;  %3230 = vst [vmem:[%s5022_s23 + $0x1c8] sm:$0xff] %v4498_v25  ;;  %2348 = vmatprep.mubr.bf16.mxu0 %v4227_v19  ;;  %2860 = vmatprep.mubr.bf16.mxu1 %v4229_v20  ;;  %v4250_v16 = vld [vmem:[%s4866_s20 + $0x7c0] ss:$8 sps:$4 sm:$0xff]   ;;  %v4251_v19 = vld [vmem:[%s4866_s20 + $0x3d4] ss:$8 sps:$4 sm:$0xff]  }
 0x213   : > { %3358 = vst [vmem:[%s5022_s23 + $0x5c8] sm:$0xff] %v4500_v26  ;;  %v4253_v20 = vld [vmem:[%s4866_s20 + $0x7d4] ss:$8 sps:$4 sm:$0xff]  }
 0x214   : > { %v2134_v27 = vpop.f32.mrb[120].mxu0  ;;  %v2646_v28 = vpop.f32.mrb[120].mxu1 }
 0x215   : > { %4509 = vtanh.f32 %v2134_v27  ;;  %v2136_v29 = vpop.f32.mrb[121].mxu0  ;;  %v2648_v30 = vpop.f32.mrb[121].mxu1 }
 0x216   : > { %4511 = vtanh.f32 %v2646_v28  ;;  %v2137_v33 = vpop.f32.mrb[122].mxu0  ;;  %v2649_v34 = vpop.f32.mrb[122].mxu1 }
 0x217   : > { %v4502_v37 = vpop.eup %4501  ;;  %4513 = vtanh.f32 %v2137_v33  ;;  %v2139_v38 = vpop.f32.mrb[123].mxu0 }
 0x218   : > { %v2651_v39 = vpop.f32.mrb[123].mxu1  ;;  %v4504_v40 = vpop.eup %4503  ;;  %3231 = vst [vmem:[%s5022_s23 + $0x1d0] sm:$0xff] %v4502_v37  ;;  %4515 = vtanh.f32 %v2649_v34 }
 0x219   : > { %v4506_v41 = vpop.eup %4505  ;;  %3359 = vst [vmem:[%s5022_s23 + $0x5d0] sm:$0xff] %v4504_v40  ;;  %2349 = vmatmul.mubr.bf16.gmra.mrb[228].mxu0 %v4231_v31  ;;  %2861 = vmatmul.mubr.bf16.gmra.mrb[228].mxu1 %v4232_v32  ;;  %v4255_v31 = vld [vmem:[%s4866_s20 + $0x3d0] ss:$8 sps:$4 sm:$0xff]  }
 0x21a   : > { %v4508_v42 = vpop.eup %4507  ;;  %3232 = vst [vmem:[%s5022_s23 + $0x1d8] sm:$0xff] %v4506_v41  ;;  %2356 = vmatprep.mubr.bf16.mxu0 %v4233_v35  ;;  %2868 = vmatprep.mubr.bf16.mxu1 %v4235_v36  ;;  %v4256_v32 = vld [vmem:[%s4866_s20 + $0x7d0] ss:$8 sps:$4 sm:$0xff]   ;;  %v4257_v35 = vld [vmem:[%s4866_s20 + $0x3e4] ss:$8 sps:$4 sm:$0xff]  }
 0x21b   : > { %3360 = vst [vmem:[%s5022_s23 + $0x5d8] sm:$0xff] %v4508_v42  ;;  %v4259_v36 = vld [vmem:[%s4866_s20 + $0x7e4] ss:$8 sps:$4 sm:$0xff]  }
 0x21c   : > { %v2142_v43 = vpop.f32.mrb[124].mxu0  ;;  %v2654_v44 = vpop.f32.mrb[124].mxu1 }
 0x21d   : > { %4517 = vtanh.f32 %v2142_v43  ;;  %v2144_v45 = vpop.f32.mrb[125].mxu0  ;;  %v2656_v46 = vpop.f32.mrb[125].mxu1 }
 0x21e   : > { %4519 = vtanh.f32 %v2654_v44  ;;  %v2145_v49 = vpop.f32.mrb[126].mxu0  ;;  %v2657_v50 = vpop.f32.mrb[126].mxu1 }
 0x21f   : > { %v4510_v53 = vpop.eup %4509  ;;  %4521 = vtanh.f32 %v2145_v49  ;;  %v2147_v54 = vpop.f32.mrb[127].mxu0 }
 0x220   : > { %v2659_v55 = vpop.f32.mrb[127].mxu1  ;;  %v4512_v56 = vpop.eup %4511  ;;  %3233 = vst [vmem:[%s5022_s23 + $0x1e0] sm:$0xff] %v4510_v53  ;;  %4523 = vtanh.f32 %v2657_v50 }
 0x221   : > { %v4514_v57 = vpop.eup %4513  ;;  %3361 = vst [vmem:[%s5022_s23 + $0x5e0] sm:$0xff] %v4512_v56  ;;  %2357 = vmatmul.mubr.bf16.gmra.mrb[232].mxu0 %v4237_v47  ;;  %2869 = vmatmul.mubr.bf16.gmra.mrb[232].mxu1 %v4238_v48  ;;  %v4261_v47 = vld [vmem:[%s4866_s20 + $0x3e0] ss:$8 sps:$4 sm:$0xff]  }
 0x222   : > { %v4516_v58 = vpop.eup %4515  ;;  %3234 = vst [vmem:[%s5022_s23 + $0x1e8] sm:$0xff] %v4514_v57  ;;  %2364 = vmatprep.mubr.bf16.mxu0 %v4239_v51  ;;  %2876 = vmatprep.mubr.bf16.mxu1 %v4241_v52  ;;  %v4262_v48 = vld [vmem:[%s4866_s20 + $0x7e0] ss:$8 sps:$4 sm:$0xff]   ;;  %v4263_v51 = vld [vmem:[%s4866_s20 + $0x3f4] ss:$8 sps:$4 sm:$0xff]  }
 0x223   : > { %3362 = vst [vmem:[%s5022_s23 + $0x5e8] sm:$0xff] %v4516_v58  ;;  %v4265_v52 = vld [vmem:[%s4866_s20 + $0x7f4] ss:$8 sps:$4 sm:$0xff]  }
 0x224   : > { %v2150_v59 = vpop.f32.mrb[128].mxu0  ;;  %v2662_v60 = vpop.f32.mrb[128].mxu1 }
 0x225   : > { %4525 = vtanh.f32 %v2150_v59  ;;  %v2152_v61 = vpop.f32.mrb[129].mxu0  ;;  %v2664_v62 = vpop.f32.mrb[129].mxu1 }
 0x226   : > { %4527 = vtanh.f32 %v2662_v60  ;;  %v2153_v1 = vpop.f32.mrb[130].mxu0  ;;  %v2665_v2 = vpop.f32.mrb[130].mxu1 }
 0x227   : > { %v4518_v5 = vpop.eup %4517  ;;  %4529 = vtanh.f32 %v2153_v1  ;;  %v2155_v6 = vpop.f32.mrb[131].mxu0 }
 0x228   : > { %v2667_v7 = vpop.f32.mrb[131].mxu1  ;;  %v4520_v8 = vpop.eup %4519  ;;  %3235 = vst [vmem:[%s5022_s23 + $0x1f0] sm:$0xff] %v4518_v5  ;;  %4531 = vtanh.f32 %v2665_v2 }
 0x229   : > { %v4522_v9 = vpop.eup %4521  ;;  %3363 = vst [vmem:[%s5022_s23 + $0x5f0] sm:$0xff] %v4520_v8  ;;  %2365 = vmatmul.mubr.bf16.gmra.mrb[236].mxu0 %v4243_v63  ;;  %2877 = vmatmul.mubr.bf16.gmra.mrb[236].mxu1 %v4244_v0  ;;  %v4267_v63 = vld [vmem:[%s4866_s20 + $0x3f0] ss:$8 sps:$4 sm:$0xff]  }
 0x22a   : > { %v4524_v10 = vpop.eup %4523  ;;  %3236 = vst [vmem:[%s5022_s23 + $0x1f8] sm:$0xff] %v4522_v9  ;;  %2372 = vmatprep.mubr.bf16.mxu0 %v4245_v3  ;;  %2884 = vmatprep.mubr.bf16.mxu1 %v4247_v4  ;;  %v4268_v0 = vld [vmem:[%s4866_s20 + $0x7f0] ss:$8 sps:$4 sm:$0xff]  }
 0x22b   : > { %3364 = vst [vmem:[%s5022_s23 + $0x5f8] sm:$0xff] %v4524_v10 }
 0x22c   : > { %v2158_v11 = vpop.f32.mrb[132].mxu0  ;;  %v2670_v12 = vpop.f32.mrb[132].mxu1 }
 0x22d   : > { %4533 = vtanh.f32 %v2158_v11  ;;  %v2160_v13 = vpop.f32.mrb[133].mxu0  ;;  %v2672_v14 = vpop.f32.mrb[133].mxu1 }
 0x22e   : > { %4535 = vtanh.f32 %v2670_v12  ;;  %v2161_v17 = vpop.f32.mrb[134].mxu0  ;;  %v2673_v18 = vpop.f32.mrb[134].mxu1 }
 0x22f   : > { %v4526_v21 = vpop.eup %4525  ;;  %4537 = vtanh.f32 %v2161_v17  ;;  %v2163_v22 = vpop.f32.mrb[135].mxu0 }
 0x230   : > { %v2675_v23 = vpop.f32.mrb[135].mxu1  ;;  %v4528_v24 = vpop.eup %4527  ;;  %3237 = vst [vmem:[%s5022_s23 + $0x200] sm:$0xff] %v4526_v21  ;;  %4539 = vtanh.f32 %v2673_v18 }
 0x231   : > { %v4530_v25 = vpop.eup %4529  ;;  %3365 = vst [vmem:[%s5022_s23 + $0x600] sm:$0xff] %v4528_v24  ;;  %2373 = vmatmul.mubr.bf16.gmra.mrb[240].mxu0 %v4249_v15  ;;  %2885 = vmatmul.mubr.bf16.gmra.mrb[240].mxu1 %v4250_v16 }
 0x232   : > { %v4532_v26 = vpop.eup %4531  ;;  %3238 = vst [vmem:[%s5022_s23 + $0x208] sm:$0xff] %v4530_v25  ;;  %2380 = vmatprep.mubr.bf16.mxu0 %v4251_v19  ;;  %2892 = vmatprep.mubr.bf16.mxu1 %v4253_v20 }
 0x233   : > { %3366 = vst [vmem:[%s5022_s23 + $0x608] sm:$0xff] %v4532_v26 }
 0x234   : > { %v2166_v27 = vpop.f32.mrb[136].mxu0  ;;  %v2678_v28 = vpop.f32.mrb[136].mxu1 }
 0x235   : > { %4541 = vtanh.f32 %v2166_v27  ;;  %v2168_v29 = vpop.f32.mrb[137].mxu0  ;;  %v2680_v30 = vpop.f32.mrb[137].mxu1 }
 0x236   : > { %4543 = vtanh.f32 %v2678_v28  ;;  %v2169_v33 = vpop.f32.mrb[138].mxu0  ;;  %v2681_v34 = vpop.f32.mrb[138].mxu1 }
 0x237   : > { %v4534_v37 = vpop.eup %4533  ;;  %4545 = vtanh.f32 %v2169_v33  ;;  %v2171_v38 = vpop.f32.mrb[139].mxu0 }
 0x238   : > { %v2683_v39 = vpop.f32.mrb[139].mxu1  ;;  %v4536_v40 = vpop.eup %4535  ;;  %3239 = vst [vmem:[%s5022_s23 + $0x210] sm:$0xff] %v4534_v37  ;;  %4547 = vtanh.f32 %v2681_v34 }
 0x239   : > { %v4538_v41 = vpop.eup %4537  ;;  %3367 = vst [vmem:[%s5022_s23 + $0x610] sm:$0xff] %v4536_v40  ;;  %2381 = vmatmul.mubr.bf16.gmra.mrb[244].mxu0 %v4255_v31  ;;  %2893 = vmatmul.mubr.bf16.gmra.mrb[244].mxu1 %v4256_v32 }
 0x23a   : > { %v4540_v42 = vpop.eup %4539  ;;  %3240 = vst [vmem:[%s5022_s23 + $0x218] sm:$0xff] %v4538_v41  ;;  %2388 = vmatprep.mubr.bf16.mxu0 %v4257_v35  ;;  %2900 = vmatprep.mubr.bf16.mxu1 %v4259_v36 }
 0x23b   : > { %3368 = vst [vmem:[%s5022_s23 + $0x618] sm:$0xff] %v4540_v42 }
 0x23c   : > { %v2174_v43 = vpop.f32.mrb[140].mxu0  ;;  %v2686_v44 = vpop.f32.mrb[140].mxu1 }
 0x23d   : > { %4549 = vtanh.f32 %v2174_v43  ;;  %v2176_v45 = vpop.f32.mrb[141].mxu0  ;;  %v2688_v46 = vpop.f32.mrb[141].mxu1 }
 0x23e   : > { %4551 = vtanh.f32 %v2686_v44  ;;  %v2177_v49 = vpop.f32.mrb[142].mxu0  ;;  %v2689_v50 = vpop.f32.mrb[142].mxu1 }
 0x23f   : > { %v4542_v53 = vpop.eup %4541  ;;  %4553 = vtanh.f32 %v2177_v49  ;;  %v2179_v54 = vpop.f32.mrb[143].mxu0 }
 0x240   : > { %v2691_v55 = vpop.f32.mrb[143].mxu1  ;;  %v4544_v56 = vpop.eup %4543  ;;  %3241 = vst [vmem:[%s5022_s23 + $0x220] sm:$0xff] %v4542_v53  ;;  %4555 = vtanh.f32 %v2689_v50 }
 0x241   : > { %v4546_v57 = vpop.eup %4545  ;;  %3369 = vst [vmem:[%s5022_s23 + $0x620] sm:$0xff] %v4544_v56  ;;  %2389 = vmatmul.mubr.bf16.gmra.mrb[248].mxu0 %v4261_v47  ;;  %2901 = vmatmul.mubr.bf16.gmra.mrb[248].mxu1 %v4262_v48 }
 0x242   : > { %v4548_v58 = vpop.eup %4547  ;;  %3242 = vst [vmem:[%s5022_s23 + $0x228] sm:$0xff] %v4546_v57  ;;  %2396 = vmatprep.mubr.bf16.mxu0 %v4263_v51  ;;  %2908 = vmatprep.mubr.bf16.mxu1 %v4265_v52 }
 0x243   : > { %3370 = vst [vmem:[%s5022_s23 + $0x628] sm:$0xff] %v4548_v58 }
 0x244   : > { %v2182_v59 = vpop.f32.mrb[144].mxu0  ;;  %v2694_v60 = vpop.f32.mrb[144].mxu1 }
 0x245   : > { %4557 = vtanh.f32 %v2182_v59  ;;  %v2184_v61 = vpop.f32.mrb[145].mxu0  ;;  %v2696_v62 = vpop.f32.mrb[145].mxu1 }
 0x246   : > { %4559 = vtanh.f32 %v2694_v60  ;;  %v2185_v1 = vpop.f32.mrb[146].mxu0  ;;  %v2697_v2 = vpop.f32.mrb[146].mxu1 }
 0x247   : > { %v4550_v3 = vpop.eup %4549  ;;  %4561 = vtanh.f32 %v2185_v1  ;;  %v2187_v4 = vpop.f32.mrb[147].mxu0 }
 0x248   : > { %v2699_v5 = vpop.f32.mrb[147].mxu1  ;;  %v4552_v6 = vpop.eup %4551  ;;  %3243 = vst [vmem:[%s5022_s23 + $0x230] sm:$0xff] %v4550_v3  ;;  %4563 = vtanh.f32 %v2697_v2 }
 0x249   : > { %v4554_v7 = vpop.eup %4553  ;;  %3371 = vst [vmem:[%s5022_s23 + $0x630] sm:$0xff] %v4552_v6  ;;  %2397 = vmatmul.mubr.bf16.gmra.mrb[252].mxu0 %v4267_v63  ;;  %2909 = vmatmul.mubr.bf16.gmra.mrb[252].mxu1 %v4268_v0 }
 0x24a   : > { %v4556_v8 = vpop.eup %4555  ;;  %3244 = vst [vmem:[%s5022_s23 + $0x238] sm:$0xff] %v4554_v7 }
 0x24b   : > { %3372 = vst [vmem:[%s5022_s23 + $0x638] sm:$0xff] %v4556_v8 }
 0x24c   : > { %v2190_v9 = vpop.f32.mrb[148].mxu0  ;;  %v2702_v10 = vpop.f32.mrb[148].mxu1 }
 0x24d   : > { %4565 = vtanh.f32 %v2190_v9  ;;  %v2192_v11 = vpop.f32.mrb[149].mxu0  ;;  %v2704_v12 = vpop.f32.mrb[149].mxu1 }
 0x24e   : > { %4567 = vtanh.f32 %v2702_v10  ;;  %v2193_v13 = vpop.f32.mrb[150].mxu0  ;;  %v2705_v14 = vpop.f32.mrb[150].mxu1 }
 0x24f   : > { %v4558_v15 = vpop.eup %4557  ;;  %4569 = vtanh.f32 %v2193_v13  ;;  %v2195_v16 = vpop.f32.mrb[151].mxu0 }
 0x250   : > { %v2707_v17 = vpop.f32.mrb[151].mxu1  ;;  %v4560_v18 = vpop.eup %4559  ;;  %3245 = vst [vmem:[%s5022_s23 + $0x240] sm:$0xff] %v4558_v15  ;;  %4571 = vtanh.f32 %v2705_v14 }
 0x251   : > { %v4562_v19 = vpop.eup %4561  ;;  %3373 = vst [vmem:[%s5022_s23 + $0x640] sm:$0xff] %v4560_v18 }
 0x252   : > { %v4564_v20 = vpop.eup %4563  ;;  %3246 = vst [vmem:[%s5022_s23 + $0x248] sm:$0xff] %v4562_v19 }
 0x253   : > { %3374 = vst [vmem:[%s5022_s23 + $0x648] sm:$0xff] %v4564_v20 }
 0x254   : > { %v2198_v21 = vpop.f32.mrb[152].mxu0  ;;  %v2710_v22 = vpop.f32.mrb[152].mxu1 }
 0x255   : > { %4573 = vtanh.f32 %v2198_v21  ;;  %v2200_v23 = vpop.f32.mrb[153].mxu0  ;;  %v2712_v24 = vpop.f32.mrb[153].mxu1 }
 0x256   : > { %4575 = vtanh.f32 %v2710_v22  ;;  %v2201_v25 = vpop.f32.mrb[154].mxu0  ;;  %v2713_v26 = vpop.f32.mrb[154].mxu1 }
 0x257   : > { %v4566_v27 = vpop.eup %4565  ;;  %4577 = vtanh.f32 %v2201_v25  ;;  %v2203_v28 = vpop.f32.mrb[155].mxu0 }
 0x258   : > { %v2715_v29 = vpop.f32.mrb[155].mxu1  ;;  %v4568_v30 = vpop.eup %4567  ;;  %3247 = vst [vmem:[%s5022_s23 + $0x250] sm:$0xff] %v4566_v27  ;;  %4579 = vtanh.f32 %v2713_v26 }
 0x259   : > { %v4570_v31 = vpop.eup %4569  ;;  %3375 = vst [vmem:[%s5022_s23 + $0x650] sm:$0xff] %v4568_v30 }
 0x25a   : > { %v4572_v32 = vpop.eup %4571  ;;  %3248 = vst [vmem:[%s5022_s23 + $0x258] sm:$0xff] %v4570_v31 }
 0x25b   : > { %3376 = vst [vmem:[%s5022_s23 + $0x658] sm:$0xff] %v4572_v32 }
 0x25c   : > { %v2206_v33 = vpop.f32.mrb[156].mxu0  ;;  %v2718_v34 = vpop.f32.mrb[156].mxu1 }
 0x25d   : > { %4581 = vtanh.f32 %v2206_v33  ;;  %v2208_v35 = vpop.f32.mrb[157].mxu0  ;;  %v2720_v36 = vpop.f32.mrb[157].mxu1 }
 0x25e   : > { %4583 = vtanh.f32 %v2718_v34  ;;  %v2209_v37 = vpop.f32.mrb[158].mxu0  ;;  %v2721_v38 = vpop.f32.mrb[158].mxu1 }
 0x25f   : > { %v4574_v39 = vpop.eup %4573  ;;  %4585 = vtanh.f32 %v2209_v37  ;;  %v2211_v40 = vpop.f32.mrb[159].mxu0 }
 0x260   : > { %v2723_v41 = vpop.f32.mrb[159].mxu1  ;;  %v4576_v42 = vpop.eup %4575  ;;  %3249 = vst [vmem:[%s5022_s23 + $0x260] sm:$0xff] %v4574_v39  ;;  %4587 = vtanh.f32 %v2721_v38 }
 0x261   : > { %v4578_v43 = vpop.eup %4577  ;;  %3377 = vst [vmem:[%s5022_s23 + $0x660] sm:$0xff] %v4576_v42 }
 0x262   : > { %v4580_v44 = vpop.eup %4579  ;;  %3250 = vst [vmem:[%s5022_s23 + $0x268] sm:$0xff] %v4578_v43 }
 0x263   : > { %3378 = vst [vmem:[%s5022_s23 + $0x668] sm:$0xff] %v4580_v44 }
 0x264   : > { %v2214_v45 = vpop.f32.mrb[160].mxu0  ;;  %v2726_v46 = vpop.f32.mrb[160].mxu1 }
 0x265   : > { %4589 = vtanh.f32 %v2214_v45  ;;  %v2216_v47 = vpop.f32.mrb[161].mxu0  ;;  %v2728_v48 = vpop.f32.mrb[161].mxu1 }
 0x266   : > { %4591 = vtanh.f32 %v2726_v46  ;;  %v2217_v49 = vpop.f32.mrb[162].mxu0  ;;  %v2729_v50 = vpop.f32.mrb[162].mxu1 }
 0x267   : > { %v4582_v51 = vpop.eup %4581  ;;  %4593 = vtanh.f32 %v2217_v49  ;;  %v2219_v52 = vpop.f32.mrb[163].mxu0 }
 0x268   : > { %v2731_v53 = vpop.f32.mrb[163].mxu1  ;;  %v4584_v54 = vpop.eup %4583  ;;  %3251 = vst [vmem:[%s5022_s23 + $0x270] sm:$0xff] %v4582_v51  ;;  %4595 = vtanh.f32 %v2729_v50 }
 0x269   : > { %v4586_v55 = vpop.eup %4585  ;;  %3379 = vst [vmem:[%s5022_s23 + $0x670] sm:$0xff] %v4584_v54 }
 0x26a   : > { %v4588_v56 = vpop.eup %4587  ;;  %3252 = vst [vmem:[%s5022_s23 + $0x278] sm:$0xff] %v4586_v55 }
 0x26b   : > { %3380 = vst [vmem:[%s5022_s23 + $0x678] sm:$0xff] %v4588_v56 }
 0x26c   : > { %v2222_v57 = vpop.f32.mrb[164].mxu0  ;;  %v2734_v58 = vpop.f32.mrb[164].mxu1 }
 0x26d   : > { %4597 = vtanh.f32 %v2222_v57  ;;  %v2224_v59 = vpop.f32.mrb[165].mxu0  ;;  %v2736_v60 = vpop.f32.mrb[165].mxu1 }
 0x26e   : > { %4599 = vtanh.f32 %v2734_v58  ;;  %v2225_v61 = vpop.f32.mrb[166].mxu0  ;;  %v2737_v62 = vpop.f32.mrb[166].mxu1 }
 0x26f   : > { %v4590_v63 = vpop.eup %4589  ;;  %4601 = vtanh.f32 %v2225_v61  ;;  %v2227_v0 = vpop.f32.mrb[167].mxu0 }
 0x270   : > { %v2739_v1 = vpop.f32.mrb[167].mxu1  ;;  %v4592_v2 = vpop.eup %4591  ;;  %3253 = vst [vmem:[%s5022_s23 + $0x280] sm:$0xff] %v4590_v63  ;;  %4603 = vtanh.f32 %v2737_v62 }
 0x271   : > { %v4594_v3 = vpop.eup %4593  ;;  %3381 = vst [vmem:[%s5022_s23 + $0x680] sm:$0xff] %v4592_v2 }
 0x272   : > { %v4596_v4 = vpop.eup %4595  ;;  %3254 = vst [vmem:[%s5022_s23 + $0x288] sm:$0xff] %v4594_v3 }
 0x273   : > { %3382 = vst [vmem:[%s5022_s23 + $0x688] sm:$0xff] %v4596_v4 }
 0x274   : > { %v2230_v5 = vpop.f32.mrb[168].mxu0  ;;  %v2742_v6 = vpop.f32.mrb[168].mxu1 }
 0x275   : > { %4605 = vtanh.f32 %v2230_v5  ;;  %v2232_v7 = vpop.f32.mrb[169].mxu0  ;;  %v2744_v8 = vpop.f32.mrb[169].mxu1 }
 0x276   : > { %4607 = vtanh.f32 %v2742_v6  ;;  %v2233_v9 = vpop.f32.mrb[170].mxu0  ;;  %v2745_v10 = vpop.f32.mrb[170].mxu1 }
 0x277   : > { %v4598_v11 = vpop.eup %4597  ;;  %4609 = vtanh.f32 %v2233_v9  ;;  %v2235_v12 = vpop.f32.mrb[171].mxu0 }
 0x278   : > { %v2747_v13 = vpop.f32.mrb[171].mxu1  ;;  %v4600_v14 = vpop.eup %4599  ;;  %3255 = vst [vmem:[%s5022_s23 + $0x290] sm:$0xff] %v4598_v11  ;;  %4611 = vtanh.f32 %v2745_v10 }
 0x279   : > { %v4602_v15 = vpop.eup %4601  ;;  %3383 = vst [vmem:[%s5022_s23 + $0x690] sm:$0xff] %v4600_v14 }
 0x27a   : > { %v4604_v16 = vpop.eup %4603  ;;  %3256 = vst [vmem:[%s5022_s23 + $0x298] sm:$0xff] %v4602_v15 }
 0x27b   : > { %3384 = vst [vmem:[%s5022_s23 + $0x698] sm:$0xff] %v4604_v16 }
 0x27c   : > { %v2238_v17 = vpop.f32.mrb[172].mxu0  ;;  %v2750_v18 = vpop.f32.mrb[172].mxu1 }
 0x27d   : > { %4613 = vtanh.f32 %v2238_v17  ;;  %v2240_v19 = vpop.f32.mrb[173].mxu0  ;;  %v2752_v20 = vpop.f32.mrb[173].mxu1 }
 0x27e   : > { %4615 = vtanh.f32 %v2750_v18  ;;  %v2241_v21 = vpop.f32.mrb[174].mxu0  ;;  %v2753_v22 = vpop.f32.mrb[174].mxu1 }
 0x27f   : > { %v4606_v23 = vpop.eup %4605  ;;  %4617 = vtanh.f32 %v2241_v21  ;;  %v2243_v24 = vpop.f32.mrb[175].mxu0 }
 0x280   : > { %v2755_v25 = vpop.f32.mrb[175].mxu1  ;;  %v4608_v26 = vpop.eup %4607  ;;  %3257 = vst [vmem:[%s5022_s23 + $0x2a0] sm:$0xff] %v4606_v23  ;;  %4619 = vtanh.f32 %v2753_v22 }
 0x281   : > { %v4610_v27 = vpop.eup %4609  ;;  %3385 = vst [vmem:[%s5022_s23 + $0x6a0] sm:$0xff] %v4608_v26 }
 0x282   : > { %v4612_v28 = vpop.eup %4611  ;;  %3258 = vst [vmem:[%s5022_s23 + $0x2a8] sm:$0xff] %v4610_v27 }
 0x283   : > { %3386 = vst [vmem:[%s5022_s23 + $0x6a8] sm:$0xff] %v4612_v28 }
 0x284   : > { %v2246_v29 = vpop.f32.mrb[176].mxu0  ;;  %v2758_v30 = vpop.f32.mrb[176].mxu1 }
 0x285   : > { %4621 = vtanh.f32 %v2246_v29  ;;  %v2248_v31 = vpop.f32.mrb[177].mxu0  ;;  %v2760_v32 = vpop.f32.mrb[177].mxu1 }
 0x286   : > { %4623 = vtanh.f32 %v2758_v30  ;;  %v2249_v33 = vpop.f32.mrb[178].mxu0  ;;  %v2761_v34 = vpop.f32.mrb[178].mxu1 }
 0x287   : > { %v4614_v35 = vpop.eup %4613  ;;  %4625 = vtanh.f32 %v2249_v33  ;;  %v2251_v36 = vpop.f32.mrb[179].mxu0 }
 0x288   : > { %v2763_v37 = vpop.f32.mrb[179].mxu1  ;;  %v4616_v38 = vpop.eup %4615  ;;  %3259 = vst [vmem:[%s5022_s23 + $0x2b0] sm:$0xff] %v4614_v35  ;;  %4627 = vtanh.f32 %v2761_v34 }
 0x289   : > { %v4618_v39 = vpop.eup %4617  ;;  %3387 = vst [vmem:[%s5022_s23 + $0x6b0] sm:$0xff] %v4616_v38 }
 0x28a   : > { %v4620_v40 = vpop.eup %4619  ;;  %3260 = vst [vmem:[%s5022_s23 + $0x2b8] sm:$0xff] %v4618_v39 }
 0x28b   : > { %3388 = vst [vmem:[%s5022_s23 + $0x6b8] sm:$0xff] %v4620_v40 }
 0x28c   : > { %v2254_v41 = vpop.f32.mrb[180].mxu0  ;;  %v2766_v42 = vpop.f32.mrb[180].mxu1 }
 0x28d   : > { %4629 = vtanh.f32 %v2254_v41  ;;  %v2256_v43 = vpop.f32.mrb[181].mxu0  ;;  %v2768_v44 = vpop.f32.mrb[181].mxu1 }
 0x28e   : > { %4631 = vtanh.f32 %v2766_v42  ;;  %v2257_v45 = vpop.f32.mrb[182].mxu0  ;;  %v2769_v46 = vpop.f32.mrb[182].mxu1 }
 0x28f   : > { %v4622_v47 = vpop.eup %4621  ;;  %4633 = vtanh.f32 %v2257_v45  ;;  %v2259_v48 = vpop.f32.mrb[183].mxu0 }
 0x290   : > { %v2771_v49 = vpop.f32.mrb[183].mxu1  ;;  %v4624_v50 = vpop.eup %4623  ;;  %3261 = vst [vmem:[%s5022_s23 + $0x2c0] sm:$0xff] %v4622_v47  ;;  %4635 = vtanh.f32 %v2769_v46 }
 0x291   : > { %v4626_v51 = vpop.eup %4625  ;;  %3389 = vst [vmem:[%s5022_s23 + $0x6c0] sm:$0xff] %v4624_v50 }
 0x292   : > { %v4628_v52 = vpop.eup %4627  ;;  %3262 = vst [vmem:[%s5022_s23 + $0x2c8] sm:$0xff] %v4626_v51 }
 0x293   : > { %3390 = vst [vmem:[%s5022_s23 + $0x6c8] sm:$0xff] %v4628_v52 }
 0x294   : > { %v2262_v53 = vpop.f32.mrb[184].mxu0  ;;  %v2774_v54 = vpop.f32.mrb[184].mxu1 }
 0x295   : > { %4637 = vtanh.f32 %v2262_v53  ;;  %v2264_v55 = vpop.f32.mrb[185].mxu0  ;;  %v2776_v56 = vpop.f32.mrb[185].mxu1 }
 0x296   : > { %4639 = vtanh.f32 %v2774_v54  ;;  %v2265_v57 = vpop.f32.mrb[186].mxu0  ;;  %v2777_v58 = vpop.f32.mrb[186].mxu1 }
 0x297   : > { %v4630_v59 = vpop.eup %4629  ;;  %4641 = vtanh.f32 %v2265_v57  ;;  %v2267_v60 = vpop.f32.mrb[187].mxu0 }
 0x298   : > { %v2779_v61 = vpop.f32.mrb[187].mxu1  ;;  %v4632_v62 = vpop.eup %4631  ;;  %3263 = vst [vmem:[%s5022_s23 + $0x2d0] sm:$0xff] %v4630_v59  ;;  %4643 = vtanh.f32 %v2777_v58 }
 0x299   : > { %v4634_v63 = vpop.eup %4633  ;;  %3391 = vst [vmem:[%s5022_s23 + $0x6d0] sm:$0xff] %v4632_v62 }
 0x29a   : > { %v4636_v0 = vpop.eup %4635  ;;  %3264 = vst [vmem:[%s5022_s23 + $0x2d8] sm:$0xff] %v4634_v63 }
 0x29b   : > { %3392 = vst [vmem:[%s5022_s23 + $0x6d8] sm:$0xff] %v4636_v0 }
 0x29c   : > { %v2270_v1 = vpop.f32.mrb[188].mxu0  ;;  %v2782_v2 = vpop.f32.mrb[188].mxu1 }
 0x29d   : > { %4645 = vtanh.f32 %v2270_v1  ;;  %v2272_v3 = vpop.f32.mrb[189].mxu0  ;;  %v2784_v4 = vpop.f32.mrb[189].mxu1 }
 0x29e   : > { %4647 = vtanh.f32 %v2782_v2  ;;  %v2273_v5 = vpop.f32.mrb[190].mxu0  ;;  %v2785_v6 = vpop.f32.mrb[190].mxu1 }
 0x29f   : > { %v4638_v7 = vpop.eup %4637  ;;  %4649 = vtanh.f32 %v2273_v5  ;;  %v2275_v8 = vpop.f32.mrb[191].mxu0 }
 0x2a0   : > { %v2787_v9 = vpop.f32.mrb[191].mxu1  ;;  %v4640_v10 = vpop.eup %4639  ;;  %3265 = vst [vmem:[%s5022_s23 + $0x2e0] sm:$0xff] %v4638_v7  ;;  %4651 = vtanh.f32 %v2785_v6 }
 0x2a1   : > { %v4642_v11 = vpop.eup %4641  ;;  %3393 = vst [vmem:[%s5022_s23 + $0x6e0] sm:$0xff] %v4640_v10 }
 0x2a2   : > { %v4644_v12 = vpop.eup %4643  ;;  %3266 = vst [vmem:[%s5022_s23 + $0x2e8] sm:$0xff] %v4642_v11 }
 0x2a3   : > { %3394 = vst [vmem:[%s5022_s23 + $0x6e8] sm:$0xff] %v4644_v12 }
 0x2a4   : > { %v2278_v13 = vpop.f32.mrb[192].mxu0  ;;  %v2790_v14 = vpop.f32.mrb[192].mxu1 }
 0x2a5   : > { %4653 = vtanh.f32 %v2278_v13  ;;  %v2280_v15 = vpop.f32.mrb[193].mxu0  ;;  %v2792_v16 = vpop.f32.mrb[193].mxu1 }
 0x2a6   : > { %4655 = vtanh.f32 %v2790_v14  ;;  %v2281_v17 = vpop.f32.mrb[194].mxu0  ;;  %v2793_v18 = vpop.f32.mrb[194].mxu1 }
 0x2a7   : > { %v4646_v19 = vpop.eup %4645  ;;  %4657 = vtanh.f32 %v2281_v17  ;;  %v2283_v20 = vpop.f32.mrb[195].mxu0 }
 0x2a8   : > { %v2795_v21 = vpop.f32.mrb[195].mxu1  ;;  %v4648_v22 = vpop.eup %4647  ;;  %3267 = vst [vmem:[%s5022_s23 + $0x2f0] sm:$0xff] %v4646_v19  ;;  %4659 = vtanh.f32 %v2793_v18 }
 0x2a9   : > { %v4650_v23 = vpop.eup %4649  ;;  %3395 = vst [vmem:[%s5022_s23 + $0x6f0] sm:$0xff] %v4648_v22 }
 0x2aa   : > { %v4652_v24 = vpop.eup %4651  ;;  %3268 = vst [vmem:[%s5022_s23 + $0x2f8] sm:$0xff] %v4650_v23 }
 0x2ab   : > { %3396 = vst [vmem:[%s5022_s23 + $0x6f8] sm:$0xff] %v4652_v24 }
 0x2ac   : > { %v2286_v25 = vpop.f32.mrb[196].mxu0  ;;  %v2798_v26 = vpop.f32.mrb[196].mxu1 }
 0x2ad   : > { %4661 = vtanh.f32 %v2286_v25  ;;  %v2288_v27 = vpop.f32.mrb[197].mxu0  ;;  %v2800_v28 = vpop.f32.mrb[197].mxu1 }
 0x2ae   : > { %4663 = vtanh.f32 %v2798_v26  ;;  %v2289_v29 = vpop.f32.mrb[198].mxu0  ;;  %v2801_v30 = vpop.f32.mrb[198].mxu1 }
 0x2af   : > { %v4654_v31 = vpop.eup %4653  ;;  %4665 = vtanh.f32 %v2289_v29  ;;  %v2291_v32 = vpop.f32.mrb[199].mxu0 }
 0x2b0   : > { %v2803_v33 = vpop.f32.mrb[199].mxu1  ;;  %v4656_v34 = vpop.eup %4655  ;;  %3269 = vst [vmem:[%s5022_s23 + $0x300] sm:$0xff] %v4654_v31  ;;  %4667 = vtanh.f32 %v2801_v30 }
 0x2b1   : > { %v4658_v35 = vpop.eup %4657  ;;  %3397 = vst [vmem:[%s5022_s23 + $0x700] sm:$0xff] %v4656_v34 }
 0x2b2   : > { %v4660_v36 = vpop.eup %4659  ;;  %3270 = vst [vmem:[%s5022_s23 + $0x308] sm:$0xff] %v4658_v35 }
 0x2b3   : > { %3398 = vst [vmem:[%s5022_s23 + $0x708] sm:$0xff] %v4660_v36 }
 0x2b4   : > { %v2294_v37 = vpop.f32.mrb[200].mxu0  ;;  %v2806_v38 = vpop.f32.mrb[200].mxu1 }
 0x2b5   : > { %4669 = vtanh.f32 %v2294_v37  ;;  %v2296_v39 = vpop.f32.mrb[201].mxu0  ;;  %v2808_v40 = vpop.f32.mrb[201].mxu1 }
 0x2b6   : > { %4671 = vtanh.f32 %v2806_v38  ;;  %v2297_v41 = vpop.f32.mrb[202].mxu0  ;;  %v2809_v42 = vpop.f32.mrb[202].mxu1 }
 0x2b7   : > { %v4662_v43 = vpop.eup %4661  ;;  %4673 = vtanh.f32 %v2297_v41  ;;  %v2299_v44 = vpop.f32.mrb[203].mxu0 }
 0x2b8   : > { %v2811_v45 = vpop.f32.mrb[203].mxu1  ;;  %v4664_v46 = vpop.eup %4663  ;;  %3271 = vst [vmem:[%s5022_s23 + $0x310] sm:$0xff] %v4662_v43  ;;  %4675 = vtanh.f32 %v2809_v42 }
 0x2b9   : > { %v4666_v47 = vpop.eup %4665  ;;  %3399 = vst [vmem:[%s5022_s23 + $0x710] sm:$0xff] %v4664_v46 }
 0x2ba   : > { %v4668_v48 = vpop.eup %4667  ;;  %3272 = vst [vmem:[%s5022_s23 + $0x318] sm:$0xff] %v4666_v47 }
 0x2bb   : > { %3400 = vst [vmem:[%s5022_s23 + $0x718] sm:$0xff] %v4668_v48 }
 0x2bc   : > { %v2302_v49 = vpop.f32.mrb[204].mxu0  ;;  %v2814_v50 = vpop.f32.mrb[204].mxu1 }
 0x2bd   : > { %4677 = vtanh.f32 %v2302_v49  ;;  %v2304_v51 = vpop.f32.mrb[205].mxu0  ;;  %v2816_v52 = vpop.f32.mrb[205].mxu1 }
 0x2be   : > { %4679 = vtanh.f32 %v2814_v50  ;;  %v2305_v53 = vpop.f32.mrb[206].mxu0  ;;  %v2817_v54 = vpop.f32.mrb[206].mxu1 }
 0x2bf   : > { %v4670_v55 = vpop.eup %4669  ;;  %4681 = vtanh.f32 %v2305_v53  ;;  %v2307_v56 = vpop.f32.mrb[207].mxu0 }
 0x2c0   : > { %v2819_v57 = vpop.f32.mrb[207].mxu1  ;;  %v4672_v58 = vpop.eup %4671  ;;  %3273 = vst [vmem:[%s5022_s23 + $0x320] sm:$0xff] %v4670_v55  ;;  %4683 = vtanh.f32 %v2817_v54 }
 0x2c1   : > { %v4674_v59 = vpop.eup %4673  ;;  %3401 = vst [vmem:[%s5022_s23 + $0x720] sm:$0xff] %v4672_v58 }
 0x2c2   : > { %v4676_v60 = vpop.eup %4675  ;;  %3274 = vst [vmem:[%s5022_s23 + $0x328] sm:$0xff] %v4674_v59 }
 0x2c3   : > { %3402 = vst [vmem:[%s5022_s23 + $0x728] sm:$0xff] %v4676_v60 }
 0x2c4   : > { %v2310_v61 = vpop.f32.mrb[208].mxu0  ;;  %v2822_v62 = vpop.f32.mrb[208].mxu1 }
 0x2c5   : > { %4685 = vtanh.f32 %v2310_v61  ;;  %v2312_v63 = vpop.f32.mrb[209].mxu0  ;;  %v2824_v0 = vpop.f32.mrb[209].mxu1 }
 0x2c6   : > { %4687 = vtanh.f32 %v2822_v62  ;;  %v2313_v1 = vpop.f32.mrb[210].mxu0  ;;  %v2825_v2 = vpop.f32.mrb[210].mxu1 }
 0x2c7   : > { %v4678_v3 = vpop.eup %4677  ;;  %4689 = vtanh.f32 %v2313_v1  ;;  %v2315_v4 = vpop.f32.mrb[211].mxu0 }
 0x2c8   : > { %v2827_v5 = vpop.f32.mrb[211].mxu1  ;;  %v4680_v6 = vpop.eup %4679  ;;  %3275 = vst [vmem:[%s5022_s23 + $0x330] sm:$0xff] %v4678_v3  ;;  %4691 = vtanh.f32 %v2825_v2 }
 0x2c9   : > { %v4682_v7 = vpop.eup %4681  ;;  %3403 = vst [vmem:[%s5022_s23 + $0x730] sm:$0xff] %v4680_v6 }
 0x2ca   : > { %v4684_v8 = vpop.eup %4683  ;;  %3276 = vst [vmem:[%s5022_s23 + $0x338] sm:$0xff] %v4682_v7 }
 0x2cb   : > { %3404 = vst [vmem:[%s5022_s23 + $0x738] sm:$0xff] %v4684_v8 }
 0x2cc   : > { %v2318_v9 = vpop.f32.mrb[212].mxu0  ;;  %v2830_v10 = vpop.f32.mrb[212].mxu1 }
 0x2cd   : > { %4693 = vtanh.f32 %v2318_v9  ;;  %v2320_v11 = vpop.f32.mrb[213].mxu0  ;;  %v2832_v12 = vpop.f32.mrb[213].mxu1 }
 0x2ce   : > { %4695 = vtanh.f32 %v2830_v10  ;;  %v2321_v13 = vpop.f32.mrb[214].mxu0  ;;  %v2833_v14 = vpop.f32.mrb[214].mxu1 }
 0x2cf   : > { %v4686_v15 = vpop.eup %4685  ;;  %4697 = vtanh.f32 %v2321_v13  ;;  %v2323_v16 = vpop.f32.mrb[215].mxu0 }
 0x2d0   : > { %v2835_v17 = vpop.f32.mrb[215].mxu1  ;;  %v4688_v18 = vpop.eup %4687  ;;  %3277 = vst [vmem:[%s5022_s23 + $0x340] sm:$0xff] %v4686_v15  ;;  %4699 = vtanh.f32 %v2833_v14 }
 0x2d1   : > { %v4690_v19 = vpop.eup %4689  ;;  %3405 = vst [vmem:[%s5022_s23 + $0x740] sm:$0xff] %v4688_v18 }
 0x2d2   : > { %v4692_v20 = vpop.eup %4691  ;;  %3278 = vst [vmem:[%s5022_s23 + $0x348] sm:$0xff] %v4690_v19 }
 0x2d3   : > { %3406 = vst [vmem:[%s5022_s23 + $0x748] sm:$0xff] %v4692_v20 }
 0x2d4   : > { %v2326_v21 = vpop.f32.mrb[216].mxu0  ;;  %v2838_v22 = vpop.f32.mrb[216].mxu1 }
 0x2d5   : > { %4701 = vtanh.f32 %v2326_v21  ;;  %v2328_v23 = vpop.f32.mrb[217].mxu0  ;;  %v2840_v24 = vpop.f32.mrb[217].mxu1 }
 0x2d6   : > { %4703 = vtanh.f32 %v2838_v22  ;;  %v2329_v25 = vpop.f32.mrb[218].mxu0  ;;  %v2841_v26 = vpop.f32.mrb[218].mxu1 }
 0x2d7   : > { %v4694_v27 = vpop.eup %4693  ;;  %4705 = vtanh.f32 %v2329_v25  ;;  %v2331_v28 = vpop.f32.mrb[219].mxu0 }
 0x2d8   : > { %v2843_v29 = vpop.f32.mrb[219].mxu1  ;;  %v4696_v30 = vpop.eup %4695  ;;  %3279 = vst [vmem:[%s5022_s23 + $0x350] sm:$0xff] %v4694_v27  ;;  %4707 = vtanh.f32 %v2841_v26 }
 0x2d9   : > { %v4698_v31 = vpop.eup %4697  ;;  %3407 = vst [vmem:[%s5022_s23 + $0x750] sm:$0xff] %v4696_v30 }
 0x2da   : > { %v4700_v32 = vpop.eup %4699  ;;  %3280 = vst [vmem:[%s5022_s23 + $0x358] sm:$0xff] %v4698_v31 }
 0x2db   : > { %3408 = vst [vmem:[%s5022_s23 + $0x758] sm:$0xff] %v4700_v32 }
 0x2dc   : > { %v2334_v33 = vpop.f32.mrb[220].mxu0  ;;  %v2846_v34 = vpop.f32.mrb[220].mxu1 }
 0x2dd   : > { %4709 = vtanh.f32 %v2334_v33  ;;  %v2336_v35 = vpop.f32.mrb[221].mxu0  ;;  %v2848_v36 = vpop.f32.mrb[221].mxu1 }
 0x2de   : > { %4711 = vtanh.f32 %v2846_v34  ;;  %v2337_v37 = vpop.f32.mrb[222].mxu0  ;;  %v2849_v38 = vpop.f32.mrb[222].mxu1 }
 0x2df   : > { %v4702_v39 = vpop.eup %4701  ;;  %4713 = vtanh.f32 %v2337_v37  ;;  %v2339_v40 = vpop.f32.mrb[223].mxu0 }
 0x2e0   : > { %v2851_v41 = vpop.f32.mrb[223].mxu1  ;;  %v4704_v42 = vpop.eup %4703  ;;  %3281 = vst [vmem:[%s5022_s23 + $0x360] sm:$0xff] %v4702_v39  ;;  %4715 = vtanh.f32 %v2849_v38 }
 0x2e1   : > { %v4706_v43 = vpop.eup %4705  ;;  %3409 = vst [vmem:[%s5022_s23 + $0x760] sm:$0xff] %v4704_v42 }
 0x2e2   : > { %v4708_v44 = vpop.eup %4707  ;;  %3282 = vst [vmem:[%s5022_s23 + $0x368] sm:$0xff] %v4706_v43 }
 0x2e3   : > { %3410 = vst [vmem:[%s5022_s23 + $0x768] sm:$0xff] %v4708_v44 }
 0x2e4   : > { %v2342_v45 = vpop.f32.mrb[224].mxu0  ;;  %v2854_v46 = vpop.f32.mrb[224].mxu1 }
 0x2e5   : > { %4717 = vtanh.f32 %v2342_v45  ;;  %v2344_v47 = vpop.f32.mrb[225].mxu0  ;;  %v2856_v48 = vpop.f32.mrb[225].mxu1 }
 0x2e6   : > { %4719 = vtanh.f32 %v2854_v46  ;;  %v2345_v49 = vpop.f32.mrb[226].mxu0  ;;  %v2857_v50 = vpop.f32.mrb[226].mxu1 }
 0x2e7   : > { %v4710_v51 = vpop.eup %4709  ;;  %4721 = vtanh.f32 %v2345_v49  ;;  %v2347_v52 = vpop.f32.mrb[227].mxu0 }
 0x2e8   : > { %v2859_v53 = vpop.f32.mrb[227].mxu1  ;;  %v4712_v54 = vpop.eup %4711  ;;  %3283 = vst [vmem:[%s5022_s23 + $0x370] sm:$0xff] %v4710_v51  ;;  %4723 = vtanh.f32 %v2857_v50 }
 0x2e9   : > { %v4714_v55 = vpop.eup %4713  ;;  %3411 = vst [vmem:[%s5022_s23 + $0x770] sm:$0xff] %v4712_v54 }
 0x2ea   : > { %v4716_v56 = vpop.eup %4715  ;;  %3284 = vst [vmem:[%s5022_s23 + $0x378] sm:$0xff] %v4714_v55 }
 0x2eb   : > { %3412 = vst [vmem:[%s5022_s23 + $0x778] sm:$0xff] %v4716_v56 }
 0x2ec   : > { %v2350_v57 = vpop.f32.mrb[228].mxu0  ;;  %v2862_v58 = vpop.f32.mrb[228].mxu1 }
 0x2ed   : > { %4725 = vtanh.f32 %v2350_v57  ;;  %v2352_v59 = vpop.f32.mrb[229].mxu0  ;;  %v2864_v60 = vpop.f32.mrb[229].mxu1 }
 0x2ee   : > { %4727 = vtanh.f32 %v2862_v58  ;;  %v2353_v61 = vpop.f32.mrb[230].mxu0  ;;  %v2865_v62 = vpop.f32.mrb[230].mxu1 }
 0x2ef   : > { %v4718_v63 = vpop.eup %4717  ;;  %4729 = vtanh.f32 %v2353_v61  ;;  %v2355_v0 = vpop.f32.mrb[231].mxu0 }
 0x2f0   : > { %v2867_v1 = vpop.f32.mrb[231].mxu1  ;;  %v4720_v2 = vpop.eup %4719  ;;  %3285 = vst [vmem:[%s5022_s23 + $0x380] sm:$0xff] %v4718_v63  ;;  %4731 = vtanh.f32 %v2865_v62 }
 0x2f1   : > { %v4722_v3 = vpop.eup %4721  ;;  %3413 = vst [vmem:[%s5022_s23 + $0x780] sm:$0xff] %v4720_v2 }
 0x2f2   : > { %v4724_v4 = vpop.eup %4723  ;;  %3286 = vst [vmem:[%s5022_s23 + $0x388] sm:$0xff] %v4722_v3 }
 0x2f3   : > { %3414 = vst [vmem:[%s5022_s23 + $0x788] sm:$0xff] %v4724_v4 }
 0x2f4   : > { %v2358_v5 = vpop.f32.mrb[232].mxu0  ;;  %v2870_v6 = vpop.f32.mrb[232].mxu1 }
 0x2f5   : > { %4733 = vtanh.f32 %v2358_v5  ;;  %v2360_v7 = vpop.f32.mrb[233].mxu0  ;;  %v2872_v8 = vpop.f32.mrb[233].mxu1 }
 0x2f6   : > { %4735 = vtanh.f32 %v2870_v6  ;;  %v2361_v9 = vpop.f32.mrb[234].mxu0  ;;  %v2873_v10 = vpop.f32.mrb[234].mxu1 }
 0x2f7   : > { %v4726_v11 = vpop.eup %4725  ;;  %4737 = vtanh.f32 %v2361_v9  ;;  %v2363_v12 = vpop.f32.mrb[235].mxu0 }
 0x2f8   : > { %v2875_v13 = vpop.f32.mrb[235].mxu1  ;;  %v4728_v14 = vpop.eup %4727  ;;  %3287 = vst [vmem:[%s5022_s23 + $0x390] sm:$0xff] %v4726_v11  ;;  %4739 = vtanh.f32 %v2873_v10 }
 0x2f9   : > { %v4730_v15 = vpop.eup %4729  ;;  %3415 = vst [vmem:[%s5022_s23 + $0x790] sm:$0xff] %v4728_v14 }
 0x2fa   : > { %v4732_v16 = vpop.eup %4731  ;;  %3288 = vst [vmem:[%s5022_s23 + $0x398] sm:$0xff] %v4730_v15 }
 0x2fb   : > { %3416 = vst [vmem:[%s5022_s23 + $0x798] sm:$0xff] %v4732_v16 }
 0x2fc   : > { %v2366_v17 = vpop.f32.mrb[236].mxu0  ;;  %v2878_v18 = vpop.f32.mrb[236].mxu1 }
 0x2fd   : > { %4741 = vtanh.f32 %v2366_v17  ;;  %v2368_v19 = vpop.f32.mrb[237].mxu0  ;;  %v2880_v20 = vpop.f32.mrb[237].mxu1 }
 0x2fe   : > { %4743 = vtanh.f32 %v2878_v18  ;;  %v2369_v21 = vpop.f32.mrb[238].mxu0  ;;  %v2881_v22 = vpop.f32.mrb[238].mxu1 }
 0x2ff   : > { %v4734_v23 = vpop.eup %4733  ;;  %4745 = vtanh.f32 %v2369_v21  ;;  %v2371_v24 = vpop.f32.mrb[239].mxu0 }
 0x300   : > { %v2883_v25 = vpop.f32.mrb[239].mxu1  ;;  %v4736_v26 = vpop.eup %4735  ;;  %3289 = vst [vmem:[%s5022_s23 + $0x3a0] sm:$0xff] %v4734_v23  ;;  %4747 = vtanh.f32 %v2881_v22 }
 0x301   : > { %v4738_v27 = vpop.eup %4737  ;;  %3417 = vst [vmem:[%s5022_s23 + $0x7a0] sm:$0xff] %v4736_v26 }
 0x302   : > { %v4740_v28 = vpop.eup %4739  ;;  %3290 = vst [vmem:[%s5022_s23 + $0x3a8] sm:$0xff] %v4738_v27 }
 0x303   : > { %3418 = vst [vmem:[%s5022_s23 + $0x7a8] sm:$0xff] %v4740_v28 }
 0x304   : > { %v2374_v29 = vpop.f32.mrb[240].mxu0  ;;  %v2886_v30 = vpop.f32.mrb[240].mxu1 }
 0x305   : > { %4749 = vtanh.f32 %v2374_v29  ;;  %v2376_v31 = vpop.f32.mrb[241].mxu0  ;;  %v2888_v32 = vpop.f32.mrb[241].mxu1 }
 0x306   : > { %4751 = vtanh.f32 %v2886_v30  ;;  %v2377_v33 = vpop.f32.mrb[242].mxu0  ;;  %v2889_v34 = vpop.f32.mrb[242].mxu1 }
 0x307   : > { %v4742_v35 = vpop.eup %4741  ;;  %4753 = vtanh.f32 %v2377_v33  ;;  %v2379_v36 = vpop.f32.mrb[243].mxu0 }
 0x308   : > { %v2891_v37 = vpop.f32.mrb[243].mxu1  ;;  %v4744_v38 = vpop.eup %4743  ;;  %3291 = vst [vmem:[%s5022_s23 + $0x3b0] sm:$0xff] %v4742_v35  ;;  %4755 = vtanh.f32 %v2889_v34 }
 0x309   : > { %v4746_v39 = vpop.eup %4745  ;;  %3419 = vst [vmem:[%s5022_s23 + $0x7b0] sm:$0xff] %v4744_v38 }
 0x30a   : > { %v4748_v40 = vpop.eup %4747  ;;  %3292 = vst [vmem:[%s5022_s23 + $0x3b8] sm:$0xff] %v4746_v39 }
 0x30b   : > { %3420 = vst [vmem:[%s5022_s23 + $0x7b8] sm:$0xff] %v4748_v40 }
 0x30c   : > { %v2382_v41 = vpop.f32.mrb[244].mxu0  ;;  %v2894_v42 = vpop.f32.mrb[244].mxu1 }
 0x30d   : > { %4757 = vtanh.f32 %v2382_v41  ;;  %v2384_v43 = vpop.f32.mrb[245].mxu0  ;;  %v2896_v44 = vpop.f32.mrb[245].mxu1 }
 0x30e   : > { %4759 = vtanh.f32 %v2894_v42  ;;  %v2385_v45 = vpop.f32.mrb[246].mxu0  ;;  %v2897_v46 = vpop.f32.mrb[246].mxu1 }
 0x30f   : > { %v4750_v47 = vpop.eup %4749  ;;  %4761 = vtanh.f32 %v2385_v45  ;;  %v2387_v48 = vpop.f32.mrb[247].mxu0 }
 0x310   : > { %v2899_v49 = vpop.f32.mrb[247].mxu1  ;;  %v4752_v50 = vpop.eup %4751  ;;  %3293 = vst [vmem:[%s5022_s23 + $0x3c0] sm:$0xff] %v4750_v47  ;;  %4763 = vtanh.f32 %v2897_v46 }
 0x311   : > { %v4754_v51 = vpop.eup %4753  ;;  %3421 = vst [vmem:[%s5022_s23 + $0x7c0] sm:$0xff] %v4752_v50 }
 0x312   : > { %v4756_v52 = vpop.eup %4755  ;;  %3294 = vst [vmem:[%s5022_s23 + $0x3c8] sm:$0xff] %v4754_v51 }
 0x313   : > { %3422 = vst [vmem:[%s5022_s23 + $0x7c8] sm:$0xff] %v4756_v52 }
 0x314   : > { %v2390_v53 = vpop.f32.mrb[248].mxu0  ;;  %v2902_v54 = vpop.f32.mrb[248].mxu1 }
 0x315   : > { %4765 = vtanh.f32 %v2390_v53  ;;  %v2392_v55 = vpop.f32.mrb[249].mxu0  ;;  %v2904_v56 = vpop.f32.mrb[249].mxu1 }
 0x316   : > { %4767 = vtanh.f32 %v2902_v54  ;;  %v2393_v57 = vpop.f32.mrb[250].mxu0  ;;  %v2905_v58 = vpop.f32.mrb[250].mxu1 }
 0x317   : > { %v4758_v59 = vpop.eup %4757  ;;  %4769 = vtanh.f32 %v2393_v57  ;;  %v2395_v60 = vpop.f32.mrb[251].mxu0 }
 0x318   : > { %v2907_v61 = vpop.f32.mrb[251].mxu1  ;;  %v4760_v62 = vpop.eup %4759  ;;  %3295 = vst [vmem:[%s5022_s23 + $0x3d0] sm:$0xff] %v4758_v59  ;;  %4771 = vtanh.f32 %v2905_v58 }
 0x319   : > { %v4762_v63 = vpop.eup %4761  ;;  %3423 = vst [vmem:[%s5022_s23 + $0x7d0] sm:$0xff] %v4760_v62 }
 0x31a   : > { %v4764_v0 = vpop.eup %4763  ;;  %3296 = vst [vmem:[%s5022_s23 + $0x3d8] sm:$0xff] %v4762_v63 }
 0x31b   : > { %3424 = vst [vmem:[%s5022_s23 + $0x7d8] sm:$0xff] %v4764_v0 }
 0x31c   : > { %v2398_v1 = vpop.f32.mrb[252].mxu0  ;;  %v2910_v2 = vpop.f32.mrb[252].mxu1 }
 0x31d   : > { %4773 = vtanh.f32 %v2398_v1  ;;  %v2400_v3 = vpop.f32.mrb[253].mxu0  ;;  %v2912_v4 = vpop.f32.mrb[253].mxu1 }
 0x31e   : > { %4775 = vtanh.f32 %v2910_v2  ;;  %v2401_v5 = vpop.f32.mrb[254].mxu0  ;;  %v2913_v6 = vpop.f32.mrb[254].mxu1 }
 0x31f   : > { %v4766_v7 = vpop.eup %4765  ;;  %4777 = vtanh.f32 %v2401_v5  ;;  %v2403_v8 = vpop.f32.mrb[255].mxu0 }
 0x320   : > { %v2915_v9 = vpop.f32.mrb[255].mxu1  ;;  %v4768_v10 = vpop.eup %4767  ;;  %3297 = vst [vmem:[%s5022_s23 + $0x3e0] sm:$0xff] %v4766_v7  ;;  %4779 = vtanh.f32 %v2913_v6 }
 0x321   : > { %v4770_v11 = vpop.eup %4769  ;;  %3425 = vst [vmem:[%s5022_s23 + $0x7e0] sm:$0xff] %v4768_v10 }
 0x322   : > { %v4772_v12 = vpop.eup %4771  ;;  %3298 = vst [vmem:[%s5022_s23 + $0x3e8] sm:$0xff] %v4770_v11 }
 0x323   : > { %3426 = vst [vmem:[%s5022_s23 + $0x7e8] sm:$0xff] %v4772_v12 }
 0x327   : > { %v4774_v13 = vpop.eup %4773 }
 0x328   : > { %v4776_v14 = vpop.eup %4775  ;;  %3299 = vst [vmem:[%s5022_s23 + $0x3f0] sm:$0xff] %v4774_v13 }
 0x329   : > { %v4778_v15 = vpop.eup %4777  ;;  %3427 = vst [vmem:[%s5022_s23 + $0x7f0] sm:$0xff] %v4776_v14 }
 0x32a   : > { %v4780_v16 = vpop.eup %4779  ;;  %3300 = vst [vmem:[%s5022_s23 + $0x3f8] sm:$0xff] %v4778_v15 }
 0x32b   : > { %3428 = vst [vmem:[%s5022_s23 + $0x7f8] sm:$0xff] %v4780_v16 }
 0x32c PF: > { %s12_s11 = sadd.s32 1, %s4803_s11   ;;  %s5434_s9 = smov %s4799_s10 }
 0x32d   : > { %p9_p5 = scmp.ge.s32.totalorder %s12_s11, 6   ;;  %s5435_s10 = smov %s5437_s12 }
 0x32f   :  { %11 = sbr.rel (!%p9_p5) target bundleno = 2 (0x2), region = 61 }

</bundles_post_ra>
